<compile_context>
chip_gen: v6e
topology: v6e:2x2x1
jax: 0.10.0
libtpu: 0.0.40
codegen_flags: <defaults>
</compile_context>

<pallas_src>
import functools

import jax
import jax.numpy as jnp
from jax.experimental import pallas as pl
from jax.experimental.pallas import tpu as pltpu


def _round_up(x, m):
    return (x + m - 1) // m * m


# FC1 tiling (the dominant, memory-bound layer). fc1_w is pre-padded along K to a
# multiple of _FC1_TK once at param-prep time.
_FC1_TM, _FC1_TN, _FC1_TK = 8, 512, 2048

_VMEM_LIMIT = 64 * 1024 * 1024
_COMPILER_PARAMS_2D = pltpu.CompilerParams(
    dimension_semantics=("parallel", "parallel"),
    vmem_limit_bytes=_VMEM_LIMIT,
)
_COMPILER_PARAMS_3D = pltpu.CompilerParams(
    dimension_semantics=("parallel", "parallel", "arbitrary"),
    vmem_limit_bytes=_VMEM_LIMIT,
)


# ---------------------------------------------------------------------------
# Fused matmul + bias + (optional) ReLU kernels: y = act(x @ w + b)
# ---------------------------------------------------------------------------
def _matmul_single_k_kernel(x_ref, w_ref, b_ref, o_ref, *, apply_relu):
    # Whole K fits in one block: no accumulator scratch needed.
    r = jnp.dot(x_ref[...], w_ref[...].astype(jnp.float32),
                preferred_element_type=jnp.float32) + b_ref[...]
    if apply_relu:
        r = jnp.maximum(r, 0.0)
    o_ref[...] = r.astype(o_ref.dtype)


def _matmul_multi_k_kernel(x_ref, w_ref, b_ref, o_ref, acc_ref, *, apply_relu):
    @pl.when(pl.program_id(2) == 0)
    def _():
        acc_ref[...] = jnp.zeros_like(acc_ref)

    acc_ref[...] += jnp.dot(x_ref[...], w_ref[...].astype(jnp.float32),
                            preferred_element_type=jnp.float32)

    @pl.when(pl.program_id(2) == pl.num_programs(2) - 1)
    def _():
        r = acc_ref[...] + b_ref[...]
        if apply_relu:
            r = jnp.maximum(r, 0.0)
        o_ref[...] = r.astype(o_ref.dtype)


def matmul_bias_act(x, w, b, *, apply_relu, tm, tn, tk):
    """y = act(x @ w + b).

    x: (M, K) f32.  w: (Kw, N) with Kw >= K (weights may arrive pre-padded along K).
    b: (N,) or (1, N).  Returns (M, N) f32.  Zero-padded K rows/cols contribute 0;
    padded M/N rows/cols are sliced off.
    """
    M, K = x.shape
    Kw, N = w.shape
    Mp = _round_up(M, tm)
    Kp = _round_up(Kw, tk)
    Np = _round_up(N, tn)

    x = x.astype(jnp.float32)
    if (Mp, Kp) != (M, K):
        # Only activations get padded per call (small); weights are pre-padded once.
        x = jnp.zeros((Mp, Kp), jnp.float32).at[:M, :K].set(x)
    if w.shape != (Kp, Np):
        # Fallback only; prepare_params already produces the padded layout.
        w = jnp.zeros((Kp, Np), w.dtype).at[:Kw, :N].set(w)
    b = b.reshape(1, -1).astype(jnp.float32)
    if b.shape != (1, Np):
        b = jnp.zeros((1, Np), jnp.float32).at[:, :N].set(b)

    kt = Kp // tk
    if kt == 1:
        out = pl.pallas_call(
            functools.partial(_matmul_single_k_kernel, apply_relu=apply_relu),
            out_shape=jax.ShapeDtypeStruct((Mp, Np), jnp.float32),
            grid_spec=pltpu.PrefetchScalarGridSpec(
                num_scalar_prefetch=0,
                grid=(Mp // tm, Np // tn),
                in_specs=[
                    pl.BlockSpec((tm, tk), lambda i, j: (i, 0)),
                    pl.BlockSpec((tk, tn), lambda i, j: (0, j)),
                    pl.BlockSpec((1, tn), lambda i, j: (0, j)),
                ],
                out_specs=pl.BlockSpec((tm, tn), lambda i, j: (i, j)),
            ),
            compiler_params=_COMPILER_PARAMS_2D,
        )(x, w, b)
    else:
        out = pl.pallas_call(
            functools.partial(_matmul_multi_k_kernel, apply_relu=apply_relu),
            out_shape=jax.ShapeDtypeStruct((Mp, Np), jnp.float32),
            grid_spec=pltpu.PrefetchScalarGridSpec(
                num_scalar_prefetch=0,
                grid=(Mp // tm, Np // tn, kt),
                in_specs=[
                    pl.BlockSpec((tm, tk), lambda i, j, k: (i, k)),
                    pl.BlockSpec((tk, tn), lambda i, j, k: (k, j)),
                    pl.BlockSpec((1, tn), lambda i, j, k: (0, j)),
                ],
                out_specs=pl.BlockSpec((tm, tn), lambda i, j, k: (i, j)),
                scratch_shapes=[pltpu.VMEM((tm, tn), jnp.float32)],
            ),
            compiler_params=_COMPILER_PARAMS_3D,
        )(x, w, b)

    if (Mp, Np) != (M, N):
        out = out[:M, :N]
    return out


# ---------------------------------------------------------------------------
# 2x2 max-pool: elementwise max of the four pooled taps on a lane-dense view
# ---------------------------------------------------------------------------
def _max4_kernel(a_ref, b_ref, c_ref, d_ref, o_ref):
    o_ref[...] = jnp.maximum(jnp.maximum(a_ref[...], b_ref[...]),
                             jnp.maximum(c_ref[...], d_ref[...]))


def maxpool2x2(x):
    """x: (N, H, W, C) NHWC with even H, W -> (N, H//2, W//2, C)."""
    N, H, W, C = x.shape
    total = N * (H // 2) * (W // 2) * C
    # Lane-dense (-1, 128) view so stores are full-width vst, not masked partials.
    lane = 128 if total % 128 == 0 else C
    a = x[:, 0::2, 0::2, :].reshape(-1, lane)
    b = x[:, 0::2, 1::2, :].reshape(-1, lane)
    c = x[:, 1::2, 0::2, :].reshape(-1, lane)
    d = x[:, 1::2, 1::2, :].reshape(-1, lane)
    out = pl.pallas_call(
        _max4_kernel,
        out_shape=jax.ShapeDtypeStruct(a.shape, jnp.float32),
    )(a, b, c, d)
    return out.reshape(N, H // 2, W // 2, C)


# ---------------------------------------------------------------------------
# im2col (glue): extract 3x3 valid patches, flattened in (kh, kw, c_in) order
# ---------------------------------------------------------------------------
def im2col(x, k):
    N, H, W, C = x.shape
    Ho, Wo = H - k + 1, W - k + 1
    cols = []
    for di in range(k):
        for dj in range(k):
            cols.append(x[:, di:di + Ho, dj:dj + Wo, :])
    patches = jnp.concatenate(cols, axis=-1)          # (N, Ho, Wo, k*k*C)
    return patches.reshape(N * Ho * Wo, k * k * C), (N, Ho, Wo)


def _conv_weight_to_matrix(w_pt):
    # PyTorch conv weight (O, Cin, KH, KW) -> (KH*KW*Cin, O) matching im2col order
    O, Cin, KH, KW = w_pt.shape
    return jnp.transpose(w_pt, (2, 3, 1, 0)).reshape(KH * KW * Cin, O)


# ---------------------------------------------------------------------------
# One-time parameter layout / padding (call OUTSIDE the per-step jit)
# ---------------------------------------------------------------------------
def prepare_params(params, *, use_bf16_fc=False):
    """Convert PyTorch-layout params to kernel layout exactly once.

    fc1_w is K-padded to a multiple of _FC1_TK here so the ~115 MB weight is never
    re-padded inside the forward pass.  `use_bf16_fc=True` optionally stores the
    big fc weights in bf16 (halves their HBM stream; accumulation stays f32).
    """
    fc_w_dtype = jnp.bfloat16 if use_bf16_fc else jnp.float32

    def pad_k(w, tk):
        K, N = w.shape
        Kp = _round_up(K, tk)
        if Kp == K:
            return w
        return jnp.zeros((Kp, N), w.dtype).at[:K, :].set(w)

    return {
        "conv1_w": _conv_weight_to_matrix(params["conv1_w"]).astype(jnp.float32),
        "conv1_b": params["conv1_b"].reshape(1, -1).astype(jnp.float32),
        "conv2_w": _conv_weight_to_matrix(params["conv2_w"]).astype(jnp.float32),
        "conv2_b": params["conv2_b"].reshape(1, -1).astype(jnp.float32),
        "fc1_w": pad_k(params["fc1_w"].astype(fc_w_dtype), _FC1_TK),
        "fc1_b": params["fc1_b"].reshape(1, -1).astype(jnp.float32),
        "fc2_w": params["fc2_w"].astype(fc_w_dtype),
        "fc2_b": params["fc2_b"].reshape(1, -1).astype(jnp.float32),
        "fc3_w": params["fc3_w"].astype(jnp.float32),
        "fc3_b": params["fc3_b"].reshape(1, -1).astype(jnp.float32),
    }


# ---------------------------------------------------------------------------
# Full Cnn.forward (expects params from prepare_params)
# ---------------------------------------------------------------------------
def cnn_forward(x_nchw, params):
    N = x_nchw.shape[0]
    x = jnp.transpose(x_nchw, (0, 2, 3, 1)).astype(jnp.float32)   # NHWC

    # Conv2d(1, 8, k=3, pad=0) + ReLU: (15488, 9) @ (9, 8), single K step,
    # block last dims equal full K/N (no im2col K padding), tm=1936 -> 8 grid steps.
    p, (n, h, w) = im2col(x, 3)
    y = matmul_bias_act(p, params["conv1_w"], params["conv1_b"],
                        apply_relu=True, tm=1936, tn=8, tk=9)
    y = y.reshape(n, h, w, 8)                                      # (N, 88, 88, 8)

    # MaxPool2d(2)
    # TODO(synk): pool could be fused into the conv1 epilogue to save a couple of
    # small HBM round-trips; kept as a separate lane-dense kernel for clarity.
    y = maxpool2x2(y)                                              # (N, 44, 44, 8)

    # Conv2d(8, 16, k=3, pad=0) + ReLU: (3528, 72) @ (72, 16), single K step.
    p, (n, h, w) = im2col(y, 3)
    y = matmul_bias_act(p, params["conv2_w"], params["conv2_b"],
                        apply_relu=True, tm=1176, tn=16, tk=72)
    y = y.reshape(n, h, w, 16)                                     # (N, 42, 42, 16)

    # torch.flatten(x, start_dim=1) on NCHW ordering
    y = jnp.transpose(y, (0, 3, 1, 2)).reshape(N, -1)              # (N, 28224)

    # fc: Linear(28224,1024)+ReLU, Dropout(id), Linear(1024,128)+ReLU, Dropout(id),
    #     Linear(128,3).  fc1 streams its pre-padded weight in 4 MB tiles.
    y = matmul_bias_act(y, params["fc1_w"], params["fc1_b"], apply_relu=True,
                        tm=_FC1_TM, tn=_FC1_TN, tk=_FC1_TK)
    # TODO(synk): nn.Dropout(p=0.5) is identity in eval/inference mode; no RNG applied.
    y = matmul_bias_act(y, params["fc2_w"], params["fc2_b"], apply_relu=True,
                        tm=8, tn=128, tk=1024)
    y = matmul_bias_act(y, params["fc3_w"], params["fc3_b"], apply_relu=False,
                        tm=8, tn=3, tk=128)
    return y


def init_params(key):
    ks = jax.random.split(key, 10)
    s = 0.01
    return {
        "conv1_w": s * jax.random.normal(ks[0], (8, 1, 3, 3), jnp.float32),
        "conv1_b": s * jax.random.normal(ks[1], (8,), jnp.float32),
        "conv2_w": s * jax.random.normal(ks[2], (16, 8, 3, 3), jnp.float32),
        "conv2_b": s * jax.random.normal(ks[3], (16,), jnp.float32),
        # Linear weights stored as (in, out); equivalent to PyTorch's (out, in).T
        "fc1_w": s * jax.random.normal(ks[4], (28224, 1024), jnp.float32),
        "fc1_b": s * jax.random.normal(ks[5], (1024,), jnp.float32),
        "fc2_w": s * jax.random.normal(ks[6], (1024, 128), jnp.float32),
        "fc2_b": s * jax.random.normal(ks[7], (128,), jnp.float32),
        "fc3_w": s * jax.random.normal(ks[8], (128, 3), jnp.float32),
        "fc3_b": s * jax.random.normal(ks[9], (3,), jnp.float32),
    }


if __name__ == "__main__":
    key = jax.random.PRNGKey(0)
    k_x, k_p = jax.random.split(key)
    # Input spatial size implied by fc in_features=28224 = 16*42*42 -> 90x90 input
    x = jax.random.normal(k_x, (2, 1, 90, 90), jnp.float32)
    params = init_params(k_p)
    # One-time layout/padding of weights, done outside the jitted forward.
    prepped = jax.block_until_ready(prepare_params(params))

    out = jax.jit(cnn_forward)(x, prepped)
    out = jax.block_until_ready(out)
    assert out.shape == (2, 3), out.shape
    print("KERNEL_OK")
</pallas_src>

<mosaic_0001>
module attributes {stable_mosaic.version = 11 : i64} {
  func.func @_matmul_single_k_kernel(%arg0: i32, %arg1: i32, %arg2: memref<1936x9xf32, #tpu.memory_space<vmem>>, %arg3: memref<9x8xf32, #tpu.memory_space<vmem>>, %arg4: memref<1x8xf32, #tpu.memory_space<vmem>>, %arg5: memref<1936x8xf32, #tpu.memory_space<vmem>>) attributes {dimension_semantics = [#tpu.dimension_semantics<parallel>, #tpu.dimension_semantics<parallel>], iteration_bounds = array<i64: 8, 1>, scalar_prefetch = 0 : i64, scratch_operands = 0 : i64, tpu.core_type = #tpu.core_type<tc>, window_params = [{transform_indices = @transform_0, window_bounds = array<i64: 1936, 9>}, {transform_indices = @transform_1, window_bounds = array<i64: 9, 8>}, {transform_indices = @transform_2, window_bounds = array<i64: 1, 8>}, {transform_indices = @transform_3, window_bounds = array<i64: 1936, 8>}]} {
    %c0 = arith.constant 0 : index
    %c0_0 = arith.constant 0 : index
    %0 = vector.load %arg2[%c0, %c0_0] : memref<1936x9xf32, #tpu.memory_space<vmem>>, vector<1936x9xf32>
    %c0_1 = arith.constant 0 : index
    %c0_2 = arith.constant 0 : index
    %1 = vector.load %arg3[%c0_1, %c0_2] : memref<9x8xf32, #tpu.memory_space<vmem>>, vector<9x8xf32>
    %cst = arith.constant dense<0.000000e+00> : vector<1936x8xf32>
    %2 = tpu.matmul %0, %1, %cst {dimension_numbers = #tpu.dot_dimension_numbers<[1], [0], [0], [1], [0, 0, 1, 1], [], []>} : vector<1936x9xf32>, vector<9x8xf32>, vector<1936x8xf32> -> vector<1936x8xf32>
    %c0_3 = arith.constant 0 : index
    %c0_4 = arith.constant 0 : index
    %3 = vector.load %arg4[%c0_3, %c0_4] : memref<1x8xf32, #tpu.memory_space<vmem>>, vector<1x8xf32>
    %4 = vector.broadcast %3 : vector<1x8xf32> to vector<1936x8xf32>
    %5 = arith.addf %2, %4 : vector<1936x8xf32>
    %cst_5 = arith.constant 0.000000e+00 : f32
    %6 = vector.broadcast %cst_5 : f32 to vector<1936x8xf32>
    %7 = arith.maximumf %5, %6 : vector<1936x8xf32>
    %c0_6 = arith.constant 0 : index
    %c0_7 = arith.constant 0 : index
    %8 = vector.load %arg5[%c0_6, %c0_7] : memref<1936x8xf32, #tpu.memory_space<vmem>>, vector<1936x8xf32>
    tpu.vector_store %arg5[%c0_6, %c0_7], %7 {strides = array<i32>} : memref<1936x8xf32, #tpu.memory_space<vmem>>, vector<1936x8xf32>,
    return
  }
  func.func @transform_0(%arg0: i32, %arg1: i32) -> (i32, i32) {
    %c0_i32 = arith.constant 0 : i32
    %c0_i32_0 = arith.constant 0 : i32
    return %arg0, %c0_i32 : i32, i32
  }
  func.func @transform_1(%arg0: i32, %arg1: i32) -> (i32, i32) {
    %c0_i32 = arith.constant 0 : i32
    %c0_i32_0 = arith.constant 0 : i32
    return %c0_i32, %arg1 : i32, i32
  }
  func.func @transform_2(%arg0: i32, %arg1: i32) -> (i32, i32) {
    %c0_i32 = arith.constant 0 : i32
    %c0_i32_0 = arith.constant 0 : i32
    return %c0_i32, %arg1 : i32, i32
  }
  func.func @transform_3(%arg0: i32, %arg1: i32) -> (i32, i32) {
    %c0_i32 = arith.constant 0 : i32
    return %arg0, %arg1 : i32, i32
  }
}

module attributes {stable_mosaic.version = 11 : i64} {
  func.func @_max4_kernel(%arg0: memref<242x128xf32, #tpu.memory_space<vmem>>, %arg1: memref<242x128xf32, #tpu.memory_space<vmem>>, %arg2: memref<242x128xf32, #tpu.memory_space<vmem>>, %arg3: memref<242x128xf32, #tpu.memory_space<vmem>>, %arg4: memref<242x128xf32, #tpu.memory_space<vmem>>) attributes {dimension_semantics = [], scalar_prefetch = 0 : i64, scratch_operands = 0 : i64, tpu.core_type = #tpu.core_type<tc>} {
    %c0 = arith.constant 0 : index
    %c0_0 = arith.constant 0 : index
    %0 = vector.load %arg0[%c0, %c0_0] : memref<242x128xf32, #tpu.memory_space<vmem>>, vector<242x128xf32>
    %c0_1 = arith.constant 0 : index
    %c0_2 = arith.constant 0 : index
    %1 = vector.load %arg1[%c0_1, %c0_2] : memref<242x128xf32, #tpu.memory_space<vmem>>, vector<242x128xf32>
    %2 = arith.maximumf %0, %1 : vector<242x128xf32>
    %c0_3 = arith.constant 0 : index
    %c0_4 = arith.constant 0 : index
    %3 = vector.load %arg2[%c0_3, %c0_4] : memref<242x128xf32, #tpu.memory_space<vmem>>, vector<242x128xf32>
    %c0_5 = arith.constant 0 : index
    %c0_6 = arith.constant 0 : index
    %4 = vector.load %arg3[%c0_5, %c0_6] : memref<242x128xf32, #tpu.memory_space<vmem>>, vector<242x128xf32>
    %5 = arith.maximumf %3, %4 : vector<242x128xf32>
    %6 = arith.maximumf %2, %5 : vector<242x128xf32>
    %c0_7 = arith.constant 0 : index
    %c0_8 = arith.constant 0 : index
    %7 = vector.load %arg4[%c0_7, %c0_8] : memref<242x128xf32, #tpu.memory_space<vmem>>, vector<242x128xf32>
    tpu.vector_store %arg4[%c0_7, %c0_8], %6 {strides = array<i32>} : memref<242x128xf32, #tpu.memory_space<vmem>>, vector<242x128xf32>,
    return
  }
}

module attributes {stable_mosaic.version = 11 : i64} {
  func.func @_matmul_single_k_kernel(%arg0: i32, %arg1: i32, %arg2: memref<1176x72xf32, #tpu.memory_space<vmem>>, %arg3: memref<72x16xf32, #tpu.memory_space<vmem>>, %arg4: memref<1x16xf32, #tpu.memory_space<vmem>>, %arg5: memref<1176x16xf32, #tpu.memory_space<vmem>>) attributes {dimension_semantics = [#tpu.dimension_semantics<parallel>, #tpu.dimension_semantics<parallel>], iteration_bounds = array<i64: 3, 1>, scalar_prefetch = 0 : i64, scratch_operands = 0 : i64, tpu.core_type = #tpu.core_type<tc>, window_params = [{transform_indices = @transform_0, window_bounds = array<i64: 1176, 72>}, {transform_indices = @transform_1, window_bounds = array<i64: 72, 16>}, {transform_indices = @transform_2, window_bounds = array<i64: 1, 16>}, {transform_indices = @transform_3, window_bounds = array<i64: 1176, 16>}]} {
    %c0 = arith.constant 0 : index
    %c0_0 = arith.constant 0 : index
    %0 = vector.load %arg2[%c0, %c0_0] : memref<1176x72xf32, #tpu.memory_space<vmem>>, vector<1176x72xf32>
    %c0_1 = arith.constant 0 : index
    %c0_2 = arith.constant 0 : index
    %1 = vector.load %arg3[%c0_1, %c0_2] : memref<72x16xf32, #tpu.memory_space<vmem>>, vector<72x16xf32>
    %cst = arith.constant dense<0.000000e+00> : vector<1176x16xf32>
    %2 = tpu.matmul %0, %1, %cst {dimension_numbers = #tpu.dot_dimension_numbers<[1], [0], [0], [1], [0, 0, 1, 1], [], []>} : vector<1176x72xf32>, vector<72x16xf32>, vector<1176x16xf32> -> vector<1176x16xf32>
    %c0_3 = arith.constant 0 : index
    %c0_4 = arith.constant 0 : index
    %3 = vector.load %arg4[%c0_3, %c0_4] : memref<1x16xf32, #tpu.memory_space<vmem>>, vector<1x16xf32>
    %4 = vector.broadcast %3 : vector<1x16xf32> to vector<1176x16xf32>
    %5 = arith.addf %2, %4 : vector<1176x16xf32>
    %cst_5 = arith.constant 0.000000e+00 : f32
    %6 = vector.broadcast %cst_5 : f32 to vector<1176x16xf32>
    %7 = arith.maximumf %5, %6 : vector<1176x16xf32>
    %c0_6 = arith.constant 0 : index
    %c0_7 = arith.constant 0 : index
    %8 = vector.load %arg5[%c0_6, %c0_7] : memref<1176x16xf32, #tpu.memory_space<vmem>>, vector<1176x16xf32>
    tpu.vector_store %arg5[%c0_6, %c0_7], %7 {strides = array<i32>} : memref<1176x16xf32, #tpu.memory_space<vmem>>, vector<1176x16xf32>,
    return
  }
  func.func @transform_0(%arg0: i32, %arg1: i32) -> (i32, i32) {
    %c0_i32 = arith.constant 0 : i32
    %c0_i32_0 = arith.constant 0 : i32
    return %arg0, %c0_i32 : i32, i32
  }
  func.func @transform_1(%arg0: i32, %arg1: i32) -> (i32, i32) {
    %c0_i32 = arith.constant 0 : i32
    %c0_i32_0 = arith.constant 0 : i32
    return %c0_i32, %arg1 : i32, i32
  }
  func.func @transform_2(%arg0: i32, %arg1: i32) -> (i32, i32) {
    %c0_i32 = arith.constant 0 : i32
    %c0_i32_0 = arith.constant 0 : i32
    return %c0_i32, %arg1 : i32, i32
  }
  func.func @transform_3(%arg0: i32, %arg1: i32) -> (i32, i32) {
    %c0_i32 = arith.constant 0 : i32
    return %arg0, %arg1 : i32, i32
  }
}

module attributes {stable_mosaic.version = 11 : i64} {
  func.func @_matmul_multi_k_kernel(%arg0: i32, %arg1: i32, %arg2: i32, %arg3: memref<8x2048xf32, #tpu.memory_space<vmem>>, %arg4: memref<2048x512xf32, #tpu.memory_space<vmem>>, %arg5: memref<1x512xf32, #tpu.memory_space<vmem>>, %arg6: memref<8x512xf32, #tpu.memory_space<vmem>>, %arg7: memref<8x512xf32, #tpu.memory_space<vmem>>) attributes {dimension_semantics = [#tpu.dimension_semantics<parallel>, #tpu.dimension_semantics<parallel>, #tpu.dimension_semantics<arbitrary>], iteration_bounds = array<i64: 1, 2, 14>, scalar_prefetch = 0 : i64, scratch_operands = 1 : i64, tpu.core_type = #tpu.core_type<tc>, window_params = [{transform_indices = @transform_0, window_bounds = array<i64: 8, 2048>}, {transform_indices = @transform_1, window_bounds = array<i64: 2048, 512>}, {transform_indices = @transform_2, window_bounds = array<i64: 1, 512>}, {transform_indices = @transform_3, window_bounds = array<i64: 8, 512>}]} {
    %c0_i32 = arith.constant 0 : i32
    %0 = arith.cmpi eq, %arg2, %c0_i32 : i32
    %1 = arith.extui %0 : i1 to i32
    %c0_i32_0 = arith.constant 0 : i32
    %2 = arith.cmpi ne, %1, %c0_i32_0 : i32
    scf.if %2 {
      %cst_9 = arith.constant 0.000000e+00 : f32
      %12 = vector.broadcast %cst_9 : f32 to vector<8x512xf32>
      %c0_10 = arith.constant 0 : index
      %c0_11 = arith.constant 0 : index
      %13 = vector.load %arg7[%c0_10, %c0_11] : memref<8x512xf32, #tpu.memory_space<vmem>>, vector<8x512xf32>
      tpu.vector_store %arg7[%c0_10, %c0_11], %12 {strides = array<i32>} : memref<8x512xf32, #tpu.memory_space<vmem>>, vector<8x512xf32>,
    } else {
    }
    %c0 = arith.constant 0 : index
    %c0_1 = arith.constant 0 : index
    %3 = vector.load %arg7[%c0, %c0_1] : memref<8x512xf32, #tpu.memory_space<vmem>>, vector<8x512xf32>
    %c0_2 = arith.constant 0 : index
    %c0_3 = arith.constant 0 : index
    %4 = vector.load %arg3[%c0_2, %c0_3] : memref<8x2048xf32, #tpu.memory_space<vmem>>, vector<8x2048xf32>
    %c0_4 = arith.constant 0 : index
    %c0_5 = arith.constant 0 : index
    %5 = vector.load %arg4[%c0_4, %c0_5] : memref<2048x512xf32, #tpu.memory_space<vmem>>, vector<2048x512xf32>
    %cst = arith.constant dense<0.000000e+00> : vector<8x512xf32>
    %6 = tpu.matmul %4, %5, %cst {dimension_numbers = #tpu.dot_dimension_numbers<[1], [0], [0], [1], [0, 0, 1, 1], [], []>} : vector<8x2048xf32>, vector<2048x512xf32>, vector<8x512xf32> -> vector<8x512xf32>
    %7 = arith.addf %3, %6 : vector<8x512xf32>
    %c0_6 = arith.constant 0 : index
    %c0_7 = arith.constant 0 : index
    %8 = vector.load %arg7[%c0_6, %c0_7] : memref<8x512xf32, #tpu.memory_space<vmem>>, vector<8x512xf32>
    tpu.vector_store %arg7[%c0_6, %c0_7], %7 {strides = array<i32>} : memref<8x512xf32, #tpu.memory_space<vmem>>, vector<8x512xf32>,
    %c13_i32 = arith.constant 13 : i32
    %9 = arith.cmpi eq, %arg2, %c13_i32 : i32
    %10 = arith.extui %9 : i1 to i32
    %c0_i32_8 = arith.constant 0 : i32
    %11 = arith.cmpi ne, %10, %c0_i32_8 : i32
    scf.if %11 {
      %c0_9 = arith.constant 0 : index
      %c0_10 = arith.constant 0 : index
      %12 = vector.load %arg7[%c0_9, %c0_10] : memref<8x512xf32, #tpu.memory_space<vmem>>, vector<8x512xf32>
      %c0_11 = arith.constant 0 : index
      %c0_12 = arith.constant 0 : index
      %13 = vector.load %arg5[%c0_11, %c0_12] : memref<1x512xf32, #tpu.memory_space<vmem>>, vector<1x512xf32>
      %14 = vector.broadcast %13 : vector<1x512xf32> to vector<8x512xf32>
      %15 = arith.addf %12, %14 : vector<8x512xf32>
      %cst_13 = arith.constant 0.000000e+00 : f32
      %16 = vector.broadcast %cst_13 : f32 to vector<8x512xf32>
      %17 = arith.maximumf %15, %16 : vector<8x512xf32>
      %c0_14 = arith.constant 0 : index
      %c0_15 = arith.constant 0 : index
      %18 = vector.load %arg6[%c0_14, %c0_15] : memref<8x512xf32, #tpu.memory_space<vmem>>, vector<8x512xf32>
      tpu.vector_store %arg6[%c0_14, %c0_15], %17 {strides = array<i32>} : memref<8x512xf32, #tpu.memory_space<vmem>>, vector<8x512xf32>,
    } else {
    }
    return
  }
  func.func @transform_0(%arg0: i32, %arg1: i32, %arg2: i32) -> (i32, i32) {
    %c0_i32 = arith.constant 0 : i32
    return %arg0, %arg2 : i32, i32
  }
  func.func @transform_1(%arg0: i32, %arg1: i32, %arg2: i32) -> (i32, i32) {
    %c0_i32 = arith.constant 0 : i32
    return %arg2, %arg1 : i32, i32
  }
  func.func @transform_2(%arg0: i32, %arg1: i32, %arg2: i32) -> (i32, i32) {
    %c0_i32 = arith.constant 0 : i32
    %c0_i32_0 = arith.constant 0 : i32
    return %c0_i32, %arg1 : i32, i32
  }
  func.func @transform_3(%arg0: i32, %arg1: i32, %arg2: i32) -> (i32, i32) {
    %c0_i32 = arith.constant 0 : i32
    return %arg0, %arg1 : i32, i32
  }
}

module attributes {stable_mosaic.version = 11 : i64} {
  func.func @_matmul_single_k_kernel(%arg0: i32, %arg1: i32, %arg2: memref<8x1024xf32, #tpu.memory_space<vmem>>, %arg3: memref<1024x128xf32, #tpu.memory_space<vmem>>, %arg4: memref<1x128xf32, #tpu.memory_space<vmem>>, %arg5: memref<8x128xf32, #tpu.memory_space<vmem>>) attributes {dimension_semantics = [#tpu.dimension_semantics<parallel>, #tpu.dimension_semantics<parallel>], iteration_bounds = array<i64: 1, 1>, scalar_prefetch = 0 : i64, scratch_operands = 0 : i64, tpu.core_type = #tpu.core_type<tc>, window_params = [{transform_indices = @transform_0, window_bounds = array<i64: 8, 1024>}, {transform_indices = @transform_1, window_bounds = array<i64: 1024, 128>}, {transform_indices = @transform_2, window_bounds = array<i64: 1, 128>}, {transform_indices = @transform_3, window_bounds = array<i64: 8, 128>}]} {
    %c0 = arith.constant 0 : index
    %c0_0 = arith.constant 0 : index
    %0 = vector.load %arg2[%c0, %c0_0] : memref<8x1024xf32, #tpu.memory_space<vmem>>, vector<8x1024xf32>
    %c0_1 = arith.constant 0 : index
    %c0_2 = arith.constant 0 : index
    %1 = vector.load %arg3[%c0_1, %c0_2] : memref<1024x128xf32, #tpu.memory_space<vmem>>, vector<1024x128xf32>
    %cst = arith.constant dense<0.000000e+00> : vector<8x128xf32>
    %2 = tpu.matmul %0, %1, %cst {dimension_numbers = #tpu.dot_dimension_numbers<[1], [0], [0], [1], [0, 0, 1, 1], [], []>} : vector<8x1024xf32>, vector<1024x128xf32>, vector<8x128xf32> -> vector<8x128xf32>
    %c0_3 = arith.constant 0 : index
    %c0_4 = arith.constant 0 : index
    %3 = vector.load %arg4[%c0_3, %c0_4] : memref<1x128xf32, #tpu.memory_space<vmem>>, vector<1x128xf32>
    %4 = vector.broadcast %3 : vector<1x128xf32> to vector<8x128xf32>
    %5 = arith.addf %2, %4 : vector<8x128xf32>
    %cst_5 = arith.constant 0.000000e+00 : f32
    %6 = vector.broadcast %cst_5 : f32 to vector<8x128xf32>
    %7 = arith.maximumf %5, %6 : vector<8x128xf32>
    %c0_6 = arith.constant 0 : index
    %c0_7 = arith.constant 0 : index
    %8 = vector.load %arg5[%c0_6, %c0_7] : memref<8x128xf32, #tpu.memory_space<vmem>>, vector<8x128xf32>
    tpu.vector_store %arg5[%c0_6, %c0_7], %7 {strides = array<i32>} : memref<8x128xf32, #tpu.memory_space<vmem>>, vector<8x128xf32>,
    return
  }
  func.func @transform_0(%arg0: i32, %arg1: i32) -> (i32, i32) {
    %c0_i32 = arith.constant 0 : i32
    %c0_i32_0 = arith.constant 0 : i32
    return %arg0, %c0_i32 : i32, i32
  }
  func.func @transform_1(%arg0: i32, %arg1: i32) -> (i32, i32) {
    %c0_i32 = arith.constant 0 : i32
    %c0_i32_0 = arith.constant 0 : i32
    return %c0_i32, %arg1 : i32, i32
  }
  func.func @transform_2(%arg0: i32, %arg1: i32) -> (i32, i32) {
    %c0_i32 = arith.constant 0 : i32
    %c0_i32_0 = arith.constant 0 : i32
    return %c0_i32, %arg1 : i32, i32
  }
  func.func @transform_3(%arg0: i32, %arg1: i32) -> (i32, i32) {
    %c0_i32 = arith.constant 0 : i32
    return %arg0, %arg1 : i32, i32
  }
}

module attributes {stable_mosaic.version = 11 : i64} {
  func.func @_matmul_single_k_kernel(%arg0: i32, %arg1: i32, %arg2: memref<8x128xf32, #tpu.memory_space<vmem>>, %arg3: memref<128x3xf32, #tpu.memory_space<vmem>>, %arg4: memref<1x3xf32, #tpu.memory_space<vmem>>, %arg5: memref<8x3xf32, #tpu.memory_space<vmem>>) attributes {dimension_semantics = [#tpu.dimension_semantics<parallel>, #tpu.dimension_semantics<parallel>], iteration_bounds = array<i64: 1, 1>, scalar_prefetch = 0 : i64, scratch_operands = 0 : i64, tpu.core_type = #tpu.core_type<tc>, window_params = [{transform_indices = @transform_0, window_bounds = array<i64: 8, 128>}, {transform_indices = @transform_1, window_bounds = array<i64: 128, 3>}, {transform_indices = @transform_2, window_bounds = array<i64: 1, 3>}, {transform_indices = @transform_3, window_bounds = array<i64: 8, 3>}]} {
    %c0 = arith.constant 0 : index
    %c0_0 = arith.constant 0 : index
    %0 = vector.load %arg2[%c0, %c0_0] : memref<8x128xf32, #tpu.memory_space<vmem>>, vector<8x128xf32>
    %c0_1 = arith.constant 0 : index
    %c0_2 = arith.constant 0 : index
    %1 = vector.load %arg3[%c0_1, %c0_2] : memref<128x3xf32, #tpu.memory_space<vmem>>, vector<128x3xf32>
    %cst = arith.constant dense<0.000000e+00> : vector<8x3xf32>
    %2 = tpu.matmul %0, %1, %cst {dimension_numbers = #tpu.dot_dimension_numbers<[1], [0], [0], [1], [0, 0, 1, 1], [], []>} : vector<8x128xf32>, vector<128x3xf32>, vector<8x3xf32> -> vector<8x3xf32>
    %c0_3 = arith.constant 0 : index
    %c0_4 = arith.constant 0 : index
    %3 = vector.load %arg4[%c0_3, %c0_4] : memref<1x3xf32, #tpu.memory_space<vmem>>, vector<1x3xf32>
    %4 = vector.broadcast %3 : vector<1x3xf32> to vector<8x3xf32>
    %5 = arith.addf %2, %4 : vector<8x3xf32>
    %c0_5 = arith.constant 0 : index
    %c0_6 = arith.constant 0 : index
    %6 = vector.load %arg5[%c0_5, %c0_6] : memref<8x3xf32, #tpu.memory_space<vmem>>, vector<8x3xf32>
    tpu.vector_store %arg5[%c0_5, %c0_6], %5 {strides = array<i32>} : memref<8x3xf32, #tpu.memory_space<vmem>>, vector<8x3xf32>,
    return
  }
  func.func @transform_0(%arg0: i32, %arg1: i32) -> (i32, i32) {
    %c0_i32 = arith.constant 0 : i32
    %c0_i32_0 = arith.constant 0 : i32
    return %arg0, %c0_i32 : i32, i32
  }
  func.func @transform_1(%arg0: i32, %arg1: i32) -> (i32, i32) {
    %c0_i32 = arith.constant 0 : i32
    %c0_i32_0 = arith.constant 0 : i32
    return %c0_i32, %arg1 : i32, i32
  }
  func.func @transform_2(%arg0: i32, %arg1: i32) -> (i32, i32) {
    %c0_i32 = arith.constant 0 : i32
    %c0_i32_0 = arith.constant 0 : i32
    return %c0_i32, %arg1 : i32, i32
  }
  func.func @transform_3(%arg0: i32, %arg1: i32) -> (i32, i32) {
    %c0_i32 = arith.constant 0 : i32
    return %arg0, %arg1 : i32, i32
  }
}

</mosaic_0001>

<bundles_post_ra>
// kernel: cnn_forward.6
= control target key start
LH: loop header
LB: loop body
LE: loop exit
PB: predicated region body
PF: predicated region fallthrough
CT: control target
= control target key end

     0   :  { %s4009_s12 = smov 0   ;;  %s4011_s13 = smov 0   ;;  %s5272_s0 = inlined_call_operand.vmem [shape: f32[15488,9], index: 0, kind: input, shape index: {}]   ;;  %s5273_s1 = inlined_call_operand.vmem [shape: f32[9,8], index: 1, kind: input, shape index: {}]   ;;  %s5274_s2 = inlined_call_operand.vmem [shape: f32[1,8], index: 2, kind: input, shape index: {}]   ;;  %s5275_s3 = inlined_call_operand.vmem [shape: f32[15488,8], index: 3, kind: output, shape index: {}]  }
   0x1   :  { %s4013_s14 = smov 0  }
   0x2 LB: > { %s25_s15 = sadd.s32 1, %s3983_s13  ;;  %p3075_p0 = scmp.ge.s32.totalorder %s3987_s14, 1  ;;  %s3987_s14 = sphi %s4013_s14, %s13_s14   ;;  %s3983_s13 = sphi %s4011_s13, %s5277_s13   ;;  %s3979_s12 = sphi %s4009_s12, %s5276_s12  }
   0x3   : > { %p27_p1 = scmp.ge.s32.totalorder %s25_s15, 8  ;;  %p169_p2 = scmp.lt.s32.totalorder %s3987_s14, 9 }
   0x5   : > { %s5279_s15 = smov (%p27_p1, %s25_s15), 0  ;;  %p170_p3 = pnand %p3075_p0, %p169_p2 }
   0x6   : > { %s203_s20 = smul.u32 (!%p170_p3), 242, %s3979_s12 }
   0x7   : > { %173 = sbr.rel (%p170_p3) target bundleno = 458 (0x1ca), region = 32 }
   0x8   : > { %p204_p4 = scmp.lt.s32.totalorder (!%p170_p3), %s203_s20, 1935 }
   0xc   : > { %v468_v0 = vld [vmem:[%s5273_s1 + $0x8] sm:$0x1]  ;;  %vm1203_vm0 = vcmask 1040384   ;;  %v467_v1 = vld [vmem:[%s5273_s1] sm:$0xff]  ;;  %s5281_s20 = smov (!%p204_p4, %s203_s20), 1935  ;;  %vm476_vm1 = vcmask 72704  }
   0xd   : > { %3568 = vmatprep.subr.msk.mxu0 %vm1203_vm0, %v468_v0  ;;  %3935 = vmatprep.subr.msk.mxu1 %vm1203_vm0, %v468_v0  ;;  %s3076_s21 = sshll.u32 %s5281_s20, 3  ;;  %vm2724_vm2 = vcmask 64512  }
   0xe   : > { %3569 = vmatpush3.msk.msra.mxu0 %vm1203_vm0, %v468_v0  ;;  %3937 = vmatpush3.msk.msra.mxu1 %vm1203_vm0, %v468_v0  ;;  %s4041_s24 = scalar_lea.vmem %s5272_s0, %s3076_s21  ;;  %s4453_s29 = scalar_lea.vmem %s5275_s3, %s3076_s21 }
   0xf   : > { %3570 = vmatprep.subr.mxu0 %v467_v1  ;;  %3936 = vmatprep.subr.mxu1 %v467_v1  ;;  %v225_v2 = vld [vmem:[%s4041_s24] sm:$0xff]  ;;  %v226_v3 = vld [vmem:[%s4041_s24 + $0x8] sm:$0xff]  ;;  %v347_v4 = vld [vmem:[%s4041_s24 + $0x3d0] sm:$0xff] }
  0x10   : > { %3571 = vmatpush3.msra.mxu0 %v467_v1  ;;  %3938 = vmatpush3.msra.mxu1 %v467_v1  ;;  %v348_v5 = vld [vmem:[%s4041_s24 + $0x3d8] sm:$0xff]  ;;  %v227_v6 = vld [vmem:[%s4041_s24 + $0x10] sm:$0xff]  ;;  %v349_v7 = vld [vmem:[%s4041_s24 + $0x3e0] sm:$0xff] }
  0x11   : > { %3572 = vmatprep.mubr.msk.f32.mxu0 %vm476_vm1, %v225_v2  ;;  %3755 = vmatprep.mubr.msk.f32.mxu1 %vm476_vm1, %v347_v4  ;;  %v228_v8 = vld [vmem:[%s4041_s24 + $0x18] sm:$0xff]  ;;  %v350_v9 = vld [vmem:[%s4041_s24 + $0x3e8] sm:$0xff]  ;;  %v229_v10 = vld [vmem:[%s4041_s24 + $0x20] sm:$0xff] }
  0x12   : > { %3573 = vmatmul.mubr.msk.f32.vlgmr.msra.gmra.mxu0 %vm476_vm1, %v226_v3  ;;  %3756 = vmatmul.mubr.msk.f32.vlgmr.msra.gmra.mxu1 %vm476_vm1, %v348_v5  ;;  %v351_v11 = vld [vmem:[%s4041_s24 + $0x3f0] sm:$0xff]  ;;  %v230_v12 = vld [vmem:[%s4041_s24 + $0x28] sm:$0xff]  ;;  %v352_v13 = vld [vmem:[%s4041_s24 + $0x3f8] sm:$0xff] }
  0x13   : > { %3575 = vmatprep.mubr.msk.f32.mxu0 %vm476_vm1, %v227_v6  ;;  %3758 = vmatprep.mubr.msk.f32.mxu1 %vm476_vm1, %v349_v7  ;;  %v231_v14 = vld [vmem:[%s4041_s24 + $0x30] sm:$0xff]  ;;  %v353_v15 = vld [vmem:[%s4041_s24 + $0x400] sm:$0xff]  ;;  %v232_v16 = vld [vmem:[%s4041_s24 + $0x38] sm:$0xff] }
  0x14   : > { %v354_v17 = vld [vmem:[%s4041_s24 + $0x408] sm:$0xff]  ;;  %v233_v18 = vld [vmem:[%s4041_s24 + $0x40] sm:$0xff]  ;;  %v355_v19 = vld [vmem:[%s4041_s24 + $0x410] sm:$0xff] }
  0x15   : > { %v234_v20 = vld [vmem:[%s4041_s24 + $0x48] sm:$0xff]  ;;  %v356_v21 = vld [vmem:[%s4041_s24 + $0x418] sm:$0xff]  ;;  %v235_v22 = vld [vmem:[%s4041_s24 + $0x50] sm:$0xff] }
  0x16   : > { %3576 = vmatmul.mubr.msk.f32.gmra.mxu0 %vm476_vm1, %v228_v8  ;;  %3759 = vmatmul.mubr.msk.f32.gmra.mxu1 %vm476_vm1, %v350_v9  ;;  %v357_v23 = vld [vmem:[%s4041_s24 + $0x420] sm:$0xff]  ;;  %v236_v24 = vld [vmem:[%s4041_s24 + $0x58] sm:$0xff]  ;;  %v358_v25 = vld [vmem:[%s4041_s24 + $0x428] sm:$0xff] }
  0x17   : > { %3578 = vmatprep.mubr.msk.f32.mxu0 %vm476_vm1, %v229_v10  ;;  %3761 = vmatprep.mubr.msk.f32.mxu1 %vm476_vm1, %v351_v11  ;;  %v237_v26 = vld [vmem:[%s4041_s24 + $0x60] sm:$0xff]  ;;  %v359_v27 = vld [vmem:[%s4041_s24 + $0x430] sm:$0xff]  ;;  %v238_v28 = vld [vmem:[%s4041_s24 + $0x68] sm:$0xff] }
  0x18   : > { %v360_v29 = vld [vmem:[%s4041_s24 + $0x438] sm:$0xff]  ;;  %v239_v30 = vld [vmem:[%s4041_s24 + $0x70] sm:$0xff]  ;;  %v361_v31 = vld [vmem:[%s4041_s24 + $0x440] sm:$0xff] }
  0x19   : > { %v240_v32 = vld [vmem:[%s4041_s24 + $0x78] sm:$0xff]  ;;  %v362_v33 = vld [vmem:[%s4041_s24 + $0x448] sm:$0xff]  ;;  %v241_v34 = vld [vmem:[%s4041_s24 + $0x80] sm:$0xff] }
  0x1a   : > { %3579 = vmatmul.mubr.msk.f32.gmra.mxu0 %vm476_vm1, %v230_v12  ;;  %3762 = vmatmul.mubr.msk.f32.gmra.mxu1 %vm476_vm1, %v352_v13  ;;  %v363_v35 = vld [vmem:[%s4041_s24 + $0x450] sm:$0xff]  ;;  %v242_v36 = vld [vmem:[%s4041_s24 + $0x88] sm:$0xff]  ;;  %v364_v37 = vld [vmem:[%s4041_s24 + $0x458] sm:$0xff] }
  0x1b   : > { %3581 = vmatprep.mubr.msk.f32.mxu0 %vm476_vm1, %v231_v14  ;;  %3764 = vmatprep.mubr.msk.f32.mxu1 %vm476_vm1, %v353_v15  ;;  %v243_v38 = vld [vmem:[%s4041_s24 + $0x90] sm:$0xff]  ;;  %v365_v39 = vld [vmem:[%s4041_s24 + $0x460] sm:$0xff]  ;;  %v244_v40 = vld [vmem:[%s4041_s24 + $0x98] sm:$0xff] }
  0x1c   : > { %v366_v41 = vld [vmem:[%s4041_s24 + $0x468] sm:$0xff]  ;;  %v245_v42 = vld [vmem:[%s4041_s24 + $0xa0] sm:$0xff]  ;;  %v367_v43 = vld [vmem:[%s4041_s24 + $0x470] sm:$0xff] }
  0x1d   : > { %v246_v44 = vld [vmem:[%s4041_s24 + $0xa8] sm:$0xff]  ;;  %v368_v45 = vld [vmem:[%s4041_s24 + $0x478] sm:$0xff]  ;;  %v247_v46 = vld [vmem:[%s4041_s24 + $0xb0] sm:$0xff] }
  0x1e   : > { %3582 = vmatmul.mubr.msk.f32.gmra.mxu0 %vm476_vm1, %v232_v16  ;;  %3765 = vmatmul.mubr.msk.f32.gmra.mxu1 %vm476_vm1, %v354_v17  ;;  %v369_v47 = vld [vmem:[%s4041_s24 + $0x480] sm:$0xff]  ;;  %v248_v48 = vld [vmem:[%s4041_s24 + $0xb8] sm:$0xff]  ;;  %v370_v49 = vld [vmem:[%s4041_s24 + $0x488] sm:$0xff] }
  0x1f   : > { %3584 = vmatprep.mubr.msk.f32.mxu0 %vm476_vm1, %v233_v18  ;;  %3767 = vmatprep.mubr.msk.f32.mxu1 %vm476_vm1, %v355_v19  ;;  %v249_v50 = vld [vmem:[%s4041_s24 + $0xc0] sm:$0xff]  ;;  %v371_v51 = vld [vmem:[%s4041_s24 + $0x490] sm:$0xff]  ;;  %v250_v52 = vld [vmem:[%s4041_s24 + $0xc8] sm:$0xff] }
  0x20   : > { %v372_v53 = vld [vmem:[%s4041_s24 + $0x498] sm:$0xff]  ;;  %v251_v54 = vld [vmem:[%s4041_s24 + $0xd0] sm:$0xff]  ;;  %v373_v55 = vld [vmem:[%s4041_s24 + $0x4a0] sm:$0xff] }
  0x21   : > { %v252_v56 = vld [vmem:[%s4041_s24 + $0xd8] sm:$0xff]  ;;  %v374_v57 = vld [vmem:[%s4041_s24 + $0x4a8] sm:$0xff]  ;;  %v253_v58 = vld [vmem:[%s4041_s24 + $0xe0] sm:$0xff] }
  0x22   : > { %3585 = vmatmul.mubr.msk.f32.gmra.mxu0 %vm476_vm1, %v234_v20  ;;  %3768 = vmatmul.mubr.msk.f32.gmra.mxu1 %vm476_vm1, %v356_v21  ;;  %v375_v59 = vld [vmem:[%s4041_s24 + $0x4b0] sm:$0xff]  ;;  %v254_v60 = vld [vmem:[%s4041_s24 + $0xe8] sm:$0xff]  ;;  %v376_v61 = vld [vmem:[%s4041_s24 + $0x4b8] sm:$0xff] }
  0x23   : > { %3587 = vmatprep.mubr.msk.f32.mxu0 %vm476_vm1, %v235_v22  ;;  %3770 = vmatprep.mubr.msk.f32.mxu1 %vm476_vm1, %v357_v23  ;;  %v255_v62 = vld [vmem:[%s4041_s24 + $0xf0] sm:$0xff]  ;;  %v377_v63 = vld [vmem:[%s4041_s24 + $0x4c0] sm:$0xff]  ;;  %v256_v0 = vld [vmem:[%s4041_s24 + $0xf8] sm:$0xff] }
  0x24   : > { %v378_v1 = vld [vmem:[%s4041_s24 + $0x4c8] sm:$0xff]  ;;  %v257_v2 = vld [vmem:[%s4041_s24 + $0x100] sm:$0xff]  ;;  %v379_v3 = vld [vmem:[%s4041_s24 + $0x4d0] sm:$0xff] }
  0x25   : > { %v258_v4 = vld [vmem:[%s4041_s24 + $0x108] sm:$0xff]  ;;  %v380_v5 = vld [vmem:[%s4041_s24 + $0x4d8] sm:$0xff]  ;;  %v259_v6 = vld [vmem:[%s4041_s24 + $0x110] sm:$0xff] }
  0x26   : > { %3588 = vmatmul.mubr.msk.f32.gmra.mxu0 %vm476_vm1, %v236_v24  ;;  %3771 = vmatmul.mubr.msk.f32.gmra.mxu1 %vm476_vm1, %v358_v25  ;;  %v381_v7 = vld [vmem:[%s4041_s24 + $0x4e0] sm:$0xff]  ;;  %v260_v8 = vld [vmem:[%s4041_s24 + $0x118] sm:$0xff]  ;;  %v382_v9 = vld [vmem:[%s4041_s24 + $0x4e8] sm:$0xff] }
  0x27   : > { %3590 = vmatprep.mubr.msk.f32.mxu0 %vm476_vm1, %v237_v26  ;;  %3773 = vmatprep.mubr.msk.f32.mxu1 %vm476_vm1, %v359_v27  ;;  %v261_v10 = vld [vmem:[%s4041_s24 + $0x120] sm:$0xff]  ;;  %v383_v11 = vld [vmem:[%s4041_s24 + $0x4f0] sm:$0xff]  ;;  %v262_v12 = vld [vmem:[%s4041_s24 + $0x128] sm:$0xff] }
  0x28   : > { %v384_v13 = vld [vmem:[%s4041_s24 + $0x4f8] sm:$0xff]  ;;  %v263_v14 = vld [vmem:[%s4041_s24 + $0x130] sm:$0xff]  ;;  %v385_v15 = vld [vmem:[%s4041_s24 + $0x500] sm:$0xff] }
  0x29   : > { %v264_v16 = vld [vmem:[%s4041_s24 + $0x138] sm:$0xff]  ;;  %v386_v17 = vld [vmem:[%s4041_s24 + $0x508] sm:$0xff]  ;;  %v265_v18 = vld [vmem:[%s4041_s24 + $0x140] sm:$0xff] }
  0x2a   : > { %3591 = vmatmul.mubr.msk.f32.gmra.mxu0 %vm476_vm1, %v238_v28  ;;  %3774 = vmatmul.mubr.msk.f32.gmra.mxu1 %vm476_vm1, %v360_v29  ;;  %v387_v19 = vld [vmem:[%s4041_s24 + $0x510] sm:$0xff]  ;;  %v266_v20 = vld [vmem:[%s4041_s24 + $0x148] sm:$0xff]  ;;  %v388_v21 = vld [vmem:[%s4041_s24 + $0x518] sm:$0xff] }
  0x2b   : > { %3593 = vmatprep.mubr.msk.f32.mxu0 %vm476_vm1, %v239_v30  ;;  %3776 = vmatprep.mubr.msk.f32.mxu1 %vm476_vm1, %v361_v31  ;;  %v267_v22 = vld [vmem:[%s4041_s24 + $0x150] sm:$0xff]  ;;  %v389_v23 = vld [vmem:[%s4041_s24 + $0x520] sm:$0xff]  ;;  %v268_v24 = vld [vmem:[%s4041_s24 + $0x158] sm:$0xff] }
  0x2c   : > { %v390_v25 = vld [vmem:[%s4041_s24 + $0x528] sm:$0xff]  ;;  %v269_v26 = vld [vmem:[%s4041_s24 + $0x160] sm:$0xff]  ;;  %v391_v27 = vld [vmem:[%s4041_s24 + $0x530] sm:$0xff] }
  0x2d   : > { %v270_v28 = vld [vmem:[%s4041_s24 + $0x168] sm:$0xff]  ;;  %v392_v29 = vld [vmem:[%s4041_s24 + $0x538] sm:$0xff]  ;;  %v271_v30 = vld [vmem:[%s4041_s24 + $0x170] sm:$0xff] }
  0x2e   : > { %3594 = vmatmul.mubr.msk.f32.gmra.mxu0 %vm476_vm1, %v240_v32  ;;  %3777 = vmatmul.mubr.msk.f32.gmra.mxu1 %vm476_vm1, %v362_v33  ;;  %v393_v31 = vld [vmem:[%s4041_s24 + $0x540] sm:$0xff]  ;;  %v272_v32 = vld [vmem:[%s4041_s24 + $0x178] sm:$0xff]  ;;  %v394_v33 = vld [vmem:[%s4041_s24 + $0x548] sm:$0xff] }
  0x2f   : > { %3596 = vmatprep.mubr.msk.f32.mxu0 %vm476_vm1, %v241_v34  ;;  %3779 = vmatprep.mubr.msk.f32.mxu1 %vm476_vm1, %v363_v35  ;;  %v273_v34 = vld [vmem:[%s4041_s24 + $0x180] sm:$0xff]  ;;  %v395_v35 = vld [vmem:[%s4041_s24 + $0x550] sm:$0xff] }
  0x32   : > { %3597 = vmatmul.mubr.msk.f32.gmra.mxu0 %vm476_vm1, %v242_v36  ;;  %3780 = vmatmul.mubr.msk.f32.gmra.mxu1 %vm476_vm1, %v364_v37  ;;  %v274_v36 = vld [vmem:[%s4041_s24 + $0x188] sm:$0xff]  ;;  %v396_v37 = vld [vmem:[%s4041_s24 + $0x558] sm:$0xff] }
  0x33   : > { %3599 = vmatprep.mubr.msk.f32.mxu0 %vm476_vm1, %v243_v38  ;;  %3782 = vmatprep.mubr.msk.f32.mxu1 %vm476_vm1, %v365_v39  ;;  %v275_v38 = vld [vmem:[%s4041_s24 + $0x190] sm:$0xff]  ;;  %v397_v39 = vld [vmem:[%s4041_s24 + $0x560] sm:$0xff] }
  0x36   : > { %3600 = vmatmul.mubr.msk.f32.gmra.mxu0 %vm476_vm1, %v244_v40  ;;  %3783 = vmatmul.mubr.msk.f32.gmra.mxu1 %vm476_vm1, %v366_v41  ;;  %v276_v40 = vld [vmem:[%s4041_s24 + $0x198] sm:$0xff]  ;;  %v398_v41 = vld [vmem:[%s4041_s24 + $0x568] sm:$0xff] }
  0x37   : > { %3602 = vmatprep.mubr.msk.f32.mxu0 %vm476_vm1, %v245_v42  ;;  %3785 = vmatprep.mubr.msk.f32.mxu1 %vm476_vm1, %v367_v43  ;;  %v277_v42 = vld [vmem:[%s4041_s24 + $0x1a0] sm:$0xff]  ;;  %v399_v43 = vld [vmem:[%s4041_s24 + $0x570] sm:$0xff] }
  0x3a   : > { %3603 = vmatmul.mubr.msk.f32.gmra.mxu0 %vm476_vm1, %v246_v44  ;;  %3786 = vmatmul.mubr.msk.f32.gmra.mxu1 %vm476_vm1, %v368_v45  ;;  %v278_v44 = vld [vmem:[%s4041_s24 + $0x1a8] sm:$0xff]  ;;  %v400_v45 = vld [vmem:[%s4041_s24 + $0x578] sm:$0xff] }
  0x3b   : > { %3605 = vmatprep.mubr.msk.f32.mxu0 %vm476_vm1, %v247_v46  ;;  %3788 = vmatprep.mubr.msk.f32.mxu1 %vm476_vm1, %v369_v47  ;;  %v279_v46 = vld [vmem:[%s4041_s24 + $0x1b0] sm:$0xff]  ;;  %v401_v47 = vld [vmem:[%s4041_s24 + $0x580] sm:$0xff] }
  0x3e   : > { %3606 = vmatmul.mubr.msk.f32.gmra.mxu0 %vm476_vm1, %v248_v48  ;;  %3789 = vmatmul.mubr.msk.f32.gmra.mxu1 %vm476_vm1, %v370_v49  ;;  %v280_v48 = vld [vmem:[%s4041_s24 + $0x1b8] sm:$0xff]  ;;  %v402_v49 = vld [vmem:[%s4041_s24 + $0x588] sm:$0xff] }
  0x3f   : > { %3608 = vmatprep.mubr.msk.f32.mxu0 %vm476_vm1, %v249_v50  ;;  %3791 = vmatprep.mubr.msk.f32.mxu1 %vm476_vm1, %v371_v51  ;;  %v281_v50 = vld [vmem:[%s4041_s24 + $0x1c0] sm:$0xff]  ;;  %v403_v51 = vld [vmem:[%s4041_s24 + $0x590] sm:$0xff] }
  0x42   : > { %3609 = vmatmul.mubr.msk.f32.gmra.mxu0 %vm476_vm1, %v250_v52  ;;  %3792 = vmatmul.mubr.msk.f32.gmra.mxu1 %vm476_vm1, %v372_v53  ;;  %v282_v52 = vld [vmem:[%s4041_s24 + $0x1c8] sm:$0xff]  ;;  %v404_v53 = vld [vmem:[%s4041_s24 + $0x598] sm:$0xff] }
  0x43   : > { %3611 = vmatprep.mubr.msk.f32.mxu0 %vm476_vm1, %v251_v54  ;;  %3794 = vmatprep.mubr.msk.f32.mxu1 %vm476_vm1, %v373_v55  ;;  %v283_v54 = vld [vmem:[%s4041_s24 + $0x1d0] sm:$0xff]  ;;  %v405_v55 = vld [vmem:[%s4041_s24 + $0x5a0] sm:$0xff] }
  0x46   : > { %3612 = vmatmul.mubr.msk.f32.gmra.mxu0 %vm476_vm1, %v252_v56  ;;  %3795 = vmatmul.mubr.msk.f32.gmra.mxu1 %vm476_vm1, %v374_v57  ;;  %v284_v56 = vld [vmem:[%s4041_s24 + $0x1d8] sm:$0xff]  ;;  %v406_v57 = vld [vmem:[%s4041_s24 + $0x5a8] sm:$0xff] }
  0x47   : > { %3614 = vmatprep.mubr.msk.f32.mxu0 %vm476_vm1, %v253_v58  ;;  %3797 = vmatprep.mubr.msk.f32.mxu1 %vm476_vm1, %v375_v59  ;;  %v285_v58 = vld [vmem:[%s4041_s24 + $0x1e0] sm:$0xff]  ;;  %v407_v59 = vld [vmem:[%s4041_s24 + $0x5b0] sm:$0xff] }
  0x4a   : > { %3615 = vmatmul.mubr.msk.f32.gmra.mxu0 %vm476_vm1, %v254_v60  ;;  %3798 = vmatmul.mubr.msk.f32.gmra.mxu1 %vm476_vm1, %v376_v61  ;;  %v286_v60 = vld [vmem:[%s4041_s24 + $0x1e8] sm:$0xff]  ;;  %v408_v61 = vld [vmem:[%s4041_s24 + $0x5b8] sm:$0xff] }
  0x4b   : > { %3617 = vmatprep.mubr.msk.f32.mxu0 %vm476_vm1, %v255_v62  ;;  %3800 = vmatprep.mubr.msk.f32.mxu1 %vm476_vm1, %v377_v63  ;;  %v287_v62 = vld [vmem:[%s4041_s24 + $0x1f0] sm:$0xff]  ;;  %v409_v63 = vld [vmem:[%s4041_s24 + $0x5c0] sm:$0xff] }
  0x4e   : > { %3618 = vmatmul.mubr.msk.f32.gmra.mxu0 %vm476_vm1, %v256_v0  ;;  %3801 = vmatmul.mubr.msk.f32.gmra.mxu1 %vm476_vm1, %v378_v1  ;;  %v288_v0 = vld [vmem:[%s4041_s24 + $0x1f8] sm:$0xff]  ;;  %v410_v1 = vld [vmem:[%s4041_s24 + $0x5c8] sm:$0xff] }
  0x4f   : > { %3620 = vmatprep.mubr.msk.f32.mxu0 %vm476_vm1, %v257_v2  ;;  %3803 = vmatprep.mubr.msk.f32.mxu1 %vm476_vm1, %v379_v3  ;;  %v289_v2 = vld [vmem:[%s4041_s24 + $0x200] sm:$0xff]  ;;  %v411_v3 = vld [vmem:[%s4041_s24 + $0x5d0] sm:$0xff] }
  0x52   : > { %3621 = vmatmul.mubr.msk.f32.gmra.mxu0 %vm476_vm1, %v258_v4  ;;  %3804 = vmatmul.mubr.msk.f32.gmra.mxu1 %vm476_vm1, %v380_v5  ;;  %v290_v4 = vld [vmem:[%s4041_s24 + $0x208] sm:$0xff]  ;;  %v412_v5 = vld [vmem:[%s4041_s24 + $0x5d8] sm:$0xff] }
  0x53   : > { %3623 = vmatprep.mubr.msk.f32.mxu0 %vm476_vm1, %v259_v6  ;;  %3806 = vmatprep.mubr.msk.f32.mxu1 %vm476_vm1, %v381_v7  ;;  %v291_v6 = vld [vmem:[%s4041_s24 + $0x210] sm:$0xff]  ;;  %v413_v7 = vld [vmem:[%s4041_s24 + $0x5e0] sm:$0xff] }
  0x56   : > { %3624 = vmatmul.mubr.msk.f32.gmra.mxu0 %vm476_vm1, %v260_v8  ;;  %3807 = vmatmul.mubr.msk.f32.gmra.mxu1 %vm476_vm1, %v382_v9  ;;  %v292_v8 = vld [vmem:[%s4041_s24 + $0x218] sm:$0xff]  ;;  %v414_v9 = vld [vmem:[%s4041_s24 + $0x5e8] sm:$0xff] }
  0x57   : > { %3626 = vmatprep.mubr.msk.f32.mxu0 %vm476_vm1, %v261_v10  ;;  %3809 = vmatprep.mubr.msk.f32.mxu1 %vm476_vm1, %v383_v11  ;;  %v293_v10 = vld [vmem:[%s4041_s24 + $0x220] sm:$0xff]  ;;  %v415_v11 = vld [vmem:[%s4041_s24 + $0x5f0] sm:$0xff] }
  0x5a   : > { %3627 = vmatmul.mubr.msk.f32.gmra.mxu0 %vm476_vm1, %v262_v12  ;;  %3810 = vmatmul.mubr.msk.f32.gmra.mxu1 %vm476_vm1, %v384_v13  ;;  %v294_v12 = vld [vmem:[%s4041_s24 + $0x228] sm:$0xff]  ;;  %v416_v13 = vld [vmem:[%s4041_s24 + $0x5f8] sm:$0xff] }
  0x5b   : > { %3629 = vmatprep.mubr.msk.f32.mxu0 %vm476_vm1, %v263_v14  ;;  %3812 = vmatprep.mubr.msk.f32.mxu1 %vm476_vm1, %v385_v15  ;;  %v295_v14 = vld [vmem:[%s4041_s24 + $0x230] sm:$0xff]  ;;  %v417_v15 = vld [vmem:[%s4041_s24 + $0x600] sm:$0xff] }
  0x5e   : > { %3630 = vmatmul.mubr.msk.f32.gmra.mxu0 %vm476_vm1, %v264_v16  ;;  %3813 = vmatmul.mubr.msk.f32.gmra.mxu1 %vm476_vm1, %v386_v17  ;;  %v296_v16 = vld [vmem:[%s4041_s24 + $0x238] sm:$0xff]  ;;  %v418_v17 = vld [vmem:[%s4041_s24 + $0x608] sm:$0xff] }
  0x5f   : > { %3632 = vmatprep.mubr.msk.f32.mxu0 %vm476_vm1, %v265_v18  ;;  %3815 = vmatprep.mubr.msk.f32.mxu1 %vm476_vm1, %v387_v19  ;;  %v297_v18 = vld [vmem:[%s4041_s24 + $0x240] sm:$0xff]  ;;  %v419_v19 = vld [vmem:[%s4041_s24 + $0x610] sm:$0xff] }
  0x62   : > { %3633 = vmatmul.mubr.msk.f32.gmra.mxu0 %vm476_vm1, %v266_v20  ;;  %3816 = vmatmul.mubr.msk.f32.gmra.mxu1 %vm476_vm1, %v388_v21  ;;  %v298_v20 = vld [vmem:[%s4041_s24 + $0x248] sm:$0xff]  ;;  %v420_v21 = vld [vmem:[%s4041_s24 + $0x618] sm:$0xff] }
  0x63   : > { %3635 = vmatprep.mubr.msk.f32.mxu0 %vm476_vm1, %v267_v22  ;;  %3818 = vmatprep.mubr.msk.f32.mxu1 %vm476_vm1, %v389_v23  ;;  %v299_v22 = vld [vmem:[%s4041_s24 + $0x250] sm:$0xff]  ;;  %v421_v23 = vld [vmem:[%s4041_s24 + $0x620] sm:$0xff] }
  0x66   : > { %3636 = vmatmul.mubr.msk.f32.gmra.mxu0 %vm476_vm1, %v268_v24  ;;  %3819 = vmatmul.mubr.msk.f32.gmra.mxu1 %vm476_vm1, %v390_v25  ;;  %v300_v24 = vld [vmem:[%s4041_s24 + $0x258] sm:$0xff]  ;;  %v422_v25 = vld [vmem:[%s4041_s24 + $0x628] sm:$0xff] }
  0x67   : > { %3638 = vmatprep.mubr.msk.f32.mxu0 %vm476_vm1, %v269_v26  ;;  %3821 = vmatprep.mubr.msk.f32.mxu1 %vm476_vm1, %v391_v27  ;;  %v301_v26 = vld [vmem:[%s4041_s24 + $0x260] sm:$0xff]  ;;  %v423_v27 = vld [vmem:[%s4041_s24 + $0x630] sm:$0xff] }
  0x6a   : > { %3639 = vmatmul.mubr.msk.f32.gmra.mxu0 %vm476_vm1, %v270_v28  ;;  %3822 = vmatmul.mubr.msk.f32.gmra.mxu1 %vm476_vm1, %v392_v29  ;;  %v302_v28 = vld [vmem:[%s4041_s24 + $0x268] sm:$0xff]  ;;  %v424_v29 = vld [vmem:[%s4041_s24 + $0x638] sm:$0xff] }
  0x6b   : > { %3641 = vmatprep.mubr.msk.f32.mxu0 %vm476_vm1, %v271_v30  ;;  %3824 = vmatprep.mubr.msk.f32.mxu1 %vm476_vm1, %v393_v31  ;;  %v303_v30 = vld [vmem:[%s4041_s24 + $0x270] sm:$0xff]  ;;  %v425_v31 = vld [vmem:[%s4041_s24 + $0x640] sm:$0xff] }
  0x6e   : > { %3642 = vmatmul.mubr.msk.f32.gmra.mxu0 %vm476_vm1, %v272_v32  ;;  %3825 = vmatmul.mubr.msk.f32.gmra.mxu1 %vm476_vm1, %v394_v33  ;;  %v304_v32 = vld [vmem:[%s4041_s24 + $0x278] sm:$0xff]  ;;  %v426_v33 = vld [vmem:[%s4041_s24 + $0x648] sm:$0xff] }
  0x6f   : > { %3644 = vmatprep.mubr.msk.f32.mxu0 %vm476_vm1, %v273_v34  ;;  %3827 = vmatprep.mubr.msk.f32.mxu1 %vm476_vm1, %v395_v35  ;;  %v305_v34 = vld [vmem:[%s4041_s24 + $0x280] sm:$0xff]  ;;  %v427_v35 = vld [vmem:[%s4041_s24 + $0x650] sm:$0xff] }
  0x72   : > { %3645 = vmatmul.mubr.msk.f32.gmra.mxu0 %vm476_vm1, %v274_v36  ;;  %3828 = vmatmul.mubr.msk.f32.gmra.mxu1 %vm476_vm1, %v396_v37  ;;  %v306_v36 = vld [vmem:[%s4041_s24 + $0x288] sm:$0xff]  ;;  %v428_v37 = vld [vmem:[%s4041_s24 + $0x658] sm:$0xff] }
  0x73   : > { %3647 = vmatprep.mubr.msk.f32.mxu0 %vm476_vm1, %v275_v38  ;;  %3830 = vmatprep.mubr.msk.f32.mxu1 %vm476_vm1, %v397_v39  ;;  %v307_v38 = vld [vmem:[%s4041_s24 + $0x290] sm:$0xff]  ;;  %v429_v39 = vld [vmem:[%s4041_s24 + $0x660] sm:$0xff] }
  0x76   : > { %3648 = vmatmul.mubr.msk.f32.gmra.mxu0 %vm476_vm1, %v276_v40  ;;  %3831 = vmatmul.mubr.msk.f32.gmra.mxu1 %vm476_vm1, %v398_v41  ;;  %v308_v40 = vld [vmem:[%s4041_s24 + $0x298] sm:$0xff]  ;;  %v430_v41 = vld [vmem:[%s4041_s24 + $0x668] sm:$0xff] }
  0x77   : > { %3650 = vmatprep.mubr.msk.f32.mxu0 %vm476_vm1, %v277_v42  ;;  %3833 = vmatprep.mubr.msk.f32.mxu1 %vm476_vm1, %v399_v43  ;;  %v309_v42 = vld [vmem:[%s4041_s24 + $0x2a0] sm:$0xff]  ;;  %v431_v43 = vld [vmem:[%s4041_s24 + $0x670] sm:$0xff] }
  0x7a   : > { %3651 = vmatmul.mubr.msk.f32.gmra.mxu0 %vm476_vm1, %v278_v44  ;;  %3834 = vmatmul.mubr.msk.f32.gmra.mxu1 %vm476_vm1, %v400_v45  ;;  %v310_v44 = vld [vmem:[%s4041_s24 + $0x2a8] sm:$0xff]  ;;  %v432_v45 = vld [vmem:[%s4041_s24 + $0x678] sm:$0xff] }
  0x7b   : > { %3653 = vmatprep.mubr.msk.f32.mxu0 %vm476_vm1, %v279_v46  ;;  %3836 = vmatprep.mubr.msk.f32.mxu1 %vm476_vm1, %v401_v47  ;;  %v311_v46 = vld [vmem:[%s4041_s24 + $0x2b0] sm:$0xff]  ;;  %v433_v47 = vld [vmem:[%s4041_s24 + $0x680] sm:$0xff] }
  0x7e   : > { %3654 = vmatmul.mubr.msk.f32.gmra.mxu0 %vm476_vm1, %v280_v48  ;;  %3837 = vmatmul.mubr.msk.f32.gmra.mxu1 %vm476_vm1, %v402_v49  ;;  %v312_v48 = vld [vmem:[%s4041_s24 + $0x2b8] sm:$0xff]  ;;  %v434_v49 = vld [vmem:[%s4041_s24 + $0x688] sm:$0xff] }
  0x7f   : > { %3656 = vmatprep.mubr.msk.f32.mxu0 %vm476_vm1, %v281_v50  ;;  %3839 = vmatprep.mubr.msk.f32.mxu1 %vm476_vm1, %v403_v51  ;;  %v313_v50 = vld [vmem:[%s4041_s24 + $0x2c0] sm:$0xff]  ;;  %v435_v51 = vld [vmem:[%s4041_s24 + $0x690] sm:$0xff] }
  0x82   : > { %3657 = vmatmul.mubr.msk.f32.gmra.mxu0 %vm476_vm1, %v282_v52  ;;  %3840 = vmatmul.mubr.msk.f32.gmra.mxu1 %vm476_vm1, %v404_v53  ;;  %v314_v52 = vld [vmem:[%s4041_s24 + $0x2c8] sm:$0xff]  ;;  %v436_v53 = vld [vmem:[%s4041_s24 + $0x698] sm:$0xff] }
  0x83   : > { %3659 = vmatprep.mubr.msk.f32.mxu0 %vm476_vm1, %v283_v54  ;;  %3842 = vmatprep.mubr.msk.f32.mxu1 %vm476_vm1, %v405_v55  ;;  %v315_v54 = vld [vmem:[%s4041_s24 + $0x2d0] sm:$0xff]  ;;  %v437_v55 = vld [vmem:[%s4041_s24 + $0x6a0] sm:$0xff] }
  0x86   : > { %3660 = vmatmul.mubr.msk.f32.gmra.mxu0 %vm476_vm1, %v284_v56  ;;  %3843 = vmatmul.mubr.msk.f32.gmra.mxu1 %vm476_vm1, %v406_v57  ;;  %v316_v56 = vld [vmem:[%s4041_s24 + $0x2d8] sm:$0xff]  ;;  %v438_v57 = vld [vmem:[%s4041_s24 + $0x6a8] sm:$0xff] }
  0x87   : > { %3662 = vmatprep.mubr.msk.f32.mxu0 %vm476_vm1, %v285_v58  ;;  %3845 = vmatprep.mubr.msk.f32.mxu1 %vm476_vm1, %v407_v59  ;;  %v317_v58 = vld [vmem:[%s4041_s24 + $0x2e0] sm:$0xff]  ;;  %v439_v59 = vld [vmem:[%s4041_s24 + $0x6b0] sm:$0xff] }
  0x8a   : > { %3663 = vmatmul.mubr.msk.f32.gmra.mxu0 %vm476_vm1, %v286_v60  ;;  %3846 = vmatmul.mubr.msk.f32.gmra.mxu1 %vm476_vm1, %v408_v61  ;;  %v318_v60 = vld [vmem:[%s4041_s24 + $0x2e8] sm:$0xff]  ;;  %v440_v61 = vld [vmem:[%s4041_s24 + $0x6b8] sm:$0xff] }
  0x8b   : > { %3665 = vmatprep.mubr.msk.f32.mxu0 %vm476_vm1, %v287_v62  ;;  %3848 = vmatprep.mubr.msk.f32.mxu1 %vm476_vm1, %v409_v63  ;;  %v319_v62 = vld [vmem:[%s4041_s24 + $0x2f0] sm:$0xff]  ;;  %v441_v63 = vld [vmem:[%s4041_s24 + $0x6c0] sm:$0xff] }
  0x8e   : > { %3666 = vmatmul.mubr.msk.f32.gmra.mxu0 %vm476_vm1, %v288_v0  ;;  %3849 = vmatmul.mubr.msk.f32.gmra.mxu1 %vm476_vm1, %v410_v1  ;;  %v320_v0 = vld [vmem:[%s4041_s24 + $0x2f8] sm:$0xff]  ;;  %v442_v1 = vld [vmem:[%s4041_s24 + $0x6c8] sm:$0xff] }
  0x8f   : > { %3668 = vmatprep.mubr.msk.f32.mxu0 %vm476_vm1, %v289_v2  ;;  %3851 = vmatprep.mubr.msk.f32.mxu1 %vm476_vm1, %v411_v3  ;;  %v321_v2 = vld [vmem:[%s4041_s24 + $0x300] sm:$0xff]  ;;  %v443_v3 = vld [vmem:[%s4041_s24 + $0x6d0] sm:$0xff] }
  0x92   : > { %3669 = vmatmul.mubr.msk.f32.gmra.mxu0 %vm476_vm1, %v290_v4  ;;  %3852 = vmatmul.mubr.msk.f32.gmra.mxu1 %vm476_vm1, %v412_v5  ;;  %v322_v4 = vld [vmem:[%s4041_s24 + $0x308] sm:$0xff]  ;;  %v444_v5 = vld [vmem:[%s4041_s24 + $0x6d8] sm:$0xff] }
  0x93   : > { %3671 = vmatprep.mubr.msk.f32.mxu0 %vm476_vm1, %v291_v6  ;;  %3854 = vmatprep.mubr.msk.f32.mxu1 %vm476_vm1, %v413_v7  ;;  %v4436_v6 = vld [vmem:[%s5274_s2] ss:$0 sm:$0xff]  ;;  %v323_v7 = vld [vmem:[%s4041_s24 + $0x310] sm:$0xff] }
  0x96   : > { %3672 = vmatmul.mubr.msk.f32.gmra.mxu0 %vm476_vm1, %v292_v8  ;;  %3855 = vmatmul.mubr.msk.f32.gmra.mxu1 %vm476_vm1, %v414_v9  ;;  %v445_v8 = vld [vmem:[%s4041_s24 + $0x6e0] sm:$0xff] }
  0x97   : > { %3674 = vmatprep.mubr.msk.f32.mxu0 %vm476_vm1, %v293_v10  ;;  %3857 = vmatprep.mubr.msk.f32.mxu1 %vm476_vm1, %v415_v11 }
  0x9a   : > { %3675 = vmatmul.mubr.msk.f32.gmra.mxu0 %vm476_vm1, %v294_v12  ;;  %3858 = vmatmul.mubr.msk.f32.gmra.mxu1 %vm476_vm1, %v416_v13  ;;  %v324_v13 = vld [vmem:[%s4041_s24 + $0x318] sm:$0xff] }
  0x9b   : > { %3677 = vmatprep.mubr.msk.f32.mxu0 %vm476_vm1, %v295_v14  ;;  %3860 = vmatprep.mubr.msk.f32.mxu1 %vm476_vm1, %v417_v15  ;;  %v446_v14 = vld [vmem:[%s4041_s24 + $0x6e8] sm:$0xff] }
  0x9e   : > { %3678 = vmatmul.mubr.msk.f32.gmra.mxu0 %vm476_vm1, %v296_v16  ;;  %3861 = vmatmul.mubr.msk.f32.gmra.mxu1 %vm476_vm1, %v418_v17  ;;  %v325_v17 = vld [vmem:[%s4041_s24 + $0x320] sm:$0xff] }
  0x9f   : > { %3680 = vmatprep.mubr.msk.f32.mxu0 %vm476_vm1, %v297_v18  ;;  %3863 = vmatprep.mubr.msk.f32.mxu1 %vm476_vm1, %v419_v19  ;;  %v447_v18 = vld [vmem:[%s4041_s24 + $0x6f0] sm:$0xff] }
  0xa2   : > { %3681 = vmatmul.mubr.msk.f32.gmra.mxu0 %vm476_vm1, %v298_v20  ;;  %3864 = vmatmul.mubr.msk.f32.gmra.mxu1 %vm476_vm1, %v420_v21 }
  0xa3   : > { %3683 = vmatprep.mubr.msk.f32.mxu0 %vm476_vm1, %v299_v22  ;;  %3866 = vmatprep.mubr.msk.f32.mxu1 %vm476_vm1, %v421_v23 }
  0xa6   : > { %3684 = vmatmul.mubr.msk.f32.gmra.mxu0 %vm476_vm1, %v300_v24  ;;  %3867 = vmatmul.mubr.msk.f32.gmra.mxu1 %vm476_vm1, %v422_v25 }
  0xa7   : > { %3686 = vmatprep.mubr.msk.f32.mxu0 %vm476_vm1, %v301_v26  ;;  %3869 = vmatprep.mubr.msk.f32.mxu1 %vm476_vm1, %v423_v27 }
  0xaa   : > { %3687 = vmatmul.mubr.msk.f32.gmra.mxu0 %vm476_vm1, %v302_v28  ;;  %3870 = vmatmul.mubr.msk.f32.gmra.mxu1 %vm476_vm1, %v424_v29  ;;  %v326_v29 = vld [vmem:[%s4041_s24 + $0x328] sm:$0xff] }
  0xab   : > { %3689 = vmatprep.mubr.msk.f32.mxu0 %vm476_vm1, %v303_v30  ;;  %3872 = vmatprep.mubr.msk.f32.mxu1 %vm476_vm1, %v425_v31  ;;  %v448_v30 = vld [vmem:[%s4041_s24 + $0x6f8] sm:$0xff] }
  0xae   : > { %3690 = vmatmul.mubr.msk.f32.gmra.mxu0 %vm476_vm1, %v304_v32  ;;  %3873 = vmatmul.mubr.msk.f32.gmra.mxu1 %vm476_vm1, %v426_v33  ;;  %v327_v33 = vld [vmem:[%s4041_s24 + $0x330] sm:$0xff] }
  0xaf   : > { %3692 = vmatprep.mubr.msk.f32.mxu0 %vm476_vm1, %v305_v34  ;;  %3875 = vmatprep.mubr.msk.f32.mxu1 %vm476_vm1, %v427_v35  ;;  %v449_v34 = vld [vmem:[%s4041_s24 + $0x700] sm:$0xff] }
  0xb2   : > { %3693 = vmatmul.mubr.msk.f32.gmra.mxu0 %vm476_vm1, %v306_v36  ;;  %3876 = vmatmul.mubr.msk.f32.gmra.mxu1 %vm476_vm1, %v428_v37 }
  0xb3   : > { %3695 = vmatprep.mubr.msk.f32.mxu0 %vm476_vm1, %v307_v38  ;;  %3878 = vmatprep.mubr.msk.f32.mxu1 %vm476_vm1, %v429_v39 }
  0xb6   : > { %3696 = vmatmul.mubr.msk.f32.gmra.mxu0 %vm476_vm1, %v308_v40  ;;  %3879 = vmatmul.mubr.msk.f32.gmra.mxu1 %vm476_vm1, %v430_v41 }
  0xb7   : > { %3698 = vmatprep.mubr.msk.f32.mxu0 %vm476_vm1, %v309_v42  ;;  %3881 = vmatprep.mubr.msk.f32.mxu1 %vm476_vm1, %v431_v43 }
  0xba   : > { %3699 = vmatmul.mubr.msk.f32.gmra.mxu0 %vm476_vm1, %v310_v44  ;;  %3882 = vmatmul.mubr.msk.f32.gmra.mxu1 %vm476_vm1, %v432_v45  ;;  %v328_v45 = vld [vmem:[%s4041_s24 + $0x338] sm:$0xff] }
  0xbb   : > { %3701 = vmatprep.mubr.msk.f32.mxu0 %vm476_vm1, %v311_v46  ;;  %3884 = vmatprep.mubr.msk.f32.mxu1 %vm476_vm1, %v433_v47  ;;  %v450_v46 = vld [vmem:[%s4041_s24 + $0x708] sm:$0xff] }
  0xbe   : > { %3702 = vmatmul.mubr.msk.f32.gmra.mxu0 %vm476_vm1, %v312_v48  ;;  %3885 = vmatmul.mubr.msk.f32.gmra.mxu1 %vm476_vm1, %v434_v49  ;;  %v329_v49 = vld [vmem:[%s4041_s24 + $0x340] sm:$0xff] }
  0xbf   : > { %3704 = vmatprep.mubr.msk.f32.mxu0 %vm476_vm1, %v313_v50  ;;  %3887 = vmatprep.mubr.msk.f32.mxu1 %vm476_vm1, %v435_v51  ;;  %v451_v50 = vld [vmem:[%s4041_s24 + $0x710] sm:$0xff] }
  0xc2   : > { %3705 = vmatmul.mubr.msk.f32.gmra.mxu0 %vm476_vm1, %v314_v52  ;;  %3888 = vmatmul.mubr.msk.f32.gmra.mxu1 %vm476_vm1, %v436_v53 }
  0xc3   : > { %3707 = vmatprep.mubr.msk.f32.mxu0 %vm476_vm1, %v315_v54  ;;  %3890 = vmatprep.mubr.msk.f32.mxu1 %vm476_vm1, %v437_v55 }
  0xc6   : > { %3708 = vmatmul.mubr.msk.f32.gmra.mxu0 %vm476_vm1, %v316_v56  ;;  %3891 = vmatmul.mubr.msk.f32.gmra.mxu1 %vm476_vm1, %v438_v57 }
  0xc7   : > { %3710 = vmatprep.mubr.msk.f32.mxu0 %vm476_vm1, %v317_v58  ;;  %3893 = vmatprep.mubr.msk.f32.mxu1 %vm476_vm1, %v439_v59 }
  0xca   : > { %3711 = vmatmul.mubr.msk.f32.gmra.mxu0 %vm476_vm1, %v318_v60  ;;  %3894 = vmatmul.mubr.msk.f32.gmra.mxu1 %vm476_vm1, %v440_v61  ;;  %v330_v61 = vld [vmem:[%s4041_s24 + $0x348] sm:$0xff] }
  0xcb   : > { %3713 = vmatprep.mubr.msk.f32.mxu0 %vm476_vm1, %v319_v62  ;;  %3896 = vmatprep.mubr.msk.f32.mxu1 %vm476_vm1, %v441_v63  ;;  %v452_v62 = vld [vmem:[%s4041_s24 + $0x718] sm:$0xff] }
  0xce   : > { %3714 = vmatmul.mubr.msk.f32.gmra.mxu0 %vm476_vm1, %v320_v0  ;;  %3897 = vmatmul.mubr.msk.f32.gmra.mxu1 %vm476_vm1, %v442_v1  ;;  %v331_v1 = vld [vmem:[%s4041_s24 + $0x350] sm:$0xff] }
  0xcf   : > { %3716 = vmatprep.mubr.msk.f32.mxu0 %vm476_vm1, %v321_v2  ;;  %3899 = vmatprep.mubr.msk.f32.mxu1 %vm476_vm1, %v443_v3  ;;  %v453_v2 = vld [vmem:[%s4041_s24 + $0x720] sm:$0xff] }
  0xd2   : > { %v3574_v9 = vpop.f32.mrf.mxu0  ;;  %3717 = vmatmul.mubr.msk.f32.gmra.mxu0 %vm476_vm1, %v322_v4  ;;  %v3757_v10 = vpop.f32.mrf.mxu1  ;;  %3900 = vmatmul.mubr.msk.f32.gmra.mxu1 %vm476_vm1, %v444_v5 }
  0xd3   : > { %v1279_v11 = vadd.f32 %v3574_v9, %v4436_v6  ;;  %v1889_v12 = vadd.f32 %v3757_v10, %v4436_v6  ;;  %3719 = vmatprep.mubr.msk.f32.mxu0 %vm476_vm1, %v323_v7  ;;  %3902 = vmatprep.mubr.msk.f32.mxu1 %vm476_vm1, %v445_v8 }
  0xd4   : > { %v1273_v15 = vpop.f32.mrf.mxu0  ;;  %v1883_v16 = vpop.f32.mrf.mxu1 }
  0xd5   : > { %v2483_v19 = vmax.f32 %v1279_v11, 0.0  ;;  %v1274_v20 = vadd.f32 %v4436_v6, %v1273_v15  ;;  %v2605_v21 = vmax.f32 %v1889_v12, 0.0  ;;  %v1884_v22 = vadd.f32 %v4436_v6, %v1883_v16  ;;  %v454_v15 = vld [vmem:[%s4041_s24 + $0x728] sm:$0xff] }
  0xd6   : > { %v3577_v23 = vpop.f32.mrf.mxu0  ;;  %3720 = vmatmul.mubr.msk.f32.gmra.mxu0 %vm476_vm1, %v324_v13  ;;  %v3760_v24 = vpop.f32.mrf.mxu1  ;;  %3903 = vmatmul.mubr.msk.f32.gmra.mxu1 %vm476_vm1, %v446_v14  ;;  %v332_v14 = vld [vmem:[%s4041_s24 + $0x358] sm:$0xff] }
  0xd7   : > { %2726 = vst.msk [vmem:[%s4453_s29 + $0x8] sm:$0xff] %vm2724_vm2, %v2483_v19  ;;  %v2482_v25 = vmax.f32 %v1274_v20, 0.0  ;;  %2848 = vst.msk [vmem:[%s4453_s29 + $0x3d8] sm:$0xff] %vm2724_vm2, %v2605_v21  ;;  %v1289_v26 = vadd.f32 %v3577_v23, %v4436_v6  ;;  %v2604_v27 = vmax.f32 %v1884_v22, 0.0  ;;  %v1899_v28 = vadd.f32 %v3760_v24, %v4436_v6  ;;  %3722 = vmatprep.mubr.msk.f32.mxu0 %vm476_vm1, %v325_v17  ;;  %v455_v19 = vld [vmem:[%s4041_s24 + $0x730] sm:$0xff] }
  0xd8   : > { %3905 = vmatprep.mubr.msk.f32.mxu1 %vm476_vm1, %v447_v18  ;;  %v1283_v31 = vpop.f32.mrf.mxu0  ;;  %v1893_v32 = vpop.f32.mrf.mxu1  ;;  %v333_v18 = vld [vmem:[%s4041_s24 + $0x360] sm:$0xff] }
  0xd9   : > { %2725 = vst.msk [vmem:[%s4453_s29] sm:$0xff] %vm2724_vm2, %v2482_v25  ;;  %v2485_v35 = vmax.f32 %v1289_v26, 0.0  ;;  %2847 = vst.msk [vmem:[%s4453_s29 + $0x3d0] sm:$0xff] %vm2724_vm2, %v2604_v27  ;;  %v1284_v36 = vadd.f32 %v4436_v6, %v1283_v31  ;;  %v2607_v37 = vmax.f32 %v1899_v28, 0.0  ;;  %v1894_v38 = vadd.f32 %v4436_v6, %v1893_v32  ;;  %v456_v31 = vld [vmem:[%s4041_s24 + $0x738] sm:$0xff] }
  0xda   : > { %v3580_v39 = vpop.f32.mrf.mxu0  ;;  %3723 = vmatmul.mubr.msk.f32.gmra.mxu0 %vm476_vm1, %v326_v29  ;;  %v3763_v40 = vpop.f32.mrf.mxu1  ;;  %3906 = vmatmul.mubr.msk.f32.gmra.mxu1 %vm476_vm1, %v448_v30  ;;  %v334_v30 = vld [vmem:[%s4041_s24 + $0x368] sm:$0xff] }
  0xdb   : > { %2728 = vst.msk [vmem:[%s4453_s29 + $0x18] sm:$0xff] %vm2724_vm2, %v2485_v35  ;;  %v2484_v41 = vmax.f32 %v1284_v36, 0.0  ;;  %2850 = vst.msk [vmem:[%s4453_s29 + $0x3e8] sm:$0xff] %vm2724_vm2, %v2607_v37  ;;  %v1299_v42 = vadd.f32 %v3580_v39, %v4436_v6  ;;  %v2606_v43 = vmax.f32 %v1894_v38, 0.0  ;;  %v1909_v44 = vadd.f32 %v3763_v40, %v4436_v6  ;;  %3725 = vmatprep.mubr.msk.f32.mxu0 %vm476_vm1, %v327_v33  ;;  %v457_v35 = vld [vmem:[%s4041_s24 + $0x740] sm:$0xff] }
  0xdc   : > { %3908 = vmatprep.mubr.msk.f32.mxu1 %vm476_vm1, %v449_v34  ;;  %v1293_v47 = vpop.f32.mrf.mxu0  ;;  %v1903_v48 = vpop.f32.mrf.mxu1  ;;  %v335_v34 = vld [vmem:[%s4041_s24 + $0x370] sm:$0xff] }
  0xdd   : > { %2727 = vst.msk [vmem:[%s4453_s29 + $0x10] sm:$0xff] %vm2724_vm2, %v2484_v41  ;;  %v2487_v51 = vmax.f32 %v1299_v42, 0.0  ;;  %2849 = vst.msk [vmem:[%s4453_s29 + $0x3e0] sm:$0xff] %vm2724_vm2, %v2606_v43  ;;  %v1294_v52 = vadd.f32 %v4436_v6, %v1293_v47  ;;  %v2609_v53 = vmax.f32 %v1909_v44, 0.0  ;;  %v1904_v54 = vadd.f32 %v4436_v6, %v1903_v48  ;;  %v458_v47 = vld [vmem:[%s4041_s24 + $0x748] sm:$0xff] }
  0xde   : > { %v3583_v55 = vpop.f32.mrf.mxu0  ;;  %3726 = vmatmul.mubr.msk.f32.gmra.mxu0 %vm476_vm1, %v328_v45  ;;  %v3766_v56 = vpop.f32.mrf.mxu1  ;;  %3909 = vmatmul.mubr.msk.f32.gmra.mxu1 %vm476_vm1, %v450_v46  ;;  %v336_v46 = vld [vmem:[%s4041_s24 + $0x378] sm:$0xff] }
  0xdf   : > { %2730 = vst.msk [vmem:[%s4453_s29 + $0x28] sm:$0xff] %vm2724_vm2, %v2487_v51  ;;  %v2486_v57 = vmax.f32 %v1294_v52, 0.0  ;;  %2852 = vst.msk [vmem:[%s4453_s29 + $0x3f8] sm:$0xff] %vm2724_vm2, %v2609_v53  ;;  %v1309_v58 = vadd.f32 %v3583_v55, %v4436_v6  ;;  %v2608_v59 = vmax.f32 %v1904_v54, 0.0  ;;  %v1919_v60 = vadd.f32 %v3766_v56, %v4436_v6  ;;  %3728 = vmatprep.mubr.msk.f32.mxu0 %vm476_vm1, %v329_v49  ;;  %v459_v51 = vld [vmem:[%s4041_s24 + $0x750] sm:$0xff] }
  0xe0   : > { %3911 = vmatprep.mubr.msk.f32.mxu1 %vm476_vm1, %v451_v50  ;;  %v1303_v63 = vpop.f32.mrf.mxu0  ;;  %v1913_v0 = vpop.f32.mrf.mxu1  ;;  %v337_v50 = vld [vmem:[%s4041_s24 + $0x380] sm:$0xff] }
  0xe1   : > { %2729 = vst.msk [vmem:[%s4453_s29 + $0x20] sm:$0xff] %vm2724_vm2, %v2486_v57  ;;  %v2489_v3 = vmax.f32 %v1309_v58, 0.0  ;;  %2851 = vst.msk [vmem:[%s4453_s29 + $0x3f0] sm:$0xff] %vm2724_vm2, %v2608_v59  ;;  %v1304_v4 = vadd.f32 %v4436_v6, %v1303_v63  ;;  %v2611_v5 = vmax.f32 %v1919_v60, 0.0  ;;  %v1914_v7 = vadd.f32 %v4436_v6, %v1913_v0  ;;  %v460_v63 = vld [vmem:[%s4041_s24 + $0x758] sm:$0xff] }
  0xe2   : > { %v3586_v8 = vpop.f32.mrf.mxu0  ;;  %3729 = vmatmul.mubr.msk.f32.gmra.mxu0 %vm476_vm1, %v330_v61  ;;  %v3769_v9 = vpop.f32.mrf.mxu1  ;;  %3912 = vmatmul.mubr.msk.f32.gmra.mxu1 %vm476_vm1, %v452_v62  ;;  %v338_v62 = vld [vmem:[%s4041_s24 + $0x388] sm:$0xff] }
  0xe3   : > { %2732 = vst.msk [vmem:[%s4453_s29 + $0x38] sm:$0xff] %vm2724_vm2, %v2489_v3  ;;  %v2488_v10 = vmax.f32 %v1304_v4, 0.0  ;;  %2854 = vst.msk [vmem:[%s4453_s29 + $0x408] sm:$0xff] %vm2724_vm2, %v2611_v5  ;;  %v1319_v11 = vadd.f32 %v3586_v8, %v4436_v6  ;;  %v2610_v12 = vmax.f32 %v1914_v7, 0.0  ;;  %v1929_v13 = vadd.f32 %v3769_v9, %v4436_v6  ;;  %3731 = vmatprep.mubr.msk.f32.mxu0 %vm476_vm1, %v331_v1  ;;  %v461_v3 = vld [vmem:[%s4041_s24 + $0x760] sm:$0xff] }
  0xe4   : > { %3914 = vmatprep.mubr.msk.f32.mxu1 %vm476_vm1, %v453_v2  ;;  %v1313_v16 = vpop.f32.mrf.mxu0  ;;  %v1923_v17 = vpop.f32.mrf.mxu1  ;;  %v339_v2 = vld [vmem:[%s4041_s24 + $0x390] sm:$0xff] }
  0xe5   : > { %2731 = vst.msk [vmem:[%s4453_s29 + $0x30] sm:$0xff] %vm2724_vm2, %v2488_v10  ;;  %v2491_v20 = vmax.f32 %v1319_v11, 0.0  ;;  %2853 = vst.msk [vmem:[%s4453_s29 + $0x400] sm:$0xff] %vm2724_vm2, %v2610_v12  ;;  %v1314_v21 = vadd.f32 %v4436_v6, %v1313_v16  ;;  %v2613_v22 = vmax.f32 %v1929_v13, 0.0  ;;  %v1924_v23 = vadd.f32 %v4436_v6, %v1923_v17  ;;  %v462_v16 = vld [vmem:[%s4041_s24 + $0x768] sm:$0xff] }
  0xe6   : > { %v3589_v24 = vpop.f32.mrf.mxu0  ;;  %3732 = vmatmul.mubr.msk.f32.gmra.mxu0 %vm476_vm1, %v332_v14  ;;  %v3772_v25 = vpop.f32.mrf.mxu1  ;;  %3915 = vmatmul.mubr.msk.f32.gmra.mxu1 %vm476_vm1, %v454_v15  ;;  %v340_v15 = vld [vmem:[%s4041_s24 + $0x398] sm:$0xff] }
  0xe7   : > { %2734 = vst.msk [vmem:[%s4453_s29 + $0x48] sm:$0xff] %vm2724_vm2, %v2491_v20  ;;  %v2490_v26 = vmax.f32 %v1314_v21, 0.0  ;;  %2856 = vst.msk [vmem:[%s4453_s29 + $0x418] sm:$0xff] %vm2724_vm2, %v2613_v22  ;;  %v1329_v27 = vadd.f32 %v3589_v24, %v4436_v6  ;;  %v2612_v28 = vmax.f32 %v1924_v23, 0.0  ;;  %v1939_v29 = vadd.f32 %v3772_v25, %v4436_v6  ;;  %3734 = vmatprep.mubr.msk.f32.mxu0 %vm476_vm1, %v333_v18  ;;  %v463_v20 = vld [vmem:[%s4041_s24 + $0x770] sm:$0xff] }
  0xe8   : > { %3917 = vmatprep.mubr.msk.f32.mxu1 %vm476_vm1, %v455_v19  ;;  %v1323_v32 = vpop.f32.mrf.mxu0  ;;  %v1933_v33 = vpop.f32.mrf.mxu1  ;;  %v341_v19 = vld [vmem:[%s4041_s24 + $0x3a0] sm:$0xff] }
  0xe9   : > { %2733 = vst.msk [vmem:[%s4453_s29 + $0x40] sm:$0xff] %vm2724_vm2, %v2490_v26  ;;  %v2493_v36 = vmax.f32 %v1329_v27, 0.0  ;;  %2855 = vst.msk [vmem:[%s4453_s29 + $0x410] sm:$0xff] %vm2724_vm2, %v2612_v28  ;;  %v1324_v37 = vadd.f32 %v4436_v6, %v1323_v32  ;;  %v2615_v38 = vmax.f32 %v1939_v29, 0.0  ;;  %v1934_v39 = vadd.f32 %v4436_v6, %v1933_v33  ;;  %v464_v32 = vld [vmem:[%s4041_s24 + $0x778] sm:$0xff] }
  0xea   : > { %v3592_v40 = vpop.f32.mrf.mxu0  ;;  %3735 = vmatmul.mubr.msk.f32.gmra.mxu0 %vm476_vm1, %v334_v30  ;;  %v3775_v41 = vpop.f32.mrf.mxu1  ;;  %3918 = vmatmul.mubr.msk.f32.gmra.mxu1 %vm476_vm1, %v456_v31  ;;  %v342_v31 = vld [vmem:[%s4041_s24 + $0x3a8] sm:$0xff] }
  0xeb   : > { %2736 = vst.msk [vmem:[%s4453_s29 + $0x58] sm:$0xff] %vm2724_vm2, %v2493_v36  ;;  %v2492_v42 = vmax.f32 %v1324_v37, 0.0  ;;  %2858 = vst.msk [vmem:[%s4453_s29 + $0x428] sm:$0xff] %vm2724_vm2, %v2615_v38  ;;  %v1339_v43 = vadd.f32 %v3592_v40, %v4436_v6  ;;  %v2614_v44 = vmax.f32 %v1934_v39, 0.0  ;;  %v1949_v45 = vadd.f32 %v3775_v41, %v4436_v6  ;;  %3737 = vmatprep.mubr.msk.f32.mxu0 %vm476_vm1, %v335_v34  ;;  %v465_v36 = vld [vmem:[%s4041_s24 + $0x780] sm:$0xff] }
  0xec   : > { %3920 = vmatprep.mubr.msk.f32.mxu1 %vm476_vm1, %v457_v35  ;;  %v1333_v48 = vpop.f32.mrf.mxu0  ;;  %v1943_v49 = vpop.f32.mrf.mxu1  ;;  %v343_v35 = vld [vmem:[%s4041_s24 + $0x3b0] sm:$0xff] }
  0xed   : > { %2735 = vst.msk [vmem:[%s4453_s29 + $0x50] sm:$0xff] %vm2724_vm2, %v2492_v42  ;;  %v2495_v52 = vmax.f32 %v1339_v43, 0.0  ;;  %2857 = vst.msk [vmem:[%s4453_s29 + $0x420] sm:$0xff] %vm2724_vm2, %v2614_v44  ;;  %v1334_v53 = vadd.f32 %v4436_v6, %v1333_v48  ;;  %v2617_v54 = vmax.f32 %v1949_v45, 0.0  ;;  %v1944_v55 = vadd.f32 %v4436_v6, %v1943_v49  ;;  %v466_v48 = vld [vmem:[%s4041_s24 + $0x788] sm:$0xff] }
  0xee   : > { %v3595_v56 = vpop.f32.mrf.mxu0  ;;  %3738 = vmatmul.mubr.msk.f32.gmra.mxu0 %vm476_vm1, %v336_v46  ;;  %v3778_v57 = vpop.f32.mrf.mxu1  ;;  %3921 = vmatmul.mubr.msk.f32.gmra.mxu1 %vm476_vm1, %v458_v47  ;;  %v344_v47 = vld [vmem:[%s4041_s24 + $0x3b8] sm:$0xff] }
  0xef   : > { %2738 = vst.msk [vmem:[%s4453_s29 + $0x68] sm:$0xff] %vm2724_vm2, %v2495_v52  ;;  %v2494_v58 = vmax.f32 %v1334_v53, 0.0  ;;  %2860 = vst.msk [vmem:[%s4453_s29 + $0x438] sm:$0xff] %vm2724_vm2, %v2617_v54  ;;  %v1349_v59 = vadd.f32 %v3595_v56, %v4436_v6  ;;  %v2616_v60 = vmax.f32 %v1944_v55, 0.0  ;;  %v1959_v61 = vadd.f32 %v3778_v57, %v4436_v6  ;;  %3740 = vmatprep.mubr.msk.f32.mxu0 %vm476_vm1, %v337_v50 }
  0xf0   : > { %3923 = vmatprep.mubr.msk.f32.mxu1 %vm476_vm1, %v459_v51  ;;  %v1343_v0 = vpop.f32.mrf.mxu0  ;;  %v1953_v1 = vpop.f32.mrf.mxu1  ;;  %v345_v51 = vld [vmem:[%s4041_s24 + $0x3c0] sm:$0xff] }
  0xf1   : > { %2737 = vst.msk [vmem:[%s4453_s29 + $0x60] sm:$0xff] %vm2724_vm2, %v2494_v58  ;;  %v2497_v4 = vmax.f32 %v1349_v59, 0.0  ;;  %2859 = vst.msk [vmem:[%s4453_s29 + $0x430] sm:$0xff] %vm2724_vm2, %v2616_v60  ;;  %v1344_v5 = vadd.f32 %v4436_v6, %v1343_v0  ;;  %v2619_v7 = vmax.f32 %v1959_v61, 0.0  ;;  %v1954_v8 = vadd.f32 %v4436_v6, %v1953_v1 }
  0xf2   : > { %v3598_v9 = vpop.f32.mrf.mxu0  ;;  %3741 = vmatmul.mubr.msk.f32.gmra.mxu0 %vm476_vm1, %v338_v62  ;;  %v3781_v10 = vpop.f32.mrf.mxu1  ;;  %3924 = vmatmul.mubr.msk.f32.gmra.mxu1 %vm476_vm1, %v460_v63  ;;  %v346_v62 = vld [vmem:[%s4041_s24 + $0x3c8] sm:$0xff] }
  0xf3   : > { %2740 = vst.msk [vmem:[%s4453_s29 + $0x78] sm:$0xff] %vm2724_vm2, %v2497_v4  ;;  %v2496_v11 = vmax.f32 %v1344_v5, 0.0  ;;  %2862 = vst.msk [vmem:[%s4453_s29 + $0x448] sm:$0xff] %vm2724_vm2, %v2619_v7  ;;  %v1359_v12 = vadd.f32 %v3598_v9, %v4436_v6  ;;  %v2618_v13 = vmax.f32 %v1954_v8, 0.0  ;;  %v1969_v14 = vadd.f32 %v3781_v10, %v4436_v6  ;;  %3743 = vmatprep.mubr.msk.f32.mxu0 %vm476_vm1, %v339_v2 }
  0xf4   : > { %3926 = vmatprep.mubr.msk.f32.mxu1 %vm476_vm1, %v461_v3  ;;  %v1353_v17 = vpop.f32.mrf.mxu0  ;;  %v1963_v18 = vpop.f32.mrf.mxu1 }
  0xf5   : > { %2739 = vst.msk [vmem:[%s4453_s29 + $0x70] sm:$0xff] %vm2724_vm2, %v2496_v11  ;;  %v2499_v21 = vmax.f32 %v1359_v12, 0.0  ;;  %2861 = vst.msk [vmem:[%s4453_s29 + $0x440] sm:$0xff] %vm2724_vm2, %v2618_v13  ;;  %v1354_v22 = vadd.f32 %v4436_v6, %v1353_v17  ;;  %v2621_v23 = vmax.f32 %v1969_v14, 0.0  ;;  %v1964_v24 = vadd.f32 %v4436_v6, %v1963_v18 }
  0xf6   : > { %v3601_v25 = vpop.f32.mrf.mxu0  ;;  %3744 = vmatmul.mubr.msk.f32.gmra.mxu0 %vm476_vm1, %v340_v15  ;;  %v3784_v26 = vpop.f32.mrf.mxu1  ;;  %3927 = vmatmul.mubr.msk.f32.gmra.mxu1 %vm476_vm1, %v462_v16 }
  0xf7   : > { %2742 = vst.msk [vmem:[%s4453_s29 + $0x88] sm:$0xff] %vm2724_vm2, %v2499_v21  ;;  %v2498_v27 = vmax.f32 %v1354_v22, 0.0  ;;  %2864 = vst.msk [vmem:[%s4453_s29 + $0x458] sm:$0xff] %vm2724_vm2, %v2621_v23  ;;  %v1369_v28 = vadd.f32 %v3601_v25, %v4436_v6  ;;  %v2620_v29 = vmax.f32 %v1964_v24, 0.0  ;;  %v1979_v30 = vadd.f32 %v3784_v26, %v4436_v6  ;;  %3746 = vmatprep.mubr.msk.f32.mxu0 %vm476_vm1, %v341_v19 }
  0xf8   : > { %3929 = vmatprep.mubr.msk.f32.mxu1 %vm476_vm1, %v463_v20  ;;  %v1363_v33 = vpop.f32.mrf.mxu0  ;;  %v1973_v34 = vpop.f32.mrf.mxu1 }
  0xf9   : > { %2741 = vst.msk [vmem:[%s4453_s29 + $0x80] sm:$0xff] %vm2724_vm2, %v2498_v27  ;;  %v2501_v37 = vmax.f32 %v1369_v28, 0.0  ;;  %2863 = vst.msk [vmem:[%s4453_s29 + $0x450] sm:$0xff] %vm2724_vm2, %v2620_v29  ;;  %v1364_v38 = vadd.f32 %v4436_v6, %v1363_v33  ;;  %v2623_v39 = vmax.f32 %v1979_v30, 0.0  ;;  %v1974_v40 = vadd.f32 %v4436_v6, %v1973_v34 }
  0xfa   : > { %v3604_v41 = vpop.f32.mrf.mxu0  ;;  %3747 = vmatmul.mubr.msk.f32.gmra.mxu0 %vm476_vm1, %v342_v31  ;;  %v3787_v42 = vpop.f32.mrf.mxu1  ;;  %3930 = vmatmul.mubr.msk.f32.gmra.mxu1 %vm476_vm1, %v464_v32 }
  0xfb   : > { %2744 = vst.msk [vmem:[%s4453_s29 + $0x98] sm:$0xff] %vm2724_vm2, %v2501_v37  ;;  %v2500_v43 = vmax.f32 %v1364_v38, 0.0  ;;  %2866 = vst.msk [vmem:[%s4453_s29 + $0x468] sm:$0xff] %vm2724_vm2, %v2623_v39  ;;  %v1379_v44 = vadd.f32 %v3604_v41, %v4436_v6  ;;  %v2622_v45 = vmax.f32 %v1974_v40, 0.0  ;;  %v1989_v46 = vadd.f32 %v3787_v42, %v4436_v6  ;;  %3749 = vmatprep.mubr.msk.f32.mxu0 %vm476_vm1, %v343_v35 }
  0xfc   : > { %3932 = vmatprep.mubr.msk.f32.mxu1 %vm476_vm1, %v465_v36  ;;  %v1373_v49 = vpop.f32.mrf.mxu0  ;;  %v1983_v50 = vpop.f32.mrf.mxu1 }
  0xfd   : > { %2743 = vst.msk [vmem:[%s4453_s29 + $0x90] sm:$0xff] %vm2724_vm2, %v2500_v43  ;;  %v2503_v52 = vmax.f32 %v1379_v44, 0.0  ;;  %2865 = vst.msk [vmem:[%s4453_s29 + $0x460] sm:$0xff] %vm2724_vm2, %v2622_v45  ;;  %v1374_v53 = vadd.f32 %v4436_v6, %v1373_v49  ;;  %v2625_v54 = vmax.f32 %v1989_v46, 0.0  ;;  %v1984_v55 = vadd.f32 %v4436_v6, %v1983_v50 }
  0xfe   : > { %v3607_v56 = vpop.f32.mrf.mxu0  ;;  %3750 = vmatmul.mubr.msk.f32.gmra.mxu0 %vm476_vm1, %v344_v47  ;;  %v3790_v57 = vpop.f32.mrf.mxu1  ;;  %3933 = vmatmul.mubr.msk.f32.gmra.mxu1 %vm476_vm1, %v466_v48 }
  0xff   : > { %2746 = vst.msk [vmem:[%s4453_s29 + $0xa8] sm:$0xff] %vm2724_vm2, %v2503_v52  ;;  %v2502_v58 = vmax.f32 %v1374_v53, 0.0  ;;  %2868 = vst.msk [vmem:[%s4453_s29 + $0x478] sm:$0xff] %vm2724_vm2, %v2625_v54  ;;  %v1389_v59 = vadd.f32 %v3607_v56, %v4436_v6  ;;  %v2624_v60 = vmax.f32 %v1984_v55, 0.0  ;;  %v1999_v61 = vadd.f32 %v3790_v57, %v4436_v6  ;;  %3752 = vmatprep.mubr.msk.f32.mxu0 %vm476_vm1, %v345_v51 }
 0x100   : > { %v1383_v63 = vpop.f32.mrf.mxu0  ;;  %v1993_v0 = vpop.f32.mrf.mxu1 }
 0x101   : > { %2745 = vst.msk [vmem:[%s4453_s29 + $0xa0] sm:$0xff] %vm2724_vm2, %v2502_v58  ;;  %v2505_v1 = vmax.f32 %v1389_v59, 0.0  ;;  %2867 = vst.msk [vmem:[%s4453_s29 + $0x470] sm:$0xff] %vm2724_vm2, %v2624_v60  ;;  %v1384_v2 = vadd.f32 %v4436_v6, %v1383_v63  ;;  %v2627_v3 = vmax.f32 %v1999_v61, 0.0  ;;  %v1994_v4 = vadd.f32 %v4436_v6, %v1993_v0 }
 0x102   : > { %v3610_v5 = vpop.f32.mrf.mxu0  ;;  %3753 = vmatmul.mubr.msk.f32.gmra.mxu0 %vm476_vm1, %v346_v62  ;;  %v3793_v7 = vpop.f32.mrf.mxu1 }
 0x103   : > { %2748 = vst.msk [vmem:[%s4453_s29 + $0xb8] sm:$0xff] %vm2724_vm2, %v2505_v1  ;;  %v2504_v8 = vmax.f32 %v1384_v2, 0.0  ;;  %2870 = vst.msk [vmem:[%s4453_s29 + $0x488] sm:$0xff] %vm2724_vm2, %v2627_v3  ;;  %v1399_v9 = vadd.f32 %v3610_v5, %v4436_v6  ;;  %v2626_v10 = vmax.f32 %v1994_v4, 0.0  ;;  %v2009_v11 = vadd.f32 %v3793_v7, %v4436_v6 }
 0x104   : > { %v1393_v12 = vpop.f32.mrf.mxu0  ;;  %v2003_v13 = vpop.f32.mrf.mxu1 }
 0x105   : > { %2747 = vst.msk [vmem:[%s4453_s29 + $0xb0] sm:$0xff] %vm2724_vm2, %v2504_v8  ;;  %v2507_v14 = vmax.f32 %v1399_v9, 0.0  ;;  %2869 = vst.msk [vmem:[%s4453_s29 + $0x480] sm:$0xff] %vm2724_vm2, %v2626_v10  ;;  %v1394_v15 = vadd.f32 %v4436_v6, %v1393_v12  ;;  %v2629_v16 = vmax.f32 %v2009_v11, 0.0  ;;  %v2004_v17 = vadd.f32 %v4436_v6, %v2003_v13 }
 0x106   : > { %v3613_v18 = vpop.f32.mrf.mxu0  ;;  %v3796_v19 = vpop.f32.mrf.mxu1 }
 0x107   : > { %2750 = vst.msk [vmem:[%s4453_s29 + $0xc8] sm:$0xff] %vm2724_vm2, %v2507_v14  ;;  %v2506_v20 = vmax.f32 %v1394_v15, 0.0  ;;  %2872 = vst.msk [vmem:[%s4453_s29 + $0x498] sm:$0xff] %vm2724_vm2, %v2629_v16  ;;  %v1409_v21 = vadd.f32 %v3613_v18, %v4436_v6  ;;  %v2628_v22 = vmax.f32 %v2004_v17, 0.0  ;;  %v2019_v23 = vadd.f32 %v3796_v19, %v4436_v6 }
 0x108   : > { %v1403_v24 = vpop.f32.mrf.mxu0  ;;  %v2013_v25 = vpop.f32.mrf.mxu1 }
 0x109   : > { %2749 = vst.msk [vmem:[%s4453_s29 + $0xc0] sm:$0xff] %vm2724_vm2, %v2506_v20  ;;  %v2509_v26 = vmax.f32 %v1409_v21, 0.0  ;;  %2871 = vst.msk [vmem:[%s4453_s29 + $0x490] sm:$0xff] %vm2724_vm2, %v2628_v22  ;;  %v1404_v27 = vadd.f32 %v4436_v6, %v1403_v24  ;;  %v2631_v28 = vmax.f32 %v2019_v23, 0.0  ;;  %v2014_v29 = vadd.f32 %v4436_v6, %v2013_v25 }
 0x10a   : > { %v3616_v30 = vpop.f32.mrf.mxu0  ;;  %v3799_v31 = vpop.f32.mrf.mxu1 }
 0x10b   : > { %2752 = vst.msk [vmem:[%s4453_s29 + $0xd8] sm:$0xff] %vm2724_vm2, %v2509_v26  ;;  %v2508_v32 = vmax.f32 %v1404_v27, 0.0  ;;  %2874 = vst.msk [vmem:[%s4453_s29 + $0x4a8] sm:$0xff] %vm2724_vm2, %v2631_v28  ;;  %v1419_v33 = vadd.f32 %v3616_v30, %v4436_v6  ;;  %v2630_v34 = vmax.f32 %v2014_v29, 0.0  ;;  %v2029_v35 = vadd.f32 %v3799_v31, %v4436_v6 }
 0x10c   : > { %v1413_v36 = vpop.f32.mrf.mxu0  ;;  %v2023_v37 = vpop.f32.mrf.mxu1 }
 0x10d   : > { %2751 = vst.msk [vmem:[%s4453_s29 + $0xd0] sm:$0xff] %vm2724_vm2, %v2508_v32  ;;  %v2511_v38 = vmax.f32 %v1419_v33, 0.0  ;;  %2873 = vst.msk [vmem:[%s4453_s29 + $0x4a0] sm:$0xff] %vm2724_vm2, %v2630_v34  ;;  %v1414_v39 = vadd.f32 %v4436_v6, %v1413_v36  ;;  %v2633_v40 = vmax.f32 %v2029_v35, 0.0  ;;  %v2024_v41 = vadd.f32 %v4436_v6, %v2023_v37 }
 0x10e   : > { %v3619_v42 = vpop.f32.mrf.mxu0  ;;  %v3802_v43 = vpop.f32.mrf.mxu1 }
 0x10f   : > { %2754 = vst.msk [vmem:[%s4453_s29 + $0xe8] sm:$0xff] %vm2724_vm2, %v2511_v38  ;;  %v2510_v44 = vmax.f32 %v1414_v39, 0.0  ;;  %2876 = vst.msk [vmem:[%s4453_s29 + $0x4b8] sm:$0xff] %vm2724_vm2, %v2633_v40  ;;  %v1429_v45 = vadd.f32 %v3619_v42, %v4436_v6  ;;  %v2632_v46 = vmax.f32 %v2024_v41, 0.0  ;;  %v2039_v47 = vadd.f32 %v3802_v43, %v4436_v6 }
 0x110   : > { %v1423_v48 = vpop.f32.mrf.mxu0  ;;  %v2033_v49 = vpop.f32.mrf.mxu1 }
 0x111   : > { %2753 = vst.msk [vmem:[%s4453_s29 + $0xe0] sm:$0xff] %vm2724_vm2, %v2510_v44  ;;  %v2513_v50 = vmax.f32 %v1429_v45, 0.0  ;;  %2875 = vst.msk [vmem:[%s4453_s29 + $0x4b0] sm:$0xff] %vm2724_vm2, %v2632_v46  ;;  %v1424_v51 = vadd.f32 %v4436_v6, %v1423_v48  ;;  %v2635_v52 = vmax.f32 %v2039_v47, 0.0  ;;  %v2034_v53 = vadd.f32 %v4436_v6, %v2033_v49 }
 0x112   : > { %v3622_v54 = vpop.f32.mrf.mxu0  ;;  %v3805_v55 = vpop.f32.mrf.mxu1 }
 0x113   : > { %2756 = vst.msk [vmem:[%s4453_s29 + $0xf8] sm:$0xff] %vm2724_vm2, %v2513_v50  ;;  %v2512_v56 = vmax.f32 %v1424_v51, 0.0  ;;  %2878 = vst.msk [vmem:[%s4453_s29 + $0x4c8] sm:$0xff] %vm2724_vm2, %v2635_v52  ;;  %v1439_v57 = vadd.f32 %v3622_v54, %v4436_v6  ;;  %v2634_v58 = vmax.f32 %v2034_v53, 0.0  ;;  %v2049_v59 = vadd.f32 %v3805_v55, %v4436_v6 }
 0x114   : > { %v1433_v60 = vpop.f32.mrf.mxu0  ;;  %v2043_v61 = vpop.f32.mrf.mxu1 }
 0x115   : > { %2755 = vst.msk [vmem:[%s4453_s29 + $0xf0] sm:$0xff] %vm2724_vm2, %v2512_v56  ;;  %v2515_v62 = vmax.f32 %v1439_v57, 0.0  ;;  %2877 = vst.msk [vmem:[%s4453_s29 + $0x4c0] sm:$0xff] %vm2724_vm2, %v2634_v58  ;;  %v1434_v63 = vadd.f32 %v4436_v6, %v1433_v60  ;;  %v2637_v0 = vmax.f32 %v2049_v59, 0.0  ;;  %v2044_v1 = vadd.f32 %v4436_v6, %v2043_v61 }
 0x116   : > { %v3625_v2 = vpop.f32.mrf.mxu0  ;;  %v3808_v3 = vpop.f32.mrf.mxu1 }
 0x117   : > { %2758 = vst.msk [vmem:[%s4453_s29 + $0x108] sm:$0xff] %vm2724_vm2, %v2515_v62  ;;  %v2514_v4 = vmax.f32 %v1434_v63, 0.0  ;;  %2880 = vst.msk [vmem:[%s4453_s29 + $0x4d8] sm:$0xff] %vm2724_vm2, %v2637_v0  ;;  %v1449_v5 = vadd.f32 %v3625_v2, %v4436_v6  ;;  %v2636_v7 = vmax.f32 %v2044_v1, 0.0  ;;  %v2059_v8 = vadd.f32 %v3808_v3, %v4436_v6 }
 0x118   : > { %v1443_v9 = vpop.f32.mrf.mxu0  ;;  %v2053_v10 = vpop.f32.mrf.mxu1 }
 0x119   : > { %2757 = vst.msk [vmem:[%s4453_s29 + $0x100] sm:$0xff] %vm2724_vm2, %v2514_v4  ;;  %v2517_v11 = vmax.f32 %v1449_v5, 0.0  ;;  %2879 = vst.msk [vmem:[%s4453_s29 + $0x4d0] sm:$0xff] %vm2724_vm2, %v2636_v7  ;;  %v1444_v12 = vadd.f32 %v4436_v6, %v1443_v9  ;;  %v2639_v13 = vmax.f32 %v2059_v8, 0.0  ;;  %v2054_v14 = vadd.f32 %v4436_v6, %v2053_v10 }
 0x11a   : > { %v3628_v15 = vpop.f32.mrf.mxu0  ;;  %v3811_v16 = vpop.f32.mrf.mxu1 }
 0x11b   : > { %2760 = vst.msk [vmem:[%s4453_s29 + $0x118] sm:$0xff] %vm2724_vm2, %v2517_v11  ;;  %v2516_v17 = vmax.f32 %v1444_v12, 0.0  ;;  %2882 = vst.msk [vmem:[%s4453_s29 + $0x4e8] sm:$0xff] %vm2724_vm2, %v2639_v13  ;;  %v1459_v18 = vadd.f32 %v3628_v15, %v4436_v6  ;;  %v2638_v19 = vmax.f32 %v2054_v14, 0.0  ;;  %v2069_v20 = vadd.f32 %v3811_v16, %v4436_v6 }
 0x11c   : > { %v1453_v21 = vpop.f32.mrf.mxu0  ;;  %v2063_v22 = vpop.f32.mrf.mxu1 }
 0x11d   : > { %2759 = vst.msk [vmem:[%s4453_s29 + $0x110] sm:$0xff] %vm2724_vm2, %v2516_v17  ;;  %v2519_v23 = vmax.f32 %v1459_v18, 0.0  ;;  %2881 = vst.msk [vmem:[%s4453_s29 + $0x4e0] sm:$0xff] %vm2724_vm2, %v2638_v19  ;;  %v1454_v24 = vadd.f32 %v4436_v6, %v1453_v21  ;;  %v2641_v25 = vmax.f32 %v2069_v20, 0.0  ;;  %v2064_v26 = vadd.f32 %v4436_v6, %v2063_v22 }
 0x11e   : > { %v3631_v27 = vpop.f32.mrf.mxu0  ;;  %v3814_v28 = vpop.f32.mrf.mxu1 }
 0x11f   : > { %2762 = vst.msk [vmem:[%s4453_s29 + $0x128] sm:$0xff] %vm2724_vm2, %v2519_v23  ;;  %v2518_v29 = vmax.f32 %v1454_v24, 0.0  ;;  %2884 = vst.msk [vmem:[%s4453_s29 + $0x4f8] sm:$0xff] %vm2724_vm2, %v2641_v25  ;;  %v1469_v30 = vadd.f32 %v3631_v27, %v4436_v6  ;;  %v2640_v31 = vmax.f32 %v2064_v26, 0.0  ;;  %v2079_v32 = vadd.f32 %v3814_v28, %v4436_v6 }
 0x120   : > { %v1463_v33 = vpop.f32.mrf.mxu0  ;;  %v2073_v34 = vpop.f32.mrf.mxu1 }
 0x121   : > { %2761 = vst.msk [vmem:[%s4453_s29 + $0x120] sm:$0xff] %vm2724_vm2, %v2518_v29  ;;  %v2521_v35 = vmax.f32 %v1469_v30, 0.0  ;;  %2883 = vst.msk [vmem:[%s4453_s29 + $0x4f0] sm:$0xff] %vm2724_vm2, %v2640_v31  ;;  %v1464_v36 = vadd.f32 %v4436_v6, %v1463_v33  ;;  %v2643_v37 = vmax.f32 %v2079_v32, 0.0  ;;  %v2074_v38 = vadd.f32 %v4436_v6, %v2073_v34 }
 0x122   : > { %v3634_v39 = vpop.f32.mrf.mxu0  ;;  %v3817_v40 = vpop.f32.mrf.mxu1 }
 0x123   : > { %2764 = vst.msk [vmem:[%s4453_s29 + $0x138] sm:$0xff] %vm2724_vm2, %v2521_v35  ;;  %v2520_v41 = vmax.f32 %v1464_v36, 0.0  ;;  %2886 = vst.msk [vmem:[%s4453_s29 + $0x508] sm:$0xff] %vm2724_vm2, %v2643_v37  ;;  %v1479_v42 = vadd.f32 %v3634_v39, %v4436_v6  ;;  %v2642_v43 = vmax.f32 %v2074_v38, 0.0  ;;  %v2089_v44 = vadd.f32 %v3817_v40, %v4436_v6 }
 0x124   : > { %v1473_v45 = vpop.f32.mrf.mxu0  ;;  %v2083_v46 = vpop.f32.mrf.mxu1 }
 0x125   : > { %2763 = vst.msk [vmem:[%s4453_s29 + $0x130] sm:$0xff] %vm2724_vm2, %v2520_v41  ;;  %v2523_v47 = vmax.f32 %v1479_v42, 0.0  ;;  %2885 = vst.msk [vmem:[%s4453_s29 + $0x500] sm:$0xff] %vm2724_vm2, %v2642_v43  ;;  %v1474_v48 = vadd.f32 %v4436_v6, %v1473_v45  ;;  %v2645_v49 = vmax.f32 %v2089_v44, 0.0  ;;  %v2084_v50 = vadd.f32 %v4436_v6, %v2083_v46 }
 0x126   : > { %v3637_v51 = vpop.f32.mrf.mxu0  ;;  %v3820_v52 = vpop.f32.mrf.mxu1 }
 0x127   : > { %2766 = vst.msk [vmem:[%s4453_s29 + $0x148] sm:$0xff] %vm2724_vm2, %v2523_v47  ;;  %v2522_v53 = vmax.f32 %v1474_v48, 0.0  ;;  %2888 = vst.msk [vmem:[%s4453_s29 + $0x518] sm:$0xff] %vm2724_vm2, %v2645_v49  ;;  %v1489_v54 = vadd.f32 %v3637_v51, %v4436_v6  ;;  %v2644_v55 = vmax.f32 %v2084_v50, 0.0  ;;  %v2099_v56 = vadd.f32 %v3820_v52, %v4436_v6  ;;  %v4850_v51 = vld [vmem:[%s5274_s2] ss:$0 sm:$0xff] }
 0x128   : > { %v1483_v57 = vpop.f32.mrf.mxu0  ;;  %v2093_v58 = vpop.f32.mrf.mxu1 }
 0x129   : > { %2765 = vst.msk [vmem:[%s4453_s29 + $0x140] sm:$0xff] %vm2724_vm2, %v2522_v53  ;;  %v2525_v59 = vmax.f32 %v1489_v54, 0.0  ;;  %2887 = vst.msk [vmem:[%s4453_s29 + $0x510] sm:$0xff] %vm2724_vm2, %v2644_v55  ;;  %v1484_v60 = vadd.f32 %v4436_v6, %v1483_v57  ;;  %v2647_v61 = vmax.f32 %v2099_v56, 0.0  ;;  %v2094_v62 = vadd.f32 %v4436_v6, %v2093_v58 }
 0x12a   : > { %v3640_v63 = vpop.f32.mrf.mxu0  ;;  %v3823_v0 = vpop.f32.mrf.mxu1 }
 0x12b   : > { %2768 = vst.msk [vmem:[%s4453_s29 + $0x158] sm:$0xff] %vm2724_vm2, %v2525_v59  ;;  %v2524_v1 = vmax.f32 %v1484_v60, 0.0  ;;  %2890 = vst.msk [vmem:[%s4453_s29 + $0x528] sm:$0xff] %vm2724_vm2, %v2647_v61  ;;  %v1499_v2 = vadd.f32 %v3640_v63, %v4436_v6  ;;  %v2646_v3 = vmax.f32 %v2094_v62, 0.0  ;;  %v2109_v4 = vadd.f32 %v3823_v0, %v4436_v6 }
 0x12c   : > { %v1493_v5 = vpop.f32.mrf.mxu0  ;;  %v2103_v7 = vpop.f32.mrf.mxu1 }
 0x12d   : > { %2767 = vst.msk [vmem:[%s4453_s29 + $0x150] sm:$0xff] %vm2724_vm2, %v2524_v1  ;;  %v2527_v8 = vmax.f32 %v1499_v2, 0.0  ;;  %2889 = vst.msk [vmem:[%s4453_s29 + $0x520] sm:$0xff] %vm2724_vm2, %v2646_v3  ;;  %v1494_v9 = vadd.f32 %v4436_v6, %v1493_v5  ;;  %v2649_v10 = vmax.f32 %v2109_v4, 0.0  ;;  %v2104_v11 = vadd.f32 %v4436_v6, %v2103_v7 }
 0x12e   : > { %v3643_v12 = vpop.f32.mrf.mxu0  ;;  %v3826_v13 = vpop.f32.mrf.mxu1 }
 0x12f   : > { %2770 = vst.msk [vmem:[%s4453_s29 + $0x168] sm:$0xff] %vm2724_vm2, %v2527_v8  ;;  %v2526_v14 = vmax.f32 %v1494_v9, 0.0  ;;  %2892 = vst.msk [vmem:[%s4453_s29 + $0x538] sm:$0xff] %vm2724_vm2, %v2649_v10  ;;  %v1509_v15 = vadd.f32 %v3643_v12, %v4436_v6  ;;  %v2648_v16 = vmax.f32 %v2104_v11, 0.0  ;;  %v2119_v17 = vadd.f32 %v3826_v13, %v4436_v6 }
 0x130   : > { %v1503_v18 = vpop.f32.mrf.mxu0  ;;  %v2113_v19 = vpop.f32.mrf.mxu1 }
 0x131   : > { %2769 = vst.msk [vmem:[%s4453_s29 + $0x160] sm:$0xff] %vm2724_vm2, %v2526_v14  ;;  %v2529_v20 = vmax.f32 %v1509_v15, 0.0  ;;  %2891 = vst.msk [vmem:[%s4453_s29 + $0x530] sm:$0xff] %vm2724_vm2, %v2648_v16  ;;  %v1504_v21 = vadd.f32 %v4436_v6, %v1503_v18  ;;  %v2651_v22 = vmax.f32 %v2119_v17, 0.0  ;;  %v2114_v23 = vadd.f32 %v4436_v6, %v2113_v19 }
 0x132   : > { %v3646_v24 = vpop.f32.mrf.mxu0  ;;  %v3829_v25 = vpop.f32.mrf.mxu1 }
 0x133   : > { %2772 = vst.msk [vmem:[%s4453_s29 + $0x178] sm:$0xff] %vm2724_vm2, %v2529_v20  ;;  %v2528_v26 = vmax.f32 %v1504_v21, 0.0  ;;  %2894 = vst.msk [vmem:[%s4453_s29 + $0x548] sm:$0xff] %vm2724_vm2, %v2651_v22  ;;  %v1519_v27 = vadd.f32 %v3646_v24, %v4436_v6  ;;  %v2650_v28 = vmax.f32 %v2114_v23, 0.0  ;;  %v2129_v29 = vadd.f32 %v3829_v25, %v4436_v6 }
 0x134   : > { %v1513_v30 = vpop.f32.mrf.mxu0  ;;  %v2123_v31 = vpop.f32.mrf.mxu1 }
 0x135   : > { %2771 = vst.msk [vmem:[%s4453_s29 + $0x170] sm:$0xff] %vm2724_vm2, %v2528_v26  ;;  %v2531_v32 = vmax.f32 %v1519_v27, 0.0  ;;  %2893 = vst.msk [vmem:[%s4453_s29 + $0x540] sm:$0xff] %vm2724_vm2, %v2650_v28  ;;  %v1514_v33 = vadd.f32 %v4436_v6, %v1513_v30  ;;  %v2653_v34 = vmax.f32 %v2129_v29, 0.0  ;;  %v2124_v35 = vadd.f32 %v4436_v6, %v2123_v31 }
 0x136   : > { %v3649_v36 = vpop.f32.mrf.mxu0  ;;  %v3832_v37 = vpop.f32.mrf.mxu1 }
 0x137   : > { %2774 = vst.msk [vmem:[%s4453_s29 + $0x188] sm:$0xff] %vm2724_vm2, %v2531_v32  ;;  %v2530_v38 = vmax.f32 %v1514_v33, 0.0  ;;  %2896 = vst.msk [vmem:[%s4453_s29 + $0x558] sm:$0xff] %vm2724_vm2, %v2653_v34  ;;  %v1529_v39 = vadd.f32 %v3649_v36, %v4436_v6  ;;  %v2652_v40 = vmax.f32 %v2124_v35, 0.0  ;;  %v2139_v41 = vadd.f32 %v3832_v37, %v4436_v6 }
 0x138   : > { %v1523_v42 = vpop.f32.mrf.mxu0  ;;  %v2133_v43 = vpop.f32.mrf.mxu1 }
 0x139   : > { %2773 = vst.msk [vmem:[%s4453_s29 + $0x180] sm:$0xff] %vm2724_vm2, %v2530_v38  ;;  %v2533_v44 = vmax.f32 %v1529_v39, 0.0  ;;  %2895 = vst.msk [vmem:[%s4453_s29 + $0x550] sm:$0xff] %vm2724_vm2, %v2652_v40  ;;  %v1524_v45 = vadd.f32 %v4436_v6, %v1523_v42  ;;  %v2655_v46 = vmax.f32 %v2139_v41, 0.0  ;;  %v2134_v47 = vadd.f32 %v4436_v6, %v2133_v43 }
 0x13a   : > { %v3652_v48 = vpop.f32.mrf.mxu0  ;;  %v3835_v49 = vpop.f32.mrf.mxu1 }
 0x13b   : > { %2776 = vst.msk [vmem:[%s4453_s29 + $0x198] sm:$0xff] %vm2724_vm2, %v2533_v44  ;;  %v2532_v50 = vmax.f32 %v1524_v45, 0.0  ;;  %2898 = vst.msk [vmem:[%s4453_s29 + $0x568] sm:$0xff] %vm2724_vm2, %v2655_v46  ;;  %v1539_v52 = vadd.f32 %v4850_v51, %v3652_v48  ;;  %v2654_v53 = vmax.f32 %v2134_v47, 0.0  ;;  %v2149_v54 = vadd.f32 %v4850_v51, %v3835_v49 }
 0x13c   : > { %v1533_v6 = vpop.f32.mrf.mxu0  ;;  %v2143_v55 = vpop.f32.mrf.mxu1 }
 0x13d   : > { %2775 = vst.msk [vmem:[%s4453_s29 + $0x190] sm:$0xff] %vm2724_vm2, %v2532_v50  ;;  %v2535_v56 = vmax.f32 %v1539_v52, 0.0  ;;  %2897 = vst.msk [vmem:[%s4453_s29 + $0x560] sm:$0xff] %vm2724_vm2, %v2654_v53  ;;  %v1534_v57 = vadd.f32 %v4850_v51, %v1533_v6  ;;  %v2657_v58 = vmax.f32 %v2149_v54, 0.0  ;;  %v2144_v59 = vadd.f32 %v4850_v51, %v2143_v55 }
 0x13e   : > { %v3655_v60 = vpop.f32.mrf.mxu0  ;;  %v3838_v61 = vpop.f32.mrf.mxu1 }
 0x13f   : > { %2778 = vst.msk [vmem:[%s4453_s29 + $0x1a8] sm:$0xff] %vm2724_vm2, %v2535_v56  ;;  %v2534_v62 = vmax.f32 %v1534_v57, 0.0  ;;  %2900 = vst.msk [vmem:[%s4453_s29 + $0x578] sm:$0xff] %vm2724_vm2, %v2657_v58  ;;  %v1549_v63 = vadd.f32 %v4850_v51, %v3655_v60  ;;  %v2656_v0 = vmax.f32 %v2144_v59, 0.0  ;;  %v2159_v1 = vadd.f32 %v4850_v51, %v3838_v61 }
 0x140   : > { %v1543_v2 = vpop.f32.mrf.mxu0  ;;  %v2153_v3 = vpop.f32.mrf.mxu1 }
 0x141   : > { %2777 = vst.msk [vmem:[%s4453_s29 + $0x1a0] sm:$0xff] %vm2724_vm2, %v2534_v62  ;;  %v2537_v4 = vmax.f32 %v1549_v63, 0.0  ;;  %2899 = vst.msk [vmem:[%s4453_s29 + $0x570] sm:$0xff] %vm2724_vm2, %v2656_v0  ;;  %v1544_v5 = vadd.f32 %v4850_v51, %v1543_v2  ;;  %v2659_v7 = vmax.f32 %v2159_v1, 0.0  ;;  %v2154_v8 = vadd.f32 %v4850_v51, %v2153_v3 }
 0x142   : > { %v3658_v9 = vpop.f32.mrf.mxu0  ;;  %v3841_v10 = vpop.f32.mrf.mxu1 }
 0x143   : > { %2780 = vst.msk [vmem:[%s4453_s29 + $0x1b8] sm:$0xff] %vm2724_vm2, %v2537_v4  ;;  %v2536_v11 = vmax.f32 %v1544_v5, 0.0  ;;  %2902 = vst.msk [vmem:[%s4453_s29 + $0x588] sm:$0xff] %vm2724_vm2, %v2659_v7  ;;  %v1559_v12 = vadd.f32 %v4850_v51, %v3658_v9  ;;  %v2658_v13 = vmax.f32 %v2154_v8, 0.0  ;;  %v2169_v14 = vadd.f32 %v4850_v51, %v3841_v10 }
 0x144   : > { %v1553_v15 = vpop.f32.mrf.mxu0  ;;  %v2163_v16 = vpop.f32.mrf.mxu1 }
 0x145   : > { %2779 = vst.msk [vmem:[%s4453_s29 + $0x1b0] sm:$0xff] %vm2724_vm2, %v2536_v11  ;;  %v2539_v17 = vmax.f32 %v1559_v12, 0.0  ;;  %2901 = vst.msk [vmem:[%s4453_s29 + $0x580] sm:$0xff] %vm2724_vm2, %v2658_v13  ;;  %v1554_v18 = vadd.f32 %v4850_v51, %v1553_v15  ;;  %v2661_v19 = vmax.f32 %v2169_v14, 0.0  ;;  %v2164_v20 = vadd.f32 %v4850_v51, %v2163_v16 }
 0x146   : > { %v3661_v21 = vpop.f32.mrf.mxu0  ;;  %v3844_v22 = vpop.f32.mrf.mxu1 }
 0x147   : > { %2782 = vst.msk [vmem:[%s4453_s29 + $0x1c8] sm:$0xff] %vm2724_vm2, %v2539_v17  ;;  %v2538_v23 = vmax.f32 %v1554_v18, 0.0  ;;  %2904 = vst.msk [vmem:[%s4453_s29 + $0x598] sm:$0xff] %vm2724_vm2, %v2661_v19  ;;  %v1569_v24 = vadd.f32 %v4850_v51, %v3661_v21  ;;  %v2660_v25 = vmax.f32 %v2164_v20, 0.0  ;;  %v2179_v26 = vadd.f32 %v4850_v51, %v3844_v22 }
 0x148   : > { %v1563_v27 = vpop.f32.mrf.mxu0  ;;  %v2173_v28 = vpop.f32.mrf.mxu1 }
 0x149   : > { %2781 = vst.msk [vmem:[%s4453_s29 + $0x1c0] sm:$0xff] %vm2724_vm2, %v2538_v23  ;;  %v2541_v29 = vmax.f32 %v1569_v24, 0.0  ;;  %2903 = vst.msk [vmem:[%s4453_s29 + $0x590] sm:$0xff] %vm2724_vm2, %v2660_v25  ;;  %v1564_v30 = vadd.f32 %v4850_v51, %v1563_v27  ;;  %v2663_v31 = vmax.f32 %v2179_v26, 0.0  ;;  %v2174_v32 = vadd.f32 %v4850_v51, %v2173_v28 }
 0x14a   : > { %v3664_v33 = vpop.f32.mrf.mxu0  ;;  %v3847_v34 = vpop.f32.mrf.mxu1 }
 0x14b   : > { %2784 = vst.msk [vmem:[%s4453_s29 + $0x1d8] sm:$0xff] %vm2724_vm2, %v2541_v29  ;;  %v2540_v35 = vmax.f32 %v1564_v30, 0.0  ;;  %2906 = vst.msk [vmem:[%s4453_s29 + $0x5a8] sm:$0xff] %vm2724_vm2, %v2663_v31  ;;  %v1579_v36 = vadd.f32 %v4850_v51, %v3664_v33  ;;  %v2662_v37 = vmax.f32 %v2174_v32, 0.0  ;;  %v2189_v38 = vadd.f32 %v4850_v51, %v3847_v34 }
 0x14c   : > { %v1573_v39 = vpop.f32.mrf.mxu0  ;;  %v2183_v40 = vpop.f32.mrf.mxu1 }
 0x14d   : > { %2783 = vst.msk [vmem:[%s4453_s29 + $0x1d0] sm:$0xff] %vm2724_vm2, %v2540_v35  ;;  %v2543_v41 = vmax.f32 %v1579_v36, 0.0  ;;  %2905 = vst.msk [vmem:[%s4453_s29 + $0x5a0] sm:$0xff] %vm2724_vm2, %v2662_v37  ;;  %v1574_v42 = vadd.f32 %v4850_v51, %v1573_v39  ;;  %v2665_v43 = vmax.f32 %v2189_v38, 0.0  ;;  %v2184_v44 = vadd.f32 %v4850_v51, %v2183_v40 }
 0x14e   : > { %v3667_v45 = vpop.f32.mrf.mxu0  ;;  %v3850_v46 = vpop.f32.mrf.mxu1 }
 0x14f   : > { %2786 = vst.msk [vmem:[%s4453_s29 + $0x1e8] sm:$0xff] %vm2724_vm2, %v2543_v41  ;;  %v2542_v47 = vmax.f32 %v1574_v42, 0.0  ;;  %2908 = vst.msk [vmem:[%s4453_s29 + $0x5b8] sm:$0xff] %vm2724_vm2, %v2665_v43  ;;  %v1589_v48 = vadd.f32 %v4850_v51, %v3667_v45  ;;  %v2664_v49 = vmax.f32 %v2184_v44, 0.0  ;;  %v2199_v50 = vadd.f32 %v4850_v51, %v3850_v46 }
 0x150   : > { %v1583_v52 = vpop.f32.mrf.mxu0  ;;  %v2193_v53 = vpop.f32.mrf.mxu1 }
 0x151   : > { %2785 = vst.msk [vmem:[%s4453_s29 + $0x1e0] sm:$0xff] %vm2724_vm2, %v2542_v47  ;;  %v2545_v54 = vmax.f32 %v1589_v48, 0.0  ;;  %2907 = vst.msk [vmem:[%s4453_s29 + $0x5b0] sm:$0xff] %vm2724_vm2, %v2664_v49  ;;  %v1584_v6 = vadd.f32 %v4850_v51, %v1583_v52  ;;  %v2667_v55 = vmax.f32 %v2199_v50, 0.0  ;;  %v2194_v56 = vadd.f32 %v4850_v51, %v2193_v53 }
 0x152   : > { %v3670_v57 = vpop.f32.mrf.mxu0  ;;  %v3853_v58 = vpop.f32.mrf.mxu1 }
 0x153   : > { %2788 = vst.msk [vmem:[%s4453_s29 + $0x1f8] sm:$0xff] %vm2724_vm2, %v2545_v54  ;;  %v2544_v59 = vmax.f32 %v1584_v6, 0.0  ;;  %2910 = vst.msk [vmem:[%s4453_s29 + $0x5c8] sm:$0xff] %vm2724_vm2, %v2667_v55  ;;  %v1599_v60 = vadd.f32 %v4850_v51, %v3670_v57  ;;  %v2666_v61 = vmax.f32 %v2194_v56, 0.0  ;;  %v2209_v62 = vadd.f32 %v4850_v51, %v3853_v58 }
 0x154   : > { %v1593_v63 = vpop.f32.mrf.mxu0  ;;  %v2203_v0 = vpop.f32.mrf.mxu1 }
 0x155   : > { %2787 = vst.msk [vmem:[%s4453_s29 + $0x1f0] sm:$0xff] %vm2724_vm2, %v2544_v59  ;;  %v2547_v1 = vmax.f32 %v1599_v60, 0.0  ;;  %2909 = vst.msk [vmem:[%s4453_s29 + $0x5c0] sm:$0xff] %vm2724_vm2, %v2666_v61  ;;  %v1594_v2 = vadd.f32 %v4850_v51, %v1593_v63  ;;  %v2669_v3 = vmax.f32 %v2209_v62, 0.0  ;;  %v2204_v4 = vadd.f32 %v4850_v51, %v2203_v0 }
 0x156   : > { %v3673_v5 = vpop.f32.mrf.mxu0  ;;  %v3856_v7 = vpop.f32.mrf.mxu1 }
 0x157   : > { %2790 = vst.msk [vmem:[%s4453_s29 + $0x208] sm:$0xff] %vm2724_vm2, %v2547_v1  ;;  %v2546_v8 = vmax.f32 %v1594_v2, 0.0  ;;  %2912 = vst.msk [vmem:[%s4453_s29 + $0x5d8] sm:$0xff] %vm2724_vm2, %v2669_v3  ;;  %v1609_v9 = vadd.f32 %v4850_v51, %v3673_v5  ;;  %v2668_v10 = vmax.f32 %v2204_v4, 0.0  ;;  %v2219_v11 = vadd.f32 %v4850_v51, %v3856_v7 }
 0x158   : > { %v1603_v12 = vpop.f32.mrf.mxu0  ;;  %v2213_v13 = vpop.f32.mrf.mxu1 }
 0x159   : > { %2789 = vst.msk [vmem:[%s4453_s29 + $0x200] sm:$0xff] %vm2724_vm2, %v2546_v8  ;;  %v2549_v14 = vmax.f32 %v1609_v9, 0.0  ;;  %2911 = vst.msk [vmem:[%s4453_s29 + $0x5d0] sm:$0xff] %vm2724_vm2, %v2668_v10  ;;  %v1604_v15 = vadd.f32 %v4850_v51, %v1603_v12  ;;  %v2671_v16 = vmax.f32 %v2219_v11, 0.0  ;;  %v2214_v17 = vadd.f32 %v4850_v51, %v2213_v13 }
 0x15a   : > { %v3676_v18 = vpop.f32.mrf.mxu0  ;;  %v3859_v19 = vpop.f32.mrf.mxu1 }
 0x15b   : > { %2792 = vst.msk [vmem:[%s4453_s29 + $0x218] sm:$0xff] %vm2724_vm2, %v2549_v14  ;;  %v2548_v20 = vmax.f32 %v1604_v15, 0.0  ;;  %2914 = vst.msk [vmem:[%s4453_s29 + $0x5e8] sm:$0xff] %vm2724_vm2, %v2671_v16  ;;  %v1619_v21 = vadd.f32 %v4850_v51, %v3676_v18  ;;  %v2670_v22 = vmax.f32 %v2214_v17, 0.0  ;;  %v2229_v23 = vadd.f32 %v4850_v51, %v3859_v19 }
 0x15c   : > { %v1613_v24 = vpop.f32.mrf.mxu0  ;;  %v2223_v25 = vpop.f32.mrf.mxu1 }
 0x15d   : > { %2791 = vst.msk [vmem:[%s4453_s29 + $0x210] sm:$0xff] %vm2724_vm2, %v2548_v20  ;;  %v2551_v26 = vmax.f32 %v1619_v21, 0.0  ;;  %2913 = vst.msk [vmem:[%s4453_s29 + $0x5e0] sm:$0xff] %vm2724_vm2, %v2670_v22  ;;  %v1614_v27 = vadd.f32 %v4850_v51, %v1613_v24  ;;  %v2673_v28 = vmax.f32 %v2229_v23, 0.0  ;;  %v2224_v29 = vadd.f32 %v4850_v51, %v2223_v25 }
 0x15e   : > { %v3679_v30 = vpop.f32.mrf.mxu0  ;;  %v3862_v31 = vpop.f32.mrf.mxu1 }
 0x15f   : > { %2794 = vst.msk [vmem:[%s4453_s29 + $0x228] sm:$0xff] %vm2724_vm2, %v2551_v26  ;;  %v2550_v32 = vmax.f32 %v1614_v27, 0.0  ;;  %2916 = vst.msk [vmem:[%s4453_s29 + $0x5f8] sm:$0xff] %vm2724_vm2, %v2673_v28  ;;  %v1629_v33 = vadd.f32 %v4850_v51, %v3679_v30  ;;  %v2672_v34 = vmax.f32 %v2224_v29, 0.0  ;;  %v2239_v35 = vadd.f32 %v4850_v51, %v3862_v31 }
 0x160   : > { %v1623_v36 = vpop.f32.mrf.mxu0  ;;  %v2233_v37 = vpop.f32.mrf.mxu1 }
 0x161   : > { %2793 = vst.msk [vmem:[%s4453_s29 + $0x220] sm:$0xff] %vm2724_vm2, %v2550_v32  ;;  %v2553_v38 = vmax.f32 %v1629_v33, 0.0  ;;  %2915 = vst.msk [vmem:[%s4453_s29 + $0x5f0] sm:$0xff] %vm2724_vm2, %v2672_v34  ;;  %v1624_v39 = vadd.f32 %v4850_v51, %v1623_v36  ;;  %v2675_v40 = vmax.f32 %v2239_v35, 0.0  ;;  %v2234_v41 = vadd.f32 %v4850_v51, %v2233_v37 }
 0x162   : > { %v3682_v42 = vpop.f32.mrf.mxu0  ;;  %v3865_v43 = vpop.f32.mrf.mxu1 }
 0x163   : > { %2796 = vst.msk [vmem:[%s4453_s29 + $0x238] sm:$0xff] %vm2724_vm2, %v2553_v38  ;;  %v2552_v44 = vmax.f32 %v1624_v39, 0.0  ;;  %2918 = vst.msk [vmem:[%s4453_s29 + $0x608] sm:$0xff] %vm2724_vm2, %v2675_v40  ;;  %v1639_v45 = vadd.f32 %v4850_v51, %v3682_v42  ;;  %v2674_v46 = vmax.f32 %v2234_v41, 0.0  ;;  %v2249_v47 = vadd.f32 %v4850_v51, %v3865_v43 }
 0x164   : > { %v1633_v48 = vpop.f32.mrf.mxu0  ;;  %v2243_v49 = vpop.f32.mrf.mxu1 }
 0x165   : > { %2795 = vst.msk [vmem:[%s4453_s29 + $0x230] sm:$0xff] %vm2724_vm2, %v2552_v44  ;;  %v2555_v50 = vmax.f32 %v1639_v45, 0.0  ;;  %2917 = vst.msk [vmem:[%s4453_s29 + $0x600] sm:$0xff] %vm2724_vm2, %v2674_v46  ;;  %v1634_v52 = vadd.f32 %v4850_v51, %v1633_v48  ;;  %v2677_v53 = vmax.f32 %v2249_v47, 0.0  ;;  %v2244_v54 = vadd.f32 %v4850_v51, %v2243_v49 }
 0x166   : > { %v3685_v6 = vpop.f32.mrf.mxu0  ;;  %v3868_v55 = vpop.f32.mrf.mxu1 }
 0x167   : > { %2798 = vst.msk [vmem:[%s4453_s29 + $0x248] sm:$0xff] %vm2724_vm2, %v2555_v50  ;;  %v2554_v56 = vmax.f32 %v1634_v52, 0.0  ;;  %2920 = vst.msk [vmem:[%s4453_s29 + $0x618] sm:$0xff] %vm2724_vm2, %v2677_v53  ;;  %v1649_v57 = vadd.f32 %v4850_v51, %v3685_v6  ;;  %v2676_v58 = vmax.f32 %v2244_v54, 0.0  ;;  %v2259_v59 = vadd.f32 %v4850_v51, %v3868_v55 }
 0x168   : > { %v1643_v60 = vpop.f32.mrf.mxu0  ;;  %v2253_v61 = vpop.f32.mrf.mxu1 }
 0x169   : > { %2797 = vst.msk [vmem:[%s4453_s29 + $0x240] sm:$0xff] %vm2724_vm2, %v2554_v56  ;;  %v2557_v62 = vmax.f32 %v1649_v57, 0.0  ;;  %2919 = vst.msk [vmem:[%s4453_s29 + $0x610] sm:$0xff] %vm2724_vm2, %v2676_v58  ;;  %v1644_v63 = vadd.f32 %v4850_v51, %v1643_v60  ;;  %v2679_v0 = vmax.f32 %v2259_v59, 0.0  ;;  %v2254_v1 = vadd.f32 %v4850_v51, %v2253_v61 }
 0x16a   : > { %v3688_v2 = vpop.f32.mrf.mxu0  ;;  %v3871_v3 = vpop.f32.mrf.mxu1 }
 0x16b   : > { %2800 = vst.msk [vmem:[%s4453_s29 + $0x258] sm:$0xff] %vm2724_vm2, %v2557_v62  ;;  %v2556_v4 = vmax.f32 %v1644_v63, 0.0  ;;  %2922 = vst.msk [vmem:[%s4453_s29 + $0x628] sm:$0xff] %vm2724_vm2, %v2679_v0  ;;  %v1659_v5 = vadd.f32 %v4850_v51, %v3688_v2  ;;  %v2678_v7 = vmax.f32 %v2254_v1, 0.0  ;;  %v2269_v8 = vadd.f32 %v4850_v51, %v3871_v3 }
 0x16c   : > { %v1653_v9 = vpop.f32.mrf.mxu0  ;;  %v2263_v10 = vpop.f32.mrf.mxu1 }
 0x16d   : > { %2799 = vst.msk [vmem:[%s4453_s29 + $0x250] sm:$0xff] %vm2724_vm2, %v2556_v4  ;;  %v2559_v11 = vmax.f32 %v1659_v5, 0.0  ;;  %2921 = vst.msk [vmem:[%s4453_s29 + $0x620] sm:$0xff] %vm2724_vm2, %v2678_v7  ;;  %v1654_v12 = vadd.f32 %v4850_v51, %v1653_v9  ;;  %v2681_v13 = vmax.f32 %v2269_v8, 0.0  ;;  %v2264_v14 = vadd.f32 %v4850_v51, %v2263_v10 }
 0x16e   : > { %v3691_v15 = vpop.f32.mrf.mxu0  ;;  %v3874_v16 = vpop.f32.mrf.mxu1 }
 0x16f   : > { %2802 = vst.msk [vmem:[%s4453_s29 + $0x268] sm:$0xff] %vm2724_vm2, %v2559_v11  ;;  %v2558_v17 = vmax.f32 %v1654_v12, 0.0  ;;  %2924 = vst.msk [vmem:[%s4453_s29 + $0x638] sm:$0xff] %vm2724_vm2, %v2681_v13  ;;  %v1669_v18 = vadd.f32 %v4850_v51, %v3691_v15  ;;  %v2680_v19 = vmax.f32 %v2264_v14, 0.0  ;;  %v2279_v20 = vadd.f32 %v4850_v51, %v3874_v16 }
 0x170   : > { %v1663_v21 = vpop.f32.mrf.mxu0  ;;  %v2273_v22 = vpop.f32.mrf.mxu1 }
 0x171   : > { %2801 = vst.msk [vmem:[%s4453_s29 + $0x260] sm:$0xff] %vm2724_vm2, %v2558_v17  ;;  %v2561_v23 = vmax.f32 %v1669_v18, 0.0  ;;  %2923 = vst.msk [vmem:[%s4453_s29 + $0x630] sm:$0xff] %vm2724_vm2, %v2680_v19  ;;  %v1664_v24 = vadd.f32 %v4850_v51, %v1663_v21  ;;  %v2683_v25 = vmax.f32 %v2279_v20, 0.0  ;;  %v2274_v26 = vadd.f32 %v4850_v51, %v2273_v22 }
 0x172   : > { %v3694_v27 = vpop.f32.mrf.mxu0  ;;  %v3877_v28 = vpop.f32.mrf.mxu1 }
 0x173   : > { %2804 = vst.msk [vmem:[%s4453_s29 + $0x278] sm:$0xff] %vm2724_vm2, %v2561_v23  ;;  %v2560_v29 = vmax.f32 %v1664_v24, 0.0  ;;  %2926 = vst.msk [vmem:[%s4453_s29 + $0x648] sm:$0xff] %vm2724_vm2, %v2683_v25  ;;  %v1679_v30 = vadd.f32 %v4850_v51, %v3694_v27  ;;  %v2682_v31 = vmax.f32 %v2274_v26, 0.0  ;;  %v2289_v32 = vadd.f32 %v4850_v51, %v3877_v28 }
 0x174   : > { %v1673_v33 = vpop.f32.mrf.mxu0  ;;  %v2283_v34 = vpop.f32.mrf.mxu1 }
 0x175   : > { %2803 = vst.msk [vmem:[%s4453_s29 + $0x270] sm:$0xff] %vm2724_vm2, %v2560_v29  ;;  %v2563_v35 = vmax.f32 %v1679_v30, 0.0  ;;  %2925 = vst.msk [vmem:[%s4453_s29 + $0x640] sm:$0xff] %vm2724_vm2, %v2682_v31  ;;  %v1674_v36 = vadd.f32 %v4850_v51, %v1673_v33  ;;  %v2685_v37 = vmax.f32 %v2289_v32, 0.0  ;;  %v2284_v38 = vadd.f32 %v4850_v51, %v2283_v34 }
 0x176   : > { %v3697_v39 = vpop.f32.mrf.mxu0  ;;  %v3880_v40 = vpop.f32.mrf.mxu1 }
 0x177   : > { %2806 = vst.msk [vmem:[%s4453_s29 + $0x288] sm:$0xff] %vm2724_vm2, %v2563_v35  ;;  %v2562_v41 = vmax.f32 %v1674_v36, 0.0  ;;  %2928 = vst.msk [vmem:[%s4453_s29 + $0x658] sm:$0xff] %vm2724_vm2, %v2685_v37  ;;  %v1689_v42 = vadd.f32 %v4850_v51, %v3697_v39  ;;  %v2684_v43 = vmax.f32 %v2284_v38, 0.0  ;;  %v2299_v44 = vadd.f32 %v4850_v51, %v3880_v40 }
 0x178   : > { %v1683_v45 = vpop.f32.mrf.mxu0  ;;  %v2293_v46 = vpop.f32.mrf.mxu1 }
 0x179   : > { %2805 = vst.msk [vmem:[%s4453_s29 + $0x280] sm:$0xff] %vm2724_vm2, %v2562_v41  ;;  %v2565_v47 = vmax.f32 %v1689_v42, 0.0  ;;  %2927 = vst.msk [vmem:[%s4453_s29 + $0x650] sm:$0xff] %vm2724_vm2, %v2684_v43  ;;  %v1684_v48 = vadd.f32 %v4850_v51, %v1683_v45  ;;  %v2687_v49 = vmax.f32 %v2299_v44, 0.0  ;;  %v2294_v50 = vadd.f32 %v4850_v51, %v2293_v46 }
 0x17a   : > { %v3700_v52 = vpop.f32.mrf.mxu0  ;;  %v3883_v53 = vpop.f32.mrf.mxu1 }
 0x17b   : > { %2808 = vst.msk [vmem:[%s4453_s29 + $0x298] sm:$0xff] %vm2724_vm2, %v2565_v47  ;;  %v2564_v54 = vmax.f32 %v1684_v48, 0.0  ;;  %2930 = vst.msk [vmem:[%s4453_s29 + $0x668] sm:$0xff] %vm2724_vm2, %v2687_v49  ;;  %v1699_v6 = vadd.f32 %v4850_v51, %v3700_v52  ;;  %v2686_v55 = vmax.f32 %v2294_v50, 0.0  ;;  %v2309_v56 = vadd.f32 %v4850_v51, %v3883_v53 }
 0x17c   : > { %v1693_v57 = vpop.f32.mrf.mxu0  ;;  %v2303_v58 = vpop.f32.mrf.mxu1 }
 0x17d   : > { %2807 = vst.msk [vmem:[%s4453_s29 + $0x290] sm:$0xff] %vm2724_vm2, %v2564_v54  ;;  %v2567_v59 = vmax.f32 %v1699_v6, 0.0  ;;  %2929 = vst.msk [vmem:[%s4453_s29 + $0x660] sm:$0xff] %vm2724_vm2, %v2686_v55  ;;  %v1694_v60 = vadd.f32 %v4850_v51, %v1693_v57  ;;  %v2689_v61 = vmax.f32 %v2309_v56, 0.0  ;;  %v2304_v62 = vadd.f32 %v4850_v51, %v2303_v58 }
 0x17e   : > { %v3703_v63 = vpop.f32.mrf.mxu0  ;;  %v3886_v0 = vpop.f32.mrf.mxu1 }
 0x17f   : > { %2810 = vst.msk [vmem:[%s4453_s29 + $0x2a8] sm:$0xff] %vm2724_vm2, %v2567_v59  ;;  %v2566_v1 = vmax.f32 %v1694_v60, 0.0  ;;  %2932 = vst.msk [vmem:[%s4453_s29 + $0x678] sm:$0xff] %vm2724_vm2, %v2689_v61  ;;  %v1709_v2 = vadd.f32 %v4850_v51, %v3703_v63  ;;  %v2688_v3 = vmax.f32 %v2304_v62, 0.0  ;;  %v2319_v4 = vadd.f32 %v4850_v51, %v3886_v0 }
 0x180   : > { %v1703_v5 = vpop.f32.mrf.mxu0  ;;  %v2313_v7 = vpop.f32.mrf.mxu1 }
 0x181   : > { %2809 = vst.msk [vmem:[%s4453_s29 + $0x2a0] sm:$0xff] %vm2724_vm2, %v2566_v1  ;;  %v2569_v8 = vmax.f32 %v1709_v2, 0.0  ;;  %2931 = vst.msk [vmem:[%s4453_s29 + $0x670] sm:$0xff] %vm2724_vm2, %v2688_v3  ;;  %v1704_v9 = vadd.f32 %v4850_v51, %v1703_v5  ;;  %v2691_v10 = vmax.f32 %v2319_v4, 0.0  ;;  %v2314_v11 = vadd.f32 %v4850_v51, %v2313_v7 }
 0x182   : > { %v3706_v12 = vpop.f32.mrf.mxu0  ;;  %v3889_v13 = vpop.f32.mrf.mxu1 }
 0x183   : > { %2812 = vst.msk [vmem:[%s4453_s29 + $0x2b8] sm:$0xff] %vm2724_vm2, %v2569_v8  ;;  %v2568_v14 = vmax.f32 %v1704_v9, 0.0  ;;  %2934 = vst.msk [vmem:[%s4453_s29 + $0x688] sm:$0xff] %vm2724_vm2, %v2691_v10  ;;  %v1719_v15 = vadd.f32 %v4850_v51, %v3706_v12  ;;  %v2690_v16 = vmax.f32 %v2314_v11, 0.0  ;;  %v2329_v17 = vadd.f32 %v4850_v51, %v3889_v13 }
 0x184   : > { %v1713_v18 = vpop.f32.mrf.mxu0  ;;  %v2323_v19 = vpop.f32.mrf.mxu1 }
 0x185   : > { %2811 = vst.msk [vmem:[%s4453_s29 + $0x2b0] sm:$0xff] %vm2724_vm2, %v2568_v14  ;;  %v2571_v20 = vmax.f32 %v1719_v15, 0.0  ;;  %2933 = vst.msk [vmem:[%s4453_s29 + $0x680] sm:$0xff] %vm2724_vm2, %v2690_v16  ;;  %v1714_v21 = vadd.f32 %v4850_v51, %v1713_v18  ;;  %v2693_v22 = vmax.f32 %v2329_v17, 0.0  ;;  %v2324_v23 = vadd.f32 %v4850_v51, %v2323_v19 }
 0x186   : > { %v3709_v24 = vpop.f32.mrf.mxu0  ;;  %v3892_v25 = vpop.f32.mrf.mxu1 }
 0x187   : > { %2814 = vst.msk [vmem:[%s4453_s29 + $0x2c8] sm:$0xff] %vm2724_vm2, %v2571_v20  ;;  %v2570_v26 = vmax.f32 %v1714_v21, 0.0  ;;  %2936 = vst.msk [vmem:[%s4453_s29 + $0x698] sm:$0xff] %vm2724_vm2, %v2693_v22  ;;  %v1729_v27 = vadd.f32 %v4850_v51, %v3709_v24  ;;  %v2692_v28 = vmax.f32 %v2324_v23, 0.0  ;;  %v2339_v29 = vadd.f32 %v4850_v51, %v3892_v25 }
 0x188   : > { %v1723_v30 = vpop.f32.mrf.mxu0  ;;  %v2333_v31 = vpop.f32.mrf.mxu1 }
 0x189   : > { %2813 = vst.msk [vmem:[%s4453_s29 + $0x2c0] sm:$0xff] %vm2724_vm2, %v2570_v26  ;;  %v2573_v32 = vmax.f32 %v1729_v27, 0.0  ;;  %2935 = vst.msk [vmem:[%s4453_s29 + $0x690] sm:$0xff] %vm2724_vm2, %v2692_v28  ;;  %v1724_v33 = vadd.f32 %v4850_v51, %v1723_v30  ;;  %v2695_v34 = vmax.f32 %v2339_v29, 0.0  ;;  %v2334_v35 = vadd.f32 %v4850_v51, %v2333_v31 }
 0x18a   : > { %v3712_v36 = vpop.f32.mrf.mxu0  ;;  %v3895_v37 = vpop.f32.mrf.mxu1 }
 0x18b   : > { %2816 = vst.msk [vmem:[%s4453_s29 + $0x2d8] sm:$0xff] %vm2724_vm2, %v2573_v32  ;;  %v2572_v38 = vmax.f32 %v1724_v33, 0.0  ;;  %2938 = vst.msk [vmem:[%s4453_s29 + $0x6a8] sm:$0xff] %vm2724_vm2, %v2695_v34  ;;  %v1739_v39 = vadd.f32 %v4850_v51, %v3712_v36  ;;  %v2694_v40 = vmax.f32 %v2334_v35, 0.0  ;;  %v2349_v41 = vadd.f32 %v4850_v51, %v3895_v37 }
 0x18c   : > { %v1733_v42 = vpop.f32.mrf.mxu0  ;;  %v2343_v43 = vpop.f32.mrf.mxu1 }
 0x18d   : > { %2815 = vst.msk [vmem:[%s4453_s29 + $0x2d0] sm:$0xff] %vm2724_vm2, %v2572_v38  ;;  %v2575_v44 = vmax.f32 %v1739_v39, 0.0  ;;  %2937 = vst.msk [vmem:[%s4453_s29 + $0x6a0] sm:$0xff] %vm2724_vm2, %v2694_v40  ;;  %v1734_v45 = vadd.f32 %v4850_v51, %v1733_v42  ;;  %v2697_v46 = vmax.f32 %v2349_v41, 0.0  ;;  %v2344_v47 = vadd.f32 %v4850_v51, %v2343_v43 }
 0x18e   : > { %v3715_v48 = vpop.f32.mrf.mxu0  ;;  %v3898_v49 = vpop.f32.mrf.mxu1 }
 0x18f   : > { %2818 = vst.msk [vmem:[%s4453_s29 + $0x2e8] sm:$0xff] %vm2724_vm2, %v2575_v44  ;;  %v2574_v50 = vmax.f32 %v1734_v45, 0.0  ;;  %2940 = vst.msk [vmem:[%s4453_s29 + $0x6b8] sm:$0xff] %vm2724_vm2, %v2697_v46  ;;  %v1749_v52 = vadd.f32 %v4850_v51, %v3715_v48  ;;  %v2696_v53 = vmax.f32 %v2344_v47, 0.0  ;;  %v2359_v54 = vadd.f32 %v4850_v51, %v3898_v49 }
 0x190   : > { %v1743_v6 = vpop.f32.mrf.mxu0  ;;  %v2353_v55 = vpop.f32.mrf.mxu1 }
 0x191   : > { %2817 = vst.msk [vmem:[%s4453_s29 + $0x2e0] sm:$0xff] %vm2724_vm2, %v2574_v50  ;;  %v2577_v56 = vmax.f32 %v1749_v52, 0.0  ;;  %2939 = vst.msk [vmem:[%s4453_s29 + $0x6b0] sm:$0xff] %vm2724_vm2, %v2696_v53  ;;  %v1744_v57 = vadd.f32 %v4850_v51, %v1743_v6  ;;  %v2699_v58 = vmax.f32 %v2359_v54, 0.0  ;;  %v2354_v59 = vadd.f32 %v4850_v51, %v2353_v55 }
 0x192   : > { %v3718_v60 = vpop.f32.mrf.mxu0  ;;  %v3901_v61 = vpop.f32.mrf.mxu1 }
 0x193   : > { %2820 = vst.msk [vmem:[%s4453_s29 + $0x2f8] sm:$0xff] %vm2724_vm2, %v2577_v56  ;;  %v2576_v62 = vmax.f32 %v1744_v57, 0.0  ;;  %2942 = vst.msk [vmem:[%s4453_s29 + $0x6c8] sm:$0xff] %vm2724_vm2, %v2699_v58  ;;  %v1759_v63 = vadd.f32 %v4850_v51, %v3718_v60  ;;  %v2698_v0 = vmax.f32 %v2354_v59, 0.0  ;;  %v2369_v1 = vadd.f32 %v4850_v51, %v3901_v61 }
 0x194   : > { %v1753_v2 = vpop.f32.mrf.mxu0  ;;  %v2363_v3 = vpop.f32.mrf.mxu1 }
 0x195   : > { %2819 = vst.msk [vmem:[%s4453_s29 + $0x2f0] sm:$0xff] %vm2724_vm2, %v2576_v62  ;;  %v2579_v4 = vmax.f32 %v1759_v63, 0.0  ;;  %2941 = vst.msk [vmem:[%s4453_s29 + $0x6c0] sm:$0xff] %vm2724_vm2, %v2698_v0  ;;  %v1754_v5 = vadd.f32 %v4850_v51, %v1753_v2  ;;  %v2701_v7 = vmax.f32 %v2369_v1, 0.0  ;;  %v2364_v8 = vadd.f32 %v4850_v51, %v2363_v3 }
 0x196   : > { %v3721_v9 = vpop.f32.mrf.mxu0  ;;  %v3904_v10 = vpop.f32.mrf.mxu1 }
 0x197   : > { %2822 = vst.msk [vmem:[%s4453_s29 + $0x308] sm:$0xff] %vm2724_vm2, %v2579_v4  ;;  %v2578_v11 = vmax.f32 %v1754_v5, 0.0  ;;  %2944 = vst.msk [vmem:[%s4453_s29 + $0x6d8] sm:$0xff] %vm2724_vm2, %v2701_v7  ;;  %v1769_v12 = vadd.f32 %v4850_v51, %v3721_v9  ;;  %v2700_v13 = vmax.f32 %v2364_v8, 0.0  ;;  %v2379_v14 = vadd.f32 %v4850_v51, %v3904_v10 }
 0x198   : > { %v1763_v15 = vpop.f32.mrf.mxu0  ;;  %v2373_v16 = vpop.f32.mrf.mxu1 }
 0x199   : > { %2821 = vst.msk [vmem:[%s4453_s29 + $0x300] sm:$0xff] %vm2724_vm2, %v2578_v11  ;;  %v2581_v17 = vmax.f32 %v1769_v12, 0.0  ;;  %2943 = vst.msk [vmem:[%s4453_s29 + $0x6d0] sm:$0xff] %vm2724_vm2, %v2700_v13  ;;  %v1764_v18 = vadd.f32 %v4850_v51, %v1763_v15  ;;  %v2703_v19 = vmax.f32 %v2379_v14, 0.0  ;;  %v2374_v20 = vadd.f32 %v4850_v51, %v2373_v16 }
 0x19a   : > { %v3724_v21 = vpop.f32.mrf.mxu0  ;;  %v3907_v22 = vpop.f32.mrf.mxu1 }
 0x19b   : > { %2824 = vst.msk [vmem:[%s4453_s29 + $0x318] sm:$0xff] %vm2724_vm2, %v2581_v17  ;;  %v2580_v23 = vmax.f32 %v1764_v18, 0.0  ;;  %2946 = vst.msk [vmem:[%s4453_s29 + $0x6e8] sm:$0xff] %vm2724_vm2, %v2703_v19  ;;  %v1779_v24 = vadd.f32 %v4850_v51, %v3724_v21  ;;  %v2702_v25 = vmax.f32 %v2374_v20, 0.0  ;;  %v2389_v26 = vadd.f32 %v4850_v51, %v3907_v22 }
 0x19c   : > { %v1773_v27 = vpop.f32.mrf.mxu0  ;;  %v2383_v28 = vpop.f32.mrf.mxu1 }
 0x19d   : > { %2823 = vst.msk [vmem:[%s4453_s29 + $0x310] sm:$0xff] %vm2724_vm2, %v2580_v23  ;;  %v2583_v29 = vmax.f32 %v1779_v24, 0.0  ;;  %2945 = vst.msk [vmem:[%s4453_s29 + $0x6e0] sm:$0xff] %vm2724_vm2, %v2702_v25  ;;  %v1774_v30 = vadd.f32 %v4850_v51, %v1773_v27  ;;  %v2705_v31 = vmax.f32 %v2389_v26, 0.0  ;;  %v2384_v32 = vadd.f32 %v4850_v51, %v2383_v28 }
 0x19e   : > { %v3727_v33 = vpop.f32.mrf.mxu0  ;;  %v3910_v34 = vpop.f32.mrf.mxu1 }
 0x19f   : > { %2826 = vst.msk [vmem:[%s4453_s29 + $0x328] sm:$0xff] %vm2724_vm2, %v2583_v29  ;;  %v2582_v35 = vmax.f32 %v1774_v30, 0.0  ;;  %2948 = vst.msk [vmem:[%s4453_s29 + $0x6f8] sm:$0xff] %vm2724_vm2, %v2705_v31  ;;  %v1789_v36 = vadd.f32 %v4850_v51, %v3727_v33  ;;  %v2704_v37 = vmax.f32 %v2384_v32, 0.0  ;;  %v2399_v38 = vadd.f32 %v4850_v51, %v3910_v34 }
 0x1a0   : > { %v1783_v39 = vpop.f32.mrf.mxu0  ;;  %v2393_v40 = vpop.f32.mrf.mxu1 }
 0x1a1   : > { %2825 = vst.msk [vmem:[%s4453_s29 + $0x320] sm:$0xff] %vm2724_vm2, %v2582_v35  ;;  %v2585_v41 = vmax.f32 %v1789_v36, 0.0  ;;  %2947 = vst.msk [vmem:[%s4453_s29 + $0x6f0] sm:$0xff] %vm2724_vm2, %v2704_v37  ;;  %v1784_v42 = vadd.f32 %v4850_v51, %v1783_v39  ;;  %v2707_v43 = vmax.f32 %v2399_v38, 0.0  ;;  %v2394_v44 = vadd.f32 %v4850_v51, %v2393_v40 }
 0x1a2   : > { %v3730_v45 = vpop.f32.mrf.mxu0  ;;  %v3913_v46 = vpop.f32.mrf.mxu1 }
 0x1a3   : > { %2828 = vst.msk [vmem:[%s4453_s29 + $0x338] sm:$0xff] %vm2724_vm2, %v2585_v41  ;;  %v2584_v47 = vmax.f32 %v1784_v42, 0.0  ;;  %2950 = vst.msk [vmem:[%s4453_s29 + $0x708] sm:$0xff] %vm2724_vm2, %v2707_v43  ;;  %v1799_v48 = vadd.f32 %v4850_v51, %v3730_v45  ;;  %v2706_v49 = vmax.f32 %v2394_v44, 0.0  ;;  %v2409_v50 = vadd.f32 %v4850_v51, %v3913_v46 }
 0x1a4   : > { %v1793_v52 = vpop.f32.mrf.mxu0  ;;  %v2403_v53 = vpop.f32.mrf.mxu1 }
 0x1a5   : > { %2827 = vst.msk [vmem:[%s4453_s29 + $0x330] sm:$0xff] %vm2724_vm2, %v2584_v47  ;;  %v2587_v54 = vmax.f32 %v1799_v48, 0.0  ;;  %2949 = vst.msk [vmem:[%s4453_s29 + $0x700] sm:$0xff] %vm2724_vm2, %v2706_v49  ;;  %v1794_v6 = vadd.f32 %v4850_v51, %v1793_v52  ;;  %v2709_v55 = vmax.f32 %v2409_v50, 0.0  ;;  %v2404_v56 = vadd.f32 %v4850_v51, %v2403_v53 }
 0x1a6   : > { %v3733_v57 = vpop.f32.mrf.mxu0  ;;  %v3916_v58 = vpop.f32.mrf.mxu1 }
 0x1a7   : > { %2830 = vst.msk [vmem:[%s4453_s29 + $0x348] sm:$0xff] %vm2724_vm2, %v2587_v54  ;;  %v2586_v59 = vmax.f32 %v1794_v6, 0.0  ;;  %2952 = vst.msk [vmem:[%s4453_s29 + $0x718] sm:$0xff] %vm2724_vm2, %v2709_v55  ;;  %v1809_v60 = vadd.f32 %v4850_v51, %v3733_v57  ;;  %v2708_v61 = vmax.f32 %v2404_v56, 0.0  ;;  %v2419_v62 = vadd.f32 %v4850_v51, %v3916_v58  ;;  %v3964_v57 = vld [vmem:[%s5274_s2] ss:$0 sm:$0xff] }
 0x1a8   : > { %v1803_v63 = vpop.f32.mrf.mxu0  ;;  %v2413_v0 = vpop.f32.mrf.mxu1 }
 0x1a9   : > { %2829 = vst.msk [vmem:[%s4453_s29 + $0x340] sm:$0xff] %vm2724_vm2, %v2586_v59  ;;  %v2589_v1 = vmax.f32 %v1809_v60, 0.0  ;;  %2951 = vst.msk [vmem:[%s4453_s29 + $0x710] sm:$0xff] %vm2724_vm2, %v2708_v61  ;;  %v1804_v2 = vadd.f32 %v4850_v51, %v1803_v63  ;;  %v2711_v3 = vmax.f32 %v2419_v62, 0.0  ;;  %v2414_v4 = vadd.f32 %v4850_v51, %v2413_v0 }
 0x1aa   : > { %v3736_v5 = vpop.f32.mrf.mxu0  ;;  %v3919_v7 = vpop.f32.mrf.mxu1 }
 0x1ab   : > { %2832 = vst.msk [vmem:[%s4453_s29 + $0x358] sm:$0xff] %vm2724_vm2, %v2589_v1  ;;  %v2588_v8 = vmax.f32 %v1804_v2, 0.0  ;;  %2954 = vst.msk [vmem:[%s4453_s29 + $0x728] sm:$0xff] %vm2724_vm2, %v2711_v3  ;;  %v1819_v9 = vadd.f32 %v4850_v51, %v3736_v5  ;;  %v2710_v10 = vmax.f32 %v2414_v4, 0.0  ;;  %v2429_v11 = vadd.f32 %v4850_v51, %v3919_v7 }
 0x1ac   : > { %v1813_v12 = vpop.f32.mrf.mxu0  ;;  %v2423_v13 = vpop.f32.mrf.mxu1 }
 0x1ad   : > { %2831 = vst.msk [vmem:[%s4453_s29 + $0x350] sm:$0xff] %vm2724_vm2, %v2588_v8  ;;  %v2591_v14 = vmax.f32 %v1819_v9, 0.0  ;;  %2953 = vst.msk [vmem:[%s4453_s29 + $0x720] sm:$0xff] %vm2724_vm2, %v2710_v10  ;;  %v1814_v15 = vadd.f32 %v4850_v51, %v1813_v12  ;;  %v2713_v16 = vmax.f32 %v2429_v11, 0.0  ;;  %v2424_v17 = vadd.f32 %v4850_v51, %v2423_v13 }
 0x1ae   : > { %v3739_v18 = vpop.f32.mrf.mxu0  ;;  %v3922_v19 = vpop.f32.mrf.mxu1 }
 0x1af   : > { %2834 = vst.msk [vmem:[%s4453_s29 + $0x368] sm:$0xff] %vm2724_vm2, %v2591_v14  ;;  %v2590_v20 = vmax.f32 %v1814_v15, 0.0  ;;  %2956 = vst.msk [vmem:[%s4453_s29 + $0x738] sm:$0xff] %vm2724_vm2, %v2713_v16  ;;  %v1829_v21 = vadd.f32 %v4850_v51, %v3739_v18  ;;  %v2712_v22 = vmax.f32 %v2424_v17, 0.0  ;;  %v2439_v23 = vadd.f32 %v4850_v51, %v3922_v19 }
 0x1b0   : > { %v1823_v24 = vpop.f32.mrf.mxu0  ;;  %v2433_v25 = vpop.f32.mrf.mxu1 }
 0x1b1   : > { %2833 = vst.msk [vmem:[%s4453_s29 + $0x360] sm:$0xff] %vm2724_vm2, %v2590_v20  ;;  %v2593_v26 = vmax.f32 %v1829_v21, 0.0  ;;  %2955 = vst.msk [vmem:[%s4453_s29 + $0x730] sm:$0xff] %vm2724_vm2, %v2712_v22  ;;  %v1824_v27 = vadd.f32 %v4850_v51, %v1823_v24  ;;  %v2715_v28 = vmax.f32 %v2439_v23, 0.0  ;;  %v2434_v29 = vadd.f32 %v4850_v51, %v2433_v25 }
 0x1b2   : > { %v3742_v30 = vpop.f32.mrf.mxu0  ;;  %v3925_v31 = vpop.f32.mrf.mxu1 }
 0x1b3   : > { %2836 = vst.msk [vmem:[%s4453_s29 + $0x378] sm:$0xff] %vm2724_vm2, %v2593_v26  ;;  %v2592_v32 = vmax.f32 %v1824_v27, 0.0  ;;  %2958 = vst.msk [vmem:[%s4453_s29 + $0x748] sm:$0xff] %vm2724_vm2, %v2715_v28  ;;  %v1839_v33 = vadd.f32 %v4850_v51, %v3742_v30  ;;  %v2714_v34 = vmax.f32 %v2434_v29, 0.0  ;;  %v2449_v35 = vadd.f32 %v4850_v51, %v3925_v31 }
 0x1b4   : > { %v1833_v36 = vpop.f32.mrf.mxu0  ;;  %v2443_v37 = vpop.f32.mrf.mxu1 }
 0x1b5   : > { %2835 = vst.msk [vmem:[%s4453_s29 + $0x370] sm:$0xff] %vm2724_vm2, %v2592_v32  ;;  %v2595_v38 = vmax.f32 %v1839_v33, 0.0  ;;  %2957 = vst.msk [vmem:[%s4453_s29 + $0x740] sm:$0xff] %vm2724_vm2, %v2714_v34  ;;  %v1834_v39 = vadd.f32 %v4850_v51, %v1833_v36  ;;  %v2717_v40 = vmax.f32 %v2449_v35, 0.0  ;;  %v2444_v41 = vadd.f32 %v4850_v51, %v2443_v37 }
 0x1b6   : > { %v3745_v42 = vpop.f32.mrf.mxu0  ;;  %v3928_v43 = vpop.f32.mrf.mxu1 }
 0x1b7   : > { %2838 = vst.msk [vmem:[%s4453_s29 + $0x388] sm:$0xff] %vm2724_vm2, %v2595_v38  ;;  %v2594_v44 = vmax.f32 %v1834_v39, 0.0  ;;  %2960 = vst.msk [vmem:[%s4453_s29 + $0x758] sm:$0xff] %vm2724_vm2, %v2717_v40  ;;  %v1849_v45 = vadd.f32 %v4850_v51, %v3745_v42  ;;  %v2716_v46 = vmax.f32 %v2444_v41, 0.0  ;;  %v2459_v47 = vadd.f32 %v4850_v51, %v3928_v43 }
 0x1b8   : > { %v1843_v48 = vpop.f32.mrf.mxu0  ;;  %v2453_v49 = vpop.f32.mrf.mxu1 }
 0x1b9   : > { %2837 = vst.msk [vmem:[%s4453_s29 + $0x380] sm:$0xff] %vm2724_vm2, %v2594_v44  ;;  %v2597_v50 = vmax.f32 %v1849_v45, 0.0  ;;  %2959 = vst.msk [vmem:[%s4453_s29 + $0x750] sm:$0xff] %vm2724_vm2, %v2716_v46  ;;  %v1844_v52 = vadd.f32 %v4850_v51, %v1843_v48  ;;  %v2719_v53 = vmax.f32 %v2459_v47, 0.0  ;;  %v2454_v54 = vadd.f32 %v4850_v51, %v2453_v49 }
 0x1ba   : > { %v3748_v6 = vpop.f32.mrf.mxu0  ;;  %v3931_v55 = vpop.f32.mrf.mxu1 }
 0x1bb   : > { %2840 = vst.msk [vmem:[%s4453_s29 + $0x398] sm:$0xff] %vm2724_vm2, %v2597_v50  ;;  %v2596_v56 = vmax.f32 %v1844_v52, 0.0  ;;  %2962 = vst.msk [vmem:[%s4453_s29 + $0x768] sm:$0xff] %vm2724_vm2, %v2719_v53  ;;  %v1859_v58 = vadd.f32 %v3964_v57, %v3748_v6  ;;  %v2718_v59 = vmax.f32 %v2454_v54, 0.0  ;;  %v2469_v60 = vadd.f32 %v3964_v57, %v3931_v55 }
 0x1bc   : > { %v1853_v61 = vpop.f32.mrf.mxu0  ;;  %v2463_v62 = vpop.f32.mrf.mxu1 }
 0x1bd   : > { %2839 = vst.msk [vmem:[%s4453_s29 + $0x390] sm:$0xff] %vm2724_vm2, %v2596_v56  ;;  %v2599_v51 = vmax.f32 %v1859_v58, 0.0  ;;  %2961 = vst.msk [vmem:[%s4453_s29 + $0x760] sm:$0xff] %vm2724_vm2, %v2718_v59  ;;  %v1854_v63 = vadd.f32 %v3964_v57, %v1853_v61  ;;  %v2721_v0 = vmax.f32 %v2469_v60, 0.0  ;;  %v2464_v1 = vadd.f32 %v3964_v57, %v2463_v62 }
 0x1be   : > { %v3751_v2 = vpop.f32.mrf.mxu0  ;;  %v3934_v3 = vpop.f32.mrf.mxu1 }
 0x1bf   : > { %2842 = vst.msk [vmem:[%s4453_s29 + $0x3a8] sm:$0xff] %vm2724_vm2, %v2599_v51  ;;  %v2598_v4 = vmax.f32 %v1854_v63, 0.0  ;;  %2964 = vst.msk [vmem:[%s4453_s29 + $0x778] sm:$0xff] %vm2724_vm2, %v2721_v0  ;;  %v1869_v5 = vadd.f32 %v3964_v57, %v3751_v2  ;;  %v2720_v7 = vmax.f32 %v2464_v1, 0.0  ;;  %v2479_v8 = vadd.f32 %v3964_v57, %v3934_v3 }
 0x1c0   : > { %v1863_v9 = vpop.f32.mrf.mxu0  ;;  %v2473_v10 = vpop.f32.mrf.mxu1 }
 0x1c1   : > { %2841 = vst.msk [vmem:[%s4453_s29 + $0x3a0] sm:$0xff] %vm2724_vm2, %v2598_v4  ;;  %v2601_v11 = vmax.f32 %v1869_v5, 0.0  ;;  %2963 = vst.msk [vmem:[%s4453_s29 + $0x770] sm:$0xff] %vm2724_vm2, %v2720_v7  ;;  %v1864_v12 = vadd.f32 %v3964_v57, %v1863_v9  ;;  %v2723_v13 = vmax.f32 %v2479_v8, 0.0  ;;  %v2474_v14 = vadd.f32 %v3964_v57, %v2473_v10 }
 0x1c2   : > { %v3754_v15 = vpop.f32.mrf.mxu0 }
 0x1c3   : > { %2844 = vst.msk [vmem:[%s4453_s29 + $0x3b8] sm:$0xff] %vm2724_vm2, %v2601_v11  ;;  %v2600_v16 = vmax.f32 %v1864_v12, 0.0  ;;  %2966 = vst.msk [vmem:[%s4453_s29 + $0x788] sm:$0xff] %vm2724_vm2, %v2723_v13  ;;  %v1879_v17 = vadd.f32 %v3964_v57, %v3754_v15  ;;  %v2722_v18 = vmax.f32 %v2474_v14, 0.0 }
 0x1c4   : > { %v1873_v19 = vpop.f32.mrf.mxu0 }
 0x1c5   : > { %2843 = vst.msk [vmem:[%s4453_s29 + $0x3b0] sm:$0xff] %vm2724_vm2, %v2600_v16  ;;  %v2603_v20 = vmax.f32 %v1879_v17, 0.0  ;;  %2965 = vst.msk [vmem:[%s4453_s29 + $0x780] sm:$0xff] %vm2724_vm2, %v2722_v18  ;;  %v1874_v21 = vadd.f32 %v3964_v57, %v1873_v19 }
 0x1c7   : > { %2846 = vst.msk [vmem:[%s4453_s29 + $0x3c8] sm:$0xff] %vm2724_vm2, %v2603_v20  ;;  %v2602_v22 = vmax.f32 %v1874_v21, 0.0 }
 0x1c9   : > { %2845 = vst.msk [vmem:[%s4453_s29 + $0x3c0] sm:$0xff] %vm2724_vm2, %v2602_v22 }
 0x1ca PF: > { %s13_s14 = sadd.s32 1, %s3987_s14   ;;  %s5276_s12 = smov %s3983_s13 }
 0x1cb   : > { %p10_p5 = scmp.ge.s32.totalorder %s13_s14, 10   ;;  %s5277_s13 = smov %s5279_s15 }
 0x1cd   :  { %12 = sbr.rel (!%p10_p5) target bundleno = 2 (0x2), region = 68 }

// kernel: cnn_forward.7
= control target key start
LH: loop header
LB: loop body
LE: loop exit
PB: predicated region body
PF: predicated region fallthrough
CT: control target
= control target key end

     0   :  { %s759_s0 = inlined_call_operand.vmem [shape: f32[242,128], index: 0, kind: input, shape index: {}]   ;;  %s760_s1 = inlined_call_operand.vmem [shape: f32[242,128], index: 1, kind: input, shape index: {}]   ;;  %s761_s2 = inlined_call_operand.vmem [shape: f32[242,128], index: 2, kind: input, shape index: {}]   ;;  %s762_s3 = inlined_call_operand.vmem [shape: f32[242,128], index: 3, kind: input, shape index: {}]   ;;  %s763_s4 = inlined_call_operand.vmem [shape: f32[242,128], index: 4, kind: output, shape index: {}]  }
   0x1   :  { %v17_v0 = vld [vmem:[%s759_s0] sm:$0xff]  ;;  %v18_v5 = vld [vmem:[%s759_s0 + $0x8] sm:$0xff]  ;;  %v19_v11 = vld [vmem:[%s759_s0 + $0x10] sm:$0xff] }
   0x2   :  { %v48_v1 = vld [vmem:[%s760_s1] sm:$0xff]  ;;  %v49_v6 = vld [vmem:[%s760_s1 + $0x8] sm:$0xff]  ;;  %v50_v13 = vld [vmem:[%s760_s1 + $0x10] sm:$0xff] }
   0x3   :  { %v110_v2 = vld [vmem:[%s761_s2] sm:$0xff]  ;;  %v79_v3 = vmax.f32 %v17_v0, %v48_v1  ;;  %v80_v8 = vmax.f32 %v18_v5, %v49_v6  ;;  %v111_v9 = vld [vmem:[%s761_s2 + $0x8] sm:$0xff]  ;;  %v112_v14 = vld [vmem:[%s761_s2 + $0x10] sm:$0xff]  ;;  %v81_v17 = vmax.f32 %v19_v11, %v50_v13 }
   0x4   :  { %v141_v4 = vld [vmem:[%s762_s3] sm:$0xff]  ;;  %v142_v10 = vld [vmem:[%s762_s3 + $0x8] sm:$0xff]  ;;  %v143_v15 = vld [vmem:[%s762_s3 + $0x10] sm:$0xff] }
   0x5   :  { %v172_v7 = vmax.f32 %v110_v2, %v141_v4  ;;  %v173_v12 = vmax.f32 %v111_v9, %v142_v10  ;;  %v174_v18 = vmax.f32 %v112_v14, %v143_v15  ;;  %v20_v19 = vld [vmem:[%s759_s0 + $0x18] sm:$0xff]  ;;  %v21_v25 = vld [vmem:[%s759_s0 + $0x20] sm:$0xff]  ;;  %v22_v32 = vld [vmem:[%s759_s0 + $0x28] sm:$0xff] }
   0x6   :  { %v51_v20 = vld [vmem:[%s760_s1 + $0x18] sm:$0xff]  ;;  %v52_v26 = vld [vmem:[%s760_s1 + $0x20] sm:$0xff]  ;;  %v53_v34 = vld [vmem:[%s760_s1 + $0x28] sm:$0xff] }
   0x7   :  { %v203_v16 = vmax.f32 %v79_v3, %v172_v7  ;;  %v113_v21 = vld [vmem:[%s761_s2 + $0x18] sm:$0xff]  ;;  %v204_v22 = vmax.f32 %v80_v8, %v173_v12  ;;  %v82_v23 = vmax.f32 %v20_v19, %v51_v20  ;;  %v205_v27 = vmax.f32 %v81_v17, %v174_v18  ;;  %v114_v30 = vld [vmem:[%s761_s2 + $0x20] sm:$0xff]  ;;  %v115_v35 = vld [vmem:[%s761_s2 + $0x28] sm:$0xff] }
   0x8   :  { %v144_v24 = vld [vmem:[%s762_s3 + $0x18] sm:$0xff]  ;;  %v83_v29 = vmax.f32 %v21_v25, %v52_v26  ;;  %v145_v31 = vld [vmem:[%s762_s3 + $0x20] sm:$0xff]  ;;  %v146_v36 = vld [vmem:[%s762_s3 + $0x28] sm:$0xff]  ;;  %v84_v38 = vmax.f32 %v22_v32, %v53_v34 }
   0x9   :  { %234 = vst [vmem:[%s763_s4] sm:$0xff] %v203_v16  ;;  %v175_v28 = vmax.f32 %v113_v21, %v144_v24  ;;  %235 = vst [vmem:[%s763_s4 + $0x8] sm:$0xff] %v204_v22  ;;  %v176_v33 = vmax.f32 %v114_v30, %v145_v31  ;;  %v177_v39 = vmax.f32 %v115_v35, %v146_v36  ;;  %v23_v40 = vld [vmem:[%s759_s0 + $0x30] sm:$0xff]  ;;  %v24_v46 = vld [vmem:[%s759_s0 + $0x38] sm:$0xff] }
   0xa   :  { %236 = vst [vmem:[%s763_s4 + $0x10] sm:$0xff] %v205_v27  ;;  %v54_v41 = vld [vmem:[%s760_s1 + $0x30] sm:$0xff]  ;;  %v55_v47 = vld [vmem:[%s760_s1 + $0x38] sm:$0xff]  ;;  %v25_v53 = vld [vmem:[%s759_s0 + $0x40] sm:$0xff] }
   0xb   :  { %v206_v37 = vmax.f32 %v82_v23, %v175_v28  ;;  %v116_v42 = vld [vmem:[%s761_s2 + $0x30] sm:$0xff]  ;;  %v207_v43 = vmax.f32 %v83_v29, %v176_v33  ;;  %v85_v44 = vmax.f32 %v23_v40, %v54_v41  ;;  %v208_v48 = vmax.f32 %v84_v38, %v177_v39  ;;  %v117_v51 = vld [vmem:[%s761_s2 + $0x38] sm:$0xff]  ;;  %v56_v55 = vld [vmem:[%s760_s1 + $0x40] sm:$0xff] }
   0xc   :  { %v147_v45 = vld [vmem:[%s762_s3 + $0x30] sm:$0xff]  ;;  %v86_v50 = vmax.f32 %v24_v46, %v55_v47  ;;  %v148_v52 = vld [vmem:[%s762_s3 + $0x38] sm:$0xff]  ;;  %v118_v56 = vld [vmem:[%s761_s2 + $0x40] sm:$0xff]  ;;  %v87_v59 = vmax.f32 %v25_v53, %v56_v55 }
   0xd   :  { %237 = vst [vmem:[%s763_s4 + $0x18] sm:$0xff] %v206_v37  ;;  %v178_v49 = vmax.f32 %v116_v42, %v147_v45  ;;  %238 = vst [vmem:[%s763_s4 + $0x20] sm:$0xff] %v207_v43  ;;  %v179_v54 = vmax.f32 %v117_v51, %v148_v52  ;;  %v149_v57 = vld [vmem:[%s762_s3 + $0x40] sm:$0xff]  ;;  %v26_v61 = vld [vmem:[%s759_s0 + $0x48] sm:$0xff] }
   0xe   :  { %239 = vst [vmem:[%s763_s4 + $0x28] sm:$0xff] %v208_v48  ;;  %v180_v60 = vmax.f32 %v118_v56, %v149_v57  ;;  %v57_v62 = vld [vmem:[%s760_s1 + $0x48] sm:$0xff]  ;;  %v27_v3 = vld [vmem:[%s759_s0 + $0x50] sm:$0xff]  ;;  %v28_v10 = vld [vmem:[%s759_s0 + $0x58] sm:$0xff] }
   0xf   :  { %v209_v58 = vmax.f32 %v85_v44, %v178_v49  ;;  %v119_v63 = vld [vmem:[%s761_s2 + $0x48] sm:$0xff]  ;;  %v210_v0 = vmax.f32 %v86_v50, %v179_v54  ;;  %v88_v1 = vmax.f32 %v26_v61, %v57_v62  ;;  %v58_v4 = vld [vmem:[%s760_s1 + $0x50] sm:$0xff]  ;;  %v59_v12 = vld [vmem:[%s760_s1 + $0x58] sm:$0xff] }
  0x10   :  { %v150_v2 = vld [vmem:[%s762_s3 + $0x48] sm:$0xff]  ;;  %v211_v5 = vmax.f32 %v87_v59, %v180_v60  ;;  %v89_v7 = vmax.f32 %v27_v3, %v58_v4  ;;  %v120_v8 = vld [vmem:[%s761_s2 + $0x50] sm:$0xff]  ;;  %v121_v13 = vld [vmem:[%s761_s2 + $0x58] sm:$0xff]  ;;  %v90_v16 = vmax.f32 %v28_v10, %v59_v12 }
  0x11   :  { %240 = vst [vmem:[%s763_s4 + $0x30] sm:$0xff] %v209_v58  ;;  %v181_v6 = vmax.f32 %v119_v63, %v150_v2  ;;  %v151_v9 = vld [vmem:[%s762_s3 + $0x50] sm:$0xff]  ;;  %241 = vst [vmem:[%s763_s4 + $0x38] sm:$0xff] %v210_v0  ;;  %v152_v14 = vld [vmem:[%s762_s3 + $0x58] sm:$0xff] }
  0x12   :  { %v182_v11 = vmax.f32 %v120_v8, %v151_v9  ;;  %242 = vst [vmem:[%s763_s4 + $0x40] sm:$0xff] %v211_v5  ;;  %v183_v17 = vmax.f32 %v121_v13, %v152_v14  ;;  %v29_v18 = vld [vmem:[%s759_s0 + $0x60] sm:$0xff]  ;;  %v30_v24 = vld [vmem:[%s759_s0 + $0x68] sm:$0xff]  ;;  %v31_v31 = vld [vmem:[%s759_s0 + $0x70] sm:$0xff] }
  0x13   :  { %v212_v15 = vmax.f32 %v88_v1, %v181_v6  ;;  %v60_v19 = vld [vmem:[%s760_s1 + $0x60] sm:$0xff]  ;;  %v61_v25 = vld [vmem:[%s760_s1 + $0x68] sm:$0xff]  ;;  %v62_v33 = vld [vmem:[%s760_s1 + $0x70] sm:$0xff] }
  0x14   :  { %v122_v20 = vld [vmem:[%s761_s2 + $0x60] sm:$0xff]  ;;  %v213_v21 = vmax.f32 %v89_v7, %v182_v11  ;;  %v91_v22 = vmax.f32 %v29_v18, %v60_v19  ;;  %v214_v26 = vmax.f32 %v90_v16, %v183_v17  ;;  %v92_v28 = vmax.f32 %v30_v24, %v61_v25  ;;  %v123_v29 = vld [vmem:[%s761_s2 + $0x68] sm:$0xff]  ;;  %v124_v34 = vld [vmem:[%s761_s2 + $0x70] sm:$0xff] }
  0x15   :  { %v153_v23 = vld [vmem:[%s762_s3 + $0x60] sm:$0xff]  ;;  %243 = vst [vmem:[%s763_s4 + $0x48] sm:$0xff] %v212_v15  ;;  %v154_v30 = vld [vmem:[%s762_s3 + $0x68] sm:$0xff]  ;;  %v155_v35 = vld [vmem:[%s762_s3 + $0x70] sm:$0xff]  ;;  %v93_v37 = vmax.f32 %v31_v31, %v62_v33 }
  0x16   :  { %v184_v27 = vmax.f32 %v122_v20, %v153_v23  ;;  %244 = vst [vmem:[%s763_s4 + $0x50] sm:$0xff] %v213_v21  ;;  %v185_v32 = vmax.f32 %v123_v29, %v154_v30  ;;  %245 = vst [vmem:[%s763_s4 + $0x58] sm:$0xff] %v214_v26  ;;  %v186_v38 = vmax.f32 %v124_v34, %v155_v35  ;;  %v32_v39 = vld [vmem:[%s759_s0 + $0x78] sm:$0xff]  ;;  %v33_v45 = vld [vmem:[%s759_s0 + $0x80] sm:$0xff] }
  0x17   :  { %v63_v40 = vld [vmem:[%s760_s1 + $0x78] sm:$0xff]  ;;  %v64_v46 = vld [vmem:[%s760_s1 + $0x80] sm:$0xff]  ;;  %v34_v52 = vld [vmem:[%s759_s0 + $0x88] sm:$0xff] }
  0x18   :  { %v215_v36 = vmax.f32 %v91_v22, %v184_v27  ;;  %v125_v41 = vld [vmem:[%s761_s2 + $0x78] sm:$0xff]  ;;  %v216_v42 = vmax.f32 %v92_v28, %v185_v32  ;;  %v94_v43 = vmax.f32 %v32_v39, %v63_v40  ;;  %v217_v47 = vmax.f32 %v93_v37, %v186_v38  ;;  %v126_v50 = vld [vmem:[%s761_s2 + $0x80] sm:$0xff]  ;;  %v65_v54 = vld [vmem:[%s760_s1 + $0x88] sm:$0xff] }
  0x19   :  { %v156_v44 = vld [vmem:[%s762_s3 + $0x78] sm:$0xff]  ;;  %v95_v49 = vmax.f32 %v33_v45, %v64_v46  ;;  %v157_v51 = vld [vmem:[%s762_s3 + $0x80] sm:$0xff]  ;;  %v127_v55 = vld [vmem:[%s761_s2 + $0x88] sm:$0xff]  ;;  %v96_v58 = vmax.f32 %v34_v52, %v65_v54 }
  0x1a   :  { %246 = vst [vmem:[%s763_s4 + $0x60] sm:$0xff] %v215_v36  ;;  %v187_v48 = vmax.f32 %v125_v41, %v156_v44  ;;  %247 = vst [vmem:[%s763_s4 + $0x68] sm:$0xff] %v216_v42  ;;  %v188_v53 = vmax.f32 %v126_v50, %v157_v51  ;;  %v158_v56 = vld [vmem:[%s762_s3 + $0x88] sm:$0xff]  ;;  %v35_v60 = vld [vmem:[%s759_s0 + $0x90] sm:$0xff] }
  0x1b   :  { %248 = vst [vmem:[%s763_s4 + $0x70] sm:$0xff] %v217_v47  ;;  %v189_v59 = vmax.f32 %v127_v55, %v158_v56  ;;  %v66_v61 = vld [vmem:[%s760_s1 + $0x90] sm:$0xff]  ;;  %v36_v2 = vld [vmem:[%s759_s0 + $0x98] sm:$0xff]  ;;  %v37_v9 = vld [vmem:[%s759_s0 + $0xa0] sm:$0xff] }
  0x1c   :  { %v218_v57 = vmax.f32 %v94_v43, %v187_v48  ;;  %v128_v62 = vld [vmem:[%s761_s2 + $0x90] sm:$0xff]  ;;  %v219_v63 = vmax.f32 %v95_v49, %v188_v53  ;;  %v97_v0 = vmax.f32 %v35_v60, %v66_v61  ;;  %v67_v3 = vld [vmem:[%s760_s1 + $0x98] sm:$0xff]  ;;  %v68_v11 = vld [vmem:[%s760_s1 + $0xa0] sm:$0xff] }
  0x1d   :  { %v159_v1 = vld [vmem:[%s762_s3 + $0x90] sm:$0xff]  ;;  %v220_v4 = vmax.f32 %v96_v58, %v189_v59  ;;  %v98_v6 = vmax.f32 %v36_v2, %v67_v3  ;;  %v129_v7 = vld [vmem:[%s761_s2 + $0x98] sm:$0xff]  ;;  %v130_v12 = vld [vmem:[%s761_s2 + $0xa0] sm:$0xff]  ;;  %v99_v15 = vmax.f32 %v37_v9, %v68_v11 }
  0x1e   :  { %249 = vst [vmem:[%s763_s4 + $0x78] sm:$0xff] %v218_v57  ;;  %v190_v5 = vmax.f32 %v128_v62, %v159_v1  ;;  %v160_v8 = vld [vmem:[%s762_s3 + $0x98] sm:$0xff]  ;;  %250 = vst [vmem:[%s763_s4 + $0x80] sm:$0xff] %v219_v63  ;;  %v161_v13 = vld [vmem:[%s762_s3 + $0xa0] sm:$0xff] }
  0x1f   :  { %v191_v10 = vmax.f32 %v129_v7, %v160_v8  ;;  %251 = vst [vmem:[%s763_s4 + $0x88] sm:$0xff] %v220_v4  ;;  %v192_v16 = vmax.f32 %v130_v12, %v161_v13  ;;  %v38_v17 = vld [vmem:[%s759_s0 + $0xa8] sm:$0xff]  ;;  %v39_v23 = vld [vmem:[%s759_s0 + $0xb0] sm:$0xff]  ;;  %v40_v30 = vld [vmem:[%s759_s0 + $0xb8] sm:$0xff] }
  0x20   :  { %v221_v14 = vmax.f32 %v97_v0, %v190_v5  ;;  %v69_v18 = vld [vmem:[%s760_s1 + $0xa8] sm:$0xff]  ;;  %v70_v24 = vld [vmem:[%s760_s1 + $0xb0] sm:$0xff]  ;;  %v71_v32 = vld [vmem:[%s760_s1 + $0xb8] sm:$0xff] }
  0x21   :  { %v131_v19 = vld [vmem:[%s761_s2 + $0xa8] sm:$0xff]  ;;  %v222_v20 = vmax.f32 %v98_v6, %v191_v10  ;;  %v100_v21 = vmax.f32 %v38_v17, %v69_v18  ;;  %v223_v25 = vmax.f32 %v99_v15, %v192_v16  ;;  %v101_v27 = vmax.f32 %v39_v23, %v70_v24  ;;  %v132_v28 = vld [vmem:[%s761_s2 + $0xb0] sm:$0xff]  ;;  %v133_v33 = vld [vmem:[%s761_s2 + $0xb8] sm:$0xff] }
  0x22   :  { %v162_v22 = vld [vmem:[%s762_s3 + $0xa8] sm:$0xff]  ;;  %252 = vst [vmem:[%s763_s4 + $0x90] sm:$0xff] %v221_v14  ;;  %v163_v29 = vld [vmem:[%s762_s3 + $0xb0] sm:$0xff]  ;;  %v164_v34 = vld [vmem:[%s762_s3 + $0xb8] sm:$0xff]  ;;  %v102_v36 = vmax.f32 %v40_v30, %v71_v32 }
  0x23   :  { %v193_v26 = vmax.f32 %v131_v19, %v162_v22  ;;  %253 = vst [vmem:[%s763_s4 + $0x98] sm:$0xff] %v222_v20  ;;  %v194_v31 = vmax.f32 %v132_v28, %v163_v29  ;;  %254 = vst [vmem:[%s763_s4 + $0xa0] sm:$0xff] %v223_v25  ;;  %v195_v37 = vmax.f32 %v133_v33, %v164_v34  ;;  %v41_v38 = vld [vmem:[%s759_s0 + $0xc0] sm:$0xff]  ;;  %v42_v44 = vld [vmem:[%s759_s0 + $0xc8] sm:$0xff] }
  0x24   :  { %v72_v39 = vld [vmem:[%s760_s1 + $0xc0] sm:$0xff]  ;;  %v73_v45 = vld [vmem:[%s760_s1 + $0xc8] sm:$0xff]  ;;  %v43_v51 = vld [vmem:[%s759_s0 + $0xd0] sm:$0xff] }
  0x25   :  { %v224_v35 = vmax.f32 %v100_v21, %v193_v26  ;;  %v134_v40 = vld [vmem:[%s761_s2 + $0xc0] sm:$0xff]  ;;  %v225_v41 = vmax.f32 %v101_v27, %v194_v31  ;;  %v103_v42 = vmax.f32 %v41_v38, %v72_v39  ;;  %v226_v46 = vmax.f32 %v102_v36, %v195_v37  ;;  %v135_v49 = vld [vmem:[%s761_s2 + $0xc8] sm:$0xff]  ;;  %v74_v53 = vld [vmem:[%s760_s1 + $0xd0] sm:$0xff] }
  0x26   :  { %v165_v43 = vld [vmem:[%s762_s3 + $0xc0] sm:$0xff]  ;;  %v104_v48 = vmax.f32 %v42_v44, %v73_v45  ;;  %v166_v50 = vld [vmem:[%s762_s3 + $0xc8] sm:$0xff]  ;;  %v136_v54 = vld [vmem:[%s761_s2 + $0xd0] sm:$0xff]  ;;  %v105_v57 = vmax.f32 %v43_v51, %v74_v53 }
  0x27   :  { %255 = vst [vmem:[%s763_s4 + $0xa8] sm:$0xff] %v224_v35  ;;  %v196_v47 = vmax.f32 %v134_v40, %v165_v43  ;;  %256 = vst [vmem:[%s763_s4 + $0xb0] sm:$0xff] %v225_v41  ;;  %v197_v52 = vmax.f32 %v135_v49, %v166_v50  ;;  %v167_v55 = vld [vmem:[%s762_s3 + $0xd0] sm:$0xff]  ;;  %v44_v59 = vld [vmem:[%s759_s0 + $0xd8] sm:$0xff] }
  0x28   :  { %257 = vst [vmem:[%s763_s4 + $0xb8] sm:$0xff] %v226_v46  ;;  %v198_v58 = vmax.f32 %v136_v54, %v167_v55  ;;  %v75_v60 = vld [vmem:[%s760_s1 + $0xd8] sm:$0xff]  ;;  %v45_v1 = vld [vmem:[%s759_s0 + $0xe0] sm:$0xff]  ;;  %v46_v8 = vld [vmem:[%s759_s0 + $0xe8] sm:$0xff] }
  0x29   :  { %v227_v56 = vmax.f32 %v103_v42, %v196_v47  ;;  %v137_v61 = vld [vmem:[%s761_s2 + $0xd8] sm:$0xff]  ;;  %v228_v62 = vmax.f32 %v104_v48, %v197_v52  ;;  %v106_v63 = vmax.f32 %v44_v59, %v75_v60  ;;  %v76_v2 = vld [vmem:[%s760_s1 + $0xe0] sm:$0xff]  ;;  %v77_v10 = vld [vmem:[%s760_s1 + $0xe8] sm:$0xff] }
  0x2a   :  { %v168_v0 = vld [vmem:[%s762_s3 + $0xd8] sm:$0xff]  ;;  %v229_v3 = vmax.f32 %v105_v57, %v198_v58  ;;  %v107_v5 = vmax.f32 %v45_v1, %v76_v2  ;;  %v138_v6 = vld [vmem:[%s761_s2 + $0xe0] sm:$0xff]  ;;  %v139_v11 = vld [vmem:[%s761_s2 + $0xe8] sm:$0xff]  ;;  %v108_v14 = vmax.f32 %v46_v8, %v77_v10 }
  0x2b   :  { %258 = vst [vmem:[%s763_s4 + $0xc0] sm:$0xff] %v227_v56  ;;  %v199_v4 = vmax.f32 %v137_v61, %v168_v0  ;;  %v169_v7 = vld [vmem:[%s762_s3 + $0xe0] sm:$0xff]  ;;  %259 = vst [vmem:[%s763_s4 + $0xc8] sm:$0xff] %v228_v62  ;;  %v170_v12 = vld [vmem:[%s762_s3 + $0xe8] sm:$0xff] }
  0x2c   :  { %v200_v9 = vmax.f32 %v138_v6, %v169_v7  ;;  %260 = vst [vmem:[%s763_s4 + $0xd0] sm:$0xff] %v229_v3  ;;  %v201_v15 = vmax.f32 %v139_v11, %v170_v12  ;;  %v47_v16 = vld [vmem:[%s759_s0 + $0xf0] sm:$0x3] }
  0x2d   :  { %v230_v13 = vmax.f32 %v106_v63, %v199_v4  ;;  %v78_v17 = vld [vmem:[%s760_s1 + $0xf0] sm:$0x3] }
  0x2e   :  { %v140_v18 = vld [vmem:[%s761_s2 + $0xf0] sm:$0x3]  ;;  %v231_v19 = vmax.f32 %v107_v5, %v200_v9  ;;  %v109_v20 = vmax.f32 %v47_v16, %v78_v17  ;;  %v232_v22 = vmax.f32 %v108_v14, %v201_v15 }
  0x2f   :  { %v171_v21 = vld [vmem:[%s762_s3 + $0xf0] sm:$0x3]  ;;  %261 = vst [vmem:[%s763_s4 + $0xd8] sm:$0xff] %v230_v13 }
  0x30   :  { %v202_v23 = vmax.f32 %v140_v18, %v171_v21  ;;  %262 = vst [vmem:[%s763_s4 + $0xe0] sm:$0xff] %v231_v19  ;;  %263 = vst [vmem:[%s763_s4 + $0xe8] sm:$0xff] %v232_v22 }
  0x32   :  { %v233_v24 = vmax.f32 %v109_v20, %v202_v23 }
  0x34   :  { %264 = vst [vmem:[%s763_s4 + $0xf0] sm:$0x3] %v233_v24 }

// kernel: cnn_forward.8
= control target key start
LH: loop header
LB: loop body
LE: loop exit
PB: predicated region body
PF: predicated region fallthrough
CT: control target
= control target key end

     0   :  { %s2892_s12 = smov 0   ;;  %s2894_s13 = smov 0   ;;  %s4023_s0 = inlined_call_operand.vmem [shape: f32[3528,72], index: 0, kind: input, shape index: {}]   ;;  %s4024_s1 = inlined_call_operand.vmem [shape: f32[72,16], index: 1, kind: input, shape index: {}]   ;;  %s4025_s2 = inlined_call_operand.vmem [shape: f32[1,16], index: 2, kind: input, shape index: {}]   ;;  %s4026_s3 = inlined_call_operand.vmem [shape: f32[3528,16], index: 3, kind: output, shape index: {}]  }
   0x1   :  { %s2896_s14 = smov 0  }
   0x2 LB: > { %s25_s15 = sadd.s32 1, %s2864_s13  ;;  %p2033_p0 = scmp.ge.s32.totalorder %s2868_s14, 1  ;;  %s2868_s14 = sphi %s2896_s14, %s13_s14   ;;  %s2864_s13 = sphi %s2894_s13, %s4028_s13   ;;  %s2860_s12 = sphi %s2892_s12, %s4027_s12  }
   0x3   : > { %p27_p1 = scmp.ge.s32.totalorder %s25_s15, 3  ;;  %p169_p2 = scmp.lt.s32.totalorder %s2868_s14, 4 }
   0x5   : > { %s4030_s15 = smov (%p27_p1, %s25_s15), 0  ;;  %p170_p3 = pnand %p2033_p0, %p169_p2 }
   0x6   : > { %s203_s18 = smul.u32 (!%p170_p3), 147, %s2860_s12 }
   0x7   : > { %173 = sbr.rel (%p170_p3) target bundleno = 521 (0x209), region = 32 }
   0x8   : > { %p204_p4 = scmp.lt.s32.totalorder (!%p170_p3), %s203_s18, 440 }
   0xc   : > { %v380_v0 = vld [vmem:[%s4024_s1 + $0x40] sm:$0xff]  ;;  %v2870_v1 = vmov 0.0   ;;  %v379_v2 = vld [vmem:[%s4024_s1 + $0x38] sm:$0xff]  ;;  %v378_v3 = vld [vmem:[%s4024_s1 + $0x30] sm:$0xff]  ;;  %s4032_s18 = smov (!%p204_p4, %s203_s18), 440  ;;  %vm388_vm0 = vcmask 588800  }
   0xd   : > { %2342 = vmatprep.subr.mxu0 %v2870_v1  ;;  %2801 = vmatprep.subr.mxu1 %v2870_v1  ;;  %v377_v4 = vld [vmem:[%s4024_s1 + $0x28] sm:$0xff]  ;;  %v376_v5 = vld [vmem:[%s4024_s1 + $0x20] sm:$0xff]  ;;  %v375_v6 = vld [vmem:[%s4024_s1 + $0x18] sm:$0xff]  ;;  %s2034_s29 = sshll.u32 %s4032_s18, 3  ;;  %vm2871_vm1 = vmmov 0   ;;  %vm1777_vm2 = vcmask 130048  }
   0xe   : > { %2343 = vmatpush3.msra.mxu0 %v380_v0  ;;  %2810 = vmatpush3.msra.mxu1 %v380_v0  ;;  %v374_v7 = vld [vmem:[%s4024_s1 + $0x10] sm:$0xff]  ;;  %v373_v8 = vld [vmem:[%s4024_s1 + $0x8] sm:$0xff]  ;;  %s2959_s9 = scalar_lea.vmem %s4023_s0, %s2034_s29  ;;  %v372_v9 = vld [vmem:[%s4024_s1] sm:$0xff]  ;;  %s3373_s20 = scalar_lea.vmem %s4026_s3, %s2034_s29 }
   0xf   : > { %2344 = vmatprep.subr.mxu0 %v2870_v1  ;;  %2802 = vmatprep.subr.mxu1 %v2870_v1  ;;  %v225_v10 = vld [vmem:[%s2959_s9] sm:$0xff]  ;;  %v299_v11 = vld [vmem:[%s2959_s9 + $0x250] sm:$0xff]  ;;  %v226_v12 = vld [vmem:[%s2959_s9 + $0x8] sm:$0xff] }
  0x10   : > { %2345 = vmatpush3.msra.mxu0 %v379_v2  ;;  %2811 = vmatpush3.msra.mxu1 %v379_v2  ;;  %v300_v13 = vld [vmem:[%s2959_s9 + $0x258] sm:$0xff]  ;;  %v227_v14 = vld [vmem:[%s2959_s9 + $0x10] sm:$0xff]  ;;  %v301_v15 = vld [vmem:[%s2959_s9 + $0x260] sm:$0xff] }
  0x11   : > { %2346 = vmatprep.subr.mxu0 %v2870_v1  ;;  %2803 = vmatprep.subr.mxu1 %v2870_v1  ;;  %v228_v16 = vld [vmem:[%s2959_s9 + $0x18] sm:$0xff]  ;;  %v302_v17 = vld [vmem:[%s2959_s9 + $0x268] sm:$0xff]  ;;  %v229_v18 = vld [vmem:[%s2959_s9 + $0x20] sm:$0xff] }
  0x12   : > { %2347 = vmatpush3.msra.mxu0 %v378_v3  ;;  %2812 = vmatpush3.msra.mxu1 %v378_v3  ;;  %v303_v19 = vld [vmem:[%s2959_s9 + $0x270] sm:$0xff]  ;;  %v230_v20 = vld [vmem:[%s2959_s9 + $0x28] sm:$0xff]  ;;  %v304_v21 = vld [vmem:[%s2959_s9 + $0x278] sm:$0xff] }
  0x13   : > { %2348 = vmatprep.subr.mxu0 %v2870_v1  ;;  %2804 = vmatprep.subr.mxu1 %v2870_v1  ;;  %v231_v22 = vld [vmem:[%s2959_s9 + $0x30] sm:$0xff]  ;;  %v305_v23 = vld [vmem:[%s2959_s9 + $0x280] sm:$0xff]  ;;  %v232_v24 = vld [vmem:[%s2959_s9 + $0x38] sm:$0xff] }
  0x14   : > { %2349 = vmatpush3.msra.mxu0 %v377_v4  ;;  %2813 = vmatpush3.msra.mxu1 %v377_v4  ;;  %v306_v25 = vld [vmem:[%s2959_s9 + $0x288] sm:$0xff]  ;;  %v233_v26 = vld [vmem:[%s2959_s9 + $0x40] sm:$0xff]  ;;  %v307_v27 = vld [vmem:[%s2959_s9 + $0x290] sm:$0xff] }
  0x15   : > { %2350 = vmatprep.subr.mxu0 %v2870_v1  ;;  %2805 = vmatprep.subr.mxu1 %v2870_v1  ;;  %v234_v28 = vld [vmem:[%s2959_s9 + $0x48] sm:$0xff]  ;;  %v308_v29 = vld [vmem:[%s2959_s9 + $0x298] sm:$0xff]  ;;  %v235_v30 = vld [vmem:[%s2959_s9 + $0x50] sm:$0xff] }
  0x16   : > { %2351 = vmatpush3.msra.mxu0 %v376_v5  ;;  %2814 = vmatpush3.msra.mxu1 %v376_v5  ;;  %v309_v31 = vld [vmem:[%s2959_s9 + $0x2a0] sm:$0xff]  ;;  %v236_v32 = vld [vmem:[%s2959_s9 + $0x58] sm:$0xff]  ;;  %v310_v33 = vld [vmem:[%s2959_s9 + $0x2a8] sm:$0xff] }
  0x17   : > { %2352 = vmatprep.subr.mxu0 %v2870_v1  ;;  %2806 = vmatprep.subr.mxu1 %v2870_v1  ;;  %v237_v34 = vld [vmem:[%s2959_s9 + $0x60] sm:$0xff]  ;;  %v311_v35 = vld [vmem:[%s2959_s9 + $0x2b0] sm:$0xff]  ;;  %v238_v36 = vld [vmem:[%s2959_s9 + $0x68] sm:$0xff] }
  0x18   : > { %2353 = vmatpush3.msra.mxu0 %v375_v6  ;;  %2815 = vmatpush3.msra.mxu1 %v375_v6  ;;  %v312_v37 = vld [vmem:[%s2959_s9 + $0x2b8] sm:$0xff]  ;;  %v239_v38 = vld [vmem:[%s2959_s9 + $0x70] sm:$0xff]  ;;  %v313_v39 = vld [vmem:[%s2959_s9 + $0x2c0] sm:$0xff] }
  0x19   : > { %2354 = vmatprep.subr.mxu0 %v2870_v1  ;;  %2807 = vmatprep.subr.mxu1 %v2870_v1  ;;  %v240_v40 = vld [vmem:[%s2959_s9 + $0x78] sm:$0xff]  ;;  %v314_v41 = vld [vmem:[%s2959_s9 + $0x2c8] sm:$0xff]  ;;  %v241_v42 = vld [vmem:[%s2959_s9 + $0x80] sm:$0xff] }
  0x1a   : > { %2355 = vmatpush3.msra.mxu0 %v374_v7  ;;  %2816 = vmatpush3.msra.mxu1 %v374_v7  ;;  %v315_v43 = vld [vmem:[%s2959_s9 + $0x2d0] sm:$0xff]  ;;  %v242_v44 = vld [vmem:[%s2959_s9 + $0x88] sm:$0xff]  ;;  %v316_v45 = vld [vmem:[%s2959_s9 + $0x2d8] sm:$0xff] }
  0x1b   : > { %2356 = vmatprep.subr.mxu0 %v2870_v1  ;;  %2808 = vmatprep.subr.mxu1 %v2870_v1  ;;  %v243_v46 = vld [vmem:[%s2959_s9 + $0x90] sm:$0xff]  ;;  %v317_v47 = vld [vmem:[%s2959_s9 + $0x2e0] sm:$0xff]  ;;  %v244_v48 = vld [vmem:[%s2959_s9 + $0x98] sm:$0xff] }
  0x1c   : > { %2357 = vmatpush3.msra.mxu0 %v373_v8  ;;  %2817 = vmatpush3.msra.mxu1 %v373_v8  ;;  %v318_v49 = vld [vmem:[%s2959_s9 + $0x2e8] sm:$0xff]  ;;  %v245_v50 = vld [vmem:[%s2959_s9 + $0xa0] sm:$0xff]  ;;  %v319_v51 = vld [vmem:[%s2959_s9 + $0x2f0] sm:$0xff] }
  0x1d   : > { %2358 = vmatprep.subr.mxu0 %v2870_v1  ;;  %2360 = vmatprep.mubr.msk.f32.mxu0 %vm2871_vm1, %v2870_v1  ;;  %v246_v52 = vld [vmem:[%s2959_s9 + $0xa8] sm:$0xff]  ;;  %v320_v53 = vld [vmem:[%s2959_s9 + $0x2f8] sm:$0xff]  ;;  %v247_v54 = vld [vmem:[%s2959_s9 + $0xb0] sm:$0xff] }
  0x1e   : > { %2359 = vmatpush3.msra.mxu0 %v372_v9  ;;  %2809 = vmatprep.subr.mxu1 %v2870_v1  ;;  %v321_v55 = vld [vmem:[%s2959_s9 + $0x300] sm:$0xff]  ;;  %v248_v56 = vld [vmem:[%s2959_s9 + $0xb8] sm:$0xff]  ;;  %v322_v57 = vld [vmem:[%s2959_s9 + $0x308] sm:$0xff] }
  0x1f   : > { %2361 = vmatmul.mubr.msk.f32.vlgmr.msra.gmra.mxu0 %vm388_vm0, %v225_v10  ;;  %2818 = vmatpush3.msra.mxu1 %v372_v9  ;;  %v249_v58 = vld [vmem:[%s2959_s9 + $0xc0] sm:$0xff]  ;;  %v323_v59 = vld [vmem:[%s2959_s9 + $0x310] sm:$0xff]  ;;  %v250_v60 = vld [vmem:[%s2959_s9 + $0xc8] sm:$0xff] }
  0x20   : > { %2582 = vmatprep.mubr.msk.f32.mxu1 %vm2871_vm1, %v2870_v1  ;;  %2363 = vmatprep.mubr.msk.f32.mxu0 %vm2871_vm1, %v2870_v1  ;;  %v324_v61 = vld [vmem:[%s2959_s9 + $0x318] sm:$0xff]  ;;  %v251_v62 = vld [vmem:[%s2959_s9 + $0xd0] sm:$0xff]  ;;  %v325_v63 = vld [vmem:[%s2959_s9 + $0x320] sm:$0xff] }
  0x21   : > { %2583 = vmatmul.mubr.msk.f32.vlgmr.msra.gmra.mxu1 %vm388_vm0, %v299_v11  ;;  %v252_v0 = vld [vmem:[%s2959_s9 + $0xd8] sm:$0xff]  ;;  %v326_v2 = vld [vmem:[%s2959_s9 + $0x328] sm:$0xff]  ;;  %v253_v3 = vld [vmem:[%s2959_s9 + $0xe0] sm:$0xff] }
  0x22   : > { %2585 = vmatprep.mubr.msk.f32.mxu1 %vm2871_vm1, %v2870_v1  ;;  %v327_v4 = vld [vmem:[%s2959_s9 + $0x330] sm:$0xff]  ;;  %v254_v5 = vld [vmem:[%s2959_s9 + $0xe8] sm:$0xff]  ;;  %v328_v6 = vld [vmem:[%s2959_s9 + $0x338] sm:$0xff] }
  0x23   : > { %2364 = vmatmul.mubr.msk.f32.gmra.mxu0 %vm388_vm0, %v226_v12  ;;  %v255_v7 = vld [vmem:[%s2959_s9 + $0xf0] sm:$0xff]  ;;  %v329_v8 = vld [vmem:[%s2959_s9 + $0x340] sm:$0xff]  ;;  %v256_v9 = vld [vmem:[%s2959_s9 + $0xf8] sm:$0xff] }
  0x24   : > { %2366 = vmatprep.mubr.msk.f32.mxu0 %vm2871_vm1, %v2870_v1  ;;  %v330_v10 = vld [vmem:[%s2959_s9 + $0x348] sm:$0xff]  ;;  %v257_v11 = vld [vmem:[%s2959_s9 + $0x100] sm:$0xff]  ;;  %v331_v12 = vld [vmem:[%s2959_s9 + $0x350] sm:$0xff] }
  0x25   : > { %2586 = vmatmul.mubr.msk.f32.gmra.mxu1 %vm388_vm0, %v300_v13  ;;  %v258_v13 = vld [vmem:[%s2959_s9 + $0x108] sm:$0xff] }
  0x26   : > { %2588 = vmatprep.mubr.msk.f32.mxu1 %vm2871_vm1, %v2870_v1 }
  0x27   : > { %2367 = vmatmul.mubr.msk.f32.gmra.mxu0 %vm388_vm0, %v227_v14  ;;  %v332_v14 = vld [vmem:[%s2959_s9 + $0x358] sm:$0xff] }
  0x28   : > { %2369 = vmatprep.mubr.msk.f32.mxu0 %vm2871_vm1, %v2870_v1 }
  0x29   : > { %2589 = vmatmul.mubr.msk.f32.gmra.mxu1 %vm388_vm0, %v301_v15  ;;  %v259_v15 = vld [vmem:[%s2959_s9 + $0x110] sm:$0xff] }
  0x2a   : > { %2591 = vmatprep.mubr.msk.f32.mxu1 %vm2871_vm1, %v2870_v1 }
  0x2b   : > { %2370 = vmatmul.mubr.msk.f32.gmra.mxu0 %vm388_vm0, %v228_v16  ;;  %v333_v16 = vld [vmem:[%s2959_s9 + $0x360] sm:$0xff] }
  0x2c   : > { %2372 = vmatprep.mubr.msk.f32.mxu0 %vm2871_vm1, %v2870_v1 }
  0x2d   : > { %2592 = vmatmul.mubr.msk.f32.gmra.mxu1 %vm388_vm0, %v302_v17  ;;  %v260_v17 = vld [vmem:[%s2959_s9 + $0x118] sm:$0xff] }
  0x2e   : > { %2594 = vmatprep.mubr.msk.f32.mxu1 %vm2871_vm1, %v2870_v1 }
  0x2f   : > { %2373 = vmatmul.mubr.msk.f32.gmra.mxu0 %vm388_vm0, %v229_v18  ;;  %v334_v18 = vld [vmem:[%s2959_s9 + $0x368] sm:$0xff] }
  0x30   : > { %2375 = vmatprep.mubr.msk.f32.mxu0 %vm2871_vm1, %v2870_v1 }
  0x31   : > { %2595 = vmatmul.mubr.msk.f32.gmra.mxu1 %vm388_vm0, %v303_v19  ;;  %v261_v19 = vld [vmem:[%s2959_s9 + $0x120] sm:$0xff] }
  0x32   : > { %2597 = vmatprep.mubr.msk.f32.mxu1 %vm2871_vm1, %v2870_v1 }
  0x33   : > { %2376 = vmatmul.mubr.msk.f32.gmra.mxu0 %vm388_vm0, %v230_v20  ;;  %v335_v20 = vld [vmem:[%s2959_s9 + $0x370] sm:$0xff] }
  0x34   : > { %2378 = vmatprep.mubr.msk.f32.mxu0 %vm2871_vm1, %v2870_v1 }
  0x35   : > { %2598 = vmatmul.mubr.msk.f32.gmra.mxu1 %vm388_vm0, %v304_v21  ;;  %v262_v21 = vld [vmem:[%s2959_s9 + $0x128] sm:$0xff] }
  0x36   : > { %2600 = vmatprep.mubr.msk.f32.mxu1 %vm2871_vm1, %v2870_v1 }
  0x37   : > { %2379 = vmatmul.mubr.msk.f32.gmra.mxu0 %vm388_vm0, %v231_v22  ;;  %v336_v22 = vld [vmem:[%s2959_s9 + $0x378] sm:$0xff] }
  0x38   : > { %2381 = vmatprep.mubr.msk.f32.mxu0 %vm2871_vm1, %v2870_v1 }
  0x39   : > { %2601 = vmatmul.mubr.msk.f32.gmra.mxu1 %vm388_vm0, %v305_v23  ;;  %v263_v23 = vld [vmem:[%s2959_s9 + $0x130] sm:$0xff] }
  0x3a   : > { %2603 = vmatprep.mubr.msk.f32.mxu1 %vm2871_vm1, %v2870_v1 }
  0x3b   : > { %2382 = vmatmul.mubr.msk.f32.gmra.mxu0 %vm388_vm0, %v232_v24  ;;  %v337_v24 = vld [vmem:[%s2959_s9 + $0x380] sm:$0xff] }
  0x3c   : > { %2384 = vmatprep.mubr.msk.f32.mxu0 %vm2871_vm1, %v2870_v1 }
  0x3d   : > { %2604 = vmatmul.mubr.msk.f32.gmra.mxu1 %vm388_vm0, %v306_v25  ;;  %v264_v25 = vld [vmem:[%s2959_s9 + $0x138] sm:$0xff] }
  0x3e   : > { %2606 = vmatprep.mubr.msk.f32.mxu1 %vm2871_vm1, %v2870_v1 }
  0x3f   : > { %2385 = vmatmul.mubr.msk.f32.gmra.mxu0 %vm388_vm0, %v233_v26  ;;  %v338_v26 = vld [vmem:[%s2959_s9 + $0x388] sm:$0xff] }
  0x40   : > { %2387 = vmatprep.mubr.msk.f32.mxu0 %vm2871_vm1, %v2870_v1 }
  0x41   : > { %2607 = vmatmul.mubr.msk.f32.gmra.mxu1 %vm388_vm0, %v307_v27  ;;  %v265_v27 = vld [vmem:[%s2959_s9 + $0x140] sm:$0xff] }
  0x42   : > { %2609 = vmatprep.mubr.msk.f32.mxu1 %vm2871_vm1, %v2870_v1 }
  0x43   : > { %2388 = vmatmul.mubr.msk.f32.gmra.mxu0 %vm388_vm0, %v234_v28  ;;  %v339_v28 = vld [vmem:[%s2959_s9 + $0x390] sm:$0xff] }
  0x44   : > { %2390 = vmatprep.mubr.msk.f32.mxu0 %vm2871_vm1, %v2870_v1 }
  0x45   : > { %2610 = vmatmul.mubr.msk.f32.gmra.mxu1 %vm388_vm0, %v308_v29  ;;  %v266_v29 = vld [vmem:[%s2959_s9 + $0x148] sm:$0xff] }
  0x46   : > { %2612 = vmatprep.mubr.msk.f32.mxu1 %vm2871_vm1, %v2870_v1 }
  0x47   : > { %2391 = vmatmul.mubr.msk.f32.gmra.mxu0 %vm388_vm0, %v235_v30  ;;  %v340_v30 = vld [vmem:[%s2959_s9 + $0x398] sm:$0xff] }
  0x48   : > { %2393 = vmatprep.mubr.msk.f32.mxu0 %vm2871_vm1, %v2870_v1 }
  0x49   : > { %2613 = vmatmul.mubr.msk.f32.gmra.mxu1 %vm388_vm0, %v309_v31  ;;  %v267_v31 = vld [vmem:[%s2959_s9 + $0x150] sm:$0xff] }
  0x4a   : > { %2615 = vmatprep.mubr.msk.f32.mxu1 %vm2871_vm1, %v2870_v1 }
  0x4b   : > { %2394 = vmatmul.mubr.msk.f32.gmra.mxu0 %vm388_vm0, %v236_v32  ;;  %v341_v32 = vld [vmem:[%s2959_s9 + $0x3a0] sm:$0xff] }
  0x4c   : > { %2396 = vmatprep.mubr.msk.f32.mxu0 %vm2871_vm1, %v2870_v1 }
  0x4d   : > { %2616 = vmatmul.mubr.msk.f32.gmra.mxu1 %vm388_vm0, %v310_v33  ;;  %v268_v33 = vld [vmem:[%s2959_s9 + $0x158] sm:$0xff] }
  0x4e   : > { %2618 = vmatprep.mubr.msk.f32.mxu1 %vm2871_vm1, %v2870_v1 }
  0x4f   : > { %2397 = vmatmul.mubr.msk.f32.gmra.mxu0 %vm388_vm0, %v237_v34  ;;  %v342_v34 = vld [vmem:[%s2959_s9 + $0x3a8] sm:$0xff] }
  0x50   : > { %2399 = vmatprep.mubr.msk.f32.mxu0 %vm2871_vm1, %v2870_v1 }
  0x51   : > { %2619 = vmatmul.mubr.msk.f32.gmra.mxu1 %vm388_vm0, %v311_v35  ;;  %v269_v35 = vld [vmem:[%s2959_s9 + $0x160] sm:$0xff] }
  0x52   : > { %2621 = vmatprep.mubr.msk.f32.mxu1 %vm2871_vm1, %v2870_v1 }
  0x53   : > { %2400 = vmatmul.mubr.msk.f32.gmra.mxu0 %vm388_vm0, %v238_v36  ;;  %v343_v36 = vld [vmem:[%s2959_s9 + $0x3b0] sm:$0xff] }
  0x54   : > { %2402 = vmatprep.mubr.msk.f32.mxu0 %vm2871_vm1, %v2870_v1 }
  0x55   : > { %2622 = vmatmul.mubr.msk.f32.gmra.mxu1 %vm388_vm0, %v312_v37  ;;  %v270_v37 = vld [vmem:[%s2959_s9 + $0x168] sm:$0xff] }
  0x56   : > { %2624 = vmatprep.mubr.msk.f32.mxu1 %vm2871_vm1, %v2870_v1 }
  0x57   : > { %2403 = vmatmul.mubr.msk.f32.gmra.mxu0 %vm388_vm0, %v239_v38  ;;  %v344_v38 = vld [vmem:[%s2959_s9 + $0x3b8] sm:$0xff] }
  0x58   : > { %2405 = vmatprep.mubr.msk.f32.mxu0 %vm2871_vm1, %v2870_v1 }
  0x59   : > { %2625 = vmatmul.mubr.msk.f32.gmra.mxu1 %vm388_vm0, %v313_v39  ;;  %v271_v39 = vld [vmem:[%s2959_s9 + $0x170] sm:$0xff] }
  0x5a   : > { %2627 = vmatprep.mubr.msk.f32.mxu1 %vm2871_vm1, %v2870_v1 }
  0x5b   : > { %2406 = vmatmul.mubr.msk.f32.gmra.mxu0 %vm388_vm0, %v240_v40  ;;  %v345_v40 = vld [vmem:[%s2959_s9 + $0x3c0] sm:$0xff] }
  0x5c   : > { %2408 = vmatprep.mubr.msk.f32.mxu0 %vm2871_vm1, %v2870_v1 }
  0x5d   : > { %2628 = vmatmul.mubr.msk.f32.gmra.mxu1 %vm388_vm0, %v314_v41  ;;  %v272_v41 = vld [vmem:[%s2959_s9 + $0x178] sm:$0xff] }
  0x5e   : > { %2630 = vmatprep.mubr.msk.f32.mxu1 %vm2871_vm1, %v2870_v1 }
  0x5f   : > { %2409 = vmatmul.mubr.msk.f32.gmra.mxu0 %vm388_vm0, %v241_v42  ;;  %v346_v42 = vld [vmem:[%s2959_s9 + $0x3c8] sm:$0xff] }
  0x60   : > { %2411 = vmatprep.mubr.msk.f32.mxu0 %vm2871_vm1, %v2870_v1 }
  0x61   : > { %2631 = vmatmul.mubr.msk.f32.gmra.mxu1 %vm388_vm0, %v315_v43  ;;  %v273_v43 = vld [vmem:[%s2959_s9 + $0x180] sm:$0xff] }
  0x62   : > { %2633 = vmatprep.mubr.msk.f32.mxu1 %vm2871_vm1, %v2870_v1 }
  0x63   : > { %2412 = vmatmul.mubr.msk.f32.gmra.mxu0 %vm388_vm0, %v242_v44  ;;  %v3358_v44 = vld [vmem:[%s4025_s2] ss:$0 sm:$0xff] }
  0x64   : > { %2414 = vmatprep.mubr.msk.f32.mxu0 %vm2871_vm1, %v2870_v1 }
  0x65   : > { %2634 = vmatmul.mubr.msk.f32.gmra.mxu1 %vm388_vm0, %v316_v45  ;;  %v347_v45 = vld [vmem:[%s2959_s9 + $0x3d0] sm:$0xff] }
  0x66   : > { %2636 = vmatprep.mubr.msk.f32.mxu1 %vm2871_vm1, %v2870_v1 }
  0x67   : > { %2415 = vmatmul.mubr.msk.f32.gmra.mxu0 %vm388_vm0, %v243_v46 }
  0x68   : > { %2417 = vmatprep.mubr.msk.f32.mxu0 %vm2871_vm1, %v2870_v1 }
  0x69   : > { %2637 = vmatmul.mubr.msk.f32.gmra.mxu1 %vm388_vm0, %v317_v47 }
  0x6a   : > { %2639 = vmatprep.mubr.msk.f32.mxu1 %vm2871_vm1, %v2870_v1 }
  0x6b   : > { %2418 = vmatmul.mubr.msk.f32.gmra.mxu0 %vm388_vm0, %v244_v48  ;;  %v274_v48 = vld [vmem:[%s2959_s9 + $0x188] sm:$0xff] }
  0x6c   : > { %2420 = vmatprep.mubr.msk.f32.mxu0 %vm2871_vm1, %v2870_v1 }
  0x6d   : > { %2640 = vmatmul.mubr.msk.f32.gmra.mxu1 %vm388_vm0, %v318_v49 }
  0x6e   : > { %2642 = vmatprep.mubr.msk.f32.mxu1 %vm2871_vm1, %v2870_v1 }
  0x6f   : > { %2421 = vmatmul.mubr.msk.f32.gmra.mxu0 %vm388_vm0, %v245_v50 }
  0x70   : > { %2423 = vmatprep.mubr.msk.f32.mxu0 %vm2871_vm1, %v2870_v1 }
  0x71   : > { %2643 = vmatmul.mubr.msk.f32.gmra.mxu1 %vm388_vm0, %v319_v51 }
  0x72   : > { %2645 = vmatprep.mubr.msk.f32.mxu1 %vm2871_vm1, %v2870_v1 }
  0x73   : > { %2424 = vmatmul.mubr.msk.f32.gmra.mxu0 %vm388_vm0, %v246_v52 }
  0x74   : > { %2426 = vmatprep.mubr.msk.f32.mxu0 %vm2871_vm1, %v2870_v1 }
  0x75   : > { %2646 = vmatmul.mubr.msk.f32.gmra.mxu1 %vm388_vm0, %v320_v53  ;;  %v348_v53 = vld [vmem:[%s2959_s9 + $0x3d8] sm:$0xff] }
  0x76   : > { %2648 = vmatprep.mubr.msk.f32.mxu1 %vm2871_vm1, %v2870_v1 }
  0x77   : > { %2427 = vmatmul.mubr.msk.f32.gmra.mxu0 %vm388_vm0, %v247_v54 }
  0x78   : > { %2429 = vmatprep.mubr.msk.f32.mxu0 %vm2871_vm1, %v2870_v1 }
  0x79   : > { %2649 = vmatmul.mubr.msk.f32.gmra.mxu1 %vm388_vm0, %v321_v55 }
  0x7a   : > { %2651 = vmatprep.mubr.msk.f32.mxu1 %vm2871_vm1, %v2870_v1 }
  0x7b   : > { %2430 = vmatmul.mubr.msk.f32.gmra.mxu0 %vm388_vm0, %v248_v56 }
  0x7c   : > { %2432 = vmatprep.mubr.msk.f32.mxu0 %vm2871_vm1, %v2870_v1 }
  0x7d   : > { %2652 = vmatmul.mubr.msk.f32.gmra.mxu1 %vm388_vm0, %v322_v57 }
  0x7e   : > { %2654 = vmatprep.mubr.msk.f32.mxu1 %vm2871_vm1, %v2870_v1 }
  0x7f   : > { %2433 = vmatmul.mubr.msk.f32.gmra.mxu0 %vm388_vm0, %v249_v58  ;;  %v275_v58 = vld [vmem:[%s2959_s9 + $0x190] sm:$0xff] }
  0x80   : > { %2435 = vmatprep.mubr.msk.f32.mxu0 %vm2871_vm1, %v2870_v1 }
  0x81   : > { %2655 = vmatmul.mubr.msk.f32.gmra.mxu1 %vm388_vm0, %v323_v59 }
  0x82   : > { %2657 = vmatprep.mubr.msk.f32.mxu1 %vm2871_vm1, %v2870_v1 }
  0x83   : > { %2436 = vmatmul.mubr.msk.f32.gmra.mxu0 %vm388_vm0, %v250_v60 }
  0x84   : > { %2438 = vmatprep.mubr.msk.f32.mxu0 %vm2871_vm1, %v2870_v1 }
  0x85   : > { %2658 = vmatmul.mubr.msk.f32.gmra.mxu1 %vm388_vm0, %v324_v61 }
  0x86   : > { %2660 = vmatprep.mubr.msk.f32.mxu1 %vm2871_vm1, %v2870_v1 }
  0x87   : > { %2439 = vmatmul.mubr.msk.f32.gmra.mxu0 %vm388_vm0, %v251_v62 }
  0x88   : > { %2441 = vmatprep.mubr.msk.f32.mxu0 %vm2871_vm1, %v2870_v1 }
  0x89   : > { %2661 = vmatmul.mubr.msk.f32.gmra.mxu1 %vm388_vm0, %v325_v63  ;;  %v349_v63 = vld [vmem:[%s2959_s9 + $0x3e0] sm:$0xff] }
  0x8a   : > { %2663 = vmatprep.mubr.msk.f32.mxu1 %vm2871_vm1, %v2870_v1 }
  0x8b   : > { %2442 = vmatmul.mubr.msk.f32.gmra.mxu0 %vm388_vm0, %v252_v0 }
  0x8c   : > { %2444 = vmatprep.mubr.msk.f32.mxu0 %vm2871_vm1, %v2870_v1 }
  0x8d   : > { %2664 = vmatmul.mubr.msk.f32.gmra.mxu1 %vm388_vm0, %v326_v2 }
  0x8e   : > { %2666 = vmatprep.mubr.msk.f32.mxu1 %vm2871_vm1, %v2870_v1 }
  0x8f   : > { %2445 = vmatmul.mubr.msk.f32.gmra.mxu0 %vm388_vm0, %v253_v3 }
  0x90   : > { %2447 = vmatprep.mubr.msk.f32.mxu0 %vm2871_vm1, %v2870_v1 }
  0x91   : > { %2667 = vmatmul.mubr.msk.f32.gmra.mxu1 %vm388_vm0, %v327_v4 }
  0x92   : > { %2669 = vmatprep.mubr.msk.f32.mxu1 %vm2871_vm1, %v2870_v1 }
  0x93   : > { %2448 = vmatmul.mubr.msk.f32.gmra.mxu0 %vm388_vm0, %v254_v5  ;;  %v276_v5 = vld [vmem:[%s2959_s9 + $0x198] sm:$0xff] }
  0x94   : > { %2450 = vmatprep.mubr.msk.f32.mxu0 %vm2871_vm1, %v2870_v1 }
  0x95   : > { %2670 = vmatmul.mubr.msk.f32.gmra.mxu1 %vm388_vm0, %v328_v6 }
  0x96   : > { %2672 = vmatprep.mubr.msk.f32.mxu1 %vm2871_vm1, %v2870_v1 }
  0x97   : > { %2451 = vmatmul.mubr.msk.f32.gmra.mxu0 %vm388_vm0, %v255_v7 }
  0x98   : > { %2453 = vmatprep.mubr.msk.f32.mxu0 %vm2871_vm1, %v2870_v1 }
  0x99   : > { %2673 = vmatmul.mubr.msk.f32.gmra.mxu1 %vm388_vm0, %v329_v8 }
  0x9a   : > { %2675 = vmatprep.mubr.msk.f32.mxu1 %vm2871_vm1, %v2870_v1 }
  0x9b   : > { %2454 = vmatmul.mubr.msk.f32.gmra.mxu0 %vm388_vm0, %v256_v9 }
  0x9c   : > { %2456 = vmatprep.mubr.msk.f32.mxu0 %vm2871_vm1, %v2870_v1 }
  0x9d   : > { %2676 = vmatmul.mubr.msk.f32.gmra.mxu1 %vm388_vm0, %v330_v10  ;;  %v350_v10 = vld [vmem:[%s2959_s9 + $0x3e8] sm:$0xff] }
  0x9e   : > { %2678 = vmatprep.mubr.msk.f32.mxu1 %vm2871_vm1, %v2870_v1 }
  0x9f   : > { %2457 = vmatmul.mubr.msk.f32.gmra.mxu0 %vm388_vm0, %v257_v11 }
  0xa0   : > { %2459 = vmatprep.mubr.msk.f32.mxu0 %vm2871_vm1, %v2870_v1 }
  0xa1   : > { %2679 = vmatmul.mubr.msk.f32.gmra.mxu1 %vm388_vm0, %v331_v12 }
  0xa2   : > { %2681 = vmatprep.mubr.msk.f32.mxu1 %vm2871_vm1, %v2870_v1 }
  0xa3   : > { %2460 = vmatmul.mubr.msk.f32.gmra.mxu0 %vm388_vm0, %v258_v13 }
  0xa4   : > { %2462 = vmatprep.mubr.msk.f32.mxu0 %vm2871_vm1, %v2870_v1 }
  0xa5   : > { %2682 = vmatmul.mubr.msk.f32.gmra.mxu1 %vm388_vm0, %v332_v14 }
  0xa6   : > { %2684 = vmatprep.mubr.msk.f32.mxu1 %vm2871_vm1, %v2870_v1 }
  0xa7   : > { %2463 = vmatmul.mubr.msk.f32.gmra.mxu0 %vm388_vm0, %v259_v15  ;;  %v277_v15 = vld [vmem:[%s2959_s9 + $0x1a0] sm:$0xff] }
  0xa8   : > { %2465 = vmatprep.mubr.msk.f32.mxu0 %vm2871_vm1, %v2870_v1 }
  0xa9   : > { %2685 = vmatmul.mubr.msk.f32.gmra.mxu1 %vm388_vm0, %v333_v16 }
  0xaa   : > { %2687 = vmatprep.mubr.msk.f32.mxu1 %vm2871_vm1, %v2870_v1 }
  0xab   : > { %2466 = vmatmul.mubr.msk.f32.gmra.mxu0 %vm388_vm0, %v260_v17 }
  0xac   : > { %2468 = vmatprep.mubr.msk.f32.mxu0 %vm2871_vm1, %v2870_v1 }
  0xad   : > { %2688 = vmatmul.mubr.msk.f32.gmra.mxu1 %vm388_vm0, %v334_v18 }
  0xae   : > { %2690 = vmatprep.mubr.msk.f32.mxu1 %vm2871_vm1, %v2870_v1 }
  0xaf   : > { %2469 = vmatmul.mubr.msk.f32.gmra.mxu0 %vm388_vm0, %v261_v19 }
  0xb0   : > { %2471 = vmatprep.mubr.msk.f32.mxu0 %vm2871_vm1, %v2870_v1 }
  0xb1   : > { %2691 = vmatmul.mubr.msk.f32.gmra.mxu1 %vm388_vm0, %v335_v20  ;;  %v351_v20 = vld [vmem:[%s2959_s9 + $0x3f0] sm:$0xff] }
  0xb2   : > { %2693 = vmatprep.mubr.msk.f32.mxu1 %vm2871_vm1, %v2870_v1 }
  0xb3   : > { %2472 = vmatmul.mubr.msk.f32.gmra.mxu0 %vm388_vm0, %v262_v21 }
  0xb4   : > { %2474 = vmatprep.mubr.msk.f32.mxu0 %vm2871_vm1, %v2870_v1 }
  0xb5   : > { %2694 = vmatmul.mubr.msk.f32.gmra.mxu1 %vm388_vm0, %v336_v22 }
  0xb6   : > { %2696 = vmatprep.mubr.msk.f32.mxu1 %vm2871_vm1, %v2870_v1 }
  0xb7   : > { %2475 = vmatmul.mubr.msk.f32.gmra.mxu0 %vm388_vm0, %v263_v23 }
  0xb8   : > { %2477 = vmatprep.mubr.msk.f32.mxu0 %vm2871_vm1, %v2870_v1 }
  0xb9   : > { %2697 = vmatmul.mubr.msk.f32.gmra.mxu1 %vm388_vm0, %v337_v24 }
  0xba   : > { %2699 = vmatprep.mubr.msk.f32.mxu1 %vm2871_vm1, %v2870_v1 }
  0xbb   : > { %2478 = vmatmul.mubr.msk.f32.gmra.mxu0 %vm388_vm0, %v264_v25  ;;  %v278_v25 = vld [vmem:[%s2959_s9 + $0x1a8] sm:$0xff] }
  0xbc   : > { %2480 = vmatprep.mubr.msk.f32.mxu0 %vm2871_vm1, %v2870_v1 }
  0xbd   : > { %2700 = vmatmul.mubr.msk.f32.gmra.mxu1 %vm388_vm0, %v338_v26 }
  0xbe   : > { %2702 = vmatprep.mubr.msk.f32.mxu1 %vm2871_vm1, %v2870_v1 }
  0xbf   : > { %2481 = vmatmul.mubr.msk.f32.gmra.mxu0 %vm388_vm0, %v265_v27 }
  0xc0   : > { %2483 = vmatprep.mubr.msk.f32.mxu0 %vm2871_vm1, %v2870_v1 }
  0xc1   : > { %2703 = vmatmul.mubr.msk.f32.gmra.mxu1 %vm388_vm0, %v339_v28 }
  0xc2   : > { %2705 = vmatprep.mubr.msk.f32.mxu1 %vm2871_vm1, %v2870_v1 }
  0xc3   : > { %2484 = vmatmul.mubr.msk.f32.gmra.mxu0 %vm388_vm0, %v266_v29 }
  0xc4   : > { %2486 = vmatprep.mubr.msk.f32.mxu0 %vm2871_vm1, %v2870_v1 }
  0xc5   : > { %2706 = vmatmul.mubr.msk.f32.gmra.mxu1 %vm388_vm0, %v340_v30  ;;  %v352_v30 = vld [vmem:[%s2959_s9 + $0x3f8] sm:$0xff] }
  0xc6   : > { %2708 = vmatprep.mubr.msk.f32.mxu1 %vm2871_vm1, %v2870_v1 }
  0xc7   : > { %2487 = vmatmul.mubr.msk.f32.gmra.mxu0 %vm388_vm0, %v267_v31 }
  0xc8   : > { %2489 = vmatprep.mubr.msk.f32.mxu0 %vm2871_vm1, %v2870_v1 }
  0xc9   : > { %2709 = vmatmul.mubr.msk.f32.gmra.mxu1 %vm388_vm0, %v341_v32 }
  0xca   : > { %2711 = vmatprep.mubr.msk.f32.mxu1 %vm2871_vm1, %v2870_v1 }
  0xcb   : > { %2490 = vmatmul.mubr.msk.f32.gmra.mxu0 %vm388_vm0, %v268_v33 }
  0xcc   : > { %2492 = vmatprep.mubr.msk.f32.mxu0 %vm2871_vm1, %v2870_v1 }
  0xcd   : > { %2712 = vmatmul.mubr.msk.f32.gmra.mxu1 %vm388_vm0, %v342_v34 }
  0xce   : > { %2714 = vmatprep.mubr.msk.f32.mxu1 %vm2871_vm1, %v2870_v1 }
  0xcf   : > { %2493 = vmatmul.mubr.msk.f32.gmra.mxu0 %vm388_vm0, %v269_v35  ;;  %v279_v35 = vld [vmem:[%s2959_s9 + $0x1b0] sm:$0xff] }
  0xd0   : > { %2495 = vmatprep.mubr.msk.f32.mxu0 %vm2871_vm1, %v2870_v1 }
  0xd1   : > { %2715 = vmatmul.mubr.msk.f32.gmra.mxu1 %vm388_vm0, %v343_v36 }
  0xd2   : > { %2717 = vmatprep.mubr.msk.f32.mxu1 %vm2871_vm1, %v2870_v1 }
  0xd3   : > { %2496 = vmatmul.mubr.msk.f32.gmra.mxu0 %vm388_vm0, %v270_v37 }
  0xd4   : > { %2498 = vmatprep.mubr.msk.f32.mxu0 %vm2871_vm1, %v2870_v1 }
  0xd5   : > { %2718 = vmatmul.mubr.msk.f32.gmra.mxu1 %vm388_vm0, %v344_v38 }
  0xd6   : > { %2720 = vmatprep.mubr.msk.f32.mxu1 %vm2871_vm1, %v2870_v1 }
  0xd7   : > { %2499 = vmatmul.mubr.msk.f32.gmra.mxu0 %vm388_vm0, %v271_v39 }
  0xd8   : > { %2501 = vmatprep.mubr.msk.f32.mxu0 %vm2871_vm1, %v2870_v1 }
  0xd9   : > { %2721 = vmatmul.mubr.msk.f32.gmra.mxu1 %vm388_vm0, %v345_v40  ;;  %v353_v40 = vld [vmem:[%s2959_s9 + $0x400] sm:$0xff] }
  0xda   : > { %2723 = vmatprep.mubr.msk.f32.mxu1 %vm2871_vm1, %v2870_v1 }
  0xdb   : > { %2502 = vmatmul.mubr.msk.f32.gmra.mxu0 %vm388_vm0, %v272_v41 }
  0xdc   : > { %2504 = vmatprep.mubr.msk.f32.mxu0 %vm2871_vm1, %v2870_v1 }
  0xdd   : > { %2724 = vmatmul.mubr.msk.f32.gmra.mxu1 %vm388_vm0, %v346_v42 }
  0xde   : > { %2726 = vmatprep.mubr.msk.f32.mxu1 %vm2871_vm1, %v2870_v1 }
  0xdf   : > { %v896_v46 = vpop.f32.mrf.mxu0  ;;  %2505 = vmatmul.mubr.msk.f32.gmra.mxu0 %vm388_vm0, %v273_v43 }
  0xe0   : > { %v897_v47 = vadd.f32 %v3358_v44, %v896_v46  ;;  %2507 = vmatprep.mubr.msk.f32.mxu0 %vm2871_vm1, %v2870_v1  ;;  %v280_v46 = vld [vmem:[%s2959_s9 + $0x1b8] sm:$0xff] }
  0xe1   : > { %v2362_v49 = vpop.f32.mrf.mxu0  ;;  %v1266_v50 = vpop.f32.mrf.mxu1  ;;  %2727 = vmatmul.mubr.msk.f32.gmra.mxu1 %vm388_vm0, %v347_v45 }
  0xe2   : > { %v1630_v51 = vmax.f32 %v897_v47, 0.0  ;;  %v1267_v52 = vadd.f32 %v3358_v44, %v1266_v50  ;;  %2729 = vmatprep.mubr.msk.f32.mxu1 %vm2871_vm1, %v2870_v1 }
  0xe3   : > { %v901_v54 = vpop.f32.mrf.mxu0  ;;  %2508 = vmatmul.mubr.msk.f32.gmra.mxu0 %vm388_vm0, %v274_v48  ;;  %v2584_v55 = vpop.f32.mrf.mxu1 }
  0xe4   : > { %1778 = vst.msk [vmem:[%s3373_s20] sm:$0xff] %vm1777_vm2, %v1630_v51  ;;  %v1704_v56 = vmax.f32 %v1267_v52, 0.0  ;;  %v902_v57 = vadd.f32 %v3358_v44, %v901_v54  ;;  %2510 = vmatprep.mubr.msk.f32.mxu0 %vm2871_vm1, %v2870_v1  ;;  %v354_v51 = vld [vmem:[%s2959_s9 + $0x408] sm:$0xff] }
  0xe5   : > { %v2365_v59 = vpop.f32.mrf.mxu0  ;;  %v1271_v60 = vpop.f32.mrf.mxu1  ;;  %2730 = vmatmul.mubr.msk.f32.gmra.mxu1 %vm388_vm0, %v348_v53 }
  0xe6   : > { %1852 = vst.msk [vmem:[%s3373_s20 + $0x250] sm:$0xff] %vm1777_vm2, %v1704_v56  ;;  %v1631_v61 = vmax.f32 %v902_v57, 0.0  ;;  %v1272_v62 = vadd.f32 %v3358_v44, %v1271_v60  ;;  %2732 = vmatprep.mubr.msk.f32.mxu1 %vm2871_vm1, %v2870_v1  ;;  %v281_v56 = vld [vmem:[%s2959_s9 + $0x1c0] sm:$0xff] }
  0xe7   : > { %v906_v0 = vpop.f32.mrf.mxu0  ;;  %2511 = vmatmul.mubr.msk.f32.gmra.mxu0 %vm388_vm0, %v275_v58  ;;  %v2587_v2 = vpop.f32.mrf.mxu1 }
  0xe8   : > { %1779 = vst.msk [vmem:[%s3373_s20 + $0x8] sm:$0xff] %vm1777_vm2, %v1631_v61  ;;  %v1705_v3 = vmax.f32 %v1272_v62, 0.0  ;;  %v907_v4 = vadd.f32 %v3358_v44, %v906_v0  ;;  %2513 = vmatprep.mubr.msk.f32.mxu0 %vm2871_vm1, %v2870_v1  ;;  %v355_v61 = vld [vmem:[%s2959_s9 + $0x410] sm:$0xff] }
  0xe9   : > { %v2368_v6 = vpop.f32.mrf.mxu0  ;;  %v1276_v7 = vpop.f32.mrf.mxu1  ;;  %2733 = vmatmul.mubr.msk.f32.gmra.mxu1 %vm388_vm0, %v349_v63 }
  0xea   : > { %1853 = vst.msk [vmem:[%s3373_s20 + $0x258] sm:$0xff] %vm1777_vm2, %v1705_v3  ;;  %v1632_v8 = vmax.f32 %v907_v4, 0.0  ;;  %v1277_v9 = vadd.f32 %v3358_v44, %v1276_v7  ;;  %2735 = vmatprep.mubr.msk.f32.mxu1 %vm2871_vm1, %v2870_v1  ;;  %v282_v3 = vld [vmem:[%s2959_s9 + $0x1c8] sm:$0xff] }
  0xeb   : > { %v911_v11 = vpop.f32.mrf.mxu0  ;;  %2514 = vmatmul.mubr.msk.f32.gmra.mxu0 %vm388_vm0, %v276_v5  ;;  %v2590_v12 = vpop.f32.mrf.mxu1 }
  0xec   : > { %1780 = vst.msk [vmem:[%s3373_s20 + $0x10] sm:$0xff] %vm1777_vm2, %v1632_v8  ;;  %v1706_v13 = vmax.f32 %v1277_v9, 0.0  ;;  %v912_v14 = vadd.f32 %v3358_v44, %v911_v11  ;;  %2516 = vmatprep.mubr.msk.f32.mxu0 %vm2871_vm1, %v2870_v1  ;;  %v356_v8 = vld [vmem:[%s2959_s9 + $0x418] sm:$0xff] }
  0xed   : > { %v2371_v16 = vpop.f32.mrf.mxu0  ;;  %v1281_v17 = vpop.f32.mrf.mxu1  ;;  %2736 = vmatmul.mubr.msk.f32.gmra.mxu1 %vm388_vm0, %v350_v10 }
  0xee   : > { %1854 = vst.msk [vmem:[%s3373_s20 + $0x260] sm:$0xff] %vm1777_vm2, %v1706_v13  ;;  %v1633_v18 = vmax.f32 %v912_v14, 0.0  ;;  %v1282_v19 = vadd.f32 %v3358_v44, %v1281_v17  ;;  %2738 = vmatprep.mubr.msk.f32.mxu1 %vm2871_vm1, %v2870_v1  ;;  %v283_v13 = vld [vmem:[%s2959_s9 + $0x1d0] sm:$0xff] }
  0xef   : > { %v916_v21 = vpop.f32.mrf.mxu0  ;;  %2517 = vmatmul.mubr.msk.f32.gmra.mxu0 %vm388_vm0, %v277_v15  ;;  %v2593_v22 = vpop.f32.mrf.mxu1 }
  0xf0   : > { %1781 = vst.msk [vmem:[%s3373_s20 + $0x18] sm:$0xff] %vm1777_vm2, %v1633_v18  ;;  %v1707_v23 = vmax.f32 %v1282_v19, 0.0  ;;  %v917_v24 = vadd.f32 %v3358_v44, %v916_v21  ;;  %2519 = vmatprep.mubr.msk.f32.mxu0 %vm2871_vm1, %v2870_v1  ;;  %v357_v18 = vld [vmem:[%s2959_s9 + $0x420] sm:$0xff] }
  0xf1   : > { %v2374_v26 = vpop.f32.mrf.mxu0  ;;  %v1286_v27 = vpop.f32.mrf.mxu1  ;;  %2739 = vmatmul.mubr.msk.f32.gmra.mxu1 %vm388_vm0, %v351_v20 }
  0xf2   : > { %1855 = vst.msk [vmem:[%s3373_s20 + $0x268] sm:$0xff] %vm1777_vm2, %v1707_v23  ;;  %v1634_v28 = vmax.f32 %v917_v24, 0.0  ;;  %v1287_v29 = vadd.f32 %v3358_v44, %v1286_v27  ;;  %2741 = vmatprep.mubr.msk.f32.mxu1 %vm2871_vm1, %v2870_v1  ;;  %v284_v23 = vld [vmem:[%s2959_s9 + $0x1d8] sm:$0xff] }
  0xf3   : > { %v921_v31 = vpop.f32.mrf.mxu0  ;;  %2520 = vmatmul.mubr.msk.f32.gmra.mxu0 %vm388_vm0, %v278_v25  ;;  %v2596_v32 = vpop.f32.mrf.mxu1 }
  0xf4   : > { %1782 = vst.msk [vmem:[%s3373_s20 + $0x20] sm:$0xff] %vm1777_vm2, %v1634_v28  ;;  %v1708_v33 = vmax.f32 %v1287_v29, 0.0  ;;  %v922_v34 = vadd.f32 %v3358_v44, %v921_v31  ;;  %2522 = vmatprep.mubr.msk.f32.mxu0 %vm2871_vm1, %v2870_v1  ;;  %v358_v28 = vld [vmem:[%s2959_s9 + $0x428] sm:$0xff] }
  0xf5   : > { %v2377_v36 = vpop.f32.mrf.mxu0  ;;  %v1291_v37 = vpop.f32.mrf.mxu1  ;;  %2742 = vmatmul.mubr.msk.f32.gmra.mxu1 %vm388_vm0, %v352_v30 }
  0xf6   : > { %1856 = vst.msk [vmem:[%s3373_s20 + $0x270] sm:$0xff] %vm1777_vm2, %v1708_v33  ;;  %v1635_v38 = vmax.f32 %v922_v34, 0.0  ;;  %v1292_v39 = vadd.f32 %v3358_v44, %v1291_v37  ;;  %2744 = vmatprep.mubr.msk.f32.mxu1 %vm2871_vm1, %v2870_v1  ;;  %v285_v33 = vld [vmem:[%s2959_s9 + $0x1e0] sm:$0xff] }
  0xf7   : > { %v926_v41 = vpop.f32.mrf.mxu0  ;;  %2523 = vmatmul.mubr.msk.f32.gmra.mxu0 %vm388_vm0, %v279_v35  ;;  %v2599_v42 = vpop.f32.mrf.mxu1 }
  0xf8   : > { %1783 = vst.msk [vmem:[%s3373_s20 + $0x28] sm:$0xff] %vm1777_vm2, %v1635_v38  ;;  %v1709_v43 = vmax.f32 %v1292_v39, 0.0  ;;  %v927_v45 = vadd.f32 %v3358_v44, %v926_v41  ;;  %2525 = vmatprep.mubr.msk.f32.mxu0 %vm2871_vm1, %v2870_v1  ;;  %v359_v38 = vld [vmem:[%s2959_s9 + $0x430] sm:$0xff] }
  0xf9   : > { %v2380_v47 = vpop.f32.mrf.mxu0  ;;  %v1296_v48 = vpop.f32.mrf.mxu1  ;;  %2745 = vmatmul.mubr.msk.f32.gmra.mxu1 %vm388_vm0, %v353_v40 }
  0xfa   : > { %1857 = vst.msk [vmem:[%s3373_s20 + $0x278] sm:$0xff] %vm1777_vm2, %v1709_v43  ;;  %v1636_v49 = vmax.f32 %v927_v45, 0.0  ;;  %v1297_v50 = vadd.f32 %v3358_v44, %v1296_v48  ;;  %2747 = vmatprep.mubr.msk.f32.mxu1 %vm2871_vm1, %v2870_v1  ;;  %v286_v43 = vld [vmem:[%s2959_s9 + $0x1e8] sm:$0xff] }
  0xfb   : > { %v931_v52 = vpop.f32.mrf.mxu0  ;;  %2526 = vmatmul.mubr.msk.f32.gmra.mxu0 %vm388_vm0, %v280_v46  ;;  %v2602_v53 = vpop.f32.mrf.mxu1 }
  0xfc   : > { %1784 = vst.msk [vmem:[%s3373_s20 + $0x30] sm:$0xff] %vm1777_vm2, %v1636_v49  ;;  %v1710_v54 = vmax.f32 %v1297_v50, 0.0  ;;  %v932_v55 = vadd.f32 %v3358_v44, %v931_v52  ;;  %2528 = vmatprep.mubr.msk.f32.mxu0 %vm2871_vm1, %v2870_v1  ;;  %v360_v49 = vld [vmem:[%s2959_s9 + $0x438] sm:$0xff] }
  0xfd   : > { %v2383_v57 = vpop.f32.mrf.mxu0  ;;  %v1301_v58 = vpop.f32.mrf.mxu1  ;;  %2748 = vmatmul.mubr.msk.f32.gmra.mxu1 %vm388_vm0, %v354_v51 }
  0xfe   : > { %1858 = vst.msk [vmem:[%s3373_s20 + $0x280] sm:$0xff] %vm1777_vm2, %v1710_v54  ;;  %v1637_v59 = vmax.f32 %v932_v55, 0.0  ;;  %v1302_v60 = vadd.f32 %v3358_v44, %v1301_v58  ;;  %2750 = vmatprep.mubr.msk.f32.mxu1 %vm2871_vm1, %v2870_v1  ;;  %v287_v54 = vld [vmem:[%s2959_s9 + $0x1f0] sm:$0xff] }
  0xff   : > { %v936_v62 = vpop.f32.mrf.mxu0  ;;  %2529 = vmatmul.mubr.msk.f32.gmra.mxu0 %vm388_vm0, %v281_v56  ;;  %v2605_v63 = vpop.f32.mrf.mxu1 }
 0x100   : > { %1785 = vst.msk [vmem:[%s3373_s20 + $0x38] sm:$0xff] %vm1777_vm2, %v1637_v59  ;;  %v1711_v0 = vmax.f32 %v1302_v60, 0.0  ;;  %v937_v2 = vadd.f32 %v3358_v44, %v936_v62  ;;  %2531 = vmatprep.mubr.msk.f32.mxu0 %vm2871_vm1, %v2870_v1  ;;  %v361_v59 = vld [vmem:[%s2959_s9 + $0x440] sm:$0xff] }
 0x101   : > { %v2386_v4 = vpop.f32.mrf.mxu0  ;;  %v1306_v5 = vpop.f32.mrf.mxu1  ;;  %2751 = vmatmul.mubr.msk.f32.gmra.mxu1 %vm388_vm0, %v355_v61 }
 0x102   : > { %1859 = vst.msk [vmem:[%s3373_s20 + $0x288] sm:$0xff] %vm1777_vm2, %v1711_v0  ;;  %v1638_v6 = vmax.f32 %v937_v2, 0.0  ;;  %v1307_v7 = vadd.f32 %v3358_v44, %v1306_v5  ;;  %2753 = vmatprep.mubr.msk.f32.mxu1 %vm2871_vm1, %v2870_v1  ;;  %v288_v0 = vld [vmem:[%s2959_s9 + $0x1f8] sm:$0xff] }
 0x103   : > { %v941_v9 = vpop.f32.mrf.mxu0  ;;  %2532 = vmatmul.mubr.msk.f32.gmra.mxu0 %vm388_vm0, %v282_v3  ;;  %v2608_v10 = vpop.f32.mrf.mxu1 }
 0x104   : > { %1786 = vst.msk [vmem:[%s3373_s20 + $0x40] sm:$0xff] %vm1777_vm2, %v1638_v6  ;;  %v1712_v11 = vmax.f32 %v1307_v7, 0.0  ;;  %v942_v12 = vadd.f32 %v3358_v44, %v941_v9  ;;  %2534 = vmatprep.mubr.msk.f32.mxu0 %vm2871_vm1, %v2870_v1  ;;  %v362_v6 = vld [vmem:[%s2959_s9 + $0x448] sm:$0xff] }
 0x105   : > { %v2389_v14 = vpop.f32.mrf.mxu0  ;;  %v1311_v15 = vpop.f32.mrf.mxu1  ;;  %2754 = vmatmul.mubr.msk.f32.gmra.mxu1 %vm388_vm0, %v356_v8 }
 0x106   : > { %1860 = vst.msk [vmem:[%s3373_s20 + $0x290] sm:$0xff] %vm1777_vm2, %v1712_v11  ;;  %v1639_v16 = vmax.f32 %v942_v12, 0.0  ;;  %v1312_v17 = vadd.f32 %v3358_v44, %v1311_v15  ;;  %2756 = vmatprep.mubr.msk.f32.mxu1 %vm2871_vm1, %v2870_v1  ;;  %v289_v11 = vld [vmem:[%s2959_s9 + $0x200] sm:$0xff] }
 0x107   : > { %v946_v19 = vpop.f32.mrf.mxu0  ;;  %2535 = vmatmul.mubr.msk.f32.gmra.mxu0 %vm388_vm0, %v283_v13  ;;  %v2611_v20 = vpop.f32.mrf.mxu1 }
 0x108   : > { %1787 = vst.msk [vmem:[%s3373_s20 + $0x48] sm:$0xff] %vm1777_vm2, %v1639_v16  ;;  %v1713_v21 = vmax.f32 %v1312_v17, 0.0  ;;  %v947_v22 = vadd.f32 %v3358_v44, %v946_v19  ;;  %2537 = vmatprep.mubr.msk.f32.mxu0 %vm2871_vm1, %v2870_v1  ;;  %v363_v16 = vld [vmem:[%s2959_s9 + $0x450] sm:$0xff] }
 0x109   : > { %v2392_v24 = vpop.f32.mrf.mxu0  ;;  %v1316_v25 = vpop.f32.mrf.mxu1  ;;  %2757 = vmatmul.mubr.msk.f32.gmra.mxu1 %vm388_vm0, %v357_v18 }
 0x10a   : > { %1861 = vst.msk [vmem:[%s3373_s20 + $0x298] sm:$0xff] %vm1777_vm2, %v1713_v21  ;;  %v1640_v26 = vmax.f32 %v947_v22, 0.0  ;;  %v1317_v27 = vadd.f32 %v3358_v44, %v1316_v25  ;;  %2759 = vmatprep.mubr.msk.f32.mxu1 %vm2871_vm1, %v2870_v1  ;;  %v290_v21 = vld [vmem:[%s2959_s9 + $0x208] sm:$0xff] }
 0x10b   : > { %v951_v29 = vpop.f32.mrf.mxu0  ;;  %2538 = vmatmul.mubr.msk.f32.gmra.mxu0 %vm388_vm0, %v284_v23  ;;  %v2614_v30 = vpop.f32.mrf.mxu1 }
 0x10c   : > { %1788 = vst.msk [vmem:[%s3373_s20 + $0x50] sm:$0xff] %vm1777_vm2, %v1640_v26  ;;  %v1714_v31 = vmax.f32 %v1317_v27, 0.0  ;;  %v952_v32 = vadd.f32 %v3358_v44, %v951_v29  ;;  %2540 = vmatprep.mubr.msk.f32.mxu0 %vm2871_vm1, %v2870_v1  ;;  %v364_v26 = vld [vmem:[%s2959_s9 + $0x458] sm:$0xff] }
 0x10d   : > { %v2395_v34 = vpop.f32.mrf.mxu0  ;;  %v1321_v35 = vpop.f32.mrf.mxu1  ;;  %2760 = vmatmul.mubr.msk.f32.gmra.mxu1 %vm388_vm0, %v358_v28 }
 0x10e   : > { %1862 = vst.msk [vmem:[%s3373_s20 + $0x2a0] sm:$0xff] %vm1777_vm2, %v1714_v31  ;;  %v1641_v36 = vmax.f32 %v952_v32, 0.0  ;;  %v1322_v37 = vadd.f32 %v3358_v44, %v1321_v35  ;;  %2762 = vmatprep.mubr.msk.f32.mxu1 %vm2871_vm1, %v2870_v1  ;;  %v291_v31 = vld [vmem:[%s2959_s9 + $0x210] sm:$0xff] }
 0x10f   : > { %v956_v39 = vpop.f32.mrf.mxu0  ;;  %2541 = vmatmul.mubr.msk.f32.gmra.mxu0 %vm388_vm0, %v285_v33  ;;  %v2617_v40 = vpop.f32.mrf.mxu1 }
 0x110   : > { %1789 = vst.msk [vmem:[%s3373_s20 + $0x58] sm:$0xff] %vm1777_vm2, %v1641_v36  ;;  %v1715_v41 = vmax.f32 %v1322_v37, 0.0  ;;  %v957_v42 = vadd.f32 %v3358_v44, %v956_v39  ;;  %2543 = vmatprep.mubr.msk.f32.mxu0 %vm2871_vm1, %v2870_v1  ;;  %v365_v36 = vld [vmem:[%s2959_s9 + $0x460] sm:$0xff] }
 0x111   : > { %v2398_v45 = vpop.f32.mrf.mxu0  ;;  %v1326_v46 = vpop.f32.mrf.mxu1  ;;  %2763 = vmatmul.mubr.msk.f32.gmra.mxu1 %vm388_vm0, %v359_v38 }
 0x112   : > { %1863 = vst.msk [vmem:[%s3373_s20 + $0x2a8] sm:$0xff] %vm1777_vm2, %v1715_v41  ;;  %v1642_v47 = vmax.f32 %v957_v42, 0.0  ;;  %v1327_v48 = vadd.f32 %v3358_v44, %v1326_v46  ;;  %2765 = vmatprep.mubr.msk.f32.mxu1 %vm2871_vm1, %v2870_v1  ;;  %v292_v41 = vld [vmem:[%s2959_s9 + $0x218] sm:$0xff] }
 0x113   : > { %v961_v50 = vpop.f32.mrf.mxu0  ;;  %2544 = vmatmul.mubr.msk.f32.gmra.mxu0 %vm388_vm0, %v286_v43  ;;  %v2620_v51 = vpop.f32.mrf.mxu1 }
 0x114   : > { %1790 = vst.msk [vmem:[%s3373_s20 + $0x60] sm:$0xff] %vm1777_vm2, %v1642_v47  ;;  %v1716_v52 = vmax.f32 %v1327_v48, 0.0  ;;  %v962_v53 = vadd.f32 %v3358_v44, %v961_v50  ;;  %2546 = vmatprep.mubr.msk.f32.mxu0 %vm2871_vm1, %v2870_v1  ;;  %v366_v47 = vld [vmem:[%s2959_s9 + $0x468] sm:$0xff] }
 0x115   : > { %v2401_v55 = vpop.f32.mrf.mxu0  ;;  %v1331_v56 = vpop.f32.mrf.mxu1  ;;  %2766 = vmatmul.mubr.msk.f32.gmra.mxu1 %vm388_vm0, %v360_v49 }
 0x116   : > { %1864 = vst.msk [vmem:[%s3373_s20 + $0x2b0] sm:$0xff] %vm1777_vm2, %v1716_v52  ;;  %v1643_v57 = vmax.f32 %v962_v53, 0.0  ;;  %v1332_v58 = vadd.f32 %v3358_v44, %v1331_v56  ;;  %2768 = vmatprep.mubr.msk.f32.mxu1 %vm2871_vm1, %v2870_v1  ;;  %v293_v52 = vld [vmem:[%s2959_s9 + $0x220] sm:$0xff] }
 0x117   : > { %v966_v60 = vpop.f32.mrf.mxu0  ;;  %2547 = vmatmul.mubr.msk.f32.gmra.mxu0 %vm388_vm0, %v287_v54  ;;  %v2623_v61 = vpop.f32.mrf.mxu1 }
 0x118   : > { %1791 = vst.msk [vmem:[%s3373_s20 + $0x68] sm:$0xff] %vm1777_vm2, %v1643_v57  ;;  %v1717_v62 = vmax.f32 %v1332_v58, 0.0  ;;  %v967_v63 = vadd.f32 %v3358_v44, %v966_v60  ;;  %2549 = vmatprep.mubr.msk.f32.mxu0 %vm2871_vm1, %v2870_v1  ;;  %v367_v57 = vld [vmem:[%s2959_s9 + $0x470] sm:$0xff] }
 0x119   : > { %v2404_v2 = vpop.f32.mrf.mxu0  ;;  %v1336_v3 = vpop.f32.mrf.mxu1  ;;  %2769 = vmatmul.mubr.msk.f32.gmra.mxu1 %vm388_vm0, %v361_v59 }
 0x11a   : > { %1865 = vst.msk [vmem:[%s3373_s20 + $0x2b8] sm:$0xff] %vm1777_vm2, %v1717_v62  ;;  %v1644_v4 = vmax.f32 %v967_v63, 0.0  ;;  %v1337_v5 = vadd.f32 %v3358_v44, %v1336_v3  ;;  %2771 = vmatprep.mubr.msk.f32.mxu1 %vm2871_vm1, %v2870_v1  ;;  %v294_v62 = vld [vmem:[%s2959_s9 + $0x228] sm:$0xff] }
 0x11b   : > { %v971_v7 = vpop.f32.mrf.mxu0  ;;  %2550 = vmatmul.mubr.msk.f32.gmra.mxu0 %vm388_vm0, %v288_v0  ;;  %v2626_v8 = vpop.f32.mrf.mxu1 }
 0x11c   : > { %1792 = vst.msk [vmem:[%s3373_s20 + $0x70] sm:$0xff] %vm1777_vm2, %v1644_v4  ;;  %v1718_v9 = vmax.f32 %v1337_v5, 0.0  ;;  %v972_v10 = vadd.f32 %v3358_v44, %v971_v7  ;;  %2552 = vmatprep.mubr.msk.f32.mxu0 %vm2871_vm1, %v2870_v1  ;;  %v368_v4 = vld [vmem:[%s2959_s9 + $0x478] sm:$0xff] }
 0x11d   : > { %v2407_v12 = vpop.f32.mrf.mxu0  ;;  %v1341_v13 = vpop.f32.mrf.mxu1  ;;  %2772 = vmatmul.mubr.msk.f32.gmra.mxu1 %vm388_vm0, %v362_v6 }
 0x11e   : > { %1866 = vst.msk [vmem:[%s3373_s20 + $0x2c0] sm:$0xff] %vm1777_vm2, %v1718_v9  ;;  %v1645_v14 = vmax.f32 %v972_v10, 0.0  ;;  %v1342_v15 = vadd.f32 %v3358_v44, %v1341_v13  ;;  %2774 = vmatprep.mubr.msk.f32.mxu1 %vm2871_vm1, %v2870_v1  ;;  %v295_v9 = vld [vmem:[%s2959_s9 + $0x230] sm:$0xff] }
 0x11f   : > { %v976_v17 = vpop.f32.mrf.mxu0  ;;  %2553 = vmatmul.mubr.msk.f32.gmra.mxu0 %vm388_vm0, %v289_v11  ;;  %v2629_v18 = vpop.f32.mrf.mxu1 }
 0x120   : > { %1793 = vst.msk [vmem:[%s3373_s20 + $0x78] sm:$0xff] %vm1777_vm2, %v1645_v14  ;;  %v1719_v19 = vmax.f32 %v1342_v15, 0.0  ;;  %v977_v20 = vadd.f32 %v3358_v44, %v976_v17  ;;  %2555 = vmatprep.mubr.msk.f32.mxu0 %vm2871_vm1, %v2870_v1  ;;  %v369_v14 = vld [vmem:[%s2959_s9 + $0x480] sm:$0xff] }
 0x121   : > { %v2410_v22 = vpop.f32.mrf.mxu0  ;;  %v1346_v23 = vpop.f32.mrf.mxu1  ;;  %2775 = vmatmul.mubr.msk.f32.gmra.mxu1 %vm388_vm0, %v363_v16 }
 0x122   : > { %1867 = vst.msk [vmem:[%s3373_s20 + $0x2c8] sm:$0xff] %vm1777_vm2, %v1719_v19  ;;  %v1646_v24 = vmax.f32 %v977_v20, 0.0  ;;  %v1347_v25 = vadd.f32 %v3358_v44, %v1346_v23  ;;  %2777 = vmatprep.mubr.msk.f32.mxu1 %vm2871_vm1, %v2870_v1  ;;  %v296_v19 = vld [vmem:[%s2959_s9 + $0x238] sm:$0xff] }
 0x123   : > { %v981_v27 = vpop.f32.mrf.mxu0  ;;  %2556 = vmatmul.mubr.msk.f32.gmra.mxu0 %vm388_vm0, %v290_v21  ;;  %v2632_v28 = vpop.f32.mrf.mxu1 }
 0x124   : > { %1794 = vst.msk [vmem:[%s3373_s20 + $0x80] sm:$0xff] %vm1777_vm2, %v1646_v24  ;;  %v1720_v29 = vmax.f32 %v1347_v25, 0.0  ;;  %v982_v30 = vadd.f32 %v3358_v44, %v981_v27  ;;  %2558 = vmatprep.mubr.msk.f32.mxu0 %vm2871_vm1, %v2870_v1  ;;  %v370_v24 = vld [vmem:[%s2959_s9 + $0x488] sm:$0xff] }
 0x125   : > { %v2413_v32 = vpop.f32.mrf.mxu0  ;;  %v1351_v33 = vpop.f32.mrf.mxu1  ;;  %2778 = vmatmul.mubr.msk.f32.gmra.mxu1 %vm388_vm0, %v364_v26 }
 0x126   : > { %1868 = vst.msk [vmem:[%s3373_s20 + $0x2d0] sm:$0xff] %vm1777_vm2, %v1720_v29  ;;  %v1647_v34 = vmax.f32 %v982_v30, 0.0  ;;  %v1352_v35 = vadd.f32 %v3358_v44, %v1351_v33  ;;  %2780 = vmatprep.mubr.msk.f32.mxu1 %vm2871_vm1, %v2870_v1  ;;  %v297_v29 = vld [vmem:[%s2959_s9 + $0x240] sm:$0xff] }
 0x127   : > { %v986_v37 = vpop.f32.mrf.mxu0  ;;  %2559 = vmatmul.mubr.msk.f32.gmra.mxu0 %vm388_vm0, %v291_v31  ;;  %v2635_v38 = vpop.f32.mrf.mxu1 }
 0x128   : > { %1795 = vst.msk [vmem:[%s3373_s20 + $0x88] sm:$0xff] %vm1777_vm2, %v1647_v34  ;;  %v1721_v39 = vmax.f32 %v1352_v35, 0.0  ;;  %v987_v40 = vadd.f32 %v3358_v44, %v986_v37  ;;  %2561 = vmatprep.mubr.msk.f32.mxu0 %vm2871_vm1, %v2870_v1  ;;  %v371_v34 = vld [vmem:[%s2959_s9 + $0x490] sm:$0xff] }
 0x129   : > { %v2416_v42 = vpop.f32.mrf.mxu0  ;;  %v1356_v43 = vpop.f32.mrf.mxu1  ;;  %2781 = vmatmul.mubr.msk.f32.gmra.mxu1 %vm388_vm0, %v365_v36 }
 0x12a   : > { %1869 = vst.msk [vmem:[%s3373_s20 + $0x2d8] sm:$0xff] %vm1777_vm2, %v1721_v39  ;;  %v1648_v45 = vmax.f32 %v987_v40, 0.0  ;;  %v1357_v46 = vadd.f32 %v3358_v44, %v1356_v43  ;;  %2783 = vmatprep.mubr.msk.f32.mxu1 %vm2871_vm1, %v2870_v1  ;;  %v298_v39 = vld [vmem:[%s2959_s9 + $0x248] sm:$0xff] }
 0x12b   : > { %v991_v48 = vpop.f32.mrf.mxu0  ;;  %2562 = vmatmul.mubr.msk.f32.gmra.mxu0 %vm388_vm0, %v292_v41  ;;  %v2638_v49 = vpop.f32.mrf.mxu1 }
 0x12c   : > { %1796 = vst.msk [vmem:[%s3373_s20 + $0x90] sm:$0xff] %vm1777_vm2, %v1648_v45  ;;  %v1722_v50 = vmax.f32 %v1357_v46, 0.0  ;;  %v992_v51 = vadd.f32 %v3358_v44, %v991_v48  ;;  %2564 = vmatprep.mubr.msk.f32.mxu0 %vm2871_vm1, %v2870_v1 }
 0x12d   : > { %v2419_v53 = vpop.f32.mrf.mxu0  ;;  %v1361_v54 = vpop.f32.mrf.mxu1  ;;  %2784 = vmatmul.mubr.msk.f32.gmra.mxu1 %vm388_vm0, %v366_v47 }
 0x12e   : > { %1870 = vst.msk [vmem:[%s3373_s20 + $0x2e0] sm:$0xff] %vm1777_vm2, %v1722_v50  ;;  %v1649_v55 = vmax.f32 %v992_v51, 0.0  ;;  %v1362_v56 = vadd.f32 %v3358_v44, %v1361_v54  ;;  %2786 = vmatprep.mubr.msk.f32.mxu1 %vm2871_vm1, %v2870_v1 }
 0x12f   : > { %v996_v58 = vpop.f32.mrf.mxu0  ;;  %2565 = vmatmul.mubr.msk.f32.gmra.mxu0 %vm388_vm0, %v293_v52  ;;  %v2641_v59 = vpop.f32.mrf.mxu1 }
 0x130   : > { %1797 = vst.msk [vmem:[%s3373_s20 + $0x98] sm:$0xff] %vm1777_vm2, %v1649_v55  ;;  %v1723_v60 = vmax.f32 %v1362_v56, 0.0  ;;  %v997_v61 = vadd.f32 %v3358_v44, %v996_v58  ;;  %2567 = vmatprep.mubr.msk.f32.mxu0 %vm2871_vm1, %v2870_v1 }
 0x131   : > { %v2422_v63 = vpop.f32.mrf.mxu0  ;;  %v1366_v0 = vpop.f32.mrf.mxu1  ;;  %2787 = vmatmul.mubr.msk.f32.gmra.mxu1 %vm388_vm0, %v367_v57 }
 0x132   : > { %1871 = vst.msk [vmem:[%s3373_s20 + $0x2e8] sm:$0xff] %vm1777_vm2, %v1723_v60  ;;  %v1650_v2 = vmax.f32 %v997_v61, 0.0  ;;  %v1367_v3 = vadd.f32 %v3358_v44, %v1366_v0  ;;  %2789 = vmatprep.mubr.msk.f32.mxu1 %vm2871_vm1, %v2870_v1 }
 0x133   : > { %v1001_v5 = vpop.f32.mrf.mxu0  ;;  %2568 = vmatmul.mubr.msk.f32.gmra.mxu0 %vm388_vm0, %v294_v62  ;;  %v2644_v6 = vpop.f32.mrf.mxu1 }
 0x134   : > { %1798 = vst.msk [vmem:[%s3373_s20 + $0xa0] sm:$0xff] %vm1777_vm2, %v1650_v2  ;;  %v1724_v7 = vmax.f32 %v1367_v3, 0.0  ;;  %v1002_v8 = vadd.f32 %v3358_v44, %v1001_v5  ;;  %2570 = vmatprep.mubr.msk.f32.mxu0 %vm2871_vm1, %v2870_v1 }
 0x135   : > { %v2425_v10 = vpop.f32.mrf.mxu0  ;;  %v1371_v11 = vpop.f32.mrf.mxu1  ;;  %2790 = vmatmul.mubr.msk.f32.gmra.mxu1 %vm388_vm0, %v368_v4 }
 0x136   : > { %1872 = vst.msk [vmem:[%s3373_s20 + $0x2f0] sm:$0xff] %vm1777_vm2, %v1724_v7  ;;  %v1651_v12 = vmax.f32 %v1002_v8, 0.0  ;;  %v1372_v13 = vadd.f32 %v3358_v44, %v1371_v11  ;;  %2792 = vmatprep.mubr.msk.f32.mxu1 %vm2871_vm1, %v2870_v1 }
 0x137   : > { %v1006_v15 = vpop.f32.mrf.mxu0  ;;  %2571 = vmatmul.mubr.msk.f32.gmra.mxu0 %vm388_vm0, %v295_v9  ;;  %v2647_v16 = vpop.f32.mrf.mxu1 }
 0x138   : > { %1799 = vst.msk [vmem:[%s3373_s20 + $0xa8] sm:$0xff] %vm1777_vm2, %v1651_v12  ;;  %v1725_v17 = vmax.f32 %v1372_v13, 0.0  ;;  %v1007_v18 = vadd.f32 %v3358_v44, %v1006_v15  ;;  %2573 = vmatprep.mubr.msk.f32.mxu0 %vm2871_vm1, %v2870_v1 }
 0x139   : > { %v2428_v20 = vpop.f32.mrf.mxu0  ;;  %v1376_v21 = vpop.f32.mrf.mxu1  ;;  %2793 = vmatmul.mubr.msk.f32.gmra.mxu1 %vm388_vm0, %v369_v14 }
 0x13a   : > { %1873 = vst.msk [vmem:[%s3373_s20 + $0x2f8] sm:$0xff] %vm1777_vm2, %v1725_v17  ;;  %v1652_v22 = vmax.f32 %v1007_v18, 0.0  ;;  %v1377_v23 = vadd.f32 %v3358_v44, %v1376_v21  ;;  %2795 = vmatprep.mubr.msk.f32.mxu1 %vm2871_vm1, %v2870_v1 }
 0x13b   : > { %v1011_v25 = vpop.f32.mrf.mxu0  ;;  %2574 = vmatmul.mubr.msk.f32.gmra.mxu0 %vm388_vm0, %v296_v19  ;;  %v2650_v26 = vpop.f32.mrf.mxu1 }
 0x13c   : > { %1800 = vst.msk [vmem:[%s3373_s20 + $0xb0] sm:$0xff] %vm1777_vm2, %v1652_v22  ;;  %v1726_v27 = vmax.f32 %v1377_v23, 0.0  ;;  %v1012_v28 = vadd.f32 %v3358_v44, %v1011_v25  ;;  %2576 = vmatprep.mubr.msk.f32.mxu0 %vm2871_vm1, %v2870_v1 }
 0x13d   : > { %v2431_v30 = vpop.f32.mrf.mxu0  ;;  %v1381_v31 = vpop.f32.mrf.mxu1  ;;  %2796 = vmatmul.mubr.msk.f32.gmra.mxu1 %vm388_vm0, %v370_v24 }
 0x13e   : > { %1874 = vst.msk [vmem:[%s3373_s20 + $0x300] sm:$0xff] %vm1777_vm2, %v1726_v27  ;;  %v1653_v32 = vmax.f32 %v1012_v28, 0.0  ;;  %v1382_v33 = vadd.f32 %v3358_v44, %v1381_v31  ;;  %2798 = vmatprep.mubr.msk.f32.mxu1 %vm2871_vm1, %v2870_v1 }
 0x13f   : > { %v1016_v35 = vpop.f32.mrf.mxu0  ;;  %2577 = vmatmul.mubr.msk.f32.gmra.mxu0 %vm388_vm0, %v297_v29  ;;  %v2653_v36 = vpop.f32.mrf.mxu1 }
 0x140   : > { %1801 = vst.msk [vmem:[%s3373_s20 + $0xb8] sm:$0xff] %vm1777_vm2, %v1653_v32  ;;  %v1727_v37 = vmax.f32 %v1382_v33, 0.0  ;;  %v1017_v38 = vadd.f32 %v3358_v44, %v1016_v35  ;;  %2579 = vmatprep.mubr.msk.f32.mxu0 %vm2871_vm1, %v2870_v1 }
 0x141   : > { %v2434_v40 = vpop.f32.mrf.mxu0  ;;  %v1386_v41 = vpop.f32.mrf.mxu1  ;;  %2799 = vmatmul.mubr.msk.f32.gmra.mxu1 %vm388_vm0, %v371_v34 }
 0x142   : > { %1875 = vst.msk [vmem:[%s3373_s20 + $0x308] sm:$0xff] %vm1777_vm2, %v1727_v37  ;;  %v1654_v42 = vmax.f32 %v1017_v38, 0.0  ;;  %v1387_v43 = vadd.f32 %v3358_v44, %v1386_v41 }
 0x143   : > { %v1021_v45 = vpop.f32.mrf.mxu0  ;;  %2580 = vmatmul.mubr.msk.f32.gmra.mxu0 %vm388_vm0, %v298_v39  ;;  %v2656_v46 = vpop.f32.mrf.mxu1 }
 0x144   : > { %1802 = vst.msk [vmem:[%s3373_s20 + $0xc0] sm:$0xff] %vm1777_vm2, %v1654_v42  ;;  %v1728_v1 = vmax.f32 %v1387_v43, 0.0  ;;  %v1022_v47 = vadd.f32 %v3358_v44, %v1021_v45 }
 0x145   : > { %v2437_v48 = vpop.f32.mrf.mxu0  ;;  %v1391_v49 = vpop.f32.mrf.mxu1 }
 0x146   : > { %1876 = vst.msk [vmem:[%s3373_s20 + $0x310] sm:$0xff] %vm1777_vm2, %v1728_v1  ;;  %v1655_v50 = vmax.f32 %v1022_v47, 0.0  ;;  %v1392_v51 = vadd.f32 %v3358_v44, %v1391_v49 }
 0x147   : > { %v1026_v52 = vpop.f32.mrf.mxu0  ;;  %v2659_v53 = vpop.f32.mrf.mxu1 }
 0x148   : > { %1803 = vst.msk [vmem:[%s3373_s20 + $0xc8] sm:$0xff] %vm1777_vm2, %v1655_v50  ;;  %v1729_v54 = vmax.f32 %v1392_v51, 0.0  ;;  %v1027_v55 = vadd.f32 %v3358_v44, %v1026_v52 }
 0x149   : > { %v2440_v56 = vpop.f32.mrf.mxu0  ;;  %v1396_v57 = vpop.f32.mrf.mxu1 }
 0x14a   : > { %1877 = vst.msk [vmem:[%s3373_s20 + $0x318] sm:$0xff] %vm1777_vm2, %v1729_v54  ;;  %v1656_v58 = vmax.f32 %v1027_v55, 0.0  ;;  %v1397_v59 = vadd.f32 %v3358_v44, %v1396_v57 }
 0x14b   : > { %v1031_v60 = vpop.f32.mrf.mxu0  ;;  %v2662_v61 = vpop.f32.mrf.mxu1 }
 0x14c   : > { %1804 = vst.msk [vmem:[%s3373_s20 + $0xd0] sm:$0xff] %vm1777_vm2, %v1656_v58  ;;  %v1730_v62 = vmax.f32 %v1397_v59, 0.0  ;;  %v1032_v63 = vadd.f32 %v3358_v44, %v1031_v60 }
 0x14d   : > { %v2443_v0 = vpop.f32.mrf.mxu0  ;;  %v1401_v2 = vpop.f32.mrf.mxu1 }
 0x14e   : > { %1878 = vst.msk [vmem:[%s3373_s20 + $0x320] sm:$0xff] %vm1777_vm2, %v1730_v62  ;;  %v1657_v3 = vmax.f32 %v1032_v63, 0.0  ;;  %v1402_v4 = vadd.f32 %v3358_v44, %v1401_v2 }
 0x14f   : > { %v1036_v5 = vpop.f32.mrf.mxu0  ;;  %v2665_v6 = vpop.f32.mrf.mxu1 }
 0x150   : > { %1805 = vst.msk [vmem:[%s3373_s20 + $0xd8] sm:$0xff] %vm1777_vm2, %v1657_v3  ;;  %v1731_v7 = vmax.f32 %v1402_v4, 0.0  ;;  %v1037_v8 = vadd.f32 %v3358_v44, %v1036_v5 }
 0x151   : > { %v2446_v9 = vpop.f32.mrf.mxu0  ;;  %v1406_v10 = vpop.f32.mrf.mxu1 }
 0x152   : > { %1879 = vst.msk [vmem:[%s3373_s20 + $0x328] sm:$0xff] %vm1777_vm2, %v1731_v7  ;;  %v1658_v11 = vmax.f32 %v1037_v8, 0.0  ;;  %v1407_v12 = vadd.f32 %v3358_v44, %v1406_v10  ;;  %v3785_v9 = vld [vmem:[%s4025_s2] ss:$0 sm:$0xff] }
 0x153   : > { %v1041_v13 = vpop.f32.mrf.mxu0  ;;  %v2668_v14 = vpop.f32.mrf.mxu1 }
 0x154   : > { %1806 = vst.msk [vmem:[%s3373_s20 + $0xe0] sm:$0xff] %vm1777_vm2, %v1658_v11  ;;  %v1732_v15 = vmax.f32 %v1407_v12, 0.0  ;;  %v1042_v16 = vadd.f32 %v3358_v44, %v1041_v13 }
 0x155   : > { %v2449_v17 = vpop.f32.mrf.mxu0  ;;  %v1411_v18 = vpop.f32.mrf.mxu1 }
 0x156   : > { %1880 = vst.msk [vmem:[%s3373_s20 + $0x330] sm:$0xff] %vm1777_vm2, %v1732_v15  ;;  %v1659_v19 = vmax.f32 %v1042_v16, 0.0  ;;  %v1412_v20 = vadd.f32 %v3358_v44, %v1411_v18 }
 0x157   : > { %v1046_v21 = vpop.f32.mrf.mxu0  ;;  %v2671_v22 = vpop.f32.mrf.mxu1 }
 0x158   : > { %1807 = vst.msk [vmem:[%s3373_s20 + $0xe8] sm:$0xff] %vm1777_vm2, %v1659_v19  ;;  %v1733_v23 = vmax.f32 %v1412_v20, 0.0  ;;  %v1047_v24 = vadd.f32 %v3358_v44, %v1046_v21 }
 0x159   : > { %v2452_v25 = vpop.f32.mrf.mxu0  ;;  %v1416_v26 = vpop.f32.mrf.mxu1 }
 0x15a   : > { %1881 = vst.msk [vmem:[%s3373_s20 + $0x338] sm:$0xff] %vm1777_vm2, %v1733_v23  ;;  %v1660_v27 = vmax.f32 %v1047_v24, 0.0  ;;  %v1417_v28 = vadd.f32 %v3358_v44, %v1416_v26 }
 0x15b   : > { %v1051_v29 = vpop.f32.mrf.mxu0  ;;  %v2674_v30 = vpop.f32.mrf.mxu1 }
 0x15c   : > { %1808 = vst.msk [vmem:[%s3373_s20 + $0xf0] sm:$0xff] %vm1777_vm2, %v1660_v27  ;;  %v1734_v31 = vmax.f32 %v1417_v28, 0.0  ;;  %v1052_v32 = vadd.f32 %v3358_v44, %v1051_v29 }
 0x15d   : > { %v2455_v33 = vpop.f32.mrf.mxu0  ;;  %v1421_v34 = vpop.f32.mrf.mxu1 }
 0x15e   : > { %1882 = vst.msk [vmem:[%s3373_s20 + $0x340] sm:$0xff] %vm1777_vm2, %v1734_v31  ;;  %v1661_v35 = vmax.f32 %v1052_v32, 0.0  ;;  %v1422_v36 = vadd.f32 %v3358_v44, %v1421_v34 }
 0x15f   : > { %v1056_v37 = vpop.f32.mrf.mxu0  ;;  %v2677_v38 = vpop.f32.mrf.mxu1 }
 0x160   : > { %1809 = vst.msk [vmem:[%s3373_s20 + $0xf8] sm:$0xff] %vm1777_vm2, %v1661_v35  ;;  %v1735_v39 = vmax.f32 %v1422_v36, 0.0  ;;  %v1057_v40 = vadd.f32 %v3358_v44, %v1056_v37 }
 0x161   : > { %v2458_v41 = vpop.f32.mrf.mxu0  ;;  %v1426_v42 = vpop.f32.mrf.mxu1 }
 0x162   : > { %1883 = vst.msk [vmem:[%s3373_s20 + $0x348] sm:$0xff] %vm1777_vm2, %v1735_v39  ;;  %v1662_v43 = vmax.f32 %v1057_v40, 0.0  ;;  %v1427_v45 = vadd.f32 %v3358_v44, %v1426_v42 }
 0x163   : > { %v1061_v46 = vpop.f32.mrf.mxu0  ;;  %v2680_v1 = vpop.f32.mrf.mxu1 }
 0x164   : > { %1810 = vst.msk [vmem:[%s3373_s20 + $0x100] sm:$0xff] %vm1777_vm2, %v1662_v43  ;;  %v1736_v47 = vmax.f32 %v1427_v45, 0.0  ;;  %v1062_v48 = vadd.f32 %v3358_v44, %v1061_v46 }
 0x165   : > { %v2461_v49 = vpop.f32.mrf.mxu0  ;;  %v1431_v50 = vpop.f32.mrf.mxu1 }
 0x166   : > { %1884 = vst.msk [vmem:[%s3373_s20 + $0x350] sm:$0xff] %vm1777_vm2, %v1736_v47  ;;  %v1663_v51 = vmax.f32 %v1062_v48, 0.0  ;;  %v1432_v52 = vadd.f32 %v3358_v44, %v1431_v50 }
 0x167   : > { %v1066_v53 = vpop.f32.mrf.mxu0  ;;  %v2683_v54 = vpop.f32.mrf.mxu1 }
 0x168   : > { %1811 = vst.msk [vmem:[%s3373_s20 + $0x108] sm:$0xff] %vm1777_vm2, %v1663_v51  ;;  %v1737_v55 = vmax.f32 %v1432_v52, 0.0  ;;  %v1067_v56 = vadd.f32 %v3358_v44, %v1066_v53 }
 0x169   : > { %v2464_v57 = vpop.f32.mrf.mxu0  ;;  %v1436_v58 = vpop.f32.mrf.mxu1 }
 0x16a   : > { %1885 = vst.msk [vmem:[%s3373_s20 + $0x358] sm:$0xff] %vm1777_vm2, %v1737_v55  ;;  %v1664_v59 = vmax.f32 %v1067_v56, 0.0  ;;  %v1437_v60 = vadd.f32 %v3358_v44, %v1436_v58 }
 0x16b   : > { %v1071_v61 = vpop.f32.mrf.mxu0  ;;  %v2686_v62 = vpop.f32.mrf.mxu1 }
 0x16c   : > { %1812 = vst.msk [vmem:[%s3373_s20 + $0x110] sm:$0xff] %vm1777_vm2, %v1664_v59  ;;  %v1738_v63 = vmax.f32 %v1437_v60, 0.0  ;;  %v1072_v0 = vadd.f32 %v3358_v44, %v1071_v61 }
 0x16d   : > { %v2467_v2 = vpop.f32.mrf.mxu0  ;;  %v1441_v3 = vpop.f32.mrf.mxu1 }
 0x16e   : > { %1886 = vst.msk [vmem:[%s3373_s20 + $0x360] sm:$0xff] %vm1777_vm2, %v1738_v63  ;;  %v1665_v4 = vmax.f32 %v1072_v0, 0.0  ;;  %v1442_v5 = vadd.f32 %v3358_v44, %v1441_v3 }
 0x16f   : > { %v1076_v6 = vpop.f32.mrf.mxu0  ;;  %v2689_v7 = vpop.f32.mrf.mxu1 }
 0x170   : > { %1813 = vst.msk [vmem:[%s3373_s20 + $0x118] sm:$0xff] %vm1777_vm2, %v1665_v4  ;;  %v1739_v8 = vmax.f32 %v1442_v5, 0.0  ;;  %v1077_v10 = vadd.f32 %v3785_v9, %v1076_v6 }
 0x171   : > { %v2470_v11 = vpop.f32.mrf.mxu0  ;;  %v1446_v12 = vpop.f32.mrf.mxu1 }
 0x172   : > { %1887 = vst.msk [vmem:[%s3373_s20 + $0x368] sm:$0xff] %vm1777_vm2, %v1739_v8  ;;  %v1666_v13 = vmax.f32 %v1077_v10, 0.0  ;;  %v1447_v44 = vadd.f32 %v3785_v9, %v1446_v12 }
 0x173   : > { %v1081_v14 = vpop.f32.mrf.mxu0  ;;  %v2692_v15 = vpop.f32.mrf.mxu1 }
 0x174   : > { %1814 = vst.msk [vmem:[%s3373_s20 + $0x120] sm:$0xff] %vm1777_vm2, %v1666_v13  ;;  %v1740_v16 = vmax.f32 %v1447_v44, 0.0  ;;  %v1082_v17 = vadd.f32 %v3785_v9, %v1081_v14 }
 0x175   : > { %v2473_v18 = vpop.f32.mrf.mxu0  ;;  %v1451_v19 = vpop.f32.mrf.mxu1 }
 0x176   : > { %1888 = vst.msk [vmem:[%s3373_s20 + $0x370] sm:$0xff] %vm1777_vm2, %v1740_v16  ;;  %v1667_v20 = vmax.f32 %v1082_v17, 0.0  ;;  %v1452_v21 = vadd.f32 %v3785_v9, %v1451_v19 }
 0x177   : > { %v1086_v22 = vpop.f32.mrf.mxu0  ;;  %v2695_v23 = vpop.f32.mrf.mxu1 }
 0x178   : > { %1815 = vst.msk [vmem:[%s3373_s20 + $0x128] sm:$0xff] %vm1777_vm2, %v1667_v20  ;;  %v1741_v24 = vmax.f32 %v1452_v21, 0.0  ;;  %v1087_v25 = vadd.f32 %v3785_v9, %v1086_v22 }
 0x179   : > { %v2476_v26 = vpop.f32.mrf.mxu0  ;;  %v1456_v27 = vpop.f32.mrf.mxu1 }
 0x17a   : > { %1889 = vst.msk [vmem:[%s3373_s20 + $0x378] sm:$0xff] %vm1777_vm2, %v1741_v24  ;;  %v1668_v28 = vmax.f32 %v1087_v25, 0.0  ;;  %v1457_v29 = vadd.f32 %v3785_v9, %v1456_v27 }
 0x17b   : > { %v1091_v30 = vpop.f32.mrf.mxu0  ;;  %v2698_v31 = vpop.f32.mrf.mxu1 }
 0x17c   : > { %1816 = vst.msk [vmem:[%s3373_s20 + $0x130] sm:$0xff] %vm1777_vm2, %v1668_v28  ;;  %v1742_v32 = vmax.f32 %v1457_v29, 0.0  ;;  %v1092_v33 = vadd.f32 %v3785_v9, %v1091_v30 }
 0x17d   : > { %v2479_v34 = vpop.f32.mrf.mxu0  ;;  %v1461_v35 = vpop.f32.mrf.mxu1 }
 0x17e   : > { %1890 = vst.msk [vmem:[%s3373_s20 + $0x380] sm:$0xff] %vm1777_vm2, %v1742_v32  ;;  %v1669_v36 = vmax.f32 %v1092_v33, 0.0  ;;  %v1462_v37 = vadd.f32 %v3785_v9, %v1461_v35 }
 0x17f   : > { %v1096_v38 = vpop.f32.mrf.mxu0  ;;  %v2701_v39 = vpop.f32.mrf.mxu1 }
 0x180   : > { %1817 = vst.msk [vmem:[%s3373_s20 + $0x138] sm:$0xff] %vm1777_vm2, %v1669_v36  ;;  %v1743_v40 = vmax.f32 %v1462_v37, 0.0  ;;  %v1097_v41 = vadd.f32 %v3785_v9, %v1096_v38 }
 0x181   : > { %v2482_v42 = vpop.f32.mrf.mxu0  ;;  %v1466_v43 = vpop.f32.mrf.mxu1 }
 0x182   : > { %1891 = vst.msk [vmem:[%s3373_s20 + $0x388] sm:$0xff] %vm1777_vm2, %v1743_v40  ;;  %v1670_v45 = vmax.f32 %v1097_v41, 0.0  ;;  %v1467_v46 = vadd.f32 %v3785_v9, %v1466_v43 }
 0x183   : > { %v1101_v1 = vpop.f32.mrf.mxu0  ;;  %v2704_v47 = vpop.f32.mrf.mxu1 }
 0x184   : > { %1818 = vst.msk [vmem:[%s3373_s20 + $0x140] sm:$0xff] %vm1777_vm2, %v1670_v45  ;;  %v1744_v48 = vmax.f32 %v1467_v46, 0.0  ;;  %v1102_v49 = vadd.f32 %v3785_v9, %v1101_v1 }
 0x185   : > { %v2485_v50 = vpop.f32.mrf.mxu0  ;;  %v1471_v51 = vpop.f32.mrf.mxu1 }
 0x186   : > { %1892 = vst.msk [vmem:[%s3373_s20 + $0x390] sm:$0xff] %vm1777_vm2, %v1744_v48  ;;  %v1671_v52 = vmax.f32 %v1102_v49, 0.0  ;;  %v1472_v53 = vadd.f32 %v3785_v9, %v1471_v51 }
 0x187   : > { %v1106_v54 = vpop.f32.mrf.mxu0  ;;  %v2707_v55 = vpop.f32.mrf.mxu1 }
 0x188   : > { %1819 = vst.msk [vmem:[%s3373_s20 + $0x148] sm:$0xff] %vm1777_vm2, %v1671_v52  ;;  %v1745_v56 = vmax.f32 %v1472_v53, 0.0  ;;  %v1107_v57 = vadd.f32 %v3785_v9, %v1106_v54 }
 0x189   : > { %v2488_v58 = vpop.f32.mrf.mxu0  ;;  %v1476_v59 = vpop.f32.mrf.mxu1 }
 0x18a   : > { %1893 = vst.msk [vmem:[%s3373_s20 + $0x398] sm:$0xff] %vm1777_vm2, %v1745_v56  ;;  %v1672_v60 = vmax.f32 %v1107_v57, 0.0  ;;  %v1477_v61 = vadd.f32 %v3785_v9, %v1476_v59 }
 0x18b   : > { %v1111_v62 = vpop.f32.mrf.mxu0  ;;  %v2710_v63 = vpop.f32.mrf.mxu1 }
 0x18c   : > { %1820 = vst.msk [vmem:[%s3373_s20 + $0x150] sm:$0xff] %vm1777_vm2, %v1672_v60  ;;  %v1746_v0 = vmax.f32 %v1477_v61, 0.0  ;;  %v1112_v2 = vadd.f32 %v3785_v9, %v1111_v62 }
 0x18d   : > { %v2491_v3 = vpop.f32.mrf.mxu0  ;;  %v1481_v4 = vpop.f32.mrf.mxu1 }
 0x18e   : > { %1894 = vst.msk [vmem:[%s3373_s20 + $0x3a0] sm:$0xff] %vm1777_vm2, %v1746_v0  ;;  %v1673_v5 = vmax.f32 %v1112_v2, 0.0  ;;  %v1482_v6 = vadd.f32 %v3785_v9, %v1481_v4 }
 0x18f   : > { %v1116_v7 = vpop.f32.mrf.mxu0  ;;  %v2713_v8 = vpop.f32.mrf.mxu1 }
 0x190   : > { %1821 = vst.msk [vmem:[%s3373_s20 + $0x158] sm:$0xff] %vm1777_vm2, %v1673_v5  ;;  %v1747_v10 = vmax.f32 %v1482_v6, 0.0  ;;  %v1117_v11 = vadd.f32 %v3785_v9, %v1116_v7 }
 0x191   : > { %v2494_v12 = vpop.f32.mrf.mxu0  ;;  %v1486_v13 = vpop.f32.mrf.mxu1 }
 0x192   : > { %1895 = vst.msk [vmem:[%s3373_s20 + $0x3a8] sm:$0xff] %vm1777_vm2, %v1747_v10  ;;  %v1674_v44 = vmax.f32 %v1117_v11, 0.0  ;;  %v1487_v14 = vadd.f32 %v3785_v9, %v1486_v13 }
 0x193   : > { %v1121_v15 = vpop.f32.mrf.mxu0  ;;  %v2716_v16 = vpop.f32.mrf.mxu1 }
 0x194   : > { %1822 = vst.msk [vmem:[%s3373_s20 + $0x160] sm:$0xff] %vm1777_vm2, %v1674_v44  ;;  %v1748_v17 = vmax.f32 %v1487_v14, 0.0  ;;  %v1122_v18 = vadd.f32 %v3785_v9, %v1121_v15 }
 0x195   : > { %v2497_v19 = vpop.f32.mrf.mxu0  ;;  %v1491_v20 = vpop.f32.mrf.mxu1 }
 0x196   : > { %1896 = vst.msk [vmem:[%s3373_s20 + $0x3b0] sm:$0xff] %vm1777_vm2, %v1748_v17  ;;  %v1675_v21 = vmax.f32 %v1122_v18, 0.0  ;;  %v1492_v22 = vadd.f32 %v3785_v9, %v1491_v20 }
 0x197   : > { %v1126_v23 = vpop.f32.mrf.mxu0  ;;  %v2719_v24 = vpop.f32.mrf.mxu1 }
 0x198   : > { %1823 = vst.msk [vmem:[%s3373_s20 + $0x168] sm:$0xff] %vm1777_vm2, %v1675_v21  ;;  %v1749_v25 = vmax.f32 %v1492_v22, 0.0  ;;  %v1127_v26 = vadd.f32 %v3785_v9, %v1126_v23 }
 0x199   : > { %v2500_v27 = vpop.f32.mrf.mxu0  ;;  %v1496_v28 = vpop.f32.mrf.mxu1 }
 0x19a   : > { %1897 = vst.msk [vmem:[%s3373_s20 + $0x3b8] sm:$0xff] %vm1777_vm2, %v1749_v25  ;;  %v1676_v29 = vmax.f32 %v1127_v26, 0.0  ;;  %v1497_v30 = vadd.f32 %v3785_v9, %v1496_v28 }
 0x19b   : > { %v1131_v31 = vpop.f32.mrf.mxu0  ;;  %v2722_v32 = vpop.f32.mrf.mxu1 }
 0x19c   : > { %1824 = vst.msk [vmem:[%s3373_s20 + $0x170] sm:$0xff] %vm1777_vm2, %v1676_v29  ;;  %v1750_v33 = vmax.f32 %v1497_v30, 0.0  ;;  %v1132_v34 = vadd.f32 %v3785_v9, %v1131_v31 }
 0x19d   : > { %v2503_v35 = vpop.f32.mrf.mxu0  ;;  %v1501_v36 = vpop.f32.mrf.mxu1 }
 0x19e   : > { %1898 = vst.msk [vmem:[%s3373_s20 + $0x3c0] sm:$0xff] %vm1777_vm2, %v1750_v33  ;;  %v1677_v37 = vmax.f32 %v1132_v34, 0.0  ;;  %v1502_v38 = vadd.f32 %v3785_v9, %v1501_v36 }
 0x19f   : > { %v1136_v39 = vpop.f32.mrf.mxu0  ;;  %v2725_v40 = vpop.f32.mrf.mxu1 }
 0x1a0   : > { %1825 = vst.msk [vmem:[%s3373_s20 + $0x178] sm:$0xff] %vm1777_vm2, %v1677_v37  ;;  %v1751_v41 = vmax.f32 %v1502_v38, 0.0  ;;  %v1137_v42 = vadd.f32 %v3785_v9, %v1136_v39 }
 0x1a1   : > { %v2506_v43 = vpop.f32.mrf.mxu0  ;;  %v1506_v45 = vpop.f32.mrf.mxu1 }
 0x1a2   : > { %1899 = vst.msk [vmem:[%s3373_s20 + $0x3c8] sm:$0xff] %vm1777_vm2, %v1751_v41  ;;  %v1678_v46 = vmax.f32 %v1137_v42, 0.0  ;;  %v1507_v1 = vadd.f32 %v3785_v9, %v1506_v45 }
 0x1a3   : > { %v1141_v47 = vpop.f32.mrf.mxu0  ;;  %v2728_v48 = vpop.f32.mrf.mxu1 }
 0x1a4   : > { %1826 = vst.msk [vmem:[%s3373_s20 + $0x180] sm:$0xff] %vm1777_vm2, %v1678_v46  ;;  %v1752_v49 = vmax.f32 %v1507_v1, 0.0  ;;  %v1142_v50 = vadd.f32 %v3785_v9, %v1141_v47 }
 0x1a5   : > { %v2509_v51 = vpop.f32.mrf.mxu0  ;;  %v1511_v52 = vpop.f32.mrf.mxu1 }
 0x1a6   : > { %1900 = vst.msk [vmem:[%s3373_s20 + $0x3d0] sm:$0xff] %vm1777_vm2, %v1752_v49  ;;  %v1679_v53 = vmax.f32 %v1142_v50, 0.0  ;;  %v1512_v54 = vadd.f32 %v3785_v9, %v1511_v52 }
 0x1a7   : > { %v1146_v55 = vpop.f32.mrf.mxu0  ;;  %v2731_v56 = vpop.f32.mrf.mxu1 }
 0x1a8   : > { %1827 = vst.msk [vmem:[%s3373_s20 + $0x188] sm:$0xff] %vm1777_vm2, %v1679_v53  ;;  %v1753_v57 = vmax.f32 %v1512_v54, 0.0  ;;  %v1147_v58 = vadd.f32 %v3785_v9, %v1146_v55 }
 0x1a9   : > { %v2512_v59 = vpop.f32.mrf.mxu0  ;;  %v1516_v60 = vpop.f32.mrf.mxu1 }
 0x1aa   : > { %1901 = vst.msk [vmem:[%s3373_s20 + $0x3d8] sm:$0xff] %vm1777_vm2, %v1753_v57  ;;  %v1680_v61 = vmax.f32 %v1147_v58, 0.0  ;;  %v1517_v62 = vadd.f32 %v3785_v9, %v1516_v60 }
 0x1ab   : > { %v1151_v63 = vpop.f32.mrf.mxu0  ;;  %v2734_v0 = vpop.f32.mrf.mxu1 }
 0x1ac   : > { %1828 = vst.msk [vmem:[%s3373_s20 + $0x190] sm:$0xff] %vm1777_vm2, %v1680_v61  ;;  %v1754_v2 = vmax.f32 %v1517_v62, 0.0  ;;  %v1152_v3 = vadd.f32 %v3785_v9, %v1151_v63 }
 0x1ad   : > { %v2515_v4 = vpop.f32.mrf.mxu0  ;;  %v1521_v5 = vpop.f32.mrf.mxu1 }
 0x1ae   : > { %1902 = vst.msk [vmem:[%s3373_s20 + $0x3e0] sm:$0xff] %vm1777_vm2, %v1754_v2  ;;  %v1681_v6 = vmax.f32 %v1152_v3, 0.0  ;;  %v1522_v7 = vadd.f32 %v3785_v9, %v1521_v5 }
 0x1af   : > { %v1156_v8 = vpop.f32.mrf.mxu0  ;;  %v2737_v10 = vpop.f32.mrf.mxu1 }
 0x1b0   : > { %1829 = vst.msk [vmem:[%s3373_s20 + $0x198] sm:$0xff] %vm1777_vm2, %v1681_v6  ;;  %v1755_v11 = vmax.f32 %v1522_v7, 0.0  ;;  %v1157_v12 = vadd.f32 %v3785_v9, %v1156_v8 }
 0x1b1   : > { %v2518_v13 = vpop.f32.mrf.mxu0  ;;  %v1526_v44 = vpop.f32.mrf.mxu1 }
 0x1b2   : > { %1903 = vst.msk [vmem:[%s3373_s20 + $0x3e8] sm:$0xff] %vm1777_vm2, %v1755_v11  ;;  %v1682_v14 = vmax.f32 %v1157_v12, 0.0  ;;  %v1527_v15 = vadd.f32 %v3785_v9, %v1526_v44 }
 0x1b3   : > { %v1161_v16 = vpop.f32.mrf.mxu0  ;;  %v2740_v17 = vpop.f32.mrf.mxu1 }
 0x1b4   : > { %1830 = vst.msk [vmem:[%s3373_s20 + $0x1a0] sm:$0xff] %vm1777_vm2, %v1682_v14  ;;  %v1756_v18 = vmax.f32 %v1527_v15, 0.0  ;;  %v1162_v19 = vadd.f32 %v3785_v9, %v1161_v16 }
 0x1b5   : > { %v2521_v20 = vpop.f32.mrf.mxu0  ;;  %v1531_v21 = vpop.f32.mrf.mxu1 }
 0x1b6   : > { %1904 = vst.msk [vmem:[%s3373_s20 + $0x3f0] sm:$0xff] %vm1777_vm2, %v1756_v18  ;;  %v1683_v22 = vmax.f32 %v1162_v19, 0.0  ;;  %v1532_v23 = vadd.f32 %v3785_v9, %v1531_v21 }
 0x1b7   : > { %v1166_v24 = vpop.f32.mrf.mxu0  ;;  %v2743_v25 = vpop.f32.mrf.mxu1 }
 0x1b8   : > { %1831 = vst.msk [vmem:[%s3373_s20 + $0x1a8] sm:$0xff] %vm1777_vm2, %v1683_v22  ;;  %v1757_v26 = vmax.f32 %v1532_v23, 0.0  ;;  %v1167_v27 = vadd.f32 %v3785_v9, %v1166_v24 }
 0x1b9   : > { %v2524_v28 = vpop.f32.mrf.mxu0  ;;  %v1536_v29 = vpop.f32.mrf.mxu1 }
 0x1ba   : > { %1905 = vst.msk [vmem:[%s3373_s20 + $0x3f8] sm:$0xff] %vm1777_vm2, %v1757_v26  ;;  %v1684_v30 = vmax.f32 %v1167_v27, 0.0  ;;  %v1537_v31 = vadd.f32 %v3785_v9, %v1536_v29 }
 0x1bb   : > { %v1171_v32 = vpop.f32.mrf.mxu0  ;;  %v2746_v33 = vpop.f32.mrf.mxu1 }
 0x1bc   : > { %1832 = vst.msk [vmem:[%s3373_s20 + $0x1b0] sm:$0xff] %vm1777_vm2, %v1684_v30  ;;  %v1758_v34 = vmax.f32 %v1537_v31, 0.0  ;;  %v1172_v35 = vadd.f32 %v3785_v9, %v1171_v32 }
 0x1bd   : > { %v2527_v36 = vpop.f32.mrf.mxu0  ;;  %v1541_v37 = vpop.f32.mrf.mxu1 }
 0x1be   : > { %1906 = vst.msk [vmem:[%s3373_s20 + $0x400] sm:$0xff] %vm1777_vm2, %v1758_v34  ;;  %v1685_v38 = vmax.f32 %v1172_v35, 0.0  ;;  %v1542_v39 = vadd.f32 %v3785_v9, %v1541_v37 }
 0x1bf   : > { %v1176_v40 = vpop.f32.mrf.mxu0  ;;  %v2749_v41 = vpop.f32.mrf.mxu1 }
 0x1c0   : > { %1833 = vst.msk [vmem:[%s3373_s20 + $0x1b8] sm:$0xff] %vm1777_vm2, %v1685_v38  ;;  %v1759_v42 = vmax.f32 %v1542_v39, 0.0  ;;  %v1177_v43 = vadd.f32 %v3785_v9, %v1176_v40 }
 0x1c1   : > { %v2530_v45 = vpop.f32.mrf.mxu0  ;;  %v1546_v46 = vpop.f32.mrf.mxu1 }
 0x1c2   : > { %1907 = vst.msk [vmem:[%s3373_s20 + $0x408] sm:$0xff] %vm1777_vm2, %v1759_v42  ;;  %v1686_v1 = vmax.f32 %v1177_v43, 0.0  ;;  %v1547_v47 = vadd.f32 %v3785_v9, %v1546_v46 }
 0x1c3   : > { %v1181_v48 = vpop.f32.mrf.mxu0  ;;  %v2752_v49 = vpop.f32.mrf.mxu1 }
 0x1c4   : > { %1834 = vst.msk [vmem:[%s3373_s20 + $0x1c0] sm:$0xff] %vm1777_vm2, %v1686_v1  ;;  %v1760_v50 = vmax.f32 %v1547_v47, 0.0  ;;  %v1182_v51 = vadd.f32 %v3785_v9, %v1181_v48 }
 0x1c5   : > { %v2533_v52 = vpop.f32.mrf.mxu0  ;;  %v1551_v53 = vpop.f32.mrf.mxu1 }
 0x1c6   : > { %1908 = vst.msk [vmem:[%s3373_s20 + $0x410] sm:$0xff] %vm1777_vm2, %v1760_v50  ;;  %v1687_v54 = vmax.f32 %v1182_v51, 0.0  ;;  %v1552_v55 = vadd.f32 %v3785_v9, %v1551_v53 }
 0x1c7   : > { %v1186_v56 = vpop.f32.mrf.mxu0  ;;  %v2755_v57 = vpop.f32.mrf.mxu1 }
 0x1c8   : > { %1835 = vst.msk [vmem:[%s3373_s20 + $0x1c8] sm:$0xff] %vm1777_vm2, %v1687_v54  ;;  %v1761_v58 = vmax.f32 %v1552_v55, 0.0  ;;  %v1187_v59 = vadd.f32 %v3785_v9, %v1186_v56 }
 0x1c9   : > { %v2536_v60 = vpop.f32.mrf.mxu0  ;;  %v1556_v61 = vpop.f32.mrf.mxu1 }
 0x1ca   : > { %1909 = vst.msk [vmem:[%s3373_s20 + $0x418] sm:$0xff] %vm1777_vm2, %v1761_v58  ;;  %v1688_v62 = vmax.f32 %v1187_v59, 0.0  ;;  %v1557_v63 = vadd.f32 %v3785_v9, %v1556_v61 }
 0x1cb   : > { %v1191_v0 = vpop.f32.mrf.mxu0  ;;  %v2758_v2 = vpop.f32.mrf.mxu1 }
 0x1cc   : > { %1836 = vst.msk [vmem:[%s3373_s20 + $0x1d0] sm:$0xff] %vm1777_vm2, %v1688_v62  ;;  %v1762_v3 = vmax.f32 %v1557_v63, 0.0  ;;  %v1192_v4 = vadd.f32 %v3785_v9, %v1191_v0 }
 0x1cd   : > { %v2539_v5 = vpop.f32.mrf.mxu0  ;;  %v1561_v6 = vpop.f32.mrf.mxu1 }
 0x1ce   : > { %1910 = vst.msk [vmem:[%s3373_s20 + $0x420] sm:$0xff] %vm1777_vm2, %v1762_v3  ;;  %v1689_v7 = vmax.f32 %v1192_v4, 0.0  ;;  %v1562_v8 = vadd.f32 %v3785_v9, %v1561_v6 }
 0x1cf   : > { %v1196_v10 = vpop.f32.mrf.mxu0  ;;  %v2761_v11 = vpop.f32.mrf.mxu1 }
 0x1d0   : > { %1837 = vst.msk [vmem:[%s3373_s20 + $0x1d8] sm:$0xff] %vm1777_vm2, %v1689_v7  ;;  %v1763_v12 = vmax.f32 %v1562_v8, 0.0  ;;  %v1197_v13 = vadd.f32 %v3785_v9, %v1196_v10 }
 0x1d1   : > { %v2542_v44 = vpop.f32.mrf.mxu0  ;;  %v1566_v14 = vpop.f32.mrf.mxu1 }
 0x1d2   : > { %1911 = vst.msk [vmem:[%s3373_s20 + $0x428] sm:$0xff] %vm1777_vm2, %v1763_v12  ;;  %v1690_v15 = vmax.f32 %v1197_v13, 0.0  ;;  %v1567_v16 = vadd.f32 %v3785_v9, %v1566_v14 }
 0x1d3   : > { %v1201_v17 = vpop.f32.mrf.mxu0  ;;  %v2764_v18 = vpop.f32.mrf.mxu1 }
 0x1d4   : > { %1838 = vst.msk [vmem:[%s3373_s20 + $0x1e0] sm:$0xff] %vm1777_vm2, %v1690_v15  ;;  %v1764_v19 = vmax.f32 %v1567_v16, 0.0  ;;  %v1202_v20 = vadd.f32 %v3785_v9, %v1201_v17 }
 0x1d5   : > { %v2545_v21 = vpop.f32.mrf.mxu0  ;;  %v1571_v22 = vpop.f32.mrf.mxu1 }
 0x1d6   : > { %1912 = vst.msk [vmem:[%s3373_s20 + $0x430] sm:$0xff] %vm1777_vm2, %v1764_v19  ;;  %v1691_v23 = vmax.f32 %v1202_v20, 0.0  ;;  %v1572_v24 = vadd.f32 %v3785_v9, %v1571_v22 }
 0x1d7   : > { %v1206_v25 = vpop.f32.mrf.mxu0  ;;  %v2767_v26 = vpop.f32.mrf.mxu1 }
 0x1d8   : > { %1839 = vst.msk [vmem:[%s3373_s20 + $0x1e8] sm:$0xff] %vm1777_vm2, %v1691_v23  ;;  %v1765_v27 = vmax.f32 %v1572_v24, 0.0  ;;  %v1207_v28 = vadd.f32 %v3785_v9, %v1206_v25 }
 0x1d9   : > { %v2548_v29 = vpop.f32.mrf.mxu0  ;;  %v1576_v30 = vpop.f32.mrf.mxu1 }
 0x1da   : > { %1913 = vst.msk [vmem:[%s3373_s20 + $0x438] sm:$0xff] %vm1777_vm2, %v1765_v27  ;;  %v1692_v31 = vmax.f32 %v1207_v28, 0.0  ;;  %v1577_v32 = vadd.f32 %v3785_v9, %v1576_v30 }
 0x1db   : > { %v1211_v33 = vpop.f32.mrf.mxu0  ;;  %v2770_v34 = vpop.f32.mrf.mxu1 }
 0x1dc   : > { %1840 = vst.msk [vmem:[%s3373_s20 + $0x1f0] sm:$0xff] %vm1777_vm2, %v1692_v31  ;;  %v1766_v35 = vmax.f32 %v1577_v32, 0.0  ;;  %v1212_v36 = vadd.f32 %v3785_v9, %v1211_v33 }
 0x1dd   : > { %v2551_v37 = vpop.f32.mrf.mxu0  ;;  %v1581_v38 = vpop.f32.mrf.mxu1 }
 0x1de   : > { %1914 = vst.msk [vmem:[%s3373_s20 + $0x440] sm:$0xff] %vm1777_vm2, %v1766_v35  ;;  %v1693_v39 = vmax.f32 %v1212_v36, 0.0  ;;  %v1582_v40 = vadd.f32 %v3785_v9, %v1581_v38 }
 0x1df   : > { %v1216_v41 = vpop.f32.mrf.mxu0  ;;  %v2773_v42 = vpop.f32.mrf.mxu1 }
 0x1e0   : > { %1841 = vst.msk [vmem:[%s3373_s20 + $0x1f8] sm:$0xff] %vm1777_vm2, %v1693_v39  ;;  %v1767_v43 = vmax.f32 %v1582_v40, 0.0  ;;  %v1217_v45 = vadd.f32 %v3785_v9, %v1216_v41 }
 0x1e1   : > { %v2554_v46 = vpop.f32.mrf.mxu0  ;;  %v1586_v1 = vpop.f32.mrf.mxu1 }
 0x1e2   : > { %1915 = vst.msk [vmem:[%s3373_s20 + $0x448] sm:$0xff] %vm1777_vm2, %v1767_v43  ;;  %v1694_v47 = vmax.f32 %v1217_v45, 0.0  ;;  %v1587_v48 = vadd.f32 %v3785_v9, %v1586_v1 }
 0x1e3   : > { %v1221_v49 = vpop.f32.mrf.mxu0  ;;  %v2776_v50 = vpop.f32.mrf.mxu1 }
 0x1e4   : > { %1842 = vst.msk [vmem:[%s3373_s20 + $0x200] sm:$0xff] %vm1777_vm2, %v1694_v47  ;;  %v1768_v51 = vmax.f32 %v1587_v48, 0.0  ;;  %v1222_v52 = vadd.f32 %v3785_v9, %v1221_v49 }
 0x1e5   : > { %v2557_v53 = vpop.f32.mrf.mxu0  ;;  %v1591_v54 = vpop.f32.mrf.mxu1 }
 0x1e6   : > { %1916 = vst.msk [vmem:[%s3373_s20 + $0x450] sm:$0xff] %vm1777_vm2, %v1768_v51  ;;  %v1695_v55 = vmax.f32 %v1222_v52, 0.0  ;;  %v1592_v56 = vadd.f32 %v3785_v9, %v1591_v54 }
 0x1e7   : > { %v1226_v57 = vpop.f32.mrf.mxu0  ;;  %v2779_v58 = vpop.f32.mrf.mxu1 }
 0x1e8   : > { %1843 = vst.msk [vmem:[%s3373_s20 + $0x208] sm:$0xff] %vm1777_vm2, %v1695_v55  ;;  %v1769_v59 = vmax.f32 %v1592_v56, 0.0  ;;  %v1227_v60 = vadd.f32 %v3785_v9, %v1226_v57 }
 0x1e9   : > { %v2560_v61 = vpop.f32.mrf.mxu0  ;;  %v1596_v62 = vpop.f32.mrf.mxu1 }
 0x1ea   : > { %1917 = vst.msk [vmem:[%s3373_s20 + $0x458] sm:$0xff] %vm1777_vm2, %v1769_v59  ;;  %v1696_v63 = vmax.f32 %v1227_v60, 0.0  ;;  %v1597_v0 = vadd.f32 %v3785_v9, %v1596_v62 }
 0x1eb   : > { %v1231_v2 = vpop.f32.mrf.mxu0  ;;  %v2782_v3 = vpop.f32.mrf.mxu1 }
 0x1ec   : > { %1844 = vst.msk [vmem:[%s3373_s20 + $0x210] sm:$0xff] %vm1777_vm2, %v1696_v63  ;;  %v1770_v4 = vmax.f32 %v1597_v0, 0.0  ;;  %v1232_v5 = vadd.f32 %v3785_v9, %v1231_v2 }
 0x1ed   : > { %v2563_v6 = vpop.f32.mrf.mxu0  ;;  %v1601_v7 = vpop.f32.mrf.mxu1 }
 0x1ee   : > { %1918 = vst.msk [vmem:[%s3373_s20 + $0x460] sm:$0xff] %vm1777_vm2, %v1770_v4  ;;  %v1697_v8 = vmax.f32 %v1232_v5, 0.0  ;;  %v1602_v10 = vadd.f32 %v3785_v9, %v1601_v7 }
 0x1ef   : > { %v1236_v11 = vpop.f32.mrf.mxu0  ;;  %v2785_v12 = vpop.f32.mrf.mxu1 }
 0x1f0   : > { %1845 = vst.msk [vmem:[%s3373_s20 + $0x218] sm:$0xff] %vm1777_vm2, %v1697_v8  ;;  %v1771_v13 = vmax.f32 %v1602_v10, 0.0  ;;  %v1237_v44 = vadd.f32 %v3785_v9, %v1236_v11 }
 0x1f1   : > { %v2566_v14 = vpop.f32.mrf.mxu0  ;;  %v1606_v15 = vpop.f32.mrf.mxu1 }
 0x1f2   : > { %1919 = vst.msk [vmem:[%s3373_s20 + $0x468] sm:$0xff] %vm1777_vm2, %v1771_v13  ;;  %v1698_v16 = vmax.f32 %v1237_v44, 0.0  ;;  %v1607_v17 = vadd.f32 %v3785_v9, %v1606_v15 }
 0x1f3   : > { %v1241_v18 = vpop.f32.mrf.mxu0  ;;  %v2788_v19 = vpop.f32.mrf.mxu1 }
 0x1f4   : > { %1846 = vst.msk [vmem:[%s3373_s20 + $0x220] sm:$0xff] %vm1777_vm2, %v1698_v16  ;;  %v1772_v20 = vmax.f32 %v1607_v17, 0.0  ;;  %v1242_v21 = vadd.f32 %v3785_v9, %v1241_v18 }
 0x1f5   : > { %v2569_v22 = vpop.f32.mrf.mxu0  ;;  %v1611_v23 = vpop.f32.mrf.mxu1 }
 0x1f6   : > { %1920 = vst.msk [vmem:[%s3373_s20 + $0x470] sm:$0xff] %vm1777_vm2, %v1772_v20  ;;  %v1699_v24 = vmax.f32 %v1242_v21, 0.0  ;;  %v1612_v25 = vadd.f32 %v3785_v9, %v1611_v23 }
 0x1f7   : > { %v1246_v26 = vpop.f32.mrf.mxu0  ;;  %v2791_v27 = vpop.f32.mrf.mxu1 }
 0x1f8   : > { %1847 = vst.msk [vmem:[%s3373_s20 + $0x228] sm:$0xff] %vm1777_vm2, %v1699_v24  ;;  %v1773_v28 = vmax.f32 %v1612_v25, 0.0  ;;  %v1247_v29 = vadd.f32 %v3785_v9, %v1246_v26 }
 0x1f9   : > { %v2572_v30 = vpop.f32.mrf.mxu0  ;;  %v1616_v31 = vpop.f32.mrf.mxu1 }
 0x1fa   : > { %1921 = vst.msk [vmem:[%s3373_s20 + $0x478] sm:$0xff] %vm1777_vm2, %v1773_v28  ;;  %v1700_v32 = vmax.f32 %v1247_v29, 0.0  ;;  %v1617_v33 = vadd.f32 %v3785_v9, %v1616_v31 }
 0x1fb   : > { %v1251_v34 = vpop.f32.mrf.mxu0  ;;  %v2794_v35 = vpop.f32.mrf.mxu1 }
 0x1fc   : > { %1848 = vst.msk [vmem:[%s3373_s20 + $0x230] sm:$0xff] %vm1777_vm2, %v1700_v32  ;;  %v1774_v36 = vmax.f32 %v1617_v33, 0.0  ;;  %v1252_v37 = vadd.f32 %v3785_v9, %v1251_v34 }
 0x1fd   : > { %v2575_v38 = vpop.f32.mrf.mxu0  ;;  %v1621_v39 = vpop.f32.mrf.mxu1 }
 0x1fe   : > { %1922 = vst.msk [vmem:[%s3373_s20 + $0x480] sm:$0xff] %vm1777_vm2, %v1774_v36  ;;  %v1701_v40 = vmax.f32 %v1252_v37, 0.0  ;;  %v1622_v41 = vadd.f32 %v3785_v9, %v1621_v39 }
 0x1ff   : > { %v1256_v42 = vpop.f32.mrf.mxu0  ;;  %v2797_v43 = vpop.f32.mrf.mxu1 }
 0x200   : > { %1849 = vst.msk [vmem:[%s3373_s20 + $0x238] sm:$0xff] %vm1777_vm2, %v1701_v40  ;;  %v1775_v45 = vmax.f32 %v1622_v41, 0.0  ;;  %v1257_v46 = vadd.f32 %v3785_v9, %v1256_v42 }
 0x201   : > { %v2578_v1 = vpop.f32.mrf.mxu0  ;;  %v1626_v47 = vpop.f32.mrf.mxu1 }
 0x202   : > { %1923 = vst.msk [vmem:[%s3373_s20 + $0x488] sm:$0xff] %vm1777_vm2, %v1775_v45  ;;  %v1702_v48 = vmax.f32 %v1257_v46, 0.0  ;;  %v1627_v49 = vadd.f32 %v3785_v9, %v1626_v47 }
 0x203   : > { %v1261_v50 = vpop.f32.mrf.mxu0  ;;  %v2800_v51 = vpop.f32.mrf.mxu1 }
 0x204   : > { %1850 = vst.msk [vmem:[%s3373_s20 + $0x240] sm:$0xff] %vm1777_vm2, %v1702_v48  ;;  %v1776_v52 = vmax.f32 %v1627_v49, 0.0  ;;  %v1262_v53 = vadd.f32 %v3785_v9, %v1261_v50 }
 0x205   : > { %v2581_v54 = vpop.f32.mrf.mxu0 }
 0x206   : > { %1924 = vst.msk [vmem:[%s3373_s20 + $0x490] sm:$0xff] %vm1777_vm2, %v1776_v52  ;;  %v1703_v55 = vmax.f32 %v1262_v53, 0.0 }
 0x208   : > { %1851 = vst.msk [vmem:[%s3373_s20 + $0x248] sm:$0xff] %vm1777_vm2, %v1703_v55 }
 0x209 PF: > { %s13_s14 = sadd.s32 1, %s2868_s14   ;;  %s4027_s12 = smov %s2864_s13 }
 0x20a   : > { %p10_p5 = scmp.ge.s32.totalorder %s13_s14, 5   ;;  %s4028_s13 = smov %s4030_s15 }
 0x20c   :  { %12 = sbr.rel (!%p10_p5) target bundleno = 2 (0x2), region = 68 }

// kernel: cnn_forward.10
= control target key start
LH: loop header
LB: loop body
LE: loop exit
PB: predicated region body
PF: predicated region fallthrough
CT: control target
= control target key end

     0   :  { %s1018_s1 = inlined_call_operand.vmem [shape: f32[1024,128], index: 1, kind: input, shape index: {}]   ;;  %s1019_s0 = inlined_call_operand.vmem [shape: f32[8,1024], index: 0, kind: input, shape index: {}]   ;;  %s1020_s2 = inlined_call_operand.vmem [shape: f32[1,128], index: 2, kind: input, shape index: {}]   ;;  %s1021_s3 = inlined_call_operand.vmem [shape: f32[8,128], index: 3, kind: output, shape index: {}]  }
   0x1   :  { %v53_v0 = vld [vmem:[%s1018_s1 + $0xf8] sm:$0xff]  ;;  %v52_v4 = vld [vmem:[%s1018_s1 + $0xf0] sm:$0xff]  ;;  %v51_v8 = vld [vmem:[%s1018_s1 + $0xe8] sm:$0xff] }
   0x2   :  { %v85_v1 = vld [vmem:[%s1018_s1 + $0x1f8] sm:$0xff]  ;;  %444 = vmatprep.subr.mxu0 %v53_v0  ;;  %v84_v5 = vld [vmem:[%s1018_s1 + $0x1f0] sm:$0xff]  ;;  %v83_v9 = vld [vmem:[%s1018_s1 + $0x1e8] sm:$0xff] }
   0x3   :  { %v37_v2 = vld [vmem:[%s1018_s1 + $0x78] sm:$0xff]  ;;  %479 = vmatprep.subr.mxu1 %v85_v1  ;;  %v36_v6 = vld [vmem:[%s1018_s1 + $0x70] sm:$0xff]  ;;  %v35_v10 = vld [vmem:[%s1018_s1 + $0x68] sm:$0xff] }
   0x4   :  { %v69_v3 = vld [vmem:[%s1018_s1 + $0x178] sm:$0xff]  ;;  %445 = vmatpush3.msra.mxu0 %v37_v2  ;;  %v68_v7 = vld [vmem:[%s1018_s1 + $0x170] sm:$0xff]  ;;  %v67_v11 = vld [vmem:[%s1018_s1 + $0x168] sm:$0xff] }
   0x5   :  { %480 = vmatpush3.msra.mxu1 %v69_v3  ;;  %446 = vmatprep.subr.mxu0 %v52_v4  ;;  %v50_v12 = vld [vmem:[%s1018_s1 + $0xe0] sm:$0xff]  ;;  %v49_v16 = vld [vmem:[%s1018_s1 + $0xd8] sm:$0xff]  ;;  %v48_v20 = vld [vmem:[%s1018_s1 + $0xd0] sm:$0xff] }
   0x6   :  { %481 = vmatprep.subr.mxu1 %v84_v5  ;;  %447 = vmatpush3.msra.mxu0 %v36_v6  ;;  %v82_v13 = vld [vmem:[%s1018_s1 + $0x1e0] sm:$0xff]  ;;  %v81_v17 = vld [vmem:[%s1018_s1 + $0x1d8] sm:$0xff]  ;;  %v80_v21 = vld [vmem:[%s1018_s1 + $0x1d0] sm:$0xff] }
   0x7   :  { %482 = vmatpush3.msra.mxu1 %v68_v7  ;;  %448 = vmatprep.subr.mxu0 %v51_v8  ;;  %v34_v14 = vld [vmem:[%s1018_s1 + $0x60] sm:$0xff]  ;;  %v33_v18 = vld [vmem:[%s1018_s1 + $0x58] sm:$0xff]  ;;  %v32_v22 = vld [vmem:[%s1018_s1 + $0x50] sm:$0xff] }
   0x8   :  { %483 = vmatprep.subr.mxu1 %v83_v9  ;;  %v66_v15 = vld [vmem:[%s1018_s1 + $0x160] sm:$0xff]  ;;  %449 = vmatpush3.msra.mxu0 %v35_v10  ;;  %v65_v19 = vld [vmem:[%s1018_s1 + $0x158] sm:$0xff]  ;;  %v64_v23 = vld [vmem:[%s1018_s1 + $0x150] sm:$0xff] }
   0x9   :  { %484 = vmatpush3.msra.mxu1 %v67_v11  ;;  %450 = vmatprep.subr.mxu0 %v50_v12  ;;  %v47_v24 = vld [vmem:[%s1018_s1 + $0xc8] sm:$0xff]  ;;  %v46_v28 = vld [vmem:[%s1018_s1 + $0xc0] sm:$0xff]  ;;  %v45_v32 = vld [vmem:[%s1018_s1 + $0xb8] sm:$0xff] }
   0xa   :  { %485 = vmatprep.subr.mxu1 %v82_v13  ;;  %451 = vmatpush3.msra.mxu0 %v34_v14  ;;  %v79_v25 = vld [vmem:[%s1018_s1 + $0x1c8] sm:$0xff]  ;;  %v78_v29 = vld [vmem:[%s1018_s1 + $0x1c0] sm:$0xff]  ;;  %v77_v33 = vld [vmem:[%s1018_s1 + $0x1b8] sm:$0xff] }
   0xb   :  { %486 = vmatpush3.msra.mxu1 %v66_v15  ;;  %452 = vmatprep.subr.mxu0 %v49_v16  ;;  %v31_v26 = vld [vmem:[%s1018_s1 + $0x48] sm:$0xff]  ;;  %v30_v30 = vld [vmem:[%s1018_s1 + $0x40] sm:$0xff]  ;;  %v29_v34 = vld [vmem:[%s1018_s1 + $0x38] sm:$0xff] }
   0xc   :  { %487 = vmatprep.subr.mxu1 %v81_v17  ;;  %453 = vmatpush3.msra.mxu0 %v33_v18  ;;  %v63_v27 = vld [vmem:[%s1018_s1 + $0x148] sm:$0xff]  ;;  %v62_v31 = vld [vmem:[%s1018_s1 + $0x140] sm:$0xff]  ;;  %v61_v35 = vld [vmem:[%s1018_s1 + $0x138] sm:$0xff] }
   0xd   :  { %488 = vmatpush3.msra.mxu1 %v65_v19  ;;  %454 = vmatprep.subr.mxu0 %v48_v20  ;;  %v44_v36 = vld [vmem:[%s1018_s1 + $0xb0] sm:$0xff]  ;;  %v43_v40 = vld [vmem:[%s1018_s1 + $0xa8] sm:$0xff]  ;;  %v42_v44 = vld [vmem:[%s1018_s1 + $0xa0] sm:$0xff] }
   0xe   :  { %489 = vmatprep.subr.mxu1 %v80_v21  ;;  %455 = vmatpush3.msra.mxu0 %v32_v22  ;;  %v76_v37 = vld [vmem:[%s1018_s1 + $0x1b0] sm:$0xff]  ;;  %v75_v41 = vld [vmem:[%s1018_s1 + $0x1a8] sm:$0xff]  ;;  %v74_v45 = vld [vmem:[%s1018_s1 + $0x1a0] sm:$0xff] }
   0xf   :  { %490 = vmatpush3.msra.mxu1 %v64_v23  ;;  %456 = vmatprep.subr.mxu0 %v47_v24  ;;  %v28_v38 = vld [vmem:[%s1018_s1 + $0x30] sm:$0xff]  ;;  %v27_v42 = vld [vmem:[%s1018_s1 + $0x28] sm:$0xff]  ;;  %v26_v46 = vld [vmem:[%s1018_s1 + $0x20] sm:$0xff] }
  0x10   :  { %491 = vmatprep.subr.mxu1 %v79_v25  ;;  %457 = vmatpush3.msra.mxu0 %v31_v26  ;;  %v60_v39 = vld [vmem:[%s1018_s1 + $0x130] sm:$0xff]  ;;  %v59_v43 = vld [vmem:[%s1018_s1 + $0x128] sm:$0xff]  ;;  %v58_v47 = vld [vmem:[%s1018_s1 + $0x120] sm:$0xff] }
  0x11   :  { %492 = vmatpush3.msra.mxu1 %v63_v27  ;;  %458 = vmatprep.subr.mxu0 %v46_v28  ;;  %v41_v48 = vld [vmem:[%s1018_s1 + $0x98] sm:$0xff]  ;;  %v40_v52 = vld [vmem:[%s1018_s1 + $0x90] sm:$0xff]  ;;  %v39_v56 = vld [vmem:[%s1018_s1 + $0x88] sm:$0xff] }
  0x12   :  { %493 = vmatprep.subr.mxu1 %v78_v29  ;;  %459 = vmatpush3.msra.mxu0 %v30_v30  ;;  %v73_v49 = vld [vmem:[%s1018_s1 + $0x198] sm:$0xff]  ;;  %v72_v53 = vld [vmem:[%s1018_s1 + $0x190] sm:$0xff]  ;;  %v71_v57 = vld [vmem:[%s1018_s1 + $0x188] sm:$0xff] }
  0x13   :  { %494 = vmatpush3.msra.mxu1 %v62_v31  ;;  %460 = vmatprep.subr.mxu0 %v45_v32  ;;  %v25_v50 = vld [vmem:[%s1018_s1 + $0x18] sm:$0xff]  ;;  %v24_v54 = vld [vmem:[%s1018_s1 + $0x10] sm:$0xff]  ;;  %v23_v58 = vld [vmem:[%s1018_s1 + $0x8] sm:$0xff] }
  0x14   :  { %495 = vmatprep.subr.mxu1 %v77_v33  ;;  %461 = vmatpush3.msra.mxu0 %v29_v34  ;;  %v57_v51 = vld [vmem:[%s1018_s1 + $0x118] sm:$0xff]  ;;  %v56_v55 = vld [vmem:[%s1018_s1 + $0x110] sm:$0xff]  ;;  %v55_v59 = vld [vmem:[%s1018_s1 + $0x108] sm:$0xff] }
  0x15   :  { %496 = vmatpush3.msra.mxu1 %v61_v35  ;;  %462 = vmatprep.subr.mxu0 %v44_v36  ;;  %v38_v60 = vld [vmem:[%s1018_s1 + $0x80] sm:$0xff]  ;;  %v15_v63 = vld [vmem:[%s1019_s0 + $0x8] sm:$0xff]  ;;  %v17_v2 = vld [vmem:[%s1019_s0 + $0x18] sm:$0xff] }
  0x16   :  { %497 = vmatprep.subr.mxu1 %v76_v37  ;;  %463 = vmatpush3.msra.mxu0 %v28_v38  ;;  %v70_v61 = vld [vmem:[%s1018_s1 + $0x180] sm:$0xff]  ;;  %v117_v3 = vld [vmem:[%s1018_s1 + $0x2f8] sm:$0xff]  ;;  %v16_v5 = vld [vmem:[%s1019_s0 + $0x10] sm:$0xff] }
  0x17   :  { %498 = vmatpush3.msra.mxu1 %v60_v39  ;;  %464 = vmatprep.subr.mxu0 %v43_v40  ;;  %v22_v62 = vld [vmem:[%s1018_s1] sm:$0xff]  ;;  %v149_v4 = vld [vmem:[%s1018_s1 + $0x3f8] sm:$0xff]  ;;  %v116_v8 = vld [vmem:[%s1018_s1 + $0x2f0] sm:$0xff] }
  0x18   :  { %499 = vmatprep.subr.mxu1 %v75_v41  ;;  %465 = vmatpush3.msra.mxu0 %v27_v42  ;;  %v54_v0 = vld [vmem:[%s1018_s1 + $0x100] sm:$0xff]  ;;  %v101_v6 = vld [vmem:[%s1018_s1 + $0x278] sm:$0xff]  ;;  %v148_v9 = vld [vmem:[%s1018_s1 + $0x3f0] sm:$0xff] }
  0x19   :  { %500 = vmatpush3.msra.mxu1 %v59_v43  ;;  %466 = vmatprep.subr.mxu0 %v42_v44  ;;  %v14_v1 = vld [vmem:[%s1019_s0] sm:$0xff]  ;;  %v133_v7 = vld [vmem:[%s1018_s1 + $0x378] sm:$0xff]  ;;  %v100_v10 = vld [vmem:[%s1018_s1 + $0x270] sm:$0xff] }
  0x1a   :  { %501 = vmatprep.subr.mxu1 %v74_v45  ;;  %467 = vmatpush3.msra.mxu0 %v26_v46  ;;  %v132_v11 = vld [vmem:[%s1018_s1 + $0x370] sm:$0xff]  ;;  %v115_v12 = vld [vmem:[%s1018_s1 + $0x2e8] sm:$0xff]  ;;  %v114_v16 = vld [vmem:[%s1018_s1 + $0x2e0] sm:$0xff] }
  0x1b   :  { %502 = vmatpush3.msra.mxu1 %v58_v47  ;;  %468 = vmatprep.subr.mxu0 %v41_v48  ;;  %v147_v13 = vld [vmem:[%s1018_s1 + $0x3e8] sm:$0xff]  ;;  %v146_v17 = vld [vmem:[%s1018_s1 + $0x3e0] sm:$0xff]  ;;  %v113_v20 = vld [vmem:[%s1018_s1 + $0x2d8] sm:$0xff] }
  0x1c   :  { %503 = vmatprep.subr.mxu1 %v73_v49  ;;  %469 = vmatpush3.msra.mxu0 %v25_v50  ;;  %v99_v14 = vld [vmem:[%s1018_s1 + $0x268] sm:$0xff]  ;;  %v98_v18 = vld [vmem:[%s1018_s1 + $0x260] sm:$0xff]  ;;  %v145_v21 = vld [vmem:[%s1018_s1 + $0x3d8] sm:$0xff] }
  0x1d   :  { %504 = vmatpush3.msra.mxu1 %v57_v51  ;;  %470 = vmatprep.subr.mxu0 %v40_v52  ;;  %v131_v15 = vld [vmem:[%s1018_s1 + $0x368] sm:$0xff]  ;;  %v130_v19 = vld [vmem:[%s1018_s1 + $0x360] sm:$0xff]  ;;  %v97_v22 = vld [vmem:[%s1018_s1 + $0x258] sm:$0xff] }
  0x1e   :  { %505 = vmatprep.subr.mxu1 %v72_v53  ;;  %471 = vmatpush3.msra.mxu0 %v24_v54  ;;  %v129_v23 = vld [vmem:[%s1018_s1 + $0x358] sm:$0xff]  ;;  %v112_v24 = vld [vmem:[%s1018_s1 + $0x2d0] sm:$0xff]  ;;  %v111_v28 = vld [vmem:[%s1018_s1 + $0x2c8] sm:$0xff] }
  0x1f   :  { %506 = vmatpush3.msra.mxu1 %v56_v55  ;;  %472 = vmatprep.subr.mxu0 %v39_v56  ;;  %v144_v25 = vld [vmem:[%s1018_s1 + $0x3d0] sm:$0xff]  ;;  %v143_v29 = vld [vmem:[%s1018_s1 + $0x3c8] sm:$0xff]  ;;  %v110_v32 = vld [vmem:[%s1018_s1 + $0x2c0] sm:$0xff] }
  0x20   :  { %507 = vmatprep.subr.mxu1 %v71_v57  ;;  %473 = vmatpush3.msra.mxu0 %v23_v58  ;;  %v96_v26 = vld [vmem:[%s1018_s1 + $0x250] sm:$0xff]  ;;  %v95_v30 = vld [vmem:[%s1018_s1 + $0x248] sm:$0xff]  ;;  %v142_v33 = vld [vmem:[%s1018_s1 + $0x3c0] sm:$0xff] }
  0x21   :  { %508 = vmatpush3.msra.mxu1 %v55_v59  ;;  %474 = vmatprep.subr.mxu0 %v38_v60  ;;  %v128_v27 = vld [vmem:[%s1018_s1 + $0x350] sm:$0xff]  ;;  %v127_v31 = vld [vmem:[%s1018_s1 + $0x348] sm:$0xff]  ;;  %v94_v34 = vld [vmem:[%s1018_s1 + $0x240] sm:$0xff] }
  0x22   :  { %509 = vmatprep.subr.mxu1 %v70_v61  ;;  %475 = vmatpush3.msra.mxu0 %v22_v62  ;;  %v126_v35 = vld [vmem:[%s1018_s1 + $0x340] sm:$0xff]  ;;  %v109_v36 = vld [vmem:[%s1018_s1 + $0x2b8] sm:$0xff]  ;;  %v108_v40 = vld [vmem:[%s1018_s1 + $0x2b0] sm:$0xff] }
  0x23   :  { %221 = vmatprep.mubr.f32.mxu0 %v15_v63  ;;  %510 = vmatpush3.msra.mxu1 %v54_v0  ;;  %v141_v37 = vld [vmem:[%s1018_s1 + $0x3b8] sm:$0xff]  ;;  %v140_v41 = vld [vmem:[%s1018_s1 + $0x3b0] sm:$0xff]  ;;  %v107_v44 = vld [vmem:[%s1018_s1 + $0x2a8] sm:$0xff] }
  0x24   :  { %222 = vmatmul.mubr.f32.vlgmr.msra.gmra.mxu0 %v14_v1  ;;  %291 = vmatprep.mubr.f32.mxu1 %v17_v2  ;;  %v93_v38 = vld [vmem:[%s1018_s1 + $0x238] sm:$0xff]  ;;  %v92_v42 = vld [vmem:[%s1018_s1 + $0x230] sm:$0xff]  ;;  %v139_v45 = vld [vmem:[%s1018_s1 + $0x3a8] sm:$0xff] }
  0x25   :  { %514 = vmatprep.subr.mxu0 %v117_v3  ;;  %549 = vmatprep.subr.mxu1 %v149_v4  ;;  %v125_v39 = vld [vmem:[%s1018_s1 + $0x338] sm:$0xff]  ;;  %v124_v43 = vld [vmem:[%s1018_s1 + $0x330] sm:$0xff]  ;;  %v91_v46 = vld [vmem:[%s1018_s1 + $0x228] sm:$0xff] }
  0x26   :  { %292 = vmatmul.mubr.f32.vlgmr.msra.gmra.mxu1 %v16_v5  ;;  %515 = vmatpush3.msra.mxu0 %v101_v6  ;;  %v123_v47 = vld [vmem:[%s1018_s1 + $0x328] sm:$0xff]  ;;  %v106_v48 = vld [vmem:[%s1018_s1 + $0x2a0] sm:$0xff]  ;;  %v105_v52 = vld [vmem:[%s1018_s1 + $0x298] sm:$0xff] }
  0x27   :  { %550 = vmatpush3.msra.mxu1 %v133_v7  ;;  %516 = vmatprep.subr.mxu0 %v116_v8  ;;  %v138_v49 = vld [vmem:[%s1018_s1 + $0x3a0] sm:$0xff]  ;;  %v137_v53 = vld [vmem:[%s1018_s1 + $0x398] sm:$0xff]  ;;  %v104_v56 = vld [vmem:[%s1018_s1 + $0x290] sm:$0xff] }
  0x28   :  { %551 = vmatprep.subr.mxu1 %v148_v9  ;;  %517 = vmatpush3.msra.mxu0 %v100_v10  ;;  %v90_v50 = vld [vmem:[%s1018_s1 + $0x220] sm:$0xff]  ;;  %v89_v54 = vld [vmem:[%s1018_s1 + $0x218] sm:$0xff]  ;;  %v136_v57 = vld [vmem:[%s1018_s1 + $0x390] sm:$0xff] }
  0x29   :  { %552 = vmatpush3.msra.mxu1 %v132_v11  ;;  %518 = vmatprep.subr.mxu0 %v115_v12  ;;  %v122_v51 = vld [vmem:[%s1018_s1 + $0x320] sm:$0xff]  ;;  %v121_v55 = vld [vmem:[%s1018_s1 + $0x318] sm:$0xff]  ;;  %v88_v58 = vld [vmem:[%s1018_s1 + $0x210] sm:$0xff] }
  0x2a   :  { %553 = vmatprep.subr.mxu1 %v147_v13  ;;  %519 = vmatpush3.msra.mxu0 %v99_v14  ;;  %v120_v59 = vld [vmem:[%s1018_s1 + $0x310] sm:$0xff]  ;;  %v103_v60 = vld [vmem:[%s1018_s1 + $0x288] sm:$0xff]  ;;  %v102_v0 = vld [vmem:[%s1018_s1 + $0x280] sm:$0xff] }
  0x2b   :  { %554 = vmatpush3.msra.mxu1 %v131_v15  ;;  %520 = vmatprep.subr.mxu0 %v114_v16  ;;  %v135_v61 = vld [vmem:[%s1018_s1 + $0x388] sm:$0xff]  ;;  %v134_v1 = vld [vmem:[%s1018_s1 + $0x380] sm:$0xff]  ;;  %v21_v5 = vld [vmem:[%s1019_s0 + $0x38] sm:$0xff] }
  0x2c   :  { %555 = vmatprep.subr.mxu1 %v146_v17  ;;  %521 = vmatpush3.msra.mxu0 %v98_v18  ;;  %v87_v62 = vld [vmem:[%s1018_s1 + $0x208] sm:$0xff]  ;;  %v86_v2 = vld [vmem:[%s1018_s1 + $0x200] sm:$0xff]  ;;  %v20_v7 = vld [vmem:[%s1019_s0 + $0x30] sm:$0xff] }
  0x2d   :  { %556 = vmatpush3.msra.mxu1 %v130_v19  ;;  %522 = vmatprep.subr.mxu0 %v113_v20  ;;  %v119_v63 = vld [vmem:[%s1018_s1 + $0x308] sm:$0xff]  ;;  %v118_v4 = vld [vmem:[%s1018_s1 + $0x300] sm:$0xff] }
  0x2e   :  { %557 = vmatprep.subr.mxu1 %v145_v21  ;;  %523 = vmatpush3.msra.mxu0 %v97_v22  ;;  %v19_v3 = vld [vmem:[%s1019_s0 + $0x28] sm:$0xff]  ;;  %v18_v6 = vld [vmem:[%s1019_s0 + $0x20] sm:$0xff] }
  0x2f   :  { %558 = vmatpush3.msra.mxu1 %v129_v23  ;;  %524 = vmatprep.subr.mxu0 %v112_v24  ;;  %v443_v12 = vld [vmem:[%s1020_s2] ss:$0 sm:$0xff] }
  0x30   :  { %559 = vmatprep.subr.mxu1 %v144_v25  ;;  %525 = vmatpush3.msra.mxu0 %v96_v26 }
  0x31   :  { %560 = vmatpush3.msra.mxu1 %v128_v27  ;;  %526 = vmatprep.subr.mxu0 %v111_v28 }
  0x32   :  { %561 = vmatprep.subr.mxu1 %v143_v29  ;;  %527 = vmatpush3.msra.mxu0 %v95_v30 }
  0x33   :  { %562 = vmatpush3.msra.mxu1 %v127_v31  ;;  %528 = vmatprep.subr.mxu0 %v110_v32 }
  0x34   :  { %563 = vmatprep.subr.mxu1 %v142_v33  ;;  %529 = vmatpush3.msra.mxu0 %v94_v34 }
  0x35   :  { %564 = vmatpush3.msra.mxu1 %v126_v35  ;;  %530 = vmatprep.subr.mxu0 %v109_v36 }
  0x36   :  { %565 = vmatprep.subr.mxu1 %v141_v37  ;;  %531 = vmatpush3.msra.mxu0 %v93_v38 }
  0x37   :  { %566 = vmatpush3.msra.mxu1 %v125_v39  ;;  %532 = vmatprep.subr.mxu0 %v108_v40 }
  0x38   :  { %567 = vmatprep.subr.mxu1 %v140_v41  ;;  %533 = vmatpush3.msra.mxu0 %v92_v42 }
  0x39   :  { %568 = vmatpush3.msra.mxu1 %v124_v43  ;;  %534 = vmatprep.subr.mxu0 %v107_v44 }
  0x3a   :  { %569 = vmatprep.subr.mxu1 %v139_v45  ;;  %535 = vmatpush3.msra.mxu0 %v91_v46 }
  0x3b   :  { %570 = vmatpush3.msra.mxu1 %v123_v47  ;;  %536 = vmatprep.subr.mxu0 %v106_v48 }
  0x3c   :  { %571 = vmatprep.subr.mxu1 %v138_v49  ;;  %537 = vmatpush3.msra.mxu0 %v90_v50 }
  0x3d   :  { %572 = vmatpush3.msra.mxu1 %v122_v51  ;;  %538 = vmatprep.subr.mxu0 %v105_v52 }
  0x3e   :  { %573 = vmatprep.subr.mxu1 %v137_v53  ;;  %539 = vmatpush3.msra.mxu0 %v89_v54 }
  0x3f   :  { %574 = vmatpush3.msra.mxu1 %v121_v55  ;;  %540 = vmatprep.subr.mxu0 %v104_v56 }
  0x40   :  { %575 = vmatprep.subr.mxu1 %v136_v57  ;;  %541 = vmatpush3.msra.mxu0 %v88_v58 }
  0x41   :  { %576 = vmatpush3.msra.mxu1 %v120_v59  ;;  %542 = vmatprep.subr.mxu0 %v103_v60 }
  0x42   :  { %577 = vmatprep.subr.mxu1 %v135_v61  ;;  %543 = vmatpush3.msra.mxu0 %v87_v62 }
  0x43   :  { %578 = vmatpush3.msra.mxu1 %v119_v63  ;;  %544 = vmatprep.subr.mxu0 %v102_v0 }
  0x44   :  { %579 = vmatprep.subr.mxu1 %v134_v1  ;;  %545 = vmatpush3.msra.mxu0 %v86_v2 }
  0x45   :  { %361 = vmatprep.mubr.f32.mxu0 %v19_v3  ;;  %580 = vmatpush3.msra.mxu1 %v118_v4 }
  0x46   :  { %431 = vmatprep.mubr.f32.mxu1 %v21_v5  ;;  %362 = vmatmul.mubr.f32.vlgmr.msra.gmra.mxu0 %v18_v6 }
  0x47   :  { %432 = vmatmul.mubr.f32.vlgmr.msra.gmra.mxu1 %v20_v7 }
  0xe4   :  { %v476_v8 = vpop.f32.mrf.mxu0 }
  0xe6   :  { %v511_v9 = vpop.f32.mrf.mxu1  ;;  %v477_v10 = vpop.f32.mrf.mxu0 }
  0xe7   :  { %v478_v11 = vadd.f32 %v477_v10, %v476_v8 }
  0xe8   :  { %v512_v13 = vpop.f32.mrf.mxu1 }
  0xe9   :  { %v224_v14 = vadd.f32 %v478_v11, %v443_v12  ;;  %v513_v15 = vadd.f32 %v512_v13, %v511_v9 }
  0xeb   :  { %v294_v20 = vadd.f32 %v513_v15, %v224_v14 }
 0x106   :  { %v546_v16 = vpop.f32.mrf.mxu0 }
 0x107   :  { %v581_v17 = vpop.f32.mrf.mxu1 }
 0x108   :  { %v547_v18 = vpop.f32.mrf.mxu0 }
 0x109   :  { %v582_v19 = vpop.f32.mrf.mxu1  ;;  %v548_v21 = vadd.f32 %v547_v18, %v546_v16 }
 0x10a   :  { %v583_v23 = vadd.f32 %v582_v19, %v581_v17 }
 0x10b   :  { %v364_v22 = vadd.f32 %v548_v21, %v294_v20 }
 0x10d   :  { %v434_v24 = vadd.f32 %v583_v23, %v364_v22 }
 0x10f   :  { %v437_v25 = vmax.f32 %v434_v24, 0.0 }
 0x111   :  { %438 = vst [vmem:[%s1021_s3] sm:$0xff] %v437_v25 }

// kernel: cnn_forward.11
= control target key start
LH: loop header
LB: loop body
LE: loop exit
PB: predicated region body
PF: predicated region fallthrough
CT: control target
= control target key end

     0   :  { %v169_v0 = vmov 0.0   ;;  %vm170_vm0 = vmmov 0   ;;  %vm108_vm1 = vcmask 23552   ;;  %s248_s1 = inlined_call_operand.vmem [shape: f32[128,3], index: 1, kind: input, shape index: {}]   ;;  %s249_s0 = inlined_call_operand.vmem [shape: f32[8,128], index: 0, kind: input, shape index: {}]   ;;  %s250_s2 = inlined_call_operand.vmem [shape: f32[1,3], index: 2, kind: input, shape index: {}]   ;;  %s251_s3 = inlined_call_operand.vmem [shape: f32[8,3], index: 3, kind: output, shape index: {}]  }
   0x1   :  { %132 = vmatprep.subr.mxu0 %v169_v0  ;;  %v30_v1 = vld [vmem:[%s248_s1 + $0x78] sm:$0xff]  ;;  %v29_v2 = vld [vmem:[%s248_s1 + $0x70] sm:$0xff]  ;;  %164 = vmatprep.mubr.msk.f32.mxu0 %vm170_vm0, %v169_v0  ;;  %v28_v3 = vld [vmem:[%s248_s1 + $0x68] sm:$0xff] }
   0x2   :  { %133 = vmatpush3.msra.mxu0 %v30_v1  ;;  %v27_v4 = vld [vmem:[%s248_s1 + $0x60] sm:$0xff]  ;;  %v26_v5 = vld [vmem:[%s248_s1 + $0x58] sm:$0xff]  ;;  %v25_v6 = vld [vmem:[%s248_s1 + $0x50] sm:$0xff] }
   0x3   :  { %134 = vmatprep.subr.mxu0 %v169_v0  ;;  %v24_v7 = vld [vmem:[%s248_s1 + $0x48] sm:$0xff]  ;;  %v23_v8 = vld [vmem:[%s248_s1 + $0x40] sm:$0xff]  ;;  %v22_v9 = vld [vmem:[%s248_s1 + $0x38] sm:$0xff] }
   0x4   :  { %135 = vmatpush3.msra.mxu0 %v29_v2  ;;  %v21_v10 = vld [vmem:[%s248_s1 + $0x30] sm:$0xff]  ;;  %v20_v11 = vld [vmem:[%s248_s1 + $0x28] sm:$0xff]  ;;  %v19_v12 = vld [vmem:[%s248_s1 + $0x20] sm:$0xff] }
   0x5   :  { %136 = vmatprep.subr.mxu0 %v169_v0  ;;  %v18_v13 = vld [vmem:[%s248_s1 + $0x18] sm:$0xff]  ;;  %v17_v14 = vld [vmem:[%s248_s1 + $0x10] sm:$0xff]  ;;  %v16_v15 = vld [vmem:[%s248_s1 + $0x8] sm:$0xff] }
   0x6   :  { %137 = vmatpush3.msra.mxu0 %v28_v3  ;;  %v15_v16 = vld [vmem:[%s248_s1] sm:$0xff] }
   0x7   :  { %138 = vmatprep.subr.mxu0 %v169_v0  ;;  %v14_v17 = vld [vmem:[%s249_s0] sm:$0xff] }
   0x8   :  { %139 = vmatpush3.msra.mxu0 %v27_v4  ;;  %v114_v18 = vld [vmem:[%s250_s2] ss:$0 sm:$0xff] }
   0x9   :  { %140 = vmatprep.subr.mxu0 %v169_v0 }
   0xa   :  { %141 = vmatpush3.msra.mxu0 %v26_v5 }
   0xb   :  { %142 = vmatprep.subr.mxu0 %v169_v0 }
   0xc   :  { %143 = vmatpush3.msra.mxu0 %v25_v6 }
   0xd   :  { %144 = vmatprep.subr.mxu0 %v169_v0 }
   0xe   :  { %145 = vmatpush3.msra.mxu0 %v24_v7 }
   0xf   :  { %146 = vmatprep.subr.mxu0 %v169_v0 }
  0x10   :  { %147 = vmatpush3.msra.mxu0 %v23_v8 }
  0x11   :  { %148 = vmatprep.subr.mxu0 %v169_v0 }
  0x12   :  { %149 = vmatpush3.msra.mxu0 %v22_v9 }
  0x13   :  { %150 = vmatprep.subr.mxu0 %v169_v0 }
  0x14   :  { %151 = vmatpush3.msra.mxu0 %v21_v10 }
  0x15   :  { %152 = vmatprep.subr.mxu0 %v169_v0 }
  0x16   :  { %153 = vmatpush3.msra.mxu0 %v20_v11 }
  0x17   :  { %154 = vmatprep.subr.mxu0 %v169_v0 }
  0x18   :  { %155 = vmatpush3.msra.mxu0 %v19_v12 }
  0x19   :  { %156 = vmatprep.subr.mxu0 %v169_v0 }
  0x1a   :  { %157 = vmatpush3.msra.mxu0 %v18_v13 }
  0x1b   :  { %158 = vmatprep.subr.mxu0 %v169_v0 }
  0x1c   :  { %159 = vmatpush3.msra.mxu0 %v17_v14 }
  0x1d   :  { %160 = vmatprep.subr.mxu0 %v169_v0 }
  0x1e   :  { %161 = vmatpush3.msra.mxu0 %v16_v15 }
  0x1f   :  { %162 = vmatprep.subr.mxu0 %v169_v0 }
  0x20   :  { %163 = vmatpush3.msra.mxu0 %v15_v16 }
  0x21   :  { %165 = vmatmul.mubr.f32.vlgmr.msra.gmra.mxu0 %v14_v17 }
  0xe1   :  { %v104_v19 = vpop.f32.mrf.mxu0 }
  0xe2   :  { %v105_v20 = vadd.f32 %v114_v18, %v104_v19 }
  0xe3   :  { %v166_v21 = vpop.f32.mrf.mxu0 }
  0xe4   :  { %109 = vst.msk [vmem:[%s251_s3] sm:$0xff] %vm108_vm1, %v105_v20 }

// kernel: cnn_forward.9
= control target key start
LH: loop header
LB: loop body
LE: loop exit
PB: predicated region body
PF: predicated region fallthrough
CT: control target
= control target key end

     0   :  { %8 = vsyncpa [#allocation4], 0  ;;  %s4086_s0 = inlined_call_operand.vmem [shape: f32[8,28672], index: 0, kind: input, shape index: {}]   ;;  %s4087_s1 = inlined_call_operand.hbm [shape: f32[28672,1024], index: 1, kind: input, shape index: {}]   ;;  %s4088_s2 = inlined_call_operand.vmem [shape: f32[1,1024], index: 2, kind: input, shape index: {}]   ;;  %s4089_s3 = inlined_call_operand.vmem [shape: f32[8,1024], index: 3, kind: output, shape index: {}]  }
   0x1   :  { %10 = vsyncpa [#allocation4 + $0x1], 0  ;;  %s2882_s12 = smov 0   ;;  %s2884_s13 = smov 0  }
   0x2   :  { %s2886_s14 = smov 0   ;;  %s2888_s15 = smov 0  }
   0x3   :  { %s2890_s16 = smov 0   ;;  %s2892_s17 = smov 0  }
   0x4   :  { %s2894_s18 = smov 0   ;;  %s2896_s19 = smov 0  }
   0x5 LB: > { %s2649_s20 = sadd.s32 4294967295, %s2855_s19   ;;  %s28_s21 = sadd.s32 1, %s2847_s17  ;;  %s2855_s19 = sphi %s2896_s19, %s16_s19   ;;  %s2851_s18 = sphi %s2894_s18, %s4099_s18   ;;  %s2847_s17 = sphi %s2892_s17, %s4098_s17   ;;  %s2843_s16 = sphi %s2890_s16, %s4097_s16   ;;  %s2839_s15 = sphi %s2888_s15, %s4096_s15   ;;  %s2835_s14 = sphi %s2886_s14, %s4095_s14   ;;  %s2831_s13 = sphi %s2884_s13, %s4094_s13   ;;  %s2827_s12 = sphi %s2882_s12, %s4093_s12  }
   0x6   : > { %p29_p0 = scmp.ge.s32.totalorder %s28_s21, 14  ;;  %s31_s22 = sadd.s32 1, %s2851_s18 }
   0x7   : > { %s72_s23 = sadd.s32 1, %s2835_s14  ;;  %p79_p1 = scmp.ne.s32.totalorder %s2835_s14, %s2831_s13 }
   0x8   : > { %s4101_s21 = smov (%p29_p0, %s28_s21), 0  ;;  %s4103_s22 = smov (!%p29_p0, %s31_s22), %s2851_s18 }
   0x9   : > { %s67_s24 = ssub.s32 %s2847_s17, %s4101_s21  ;;  %p80_p2 = scmp.eq.s32.totalorder %s2855_s19, 0 }
   0xa   : > { %p33_p3 = scmp.ge.s32.totalorder %s4103_s22, 2  ;;  %p85_p4 = scmp.ne.s32.totalorder %s2831_s13, %s2827_s12 }
   0xb   : > { %p2933_p5 = por %p80_p2, %p79_p1  ;;  %p86_p6 = scmp.eq.s32.totalorder %s2649_s20, 0 }
   0xc   : > { %s4105_s22 = smov (%p33_p3, %s4103_s22), 0  ;;  %p2676_p8 = scmp.lt.s32.totalorder %s2855_s19, 28 }
   0xd   : > { %p2939_p7 = por %p86_p6, %p85_p4  ;;  %s68_s27 = ssub.s32 %s2851_s18, %s4105_s22 }
   0xe   : > { %s69_s28 = sor.u32 %s68_s27, %s67_s24  ;;  %s176_s29 = sand.u32 1, %s2835_s14  }
   0xf   : > { %p70_p9 = scmp.eq.s32.totalorder %s69_s28, 0  ;;  %s2653_s30 = sshll.u32 %s176_s29, 13 }
  0x10   : > { %s2655_s4 = sshll.u32 %s2851_s18, 2  ;;  %s2669_s6 = sshll.u32 %s2847_s17, 11 }
  0x11   : > { %s2949_s5 = scalar_select %p70_p9, %s2835_s14, %s72_s23  }
  0x12   : > { %s187_s7 = sadd.s32 %s2669_s6, %s2655_s4  ;;  %s180_s8 = scalar_lea.vmem [#allocation3], %s2653_s30 }
  0x13   : > { %s190_s9 = sshll.u32 %s180_s8, 4  ;;  %s2657_s10 = sshll.u32 %s187_s7, 7  ;;  %s191_s9 = int_to_ptr.vmem [resolvable:$true] %s190_s9 }
  0x14   : > { %s189_s20 = scalar_lea.hbm %s4087_s1, %s2657_s10  ;;  %p2959_p10 = pnand %p2676_p8, %p2933_p5 }
  0x15   : > { %s177_s27 = scalar_lea.sflag [#allocation4], %s176_s29  ;;  %s2774_s23 = scalar_lea.vmem %s191_s9, 131072 }
  0x16   : > { %p2763_p11 = pneg %p2959_p10  ;;  %p2775_p12 = scmp.ne.s32.totalorder %s191_s9, %s2774_s23 }
  0x17   : > { %s2857_s28 = smov [#allocation3]  }
  0x18   : > { %p2777_p13 = pnand %p2775_p12, %p2763_p11  ;;  %s2779_s30 = sshll.u32 %s2857_s28, 4  ;;  %s2780_s30 = int_to_ptr.vmem [resolvable:$false] %s2779_s30 }
  0x19   : > { %s2781_s4 = scalar_lea.vmem %s2780_s30, 262144  ;;  %p2782_p1 = scmp.lt.s32.totalorder %s191_s9, %s2780_s30 }
  0x1a   : > { %p2778_p0 = pneg %p2777_p13  ;;  %p2783_p2 = scmp.lt.s32.totalorder %s2781_s4, %s2774_s23 }
  0x1c   : > { %p2784_p3 = por %p2783_p2, %p2782_p1 }
  0x1e   : > { %p2785_p4 = pnand %p2784_p3, %p2778_p0 }
  0x20   : > { %2788 = shalt.err (!%p2785_p4)
}
  0x21   : > { %s2858_s25 = smov 1024   ;;  %s2859_s29 = smov 512  }
  0x22   : > { %s2860_s6 = smov 32   ;;  %p2658_p5 = scmp.ge.s32.totalorder %s2855_s19, 1 }
  0x23   : > { %2675 = dma.hbm_to_vmem [thread:$0]  (!%p2959_p10), %s189_s20, 131072, %s191_s9, %s177_s27, %s2858_s25, %s2859_s29, %s2860_s6  }
  0x24   : > { %p206_p6 = scmp.lt.s32.totalorder %s2855_s19, 29 }
  0x26   : > { %p207_p8 = pnand %p2658_p5, %p206_p6 }
  0x27   : > { %s212_s7 = sand.u32 (!%p207_p8), 1, %s2831_s13  }
  0x28   : > { %210 = sbr.rel (%p207_p8) target bundleno = 804 (0x324), region = 32  ;;  %s2659_s8 = sshll.u32 (!%p207_p8), %s212_s7, 13 }
  0x29   : > { %s213_s10 = scalar_lea.sflag (!%p207_p8), [#allocation4], %s212_s7  ;;  %s2970_s11 = scalar_lea.vmem (!%p207_p8), [#allocation3], %s2659_s8 }
  0x2d   : > { %2822 = dma.done.wait (%p2939_p7), %s213_s10, 131072  }
  0x2e   : > { %2824 = vsyncadd (%p2939_p7), %s213_s10, 4294836224  ;;  %s2660_s12 = sshll.u32 %s2839_s15, 4  ;;  %s2662_s9 = sshll.u32 %s2843_s16, 2 }
  0x2f   : > { %p259_p9 = scmp.lt.s32.totalorder %s2660_s12, 223  ;;  %p269_p10 = scmp.lt.s32.totalorder %s2662_s9, 7 }
  0x30   : > { %p2665_p7 = scmp.ne.s32.totalorder %s2839_s15, 0 }
  0x31   : > { %s4107_s12 = smov (!%p259_p9, %s2660_s12), 223  ;;  %s4109_s9 = smov (!%p269_p10, %s2662_s9), 7 }
  0x32   : > { %s2661_s20 = sshll.u32 %s4107_s12, 3  ;;  %s271_s30 = scalar_lea.vmem %s4088_s2, %s4109_s9 }
  0x33   : > { %s2983_s23 = scalar_lea.vmem %s4086_s0, %s2661_s20  ;;  %s2664_s4 = sshll.u32 %s4109_s9, 3 }
  0x34   : > { %s2993_s29 = scalar_lea.vmem %s4089_s3, %s2664_s4  ;;  %286 = sbr.rel (%p2665_p7) target bundleno = 60 (0x3c), region = 40 }
  0x39   : > { %v2861_v0 = vmov 0.0  }
  0x3a   : > { %287 = vst [vmem:[#allocation2 + $0x10] sm:$0xff] %v2861_v0  ;;  %288 = vst [vmem:[#allocation2] sm:$0xff] %v2861_v0 }
  0x3b   : > { %289 = vst [vmem:[#allocation2 + $0x18] sm:$0xff] %v2861_v0  ;;  %290 = vst [vmem:[#allocation2 + $0x8] sm:$0xff] %v2861_v0 }
  0x3c PF: > { %v372_v1 = vld [vmem:[%s2970_s11 + $0x1e8] sm:$0xff]  ;;  %v371_v3 = vld [vmem:[%s2970_s11 + $0x1e0] sm:$0xff]  ;;  %p2666_p11 = scmp.ne.s32.totalorder %s2839_s15, 13 }
  0x3d   : > { %v500_v2 = vld [vmem:[%s2970_s11 + $0x5e8] sm:$0xff]  ;;  %1335 = vmatprep.subr.mxu0 %v372_v1  ;;  %v499_v4 = vld [vmem:[%s2970_s11 + $0x5e0] sm:$0xff] }
  0x3e   : > { %1406 = vmatprep.subr.mxu1 %v500_v2  ;;  %v368_v5 = vld [vmem:[%s2970_s11 + $0x1c8] sm:$0xff]  ;;  %1336 = vmatpush1.msra.mxu0 %v371_v3  ;;  %v367_v7 = vld [vmem:[%s2970_s11 + $0x1c0] sm:$0xff] }
  0x3f   : > { %v496_v6 = vld [vmem:[%s2970_s11 + $0x5c8] sm:$0xff]  ;;  %1407 = vmatpush1.msra.mxu1 %v499_v4  ;;  %v495_v8 = vld [vmem:[%s2970_s11 + $0x5c0] sm:$0xff]  ;;  %1337 = vmatprep.subr.mxu0 %v368_v5 }
  0x40   : > { %v364_v9 = vld [vmem:[%s2970_s11 + $0x1a8] sm:$0xff]  ;;  %1408 = vmatprep.subr.mxu1 %v496_v6  ;;  %v363_v11 = vld [vmem:[%s2970_s11 + $0x1a0] sm:$0xff]  ;;  %1338 = vmatpush1.msra.mxu0 %v367_v7 }
  0x41   : > { %v492_v10 = vld [vmem:[%s2970_s11 + $0x5a8] sm:$0xff]  ;;  %v491_v12 = vld [vmem:[%s2970_s11 + $0x5a0] sm:$0xff]  ;;  %1409 = vmatpush1.msra.mxu1 %v495_v8  ;;  %1339 = vmatprep.subr.mxu0 %v364_v9 }
  0x42   : > { %v360_v13 = vld [vmem:[%s2970_s11 + $0x188] sm:$0xff]  ;;  %1410 = vmatprep.subr.mxu1 %v492_v10  ;;  %v359_v15 = vld [vmem:[%s2970_s11 + $0x180] sm:$0xff]  ;;  %1340 = vmatpush1.msra.mxu0 %v363_v11 }
  0x43   : > { %v488_v14 = vld [vmem:[%s2970_s11 + $0x588] sm:$0xff]  ;;  %v487_v16 = vld [vmem:[%s2970_s11 + $0x580] sm:$0xff]  ;;  %1411 = vmatpush1.msra.mxu1 %v491_v12  ;;  %1341 = vmatprep.subr.mxu0 %v360_v13 }
  0x44   : > { %v356_v17 = vld [vmem:[%s2970_s11 + $0x168] sm:$0xff]  ;;  %1412 = vmatprep.subr.mxu1 %v488_v14  ;;  %v355_v19 = vld [vmem:[%s2970_s11 + $0x160] sm:$0xff]  ;;  %1342 = vmatpush1.msra.mxu0 %v359_v15 }
  0x45   : > { %v484_v18 = vld [vmem:[%s2970_s11 + $0x568] sm:$0xff]  ;;  %v483_v20 = vld [vmem:[%s2970_s11 + $0x560] sm:$0xff]  ;;  %1413 = vmatpush1.msra.mxu1 %v487_v16  ;;  %1343 = vmatprep.subr.mxu0 %v356_v17 }
  0x46   : > { %v352_v21 = vld [vmem:[%s2970_s11 + $0x148] sm:$0xff]  ;;  %1414 = vmatprep.subr.mxu1 %v484_v18  ;;  %v351_v23 = vld [vmem:[%s2970_s11 + $0x140] sm:$0xff]  ;;  %1344 = vmatpush1.msra.mxu0 %v355_v19 }
  0x47   : > { %v480_v22 = vld [vmem:[%s2970_s11 + $0x548] sm:$0xff]  ;;  %v479_v24 = vld [vmem:[%s2970_s11 + $0x540] sm:$0xff]  ;;  %1415 = vmatpush1.msra.mxu1 %v483_v20  ;;  %1345 = vmatprep.subr.mxu0 %v352_v21 }
  0x48   : > { %v348_v25 = vld [vmem:[%s2970_s11 + $0x128] sm:$0xff]  ;;  %1416 = vmatprep.subr.mxu1 %v480_v22  ;;  %v347_v27 = vld [vmem:[%s2970_s11 + $0x120] sm:$0xff]  ;;  %1346 = vmatpush1.msra.mxu0 %v351_v23 }
  0x49   : > { %v476_v26 = vld [vmem:[%s2970_s11 + $0x528] sm:$0xff]  ;;  %v475_v28 = vld [vmem:[%s2970_s11 + $0x520] sm:$0xff]  ;;  %1417 = vmatpush1.msra.mxu1 %v479_v24  ;;  %1347 = vmatprep.subr.mxu0 %v348_v25 }
  0x4a   : > { %v344_v29 = vld [vmem:[%s2970_s11 + $0x108] sm:$0xff]  ;;  %1418 = vmatprep.subr.mxu1 %v476_v26  ;;  %v343_v31 = vld [vmem:[%s2970_s11 + $0x100] sm:$0xff]  ;;  %1348 = vmatpush1.msra.mxu0 %v347_v27 }
  0x4b   : > { %v472_v30 = vld [vmem:[%s2970_s11 + $0x508] sm:$0xff]  ;;  %v471_v32 = vld [vmem:[%s2970_s11 + $0x500] sm:$0xff]  ;;  %1419 = vmatpush1.msra.mxu1 %v475_v28  ;;  %1349 = vmatprep.subr.mxu0 %v344_v29 }
  0x4c   : > { %v340_v33 = vld [vmem:[%s2970_s11 + $0xe8] sm:$0xff]  ;;  %1420 = vmatprep.subr.mxu1 %v472_v30  ;;  %v339_v35 = vld [vmem:[%s2970_s11 + $0xe0] sm:$0xff]  ;;  %1350 = vmatpush1.msra.mxu0 %v343_v31 }
  0x4d   : > { %v468_v34 = vld [vmem:[%s2970_s11 + $0x4e8] sm:$0xff]  ;;  %v467_v36 = vld [vmem:[%s2970_s11 + $0x4e0] sm:$0xff]  ;;  %1421 = vmatpush1.msra.mxu1 %v471_v32  ;;  %1351 = vmatprep.subr.mxu0 %v340_v33 }
  0x4e   : > { %v336_v37 = vld [vmem:[%s2970_s11 + $0xc8] sm:$0xff]  ;;  %1422 = vmatprep.subr.mxu1 %v468_v34  ;;  %v335_v39 = vld [vmem:[%s2970_s11 + $0xc0] sm:$0xff]  ;;  %1352 = vmatpush1.msra.mxu0 %v339_v35 }
  0x4f   : > { %v464_v38 = vld [vmem:[%s2970_s11 + $0x4c8] sm:$0xff]  ;;  %v463_v40 = vld [vmem:[%s2970_s11 + $0x4c0] sm:$0xff]  ;;  %1423 = vmatpush1.msra.mxu1 %v467_v36  ;;  %1353 = vmatprep.subr.mxu0 %v336_v37 }
  0x50   : > { %v332_v41 = vld [vmem:[%s2970_s11 + $0xa8] sm:$0xff]  ;;  %1424 = vmatprep.subr.mxu1 %v464_v38  ;;  %v331_v43 = vld [vmem:[%s2970_s11 + $0xa0] sm:$0xff]  ;;  %1354 = vmatpush1.msra.mxu0 %v335_v39 }
  0x51   : > { %v460_v42 = vld [vmem:[%s2970_s11 + $0x4a8] sm:$0xff]  ;;  %v459_v44 = vld [vmem:[%s2970_s11 + $0x4a0] sm:$0xff]  ;;  %1425 = vmatpush1.msra.mxu1 %v463_v40  ;;  %1355 = vmatprep.subr.mxu0 %v332_v41 }
  0x52   : > { %v328_v45 = vld [vmem:[%s2970_s11 + $0x88] sm:$0xff]  ;;  %1426 = vmatprep.subr.mxu1 %v460_v42  ;;  %v327_v47 = vld [vmem:[%s2970_s11 + $0x80] sm:$0xff]  ;;  %1356 = vmatpush1.msra.mxu0 %v331_v43 }
  0x53   : > { %v456_v46 = vld [vmem:[%s2970_s11 + $0x488] sm:$0xff]  ;;  %v455_v48 = vld [vmem:[%s2970_s11 + $0x480] sm:$0xff]  ;;  %1427 = vmatpush1.msra.mxu1 %v459_v44  ;;  %1357 = vmatprep.subr.mxu0 %v328_v45 }
  0x54   : > { %v324_v49 = vld [vmem:[%s2970_s11 + $0x68] sm:$0xff]  ;;  %1428 = vmatprep.subr.mxu1 %v456_v46  ;;  %v323_v51 = vld [vmem:[%s2970_s11 + $0x60] sm:$0xff]  ;;  %1358 = vmatpush1.msra.mxu0 %v327_v47 }
  0x55   : > { %v452_v50 = vld [vmem:[%s2970_s11 + $0x468] sm:$0xff]  ;;  %v451_v52 = vld [vmem:[%s2970_s11 + $0x460] sm:$0xff]  ;;  %1429 = vmatpush1.msra.mxu1 %v455_v48  ;;  %1359 = vmatprep.subr.mxu0 %v324_v49 }
  0x56   : > { %v320_v53 = vld [vmem:[%s2970_s11 + $0x48] sm:$0xff]  ;;  %1430 = vmatprep.subr.mxu1 %v452_v50  ;;  %v319_v55 = vld [vmem:[%s2970_s11 + $0x40] sm:$0xff]  ;;  %1360 = vmatpush1.msra.mxu0 %v323_v51 }
  0x57   : > { %v448_v54 = vld [vmem:[%s2970_s11 + $0x448] sm:$0xff]  ;;  %v447_v56 = vld [vmem:[%s2970_s11 + $0x440] sm:$0xff]  ;;  %1431 = vmatpush1.msra.mxu1 %v451_v52  ;;  %1361 = vmatprep.subr.mxu0 %v320_v53 }
  0x58   : > { %v316_v57 = vld [vmem:[%s2970_s11 + $0x28] sm:$0xff]  ;;  %1432 = vmatprep.subr.mxu1 %v448_v54  ;;  %v315_v59 = vld [vmem:[%s2970_s11 + $0x20] sm:$0xff]  ;;  %1362 = vmatpush1.msra.mxu0 %v319_v55 }
  0x59   : > { %v444_v58 = vld [vmem:[%s2970_s11 + $0x428] sm:$0xff]  ;;  %v443_v60 = vld [vmem:[%s2970_s11 + $0x420] sm:$0xff]  ;;  %1433 = vmatpush1.msra.mxu1 %v447_v56  ;;  %1363 = vmatprep.subr.mxu0 %v316_v57 }
  0x5a   : > { %v312_v61 = vld [vmem:[%s2970_s11 + $0x8] sm:$0xff]  ;;  %1434 = vmatprep.subr.mxu1 %v444_v58  ;;  %v311_v63 = vld [vmem:[%s2970_s11] sm:$0xff]  ;;  %1364 = vmatpush1.msra.mxu0 %v315_v59 }
  0x5b   : > { %v440_v62 = vld [vmem:[%s2970_s11 + $0x408] sm:$0xff]  ;;  %v439_v0 = vld [vmem:[%s2970_s11 + $0x400] sm:$0xff]  ;;  %1435 = vmatpush1.msra.mxu1 %v443_v60  ;;  %1365 = vmatprep.subr.mxu0 %v312_v61 }
  0x5c   : > { %v436_v1 = vld [vmem:[%s2970_s11 + $0x3e8] sm:$0xff]  ;;  %1436 = vmatprep.subr.mxu1 %v440_v62  ;;  %v435_v3 = vld [vmem:[%s2970_s11 + $0x3e0] sm:$0xff]  ;;  %1366 = vmatpush1.msra.mxu0 %v311_v63 }
  0x5d   : > { %v564_v2 = vld [vmem:[%s2970_s11 + $0x7e8] sm:$0xff]  ;;  %v563_v4 = vld [vmem:[%s2970_s11 + $0x7e0] sm:$0xff]  ;;  %1437 = vmatpush1.msra.mxu1 %v439_v0  ;;  %1367 = vmatprep.subr.mxu0 %v436_v1 }
  0x5e   : > { %v432_v5 = vld [vmem:[%s2970_s11 + $0x3c8] sm:$0xff]  ;;  %1438 = vmatprep.subr.mxu1 %v564_v2  ;;  %v431_v7 = vld [vmem:[%s2970_s11 + $0x3c0] sm:$0xff]  ;;  %1368 = vmatpush2.msra.mxu0 %v435_v3  ;;  %v298_v2 = vld [vmem:[%s2983_s23 + $0x18] sm:$0xff] }
  0x5f   : > { %v560_v6 = vld [vmem:[%s2970_s11 + $0x7c8] sm:$0xff]  ;;  %v559_v8 = vld [vmem:[%s2970_s11 + $0x7c0] sm:$0xff]  ;;  %1439 = vmatpush2.msra.mxu1 %v563_v4  ;;  %1369 = vmatprep.subr.mxu0 %v432_v5  ;;  %v297_v4 = vld [vmem:[%s2983_s23 + $0x10] sm:$0xff] }
  0x60   : > { %v428_v9 = vld [vmem:[%s2970_s11 + $0x3a8] sm:$0xff]  ;;  %1440 = vmatprep.subr.mxu1 %v560_v6  ;;  %v427_v11 = vld [vmem:[%s2970_s11 + $0x3a0] sm:$0xff]  ;;  %1370 = vmatpush2.msra.mxu0 %v431_v7 }
  0x61   : > { %v556_v10 = vld [vmem:[%s2970_s11 + $0x7a8] sm:$0xff]  ;;  %v555_v12 = vld [vmem:[%s2970_s11 + $0x7a0] sm:$0xff]  ;;  %1441 = vmatpush2.msra.mxu1 %v559_v8  ;;  %1371 = vmatprep.subr.mxu0 %v428_v9 }
  0x62   : > { %v424_v13 = vld [vmem:[%s2970_s11 + $0x388] sm:$0xff]  ;;  %1442 = vmatprep.subr.mxu1 %v556_v10  ;;  %v423_v15 = vld [vmem:[%s2970_s11 + $0x380] sm:$0xff]  ;;  %1372 = vmatpush2.msra.mxu0 %v427_v11 }
  0x63   : > { %v552_v14 = vld [vmem:[%s2970_s11 + $0x788] sm:$0xff]  ;;  %v551_v16 = vld [vmem:[%s2970_s11 + $0x780] sm:$0xff]  ;;  %1443 = vmatpush2.msra.mxu1 %v555_v12  ;;  %1373 = vmatprep.subr.mxu0 %v424_v13 }
  0x64   : > { %v420_v17 = vld [vmem:[%s2970_s11 + $0x368] sm:$0xff]  ;;  %1444 = vmatprep.subr.mxu1 %v552_v14  ;;  %v419_v19 = vld [vmem:[%s2970_s11 + $0x360] sm:$0xff]  ;;  %1374 = vmatpush2.msra.mxu0 %v423_v15 }
  0x65   : > { %v548_v18 = vld [vmem:[%s2970_s11 + $0x768] sm:$0xff]  ;;  %v547_v20 = vld [vmem:[%s2970_s11 + $0x760] sm:$0xff]  ;;  %1445 = vmatpush2.msra.mxu1 %v551_v16  ;;  %1375 = vmatprep.subr.mxu0 %v420_v17 }
  0x66   : > { %v416_v21 = vld [vmem:[%s2970_s11 + $0x348] sm:$0xff]  ;;  %1446 = vmatprep.subr.mxu1 %v548_v18  ;;  %v415_v23 = vld [vmem:[%s2970_s11 + $0x340] sm:$0xff]  ;;  %1376 = vmatpush2.msra.mxu0 %v419_v19 }
  0x67   : > { %v544_v22 = vld [vmem:[%s2970_s11 + $0x748] sm:$0xff]  ;;  %v543_v24 = vld [vmem:[%s2970_s11 + $0x740] sm:$0xff]  ;;  %1447 = vmatpush2.msra.mxu1 %v547_v20  ;;  %1377 = vmatprep.subr.mxu0 %v416_v21 }
  0x68   : > { %v412_v25 = vld [vmem:[%s2970_s11 + $0x328] sm:$0xff]  ;;  %1448 = vmatprep.subr.mxu1 %v544_v22  ;;  %v411_v27 = vld [vmem:[%s2970_s11 + $0x320] sm:$0xff]  ;;  %1378 = vmatpush2.msra.mxu0 %v415_v23 }
  0x69   : > { %v540_v26 = vld [vmem:[%s2970_s11 + $0x728] sm:$0xff]  ;;  %v539_v28 = vld [vmem:[%s2970_s11 + $0x720] sm:$0xff]  ;;  %1449 = vmatpush2.msra.mxu1 %v543_v24  ;;  %1379 = vmatprep.subr.mxu0 %v412_v25 }
  0x6a   : > { %v408_v29 = vld [vmem:[%s2970_s11 + $0x308] sm:$0xff]  ;;  %1450 = vmatprep.subr.mxu1 %v540_v26  ;;  %v407_v31 = vld [vmem:[%s2970_s11 + $0x300] sm:$0xff]  ;;  %1380 = vmatpush2.msra.mxu0 %v411_v27 }
  0x6b   : > { %v536_v30 = vld [vmem:[%s2970_s11 + $0x708] sm:$0xff]  ;;  %v535_v32 = vld [vmem:[%s2970_s11 + $0x700] sm:$0xff]  ;;  %1451 = vmatpush2.msra.mxu1 %v539_v28  ;;  %1381 = vmatprep.subr.mxu0 %v408_v29 }
  0x6c   : > { %v404_v33 = vld [vmem:[%s2970_s11 + $0x2e8] sm:$0xff]  ;;  %1452 = vmatprep.subr.mxu1 %v536_v30  ;;  %v403_v35 = vld [vmem:[%s2970_s11 + $0x2e0] sm:$0xff]  ;;  %1382 = vmatpush2.msra.mxu0 %v407_v31 }
  0x6d   : > { %v532_v34 = vld [vmem:[%s2970_s11 + $0x6e8] sm:$0xff]  ;;  %v531_v36 = vld [vmem:[%s2970_s11 + $0x6e0] sm:$0xff]  ;;  %1453 = vmatpush2.msra.mxu1 %v535_v32  ;;  %1383 = vmatprep.subr.mxu0 %v404_v33 }
  0x6e   : > { %v400_v37 = vld [vmem:[%s2970_s11 + $0x2c8] sm:$0xff]  ;;  %1454 = vmatprep.subr.mxu1 %v532_v34  ;;  %v399_v39 = vld [vmem:[%s2970_s11 + $0x2c0] sm:$0xff]  ;;  %1384 = vmatpush2.msra.mxu0 %v403_v35 }
  0x6f   : > { %v528_v38 = vld [vmem:[%s2970_s11 + $0x6c8] sm:$0xff]  ;;  %v527_v40 = vld [vmem:[%s2970_s11 + $0x6c0] sm:$0xff]  ;;  %1455 = vmatpush2.msra.mxu1 %v531_v36  ;;  %1385 = vmatprep.subr.mxu0 %v400_v37 }
  0x70   : > { %v396_v41 = vld [vmem:[%s2970_s11 + $0x2a8] sm:$0xff]  ;;  %1456 = vmatprep.subr.mxu1 %v528_v38  ;;  %v395_v43 = vld [vmem:[%s2970_s11 + $0x2a0] sm:$0xff]  ;;  %1386 = vmatpush2.msra.mxu0 %v399_v39 }
  0x71   : > { %v524_v42 = vld [vmem:[%s2970_s11 + $0x6a8] sm:$0xff]  ;;  %v523_v44 = vld [vmem:[%s2970_s11 + $0x6a0] sm:$0xff]  ;;  %1457 = vmatpush2.msra.mxu1 %v527_v40  ;;  %1387 = vmatprep.subr.mxu0 %v396_v41 }
  0x72   : > { %v392_v45 = vld [vmem:[%s2970_s11 + $0x288] sm:$0xff]  ;;  %1458 = vmatprep.subr.mxu1 %v524_v42  ;;  %v391_v47 = vld [vmem:[%s2970_s11 + $0x280] sm:$0xff]  ;;  %1388 = vmatpush2.msra.mxu0 %v395_v43 }
  0x73   : > { %v520_v46 = vld [vmem:[%s2970_s11 + $0x688] sm:$0xff]  ;;  %v519_v48 = vld [vmem:[%s2970_s11 + $0x680] sm:$0xff]  ;;  %1459 = vmatpush2.msra.mxu1 %v523_v44  ;;  %1389 = vmatprep.subr.mxu0 %v392_v45 }
  0x74   : > { %v388_v49 = vld [vmem:[%s2970_s11 + $0x268] sm:$0xff]  ;;  %1460 = vmatprep.subr.mxu1 %v520_v46  ;;  %v387_v51 = vld [vmem:[%s2970_s11 + $0x260] sm:$0xff]  ;;  %1390 = vmatpush2.msra.mxu0 %v391_v47 }
  0x75   : > { %v516_v50 = vld [vmem:[%s2970_s11 + $0x668] sm:$0xff]  ;;  %v515_v52 = vld [vmem:[%s2970_s11 + $0x660] sm:$0xff]  ;;  %1461 = vmatpush2.msra.mxu1 %v519_v48  ;;  %1391 = vmatprep.subr.mxu0 %v388_v49 }
  0x76   : > { %v384_v53 = vld [vmem:[%s2970_s11 + $0x248] sm:$0xff]  ;;  %1462 = vmatprep.subr.mxu1 %v516_v50  ;;  %v383_v55 = vld [vmem:[%s2970_s11 + $0x240] sm:$0xff]  ;;  %1392 = vmatpush2.msra.mxu0 %v387_v51 }
  0x77   : > { %v512_v54 = vld [vmem:[%s2970_s11 + $0x648] sm:$0xff]  ;;  %v511_v56 = vld [vmem:[%s2970_s11 + $0x640] sm:$0xff]  ;;  %1463 = vmatpush2.msra.mxu1 %v515_v52  ;;  %1393 = vmatprep.subr.mxu0 %v384_v53 }
  0x78   : > { %v380_v57 = vld [vmem:[%s2970_s11 + $0x228] sm:$0xff]  ;;  %1464 = vmatprep.subr.mxu1 %v512_v54  ;;  %v379_v59 = vld [vmem:[%s2970_s11 + $0x220] sm:$0xff]  ;;  %1394 = vmatpush2.msra.mxu0 %v383_v55 }
  0x79   : > { %v508_v58 = vld [vmem:[%s2970_s11 + $0x628] sm:$0xff]  ;;  %v507_v60 = vld [vmem:[%s2970_s11 + $0x620] sm:$0xff]  ;;  %1465 = vmatpush2.msra.mxu1 %v511_v56  ;;  %1395 = vmatprep.subr.mxu0 %v380_v57 }
  0x7a   : > { %v376_v61 = vld [vmem:[%s2970_s11 + $0x208] sm:$0xff]  ;;  %1466 = vmatprep.subr.mxu1 %v508_v58  ;;  %v375_v63 = vld [vmem:[%s2970_s11 + $0x200] sm:$0xff]  ;;  %1396 = vmatpush2.msra.mxu0 %v379_v59 }
  0x7b   : > { %v504_v62 = vld [vmem:[%s2970_s11 + $0x608] sm:$0xff]  ;;  %1467 = vmatpush2.msra.mxu1 %v507_v60  ;;  %v503_v1 = vld [vmem:[%s2970_s11 + $0x600] sm:$0xff]  ;;  %1397 = vmatprep.subr.mxu0 %v376_v61 }
  0x7c   : > { %v296_v0 = vld [vmem:[%s2983_s23 + $0x8] sm:$0xff]  ;;  %1468 = vmatprep.subr.mxu1 %v504_v62  ;;  %v295_v3 = vld [vmem:[%s2983_s23] sm:$0xff]  ;;  %1398 = vmatpush2.msra.mxu0 %v375_v63 }
  0x7d   : > { %1399 = vmatprep.mubr.f32.mxu0 %v296_v0  ;;  %v628_v5 = vld [vmem:[%s2970_s11 + $0x9e8] sm:$0xff]  ;;  %1469 = vmatpush2.msra.mxu1 %v503_v1  ;;  %v627_v7 = vld [vmem:[%s2970_s11 + $0x9e0] sm:$0xff] }
  0x7e   : > { %v756_v6 = vld [vmem:[%s2970_s11 + $0xde8] sm:$0xff]  ;;  %1470 = vmatprep.mubr.f32.mxu1 %v298_v2  ;;  %v755_v8 = vld [vmem:[%s2970_s11 + $0xde0] sm:$0xff]  ;;  %1400 = vmatmul.mubr.f32.vlgmr.msra.gmra.mxu0 %v295_v3 }
  0x7f   : > { %1471 = vmatmul.mubr.f32.vlgmr.msra.gmra.mxu1 %v297_v4  ;;  %v624_v9 = vld [vmem:[%s2970_s11 + $0x9c8] sm:$0xff]  ;;  %1477 = vmatprep.subr.mxu0 %v628_v5  ;;  %v623_v11 = vld [vmem:[%s2970_s11 + $0x9c0] sm:$0xff] }
  0x80   : > { %v752_v10 = vld [vmem:[%s2970_s11 + $0xdc8] sm:$0xff]  ;;  %1548 = vmatprep.subr.mxu1 %v756_v6  ;;  %v751_v12 = vld [vmem:[%s2970_s11 + $0xdc0] sm:$0xff]  ;;  %1478 = vmatpush1.msra.mxu0 %v627_v7 }
  0x81   : > { %1549 = vmatpush1.msra.mxu1 %v755_v8  ;;  %v620_v13 = vld [vmem:[%s2970_s11 + $0x9a8] sm:$0xff]  ;;  %1479 = vmatprep.subr.mxu0 %v624_v9  ;;  %v619_v15 = vld [vmem:[%s2970_s11 + $0x9a0] sm:$0xff] }
  0x82   : > { %v748_v14 = vld [vmem:[%s2970_s11 + $0xda8] sm:$0xff]  ;;  %1550 = vmatprep.subr.mxu1 %v752_v10  ;;  %v747_v16 = vld [vmem:[%s2970_s11 + $0xda0] sm:$0xff]  ;;  %1480 = vmatpush1.msra.mxu0 %v623_v11 }
  0x83   : > { %1551 = vmatpush1.msra.mxu1 %v751_v12  ;;  %v616_v17 = vld [vmem:[%s2970_s11 + $0x988] sm:$0xff]  ;;  %1481 = vmatprep.subr.mxu0 %v620_v13  ;;  %v615_v19 = vld [vmem:[%s2970_s11 + $0x980] sm:$0xff] }
  0x84   : > { %v744_v18 = vld [vmem:[%s2970_s11 + $0xd88] sm:$0xff]  ;;  %1552 = vmatprep.subr.mxu1 %v748_v14  ;;  %v743_v20 = vld [vmem:[%s2970_s11 + $0xd80] sm:$0xff]  ;;  %1482 = vmatpush1.msra.mxu0 %v619_v15 }
  0x85   : > { %1553 = vmatpush1.msra.mxu1 %v747_v16  ;;  %v612_v21 = vld [vmem:[%s2970_s11 + $0x968] sm:$0xff]  ;;  %1483 = vmatprep.subr.mxu0 %v616_v17  ;;  %v611_v23 = vld [vmem:[%s2970_s11 + $0x960] sm:$0xff] }
  0x86   : > { %v740_v22 = vld [vmem:[%s2970_s11 + $0xd68] sm:$0xff]  ;;  %1554 = vmatprep.subr.mxu1 %v744_v18  ;;  %v739_v24 = vld [vmem:[%s2970_s11 + $0xd60] sm:$0xff]  ;;  %1484 = vmatpush1.msra.mxu0 %v615_v19 }
  0x87   : > { %1555 = vmatpush1.msra.mxu1 %v743_v20  ;;  %v608_v25 = vld [vmem:[%s2970_s11 + $0x948] sm:$0xff]  ;;  %1485 = vmatprep.subr.mxu0 %v612_v21  ;;  %v607_v27 = vld [vmem:[%s2970_s11 + $0x940] sm:$0xff] }
  0x88   : > { %v736_v26 = vld [vmem:[%s2970_s11 + $0xd48] sm:$0xff]  ;;  %1556 = vmatprep.subr.mxu1 %v740_v22  ;;  %v735_v28 = vld [vmem:[%s2970_s11 + $0xd40] sm:$0xff]  ;;  %1486 = vmatpush1.msra.mxu0 %v611_v23 }
  0x89   : > { %1557 = vmatpush1.msra.mxu1 %v739_v24  ;;  %v604_v29 = vld [vmem:[%s2970_s11 + $0x928] sm:$0xff]  ;;  %1487 = vmatprep.subr.mxu0 %v608_v25  ;;  %v603_v31 = vld [vmem:[%s2970_s11 + $0x920] sm:$0xff] }
  0x8a   : > { %v732_v30 = vld [vmem:[%s2970_s11 + $0xd28] sm:$0xff]  ;;  %1558 = vmatprep.subr.mxu1 %v736_v26  ;;  %v731_v32 = vld [vmem:[%s2970_s11 + $0xd20] sm:$0xff]  ;;  %1488 = vmatpush1.msra.mxu0 %v607_v27 }
  0x8b   : > { %1559 = vmatpush1.msra.mxu1 %v735_v28  ;;  %v600_v33 = vld [vmem:[%s2970_s11 + $0x908] sm:$0xff]  ;;  %1489 = vmatprep.subr.mxu0 %v604_v29  ;;  %v599_v35 = vld [vmem:[%s2970_s11 + $0x900] sm:$0xff] }
  0x8c   : > { %v728_v34 = vld [vmem:[%s2970_s11 + $0xd08] sm:$0xff]  ;;  %1560 = vmatprep.subr.mxu1 %v732_v30  ;;  %v727_v36 = vld [vmem:[%s2970_s11 + $0xd00] sm:$0xff]  ;;  %1490 = vmatpush1.msra.mxu0 %v603_v31 }
  0x8d   : > { %1561 = vmatpush1.msra.mxu1 %v731_v32  ;;  %v596_v37 = vld [vmem:[%s2970_s11 + $0x8e8] sm:$0xff]  ;;  %1491 = vmatprep.subr.mxu0 %v600_v33  ;;  %v595_v39 = vld [vmem:[%s2970_s11 + $0x8e0] sm:$0xff] }
  0x8e   : > { %v724_v38 = vld [vmem:[%s2970_s11 + $0xce8] sm:$0xff]  ;;  %1562 = vmatprep.subr.mxu1 %v728_v34  ;;  %v723_v40 = vld [vmem:[%s2970_s11 + $0xce0] sm:$0xff]  ;;  %1492 = vmatpush1.msra.mxu0 %v599_v35 }
  0x8f   : > { %1563 = vmatpush1.msra.mxu1 %v727_v36  ;;  %v592_v41 = vld [vmem:[%s2970_s11 + $0x8c8] sm:$0xff]  ;;  %1493 = vmatprep.subr.mxu0 %v596_v37  ;;  %v591_v43 = vld [vmem:[%s2970_s11 + $0x8c0] sm:$0xff] }
  0x90   : > { %v720_v42 = vld [vmem:[%s2970_s11 + $0xcc8] sm:$0xff]  ;;  %1564 = vmatprep.subr.mxu1 %v724_v38  ;;  %v719_v44 = vld [vmem:[%s2970_s11 + $0xcc0] sm:$0xff]  ;;  %1494 = vmatpush1.msra.mxu0 %v595_v39 }
  0x91   : > { %1565 = vmatpush1.msra.mxu1 %v723_v40  ;;  %v588_v45 = vld [vmem:[%s2970_s11 + $0x8a8] sm:$0xff]  ;;  %1495 = vmatprep.subr.mxu0 %v592_v41  ;;  %v587_v47 = vld [vmem:[%s2970_s11 + $0x8a0] sm:$0xff] }
  0x92   : > { %v716_v46 = vld [vmem:[%s2970_s11 + $0xca8] sm:$0xff]  ;;  %1566 = vmatprep.subr.mxu1 %v720_v42  ;;  %v715_v48 = vld [vmem:[%s2970_s11 + $0xca0] sm:$0xff]  ;;  %1496 = vmatpush1.msra.mxu0 %v591_v43 }
  0x93   : > { %1567 = vmatpush1.msra.mxu1 %v719_v44  ;;  %v584_v49 = vld [vmem:[%s2970_s11 + $0x888] sm:$0xff]  ;;  %1497 = vmatprep.subr.mxu0 %v588_v45  ;;  %v583_v51 = vld [vmem:[%s2970_s11 + $0x880] sm:$0xff] }
  0x94   : > { %v712_v50 = vld [vmem:[%s2970_s11 + $0xc88] sm:$0xff]  ;;  %1568 = vmatprep.subr.mxu1 %v716_v46  ;;  %v711_v52 = vld [vmem:[%s2970_s11 + $0xc80] sm:$0xff]  ;;  %1498 = vmatpush1.msra.mxu0 %v587_v47 }
  0x95   : > { %1569 = vmatpush1.msra.mxu1 %v715_v48  ;;  %v580_v53 = vld [vmem:[%s2970_s11 + $0x868] sm:$0xff]  ;;  %1499 = vmatprep.subr.mxu0 %v584_v49  ;;  %v579_v55 = vld [vmem:[%s2970_s11 + $0x860] sm:$0xff] }
  0x96   : > { %v708_v54 = vld [vmem:[%s2970_s11 + $0xc68] sm:$0xff]  ;;  %1570 = vmatprep.subr.mxu1 %v712_v50  ;;  %v707_v56 = vld [vmem:[%s2970_s11 + $0xc60] sm:$0xff]  ;;  %1500 = vmatpush1.msra.mxu0 %v583_v51 }
  0x97   : > { %1571 = vmatpush1.msra.mxu1 %v711_v52  ;;  %v576_v57 = vld [vmem:[%s2970_s11 + $0x848] sm:$0xff]  ;;  %1501 = vmatprep.subr.mxu0 %v580_v53  ;;  %v575_v59 = vld [vmem:[%s2970_s11 + $0x840] sm:$0xff] }
  0x98   : > { %v704_v58 = vld [vmem:[%s2970_s11 + $0xc48] sm:$0xff]  ;;  %1572 = vmatprep.subr.mxu1 %v708_v54  ;;  %v703_v60 = vld [vmem:[%s2970_s11 + $0xc40] sm:$0xff]  ;;  %1502 = vmatpush1.msra.mxu0 %v579_v55 }
  0x99   : > { %1573 = vmatpush1.msra.mxu1 %v707_v56  ;;  %v572_v61 = vld [vmem:[%s2970_s11 + $0x828] sm:$0xff]  ;;  %1503 = vmatprep.subr.mxu0 %v576_v57  ;;  %v571_v63 = vld [vmem:[%s2970_s11 + $0x820] sm:$0xff] }
  0x9a   : > { %v700_v62 = vld [vmem:[%s2970_s11 + $0xc28] sm:$0xff]  ;;  %1574 = vmatprep.subr.mxu1 %v704_v58  ;;  %v699_v0 = vld [vmem:[%s2970_s11 + $0xc20] sm:$0xff]  ;;  %1504 = vmatpush1.msra.mxu0 %v575_v59 }
  0x9b   : > { %1575 = vmatpush1.msra.mxu1 %v703_v60  ;;  %v568_v1 = vld [vmem:[%s2970_s11 + $0x808] sm:$0xff]  ;;  %1505 = vmatprep.subr.mxu0 %v572_v61  ;;  %v567_v3 = vld [vmem:[%s2970_s11 + $0x800] sm:$0xff] }
  0x9c   : > { %v696_v2 = vld [vmem:[%s2970_s11 + $0xc08] sm:$0xff]  ;;  %1576 = vmatprep.subr.mxu1 %v700_v62  ;;  %v695_v4 = vld [vmem:[%s2970_s11 + $0xc00] sm:$0xff]  ;;  %1506 = vmatpush1.msra.mxu0 %v571_v63 }
  0x9d   : > { %1577 = vmatpush1.msra.mxu1 %v699_v0  ;;  %v692_v5 = vld [vmem:[%s2970_s11 + $0xbe8] sm:$0xff]  ;;  %1507 = vmatprep.subr.mxu0 %v568_v1  ;;  %v691_v7 = vld [vmem:[%s2970_s11 + $0xbe0] sm:$0xff] }
  0x9e   : > { %v820_v6 = vld [vmem:[%s2970_s11 + $0xfe8] sm:$0xff]  ;;  %1578 = vmatprep.subr.mxu1 %v696_v2  ;;  %v819_v8 = vld [vmem:[%s2970_s11 + $0xfe0] sm:$0xff]  ;;  %1508 = vmatpush1.msra.mxu0 %v567_v3 }
  0x9f   : > { %1579 = vmatpush1.msra.mxu1 %v695_v4  ;;  %v688_v9 = vld [vmem:[%s2970_s11 + $0xbc8] sm:$0xff]  ;;  %1509 = vmatprep.subr.mxu0 %v692_v5  ;;  %v687_v11 = vld [vmem:[%s2970_s11 + $0xbc0] sm:$0xff] }
  0xa0   : > { %v816_v10 = vld [vmem:[%s2970_s11 + $0xfc8] sm:$0xff]  ;;  %1580 = vmatprep.subr.mxu1 %v820_v6  ;;  %v815_v12 = vld [vmem:[%s2970_s11 + $0xfc0] sm:$0xff]  ;;  %1510 = vmatpush2.msra.mxu0 %v691_v7  ;;  %v302_v7 = vld [vmem:[%s2983_s23 + $0x38] sm:$0xff] }
  0xa1   : > { %1581 = vmatpush2.msra.mxu1 %v819_v8  ;;  %v684_v13 = vld [vmem:[%s2970_s11 + $0xba8] sm:$0xff]  ;;  %1511 = vmatprep.subr.mxu0 %v688_v9  ;;  %v683_v15 = vld [vmem:[%s2970_s11 + $0xba0] sm:$0xff] }
  0xa2   : > { %v812_v14 = vld [vmem:[%s2970_s11 + $0xfa8] sm:$0xff]  ;;  %1582 = vmatprep.subr.mxu1 %v816_v10  ;;  %v811_v16 = vld [vmem:[%s2970_s11 + $0xfa0] sm:$0xff]  ;;  %1512 = vmatpush2.msra.mxu0 %v687_v11  ;;  %v301_v10 = vld [vmem:[%s2983_s23 + $0x30] sm:$0xff] }
  0xa3   : > { %1583 = vmatpush2.msra.mxu1 %v815_v12  ;;  %v680_v17 = vld [vmem:[%s2970_s11 + $0xb88] sm:$0xff]  ;;  %1513 = vmatprep.subr.mxu0 %v684_v13  ;;  %v679_v19 = vld [vmem:[%s2970_s11 + $0xb80] sm:$0xff] }
  0xa4   : > { %v808_v18 = vld [vmem:[%s2970_s11 + $0xf88] sm:$0xff]  ;;  %1584 = vmatprep.subr.mxu1 %v812_v14  ;;  %v807_v20 = vld [vmem:[%s2970_s11 + $0xf80] sm:$0xff]  ;;  %1514 = vmatpush2.msra.mxu0 %v683_v15 }
  0xa5   : > { %1585 = vmatpush2.msra.mxu1 %v811_v16  ;;  %v676_v21 = vld [vmem:[%s2970_s11 + $0xb68] sm:$0xff]  ;;  %1515 = vmatprep.subr.mxu0 %v680_v17  ;;  %v675_v23 = vld [vmem:[%s2970_s11 + $0xb60] sm:$0xff] }
  0xa6   : > { %v804_v22 = vld [vmem:[%s2970_s11 + $0xf68] sm:$0xff]  ;;  %1586 = vmatprep.subr.mxu1 %v808_v18  ;;  %v803_v24 = vld [vmem:[%s2970_s11 + $0xf60] sm:$0xff]  ;;  %1516 = vmatpush2.msra.mxu0 %v679_v19 }
  0xa7   : > { %1587 = vmatpush2.msra.mxu1 %v807_v20  ;;  %v672_v25 = vld [vmem:[%s2970_s11 + $0xb48] sm:$0xff]  ;;  %1517 = vmatprep.subr.mxu0 %v676_v21  ;;  %v671_v27 = vld [vmem:[%s2970_s11 + $0xb40] sm:$0xff] }
  0xa8   : > { %v800_v26 = vld [vmem:[%s2970_s11 + $0xf48] sm:$0xff]  ;;  %1588 = vmatprep.subr.mxu1 %v804_v22  ;;  %v799_v28 = vld [vmem:[%s2970_s11 + $0xf40] sm:$0xff]  ;;  %1518 = vmatpush2.msra.mxu0 %v675_v23 }
  0xa9   : > { %1589 = vmatpush2.msra.mxu1 %v803_v24  ;;  %v668_v29 = vld [vmem:[%s2970_s11 + $0xb28] sm:$0xff]  ;;  %1519 = vmatprep.subr.mxu0 %v672_v25  ;;  %v667_v31 = vld [vmem:[%s2970_s11 + $0xb20] sm:$0xff] }
  0xaa   : > { %v796_v30 = vld [vmem:[%s2970_s11 + $0xf28] sm:$0xff]  ;;  %1590 = vmatprep.subr.mxu1 %v800_v26  ;;  %v795_v32 = vld [vmem:[%s2970_s11 + $0xf20] sm:$0xff]  ;;  %1520 = vmatpush2.msra.mxu0 %v671_v27 }
  0xab   : > { %1591 = vmatpush2.msra.mxu1 %v799_v28  ;;  %v664_v33 = vld [vmem:[%s2970_s11 + $0xb08] sm:$0xff]  ;;  %1521 = vmatprep.subr.mxu0 %v668_v29  ;;  %v663_v35 = vld [vmem:[%s2970_s11 + $0xb00] sm:$0xff] }
  0xac   : > { %v792_v34 = vld [vmem:[%s2970_s11 + $0xf08] sm:$0xff]  ;;  %1592 = vmatprep.subr.mxu1 %v796_v30  ;;  %v791_v36 = vld [vmem:[%s2970_s11 + $0xf00] sm:$0xff]  ;;  %1522 = vmatpush2.msra.mxu0 %v667_v31 }
  0xad   : > { %1593 = vmatpush2.msra.mxu1 %v795_v32  ;;  %v660_v37 = vld [vmem:[%s2970_s11 + $0xae8] sm:$0xff]  ;;  %1523 = vmatprep.subr.mxu0 %v664_v33  ;;  %v659_v39 = vld [vmem:[%s2970_s11 + $0xae0] sm:$0xff] }
  0xae   : > { %v788_v38 = vld [vmem:[%s2970_s11 + $0xee8] sm:$0xff]  ;;  %1594 = vmatprep.subr.mxu1 %v792_v34  ;;  %v787_v40 = vld [vmem:[%s2970_s11 + $0xee0] sm:$0xff]  ;;  %1524 = vmatpush2.msra.mxu0 %v663_v35 }
  0xaf   : > { %1595 = vmatpush2.msra.mxu1 %v791_v36  ;;  %v656_v41 = vld [vmem:[%s2970_s11 + $0xac8] sm:$0xff]  ;;  %1525 = vmatprep.subr.mxu0 %v660_v37  ;;  %v655_v43 = vld [vmem:[%s2970_s11 + $0xac0] sm:$0xff] }
  0xb0   : > { %v784_v42 = vld [vmem:[%s2970_s11 + $0xec8] sm:$0xff]  ;;  %1596 = vmatprep.subr.mxu1 %v788_v38  ;;  %v783_v44 = vld [vmem:[%s2970_s11 + $0xec0] sm:$0xff]  ;;  %1526 = vmatpush2.msra.mxu0 %v659_v39 }
  0xb1   : > { %1597 = vmatpush2.msra.mxu1 %v787_v40  ;;  %v652_v45 = vld [vmem:[%s2970_s11 + $0xaa8] sm:$0xff]  ;;  %1527 = vmatprep.subr.mxu0 %v656_v41  ;;  %v651_v47 = vld [vmem:[%s2970_s11 + $0xaa0] sm:$0xff] }
  0xb2   : > { %v780_v46 = vld [vmem:[%s2970_s11 + $0xea8] sm:$0xff]  ;;  %1598 = vmatprep.subr.mxu1 %v784_v42  ;;  %v779_v48 = vld [vmem:[%s2970_s11 + $0xea0] sm:$0xff]  ;;  %1528 = vmatpush2.msra.mxu0 %v655_v43 }
  0xb3   : > { %1599 = vmatpush2.msra.mxu1 %v783_v44  ;;  %v648_v49 = vld [vmem:[%s2970_s11 + $0xa88] sm:$0xff]  ;;  %1529 = vmatprep.subr.mxu0 %v652_v45  ;;  %v647_v51 = vld [vmem:[%s2970_s11 + $0xa80] sm:$0xff] }
  0xb4   : > { %v776_v50 = vld [vmem:[%s2970_s11 + $0xe88] sm:$0xff]  ;;  %1600 = vmatprep.subr.mxu1 %v780_v46  ;;  %v775_v52 = vld [vmem:[%s2970_s11 + $0xe80] sm:$0xff]  ;;  %1530 = vmatpush2.msra.mxu0 %v651_v47 }
  0xb5   : > { %1601 = vmatpush2.msra.mxu1 %v779_v48  ;;  %v644_v53 = vld [vmem:[%s2970_s11 + $0xa68] sm:$0xff]  ;;  %1531 = vmatprep.subr.mxu0 %v648_v49  ;;  %v643_v55 = vld [vmem:[%s2970_s11 + $0xa60] sm:$0xff] }
  0xb6   : > { %v772_v54 = vld [vmem:[%s2970_s11 + $0xe68] sm:$0xff]  ;;  %1602 = vmatprep.subr.mxu1 %v776_v50  ;;  %v771_v56 = vld [vmem:[%s2970_s11 + $0xe60] sm:$0xff]  ;;  %1532 = vmatpush2.msra.mxu0 %v647_v51 }
  0xb7   : > { %1603 = vmatpush2.msra.mxu1 %v775_v52  ;;  %v640_v57 = vld [vmem:[%s2970_s11 + $0xa48] sm:$0xff]  ;;  %1533 = vmatprep.subr.mxu0 %v644_v53  ;;  %v639_v59 = vld [vmem:[%s2970_s11 + $0xa40] sm:$0xff] }
  0xb8   : > { %v768_v58 = vld [vmem:[%s2970_s11 + $0xe48] sm:$0xff]  ;;  %1604 = vmatprep.subr.mxu1 %v772_v54  ;;  %v767_v60 = vld [vmem:[%s2970_s11 + $0xe40] sm:$0xff]  ;;  %1534 = vmatpush2.msra.mxu0 %v643_v55 }
  0xb9   : > { %1605 = vmatpush2.msra.mxu1 %v771_v56  ;;  %v636_v61 = vld [vmem:[%s2970_s11 + $0xa28] sm:$0xff]  ;;  %1535 = vmatprep.subr.mxu0 %v640_v57  ;;  %v635_v63 = vld [vmem:[%s2970_s11 + $0xa20] sm:$0xff] }
  0xba   : > { %v764_v62 = vld [vmem:[%s2970_s11 + $0xe28] sm:$0xff]  ;;  %1606 = vmatprep.subr.mxu1 %v768_v58  ;;  %v763_v0 = vld [vmem:[%s2970_s11 + $0xe20] sm:$0xff]  ;;  %1536 = vmatpush2.msra.mxu0 %v639_v59 }
  0xbb   : > { %1607 = vmatpush2.msra.mxu1 %v767_v60  ;;  %v632_v1 = vld [vmem:[%s2970_s11 + $0xa08] sm:$0xff]  ;;  %1537 = vmatprep.subr.mxu0 %v636_v61  ;;  %v631_v3 = vld [vmem:[%s2970_s11 + $0xa00] sm:$0xff] }
  0xbc   : > { %v760_v2 = vld [vmem:[%s2970_s11 + $0xe08] sm:$0xff]  ;;  %1608 = vmatprep.subr.mxu1 %v764_v62  ;;  %1538 = vmatpush2.msra.mxu0 %v635_v63  ;;  %v759_v5 = vld [vmem:[%s2970_s11 + $0xe00] sm:$0xff] }
  0xbd   : > { %v300_v4 = vld [vmem:[%s2983_s23 + $0x28] sm:$0xff]  ;;  %1609 = vmatpush2.msra.mxu1 %v763_v0  ;;  %v299_v6 = vld [vmem:[%s2983_s23 + $0x20] sm:$0xff]  ;;  %1539 = vmatprep.subr.mxu0 %v632_v1 }
  0xbe   : > { %1610 = vmatprep.subr.mxu1 %v760_v2  ;;  %v884_v8 = vld [vmem:[%s2970_s11 + $0x11e8] sm:$0xff]  ;;  %1540 = vmatpush2.msra.mxu0 %v631_v3  ;;  %v883_v11 = vld [vmem:[%s2970_s11 + $0x11e0] sm:$0xff] }
  0xbf   : > { %1541 = vmatprep.mubr.f32.mxu0 %v300_v4  ;;  %v1012_v9 = vld [vmem:[%s2970_s11 + $0x15e8] sm:$0xff]  ;;  %1611 = vmatpush2.msra.mxu1 %v759_v5  ;;  %v1011_v12 = vld [vmem:[%s2970_s11 + $0x15e0] sm:$0xff] }
  0xc0   : > { %1542 = vmatmul.mubr.f32.vlgmr.msra.gmra.mxu0 %v299_v6  ;;  %1612 = vmatprep.mubr.f32.mxu1 %v302_v7  ;;  %v880_v13 = vld [vmem:[%s2970_s11 + $0x11c8] sm:$0xff]  ;;  %v879_v15 = vld [vmem:[%s2970_s11 + $0x11c0] sm:$0xff] }
  0xc1   : > { %1619 = vmatprep.subr.mxu0 %v884_v8  ;;  %v1008_v14 = vld [vmem:[%s2970_s11 + $0x15c8] sm:$0xff]  ;;  %1690 = vmatprep.subr.mxu1 %v1012_v9  ;;  %v1007_v16 = vld [vmem:[%s2970_s11 + $0x15c0] sm:$0xff] }
  0xc2   : > { %1613 = vmatmul.mubr.f32.vlgmr.msra.gmra.mxu1 %v301_v10  ;;  %1620 = vmatpush1.msra.mxu0 %v883_v11  ;;  %v876_v17 = vld [vmem:[%s2970_s11 + $0x11a8] sm:$0xff]  ;;  %v875_v19 = vld [vmem:[%s2970_s11 + $0x11a0] sm:$0xff] }
  0xc3   : > { %1691 = vmatpush1.msra.mxu1 %v1011_v12  ;;  %v1004_v18 = vld [vmem:[%s2970_s11 + $0x15a8] sm:$0xff]  ;;  %1621 = vmatprep.subr.mxu0 %v880_v13  ;;  %v1003_v20 = vld [vmem:[%s2970_s11 + $0x15a0] sm:$0xff] }
  0xc4   : > { %1692 = vmatprep.subr.mxu1 %v1008_v14  ;;  %1622 = vmatpush1.msra.mxu0 %v879_v15  ;;  %v872_v21 = vld [vmem:[%s2970_s11 + $0x1188] sm:$0xff]  ;;  %v871_v23 = vld [vmem:[%s2970_s11 + $0x1180] sm:$0xff] }
  0xc5   : > { %1693 = vmatpush1.msra.mxu1 %v1007_v16  ;;  %v1000_v22 = vld [vmem:[%s2970_s11 + $0x1588] sm:$0xff]  ;;  %1623 = vmatprep.subr.mxu0 %v876_v17  ;;  %v999_v24 = vld [vmem:[%s2970_s11 + $0x1580] sm:$0xff] }
  0xc6   : > { %1694 = vmatprep.subr.mxu1 %v1004_v18  ;;  %1624 = vmatpush1.msra.mxu0 %v875_v19  ;;  %v868_v25 = vld [vmem:[%s2970_s11 + $0x1168] sm:$0xff]  ;;  %v867_v27 = vld [vmem:[%s2970_s11 + $0x1160] sm:$0xff] }
  0xc7   : > { %1695 = vmatpush1.msra.mxu1 %v1003_v20  ;;  %v996_v26 = vld [vmem:[%s2970_s11 + $0x1568] sm:$0xff]  ;;  %1625 = vmatprep.subr.mxu0 %v872_v21  ;;  %v995_v28 = vld [vmem:[%s2970_s11 + $0x1560] sm:$0xff] }
  0xc8   : > { %1696 = vmatprep.subr.mxu1 %v1000_v22  ;;  %1626 = vmatpush1.msra.mxu0 %v871_v23  ;;  %v864_v29 = vld [vmem:[%s2970_s11 + $0x1148] sm:$0xff]  ;;  %v863_v31 = vld [vmem:[%s2970_s11 + $0x1140] sm:$0xff] }
  0xc9   : > { %1697 = vmatpush1.msra.mxu1 %v999_v24  ;;  %v992_v30 = vld [vmem:[%s2970_s11 + $0x1548] sm:$0xff]  ;;  %1627 = vmatprep.subr.mxu0 %v868_v25  ;;  %v991_v32 = vld [vmem:[%s2970_s11 + $0x1540] sm:$0xff] }
  0xca   : > { %1698 = vmatprep.subr.mxu1 %v996_v26  ;;  %1628 = vmatpush1.msra.mxu0 %v867_v27  ;;  %v860_v33 = vld [vmem:[%s2970_s11 + $0x1128] sm:$0xff]  ;;  %v859_v35 = vld [vmem:[%s2970_s11 + $0x1120] sm:$0xff] }
  0xcb   : > { %1699 = vmatpush1.msra.mxu1 %v995_v28  ;;  %v988_v34 = vld [vmem:[%s2970_s11 + $0x1528] sm:$0xff]  ;;  %1629 = vmatprep.subr.mxu0 %v864_v29  ;;  %v987_v36 = vld [vmem:[%s2970_s11 + $0x1520] sm:$0xff] }
  0xcc   : > { %1700 = vmatprep.subr.mxu1 %v992_v30  ;;  %1630 = vmatpush1.msra.mxu0 %v863_v31  ;;  %v856_v37 = vld [vmem:[%s2970_s11 + $0x1108] sm:$0xff]  ;;  %v855_v39 = vld [vmem:[%s2970_s11 + $0x1100] sm:$0xff] }
  0xcd   : > { %1701 = vmatpush1.msra.mxu1 %v991_v32  ;;  %v984_v38 = vld [vmem:[%s2970_s11 + $0x1508] sm:$0xff]  ;;  %1631 = vmatprep.subr.mxu0 %v860_v33  ;;  %v983_v40 = vld [vmem:[%s2970_s11 + $0x1500] sm:$0xff] }
  0xce   : > { %1702 = vmatprep.subr.mxu1 %v988_v34  ;;  %1632 = vmatpush1.msra.mxu0 %v859_v35  ;;  %v852_v41 = vld [vmem:[%s2970_s11 + $0x10e8] sm:$0xff]  ;;  %v851_v43 = vld [vmem:[%s2970_s11 + $0x10e0] sm:$0xff] }
  0xcf   : > { %1703 = vmatpush1.msra.mxu1 %v987_v36  ;;  %v980_v42 = vld [vmem:[%s2970_s11 + $0x14e8] sm:$0xff]  ;;  %1633 = vmatprep.subr.mxu0 %v856_v37  ;;  %v979_v44 = vld [vmem:[%s2970_s11 + $0x14e0] sm:$0xff] }
  0xd0   : > { %1704 = vmatprep.subr.mxu1 %v984_v38  ;;  %1634 = vmatpush1.msra.mxu0 %v855_v39  ;;  %v848_v45 = vld [vmem:[%s2970_s11 + $0x10c8] sm:$0xff]  ;;  %v847_v47 = vld [vmem:[%s2970_s11 + $0x10c0] sm:$0xff] }
  0xd1   : > { %1705 = vmatpush1.msra.mxu1 %v983_v40  ;;  %v976_v46 = vld [vmem:[%s2970_s11 + $0x14c8] sm:$0xff]  ;;  %1635 = vmatprep.subr.mxu0 %v852_v41  ;;  %v975_v48 = vld [vmem:[%s2970_s11 + $0x14c0] sm:$0xff] }
  0xd2   : > { %1706 = vmatprep.subr.mxu1 %v980_v42  ;;  %1636 = vmatpush1.msra.mxu0 %v851_v43  ;;  %v844_v49 = vld [vmem:[%s2970_s11 + $0x10a8] sm:$0xff]  ;;  %v843_v51 = vld [vmem:[%s2970_s11 + $0x10a0] sm:$0xff] }
  0xd3   : > { %1707 = vmatpush1.msra.mxu1 %v979_v44  ;;  %v972_v50 = vld [vmem:[%s2970_s11 + $0x14a8] sm:$0xff]  ;;  %1637 = vmatprep.subr.mxu0 %v848_v45  ;;  %v971_v52 = vld [vmem:[%s2970_s11 + $0x14a0] sm:$0xff] }
  0xd4   : > { %1708 = vmatprep.subr.mxu1 %v976_v46  ;;  %1638 = vmatpush1.msra.mxu0 %v847_v47  ;;  %v840_v53 = vld [vmem:[%s2970_s11 + $0x1088] sm:$0xff]  ;;  %v839_v55 = vld [vmem:[%s2970_s11 + $0x1080] sm:$0xff] }
  0xd5   : > { %1709 = vmatpush1.msra.mxu1 %v975_v48  ;;  %v968_v54 = vld [vmem:[%s2970_s11 + $0x1488] sm:$0xff]  ;;  %1639 = vmatprep.subr.mxu0 %v844_v49  ;;  %v967_v56 = vld [vmem:[%s2970_s11 + $0x1480] sm:$0xff] }
  0xd6   : > { %1710 = vmatprep.subr.mxu1 %v972_v50  ;;  %1640 = vmatpush1.msra.mxu0 %v843_v51  ;;  %v836_v57 = vld [vmem:[%s2970_s11 + $0x1068] sm:$0xff]  ;;  %v835_v59 = vld [vmem:[%s2970_s11 + $0x1060] sm:$0xff] }
  0xd7   : > { %1711 = vmatpush1.msra.mxu1 %v971_v52  ;;  %v964_v58 = vld [vmem:[%s2970_s11 + $0x1468] sm:$0xff]  ;;  %1641 = vmatprep.subr.mxu0 %v840_v53  ;;  %v963_v60 = vld [vmem:[%s2970_s11 + $0x1460] sm:$0xff] }
  0xd8   : > { %1712 = vmatprep.subr.mxu1 %v968_v54  ;;  %1642 = vmatpush1.msra.mxu0 %v839_v55  ;;  %v832_v61 = vld [vmem:[%s2970_s11 + $0x1048] sm:$0xff]  ;;  %v831_v63 = vld [vmem:[%s2970_s11 + $0x1040] sm:$0xff] }
  0xd9   : > { %1713 = vmatpush1.msra.mxu1 %v967_v56  ;;  %v960_v62 = vld [vmem:[%s2970_s11 + $0x1448] sm:$0xff]  ;;  %1643 = vmatprep.subr.mxu0 %v836_v57  ;;  %v959_v0 = vld [vmem:[%s2970_s11 + $0x1440] sm:$0xff] }
  0xda   : > { %1714 = vmatprep.subr.mxu1 %v964_v58  ;;  %1644 = vmatpush1.msra.mxu0 %v835_v59  ;;  %v828_v1 = vld [vmem:[%s2970_s11 + $0x1028] sm:$0xff]  ;;  %v827_v3 = vld [vmem:[%s2970_s11 + $0x1020] sm:$0xff] }
  0xdb   : > { %1715 = vmatpush1.msra.mxu1 %v963_v60  ;;  %v956_v2 = vld [vmem:[%s2970_s11 + $0x1428] sm:$0xff]  ;;  %1645 = vmatprep.subr.mxu0 %v832_v61  ;;  %v955_v4 = vld [vmem:[%s2970_s11 + $0x1420] sm:$0xff] }
  0xdc   : > { %1716 = vmatprep.subr.mxu1 %v960_v62  ;;  %1646 = vmatpush1.msra.mxu0 %v831_v63  ;;  %v824_v5 = vld [vmem:[%s2970_s11 + $0x1008] sm:$0xff]  ;;  %v823_v7 = vld [vmem:[%s2970_s11 + $0x1000] sm:$0xff] }
  0xdd   : > { %1717 = vmatpush1.msra.mxu1 %v959_v0  ;;  %v952_v6 = vld [vmem:[%s2970_s11 + $0x1408] sm:$0xff]  ;;  %1647 = vmatprep.subr.mxu0 %v828_v1  ;;  %v951_v8 = vld [vmem:[%s2970_s11 + $0x1400] sm:$0xff] }
  0xde   : > { %1718 = vmatprep.subr.mxu1 %v956_v2  ;;  %1648 = vmatpush1.msra.mxu0 %v827_v3  ;;  %v948_v9 = vld [vmem:[%s2970_s11 + $0x13e8] sm:$0xff]  ;;  %v947_v11 = vld [vmem:[%s2970_s11 + $0x13e0] sm:$0xff] }
  0xdf   : > { %1719 = vmatpush1.msra.mxu1 %v955_v4  ;;  %v1076_v10 = vld [vmem:[%s2970_s11 + $0x17e8] sm:$0xff]  ;;  %1649 = vmatprep.subr.mxu0 %v824_v5  ;;  %v1075_v12 = vld [vmem:[%s2970_s11 + $0x17e0] sm:$0xff] }
  0xe0   : > { %1720 = vmatprep.subr.mxu1 %v952_v6  ;;  %1650 = vmatpush1.msra.mxu0 %v823_v7  ;;  %v944_v13 = vld [vmem:[%s2970_s11 + $0x13c8] sm:$0xff]  ;;  %v943_v15 = vld [vmem:[%s2970_s11 + $0x13c0] sm:$0xff] }
  0xe1   : > { %1721 = vmatpush1.msra.mxu1 %v951_v8  ;;  %v1072_v14 = vld [vmem:[%s2970_s11 + $0x17c8] sm:$0xff]  ;;  %1651 = vmatprep.subr.mxu0 %v948_v9  ;;  %v1071_v16 = vld [vmem:[%s2970_s11 + $0x17c0] sm:$0xff] }
  0xe2   : > { %1722 = vmatprep.subr.mxu1 %v1076_v10  ;;  %1652 = vmatpush2.msra.mxu0 %v947_v11  ;;  %v940_v17 = vld [vmem:[%s2970_s11 + $0x13a8] sm:$0xff]  ;;  %v939_v19 = vld [vmem:[%s2970_s11 + $0x13a0] sm:$0xff]  ;;  %v306_v11 = vld [vmem:[%s2983_s23 + $0x58] sm:$0xff] }
  0xe3   : > { %1723 = vmatpush2.msra.mxu1 %v1075_v12  ;;  %v1068_v18 = vld [vmem:[%s2970_s11 + $0x17a8] sm:$0xff]  ;;  %1653 = vmatprep.subr.mxu0 %v944_v13  ;;  %v1067_v20 = vld [vmem:[%s2970_s11 + $0x17a0] sm:$0xff] }
  0xe4   : > { %1724 = vmatprep.subr.mxu1 %v1072_v14  ;;  %1654 = vmatpush2.msra.mxu0 %v943_v15  ;;  %v936_v21 = vld [vmem:[%s2970_s11 + $0x1388] sm:$0xff]  ;;  %v935_v23 = vld [vmem:[%s2970_s11 + $0x1380] sm:$0xff]  ;;  %v305_v14 = vld [vmem:[%s2983_s23 + $0x50] sm:$0xff] }
  0xe5   : > { %1725 = vmatpush2.msra.mxu1 %v1071_v16  ;;  %v1064_v22 = vld [vmem:[%s2970_s11 + $0x1788] sm:$0xff]  ;;  %1655 = vmatprep.subr.mxu0 %v940_v17  ;;  %v1063_v24 = vld [vmem:[%s2970_s11 + $0x1780] sm:$0xff] }
  0xe6   : > { %1726 = vmatprep.subr.mxu1 %v1068_v18  ;;  %1656 = vmatpush2.msra.mxu0 %v939_v19  ;;  %v932_v25 = vld [vmem:[%s2970_s11 + $0x1368] sm:$0xff]  ;;  %v931_v27 = vld [vmem:[%s2970_s11 + $0x1360] sm:$0xff] }
  0xe7   : > { %1727 = vmatpush2.msra.mxu1 %v1067_v20  ;;  %v1060_v26 = vld [vmem:[%s2970_s11 + $0x1768] sm:$0xff]  ;;  %1657 = vmatprep.subr.mxu0 %v936_v21  ;;  %v1059_v28 = vld [vmem:[%s2970_s11 + $0x1760] sm:$0xff] }
  0xe8   : > { %1728 = vmatprep.subr.mxu1 %v1064_v22  ;;  %1658 = vmatpush2.msra.mxu0 %v935_v23  ;;  %v928_v29 = vld [vmem:[%s2970_s11 + $0x1348] sm:$0xff]  ;;  %v927_v31 = vld [vmem:[%s2970_s11 + $0x1340] sm:$0xff] }
  0xe9   : > { %1729 = vmatpush2.msra.mxu1 %v1063_v24  ;;  %v1056_v30 = vld [vmem:[%s2970_s11 + $0x1748] sm:$0xff]  ;;  %1659 = vmatprep.subr.mxu0 %v932_v25  ;;  %v1055_v32 = vld [vmem:[%s2970_s11 + $0x1740] sm:$0xff] }
  0xea   : > { %1730 = vmatprep.subr.mxu1 %v1060_v26  ;;  %1660 = vmatpush2.msra.mxu0 %v931_v27  ;;  %v924_v33 = vld [vmem:[%s2970_s11 + $0x1328] sm:$0xff]  ;;  %v923_v35 = vld [vmem:[%s2970_s11 + $0x1320] sm:$0xff] }
  0xeb   : > { %1731 = vmatpush2.msra.mxu1 %v1059_v28  ;;  %v1052_v34 = vld [vmem:[%s2970_s11 + $0x1728] sm:$0xff]  ;;  %1661 = vmatprep.subr.mxu0 %v928_v29  ;;  %v1051_v36 = vld [vmem:[%s2970_s11 + $0x1720] sm:$0xff] }
  0xec   : > { %1732 = vmatprep.subr.mxu1 %v1056_v30  ;;  %1662 = vmatpush2.msra.mxu0 %v927_v31  ;;  %v920_v37 = vld [vmem:[%s2970_s11 + $0x1308] sm:$0xff]  ;;  %v919_v39 = vld [vmem:[%s2970_s11 + $0x1300] sm:$0xff] }
  0xed   : > { %1733 = vmatpush2.msra.mxu1 %v1055_v32  ;;  %v1048_v38 = vld [vmem:[%s2970_s11 + $0x1708] sm:$0xff]  ;;  %1663 = vmatprep.subr.mxu0 %v924_v33  ;;  %v1047_v40 = vld [vmem:[%s2970_s11 + $0x1700] sm:$0xff] }
  0xee   : > { %1734 = vmatprep.subr.mxu1 %v1052_v34  ;;  %1664 = vmatpush2.msra.mxu0 %v923_v35  ;;  %v916_v41 = vld [vmem:[%s2970_s11 + $0x12e8] sm:$0xff]  ;;  %v915_v43 = vld [vmem:[%s2970_s11 + $0x12e0] sm:$0xff] }
  0xef   : > { %1735 = vmatpush2.msra.mxu1 %v1051_v36  ;;  %v1044_v42 = vld [vmem:[%s2970_s11 + $0x16e8] sm:$0xff]  ;;  %1665 = vmatprep.subr.mxu0 %v920_v37  ;;  %v1043_v44 = vld [vmem:[%s2970_s11 + $0x16e0] sm:$0xff] }
  0xf0   : > { %1736 = vmatprep.subr.mxu1 %v1048_v38  ;;  %1666 = vmatpush2.msra.mxu0 %v919_v39  ;;  %v912_v45 = vld [vmem:[%s2970_s11 + $0x12c8] sm:$0xff]  ;;  %v911_v47 = vld [vmem:[%s2970_s11 + $0x12c0] sm:$0xff] }
  0xf1   : > { %1737 = vmatpush2.msra.mxu1 %v1047_v40  ;;  %v1040_v46 = vld [vmem:[%s2970_s11 + $0x16c8] sm:$0xff]  ;;  %1667 = vmatprep.subr.mxu0 %v916_v41  ;;  %v1039_v48 = vld [vmem:[%s2970_s11 + $0x16c0] sm:$0xff] }
  0xf2   : > { %1738 = vmatprep.subr.mxu1 %v1044_v42  ;;  %1668 = vmatpush2.msra.mxu0 %v915_v43  ;;  %v908_v49 = vld [vmem:[%s2970_s11 + $0x12a8] sm:$0xff]  ;;  %v907_v51 = vld [vmem:[%s2970_s11 + $0x12a0] sm:$0xff] }
  0xf3   : > { %1739 = vmatpush2.msra.mxu1 %v1043_v44  ;;  %v1036_v50 = vld [vmem:[%s2970_s11 + $0x16a8] sm:$0xff]  ;;  %1669 = vmatprep.subr.mxu0 %v912_v45  ;;  %v1035_v52 = vld [vmem:[%s2970_s11 + $0x16a0] sm:$0xff] }
  0xf4   : > { %1740 = vmatprep.subr.mxu1 %v1040_v46  ;;  %1670 = vmatpush2.msra.mxu0 %v911_v47  ;;  %v904_v53 = vld [vmem:[%s2970_s11 + $0x1288] sm:$0xff]  ;;  %v903_v55 = vld [vmem:[%s2970_s11 + $0x1280] sm:$0xff] }
  0xf5   : > { %1741 = vmatpush2.msra.mxu1 %v1039_v48  ;;  %v1032_v54 = vld [vmem:[%s2970_s11 + $0x1688] sm:$0xff]  ;;  %1671 = vmatprep.subr.mxu0 %v908_v49  ;;  %v1031_v56 = vld [vmem:[%s2970_s11 + $0x1680] sm:$0xff] }
  0xf6   : > { %1742 = vmatprep.subr.mxu1 %v1036_v50  ;;  %1672 = vmatpush2.msra.mxu0 %v907_v51  ;;  %v900_v57 = vld [vmem:[%s2970_s11 + $0x1268] sm:$0xff]  ;;  %v899_v59 = vld [vmem:[%s2970_s11 + $0x1260] sm:$0xff] }
  0xf7   : > { %1743 = vmatpush2.msra.mxu1 %v1035_v52  ;;  %v1028_v58 = vld [vmem:[%s2970_s11 + $0x1668] sm:$0xff]  ;;  %1673 = vmatprep.subr.mxu0 %v904_v53  ;;  %v1027_v60 = vld [vmem:[%s2970_s11 + $0x1660] sm:$0xff] }
  0xf8   : > { %1744 = vmatprep.subr.mxu1 %v1032_v54  ;;  %1674 = vmatpush2.msra.mxu0 %v903_v55  ;;  %v896_v61 = vld [vmem:[%s2970_s11 + $0x1248] sm:$0xff]  ;;  %v895_v63 = vld [vmem:[%s2970_s11 + $0x1240] sm:$0xff] }
  0xf9   : > { %1745 = vmatpush2.msra.mxu1 %v1031_v56  ;;  %v1024_v62 = vld [vmem:[%s2970_s11 + $0x1648] sm:$0xff]  ;;  %1675 = vmatprep.subr.mxu0 %v900_v57  ;;  %v1023_v0 = vld [vmem:[%s2970_s11 + $0x1640] sm:$0xff] }
  0xfa   : > { %1746 = vmatprep.subr.mxu1 %v1028_v58  ;;  %1676 = vmatpush2.msra.mxu0 %v899_v59  ;;  %v892_v1 = vld [vmem:[%s2970_s11 + $0x1228] sm:$0xff]  ;;  %v891_v3 = vld [vmem:[%s2970_s11 + $0x1220] sm:$0xff] }
  0xfb   : > { %1747 = vmatpush2.msra.mxu1 %v1027_v60  ;;  %v1020_v2 = vld [vmem:[%s2970_s11 + $0x1628] sm:$0xff]  ;;  %1677 = vmatprep.subr.mxu0 %v896_v61  ;;  %v1019_v4 = vld [vmem:[%s2970_s11 + $0x1620] sm:$0xff] }
  0xfc   : > { %1748 = vmatprep.subr.mxu1 %v1024_v62  ;;  %1678 = vmatpush2.msra.mxu0 %v895_v63  ;;  %v888_v5 = vld [vmem:[%s2970_s11 + $0x1208] sm:$0xff]  ;;  %v887_v7 = vld [vmem:[%s2970_s11 + $0x1200] sm:$0xff] }
  0xfd   : > { %1749 = vmatpush2.msra.mxu1 %v1023_v0  ;;  %v1016_v6 = vld [vmem:[%s2970_s11 + $0x1608] sm:$0xff]  ;;  %1679 = vmatprep.subr.mxu0 %v892_v1  ;;  %v1015_v9 = vld [vmem:[%s2970_s11 + $0x1600] sm:$0xff] }
  0xfe   : > { %1750 = vmatprep.subr.mxu1 %v1020_v2  ;;  %v304_v8 = vld [vmem:[%s2983_s23 + $0x48] sm:$0xff]  ;;  %1680 = vmatpush2.msra.mxu0 %v891_v3  ;;  %v303_v10 = vld [vmem:[%s2983_s23 + $0x40] sm:$0xff] }
  0xff   : > { %1751 = vmatpush2.msra.mxu1 %v1019_v4  ;;  %1681 = vmatprep.subr.mxu0 %v888_v5  ;;  %v1140_v12 = vld [vmem:[%s2970_s11 + $0x19e8] sm:$0xff]  ;;  %v1139_v15 = vld [vmem:[%s2970_s11 + $0x19e0] sm:$0xff] }
 0x100   : > { %1752 = vmatprep.subr.mxu1 %v1016_v6  ;;  %1682 = vmatpush2.msra.mxu0 %v887_v7  ;;  %v1268_v13 = vld [vmem:[%s2970_s11 + $0x1de8] sm:$0xff]  ;;  %v1267_v16 = vld [vmem:[%s2970_s11 + $0x1de0] sm:$0xff] }
 0x101   : > { %1683 = vmatprep.mubr.f32.mxu0 %v304_v8  ;;  %1753 = vmatpush2.msra.mxu1 %v1015_v9  ;;  %v1136_v17 = vld [vmem:[%s2970_s11 + $0x19c8] sm:$0xff]  ;;  %v1135_v19 = vld [vmem:[%s2970_s11 + $0x19c0] sm:$0xff] }
 0x102   : > { %1684 = vmatmul.mubr.f32.vlgmr.msra.gmra.mxu0 %v303_v10  ;;  %1754 = vmatprep.mubr.f32.mxu1 %v306_v11  ;;  %v1264_v18 = vld [vmem:[%s2970_s11 + $0x1dc8] sm:$0xff]  ;;  %v1263_v20 = vld [vmem:[%s2970_s11 + $0x1dc0] sm:$0xff] }
 0x103   : > { %1761 = vmatprep.subr.mxu0 %v1140_v12  ;;  %1832 = vmatprep.subr.mxu1 %v1268_v13  ;;  %v1132_v21 = vld [vmem:[%s2970_s11 + $0x19a8] sm:$0xff]  ;;  %v1131_v23 = vld [vmem:[%s2970_s11 + $0x19a0] sm:$0xff] }
 0x104   : > { %1755 = vmatmul.mubr.f32.vlgmr.msra.gmra.mxu1 %v305_v14  ;;  %1762 = vmatpush1.msra.mxu0 %v1139_v15  ;;  %v1260_v22 = vld [vmem:[%s2970_s11 + $0x1da8] sm:$0xff]  ;;  %v1259_v24 = vld [vmem:[%s2970_s11 + $0x1da0] sm:$0xff] }
 0x105   : > { %1833 = vmatpush1.msra.mxu1 %v1267_v16  ;;  %1763 = vmatprep.subr.mxu0 %v1136_v17  ;;  %v1128_v25 = vld [vmem:[%s2970_s11 + $0x1988] sm:$0xff]  ;;  %v1127_v27 = vld [vmem:[%s2970_s11 + $0x1980] sm:$0xff] }
 0x106   : > { %1834 = vmatprep.subr.mxu1 %v1264_v18  ;;  %1764 = vmatpush1.msra.mxu0 %v1135_v19  ;;  %v1256_v26 = vld [vmem:[%s2970_s11 + $0x1d88] sm:$0xff]  ;;  %v1255_v28 = vld [vmem:[%s2970_s11 + $0x1d80] sm:$0xff] }
 0x107   : > { %1835 = vmatpush1.msra.mxu1 %v1263_v20  ;;  %1765 = vmatprep.subr.mxu0 %v1132_v21  ;;  %v1124_v29 = vld [vmem:[%s2970_s11 + $0x1968] sm:$0xff]  ;;  %v1123_v31 = vld [vmem:[%s2970_s11 + $0x1960] sm:$0xff] }
 0x108   : > { %1836 = vmatprep.subr.mxu1 %v1260_v22  ;;  %1766 = vmatpush1.msra.mxu0 %v1131_v23  ;;  %v1252_v30 = vld [vmem:[%s2970_s11 + $0x1d68] sm:$0xff]  ;;  %v1251_v32 = vld [vmem:[%s2970_s11 + $0x1d60] sm:$0xff] }
 0x109   : > { %1837 = vmatpush1.msra.mxu1 %v1259_v24  ;;  %1767 = vmatprep.subr.mxu0 %v1128_v25  ;;  %v1120_v33 = vld [vmem:[%s2970_s11 + $0x1948] sm:$0xff]  ;;  %v1119_v35 = vld [vmem:[%s2970_s11 + $0x1940] sm:$0xff] }
 0x10a   : > { %1838 = vmatprep.subr.mxu1 %v1256_v26  ;;  %1768 = vmatpush1.msra.mxu0 %v1127_v27  ;;  %v1248_v34 = vld [vmem:[%s2970_s11 + $0x1d48] sm:$0xff]  ;;  %v1247_v36 = vld [vmem:[%s2970_s11 + $0x1d40] sm:$0xff] }
 0x10b   : > { %1839 = vmatpush1.msra.mxu1 %v1255_v28  ;;  %1769 = vmatprep.subr.mxu0 %v1124_v29  ;;  %v1116_v37 = vld [vmem:[%s2970_s11 + $0x1928] sm:$0xff]  ;;  %v1115_v39 = vld [vmem:[%s2970_s11 + $0x1920] sm:$0xff] }
 0x10c   : > { %1840 = vmatprep.subr.mxu1 %v1252_v30  ;;  %1770 = vmatpush1.msra.mxu0 %v1123_v31  ;;  %v1244_v38 = vld [vmem:[%s2970_s11 + $0x1d28] sm:$0xff]  ;;  %v1243_v40 = vld [vmem:[%s2970_s11 + $0x1d20] sm:$0xff] }
 0x10d   : > { %1841 = vmatpush1.msra.mxu1 %v1251_v32  ;;  %1771 = vmatprep.subr.mxu0 %v1120_v33  ;;  %v1112_v41 = vld [vmem:[%s2970_s11 + $0x1908] sm:$0xff]  ;;  %v1111_v43 = vld [vmem:[%s2970_s11 + $0x1900] sm:$0xff] }
 0x10e   : > { %1842 = vmatprep.subr.mxu1 %v1248_v34  ;;  %1772 = vmatpush1.msra.mxu0 %v1119_v35  ;;  %v1240_v42 = vld [vmem:[%s2970_s11 + $0x1d08] sm:$0xff]  ;;  %v1239_v44 = vld [vmem:[%s2970_s11 + $0x1d00] sm:$0xff] }
 0x10f   : > { %1843 = vmatpush1.msra.mxu1 %v1247_v36  ;;  %1773 = vmatprep.subr.mxu0 %v1116_v37  ;;  %v1108_v45 = vld [vmem:[%s2970_s11 + $0x18e8] sm:$0xff]  ;;  %v1107_v47 = vld [vmem:[%s2970_s11 + $0x18e0] sm:$0xff] }
 0x110   : > { %1844 = vmatprep.subr.mxu1 %v1244_v38  ;;  %1774 = vmatpush1.msra.mxu0 %v1115_v39  ;;  %v1236_v46 = vld [vmem:[%s2970_s11 + $0x1ce8] sm:$0xff]  ;;  %v1235_v48 = vld [vmem:[%s2970_s11 + $0x1ce0] sm:$0xff] }
 0x111   : > { %1845 = vmatpush1.msra.mxu1 %v1243_v40  ;;  %1775 = vmatprep.subr.mxu0 %v1112_v41  ;;  %v1104_v49 = vld [vmem:[%s2970_s11 + $0x18c8] sm:$0xff]  ;;  %v1103_v51 = vld [vmem:[%s2970_s11 + $0x18c0] sm:$0xff] }
 0x112   : > { %1846 = vmatprep.subr.mxu1 %v1240_v42  ;;  %1776 = vmatpush1.msra.mxu0 %v1111_v43  ;;  %v1232_v50 = vld [vmem:[%s2970_s11 + $0x1cc8] sm:$0xff]  ;;  %v1231_v52 = vld [vmem:[%s2970_s11 + $0x1cc0] sm:$0xff] }
 0x113   : > { %1847 = vmatpush1.msra.mxu1 %v1239_v44  ;;  %1777 = vmatprep.subr.mxu0 %v1108_v45  ;;  %v1100_v53 = vld [vmem:[%s2970_s11 + $0x18a8] sm:$0xff]  ;;  %v1099_v55 = vld [vmem:[%s2970_s11 + $0x18a0] sm:$0xff] }
 0x114   : > { %1848 = vmatprep.subr.mxu1 %v1236_v46  ;;  %1778 = vmatpush1.msra.mxu0 %v1107_v47  ;;  %v1228_v54 = vld [vmem:[%s2970_s11 + $0x1ca8] sm:$0xff]  ;;  %v1227_v56 = vld [vmem:[%s2970_s11 + $0x1ca0] sm:$0xff] }
 0x115   : > { %1849 = vmatpush1.msra.mxu1 %v1235_v48  ;;  %1779 = vmatprep.subr.mxu0 %v1104_v49  ;;  %v1096_v57 = vld [vmem:[%s2970_s11 + $0x1888] sm:$0xff]  ;;  %v1095_v59 = vld [vmem:[%s2970_s11 + $0x1880] sm:$0xff] }
 0x116   : > { %1850 = vmatprep.subr.mxu1 %v1232_v50  ;;  %1780 = vmatpush1.msra.mxu0 %v1103_v51  ;;  %v1224_v58 = vld [vmem:[%s2970_s11 + $0x1c88] sm:$0xff]  ;;  %v1223_v60 = vld [vmem:[%s2970_s11 + $0x1c80] sm:$0xff] }
 0x117   : > { %1851 = vmatpush1.msra.mxu1 %v1231_v52  ;;  %1781 = vmatprep.subr.mxu0 %v1100_v53  ;;  %v1092_v61 = vld [vmem:[%s2970_s11 + $0x1868] sm:$0xff]  ;;  %v1091_v63 = vld [vmem:[%s2970_s11 + $0x1860] sm:$0xff] }
 0x118   : > { %1852 = vmatprep.subr.mxu1 %v1228_v54  ;;  %1782 = vmatpush1.msra.mxu0 %v1099_v55  ;;  %v1220_v62 = vld [vmem:[%s2970_s11 + $0x1c68] sm:$0xff]  ;;  %v1219_v0 = vld [vmem:[%s2970_s11 + $0x1c60] sm:$0xff] }
 0x119   : > { %1853 = vmatpush1.msra.mxu1 %v1227_v56  ;;  %1783 = vmatprep.subr.mxu0 %v1096_v57  ;;  %v1088_v1 = vld [vmem:[%s2970_s11 + $0x1848] sm:$0xff]  ;;  %v1087_v3 = vld [vmem:[%s2970_s11 + $0x1840] sm:$0xff] }
 0x11a   : > { %1854 = vmatprep.subr.mxu1 %v1224_v58  ;;  %1784 = vmatpush1.msra.mxu0 %v1095_v59  ;;  %v1216_v2 = vld [vmem:[%s2970_s11 + $0x1c48] sm:$0xff]  ;;  %v1215_v4 = vld [vmem:[%s2970_s11 + $0x1c40] sm:$0xff] }
 0x11b   : > { %1855 = vmatpush1.msra.mxu1 %v1223_v60  ;;  %1785 = vmatprep.subr.mxu0 %v1092_v61  ;;  %v1084_v5 = vld [vmem:[%s2970_s11 + $0x1828] sm:$0xff]  ;;  %v1083_v7 = vld [vmem:[%s2970_s11 + $0x1820] sm:$0xff] }
 0x11c   : > { %1856 = vmatprep.subr.mxu1 %v1220_v62  ;;  %1786 = vmatpush1.msra.mxu0 %v1091_v63  ;;  %v1212_v6 = vld [vmem:[%s2970_s11 + $0x1c28] sm:$0xff]  ;;  %v1211_v8 = vld [vmem:[%s2970_s11 + $0x1c20] sm:$0xff] }
 0x11d   : > { %1857 = vmatpush1.msra.mxu1 %v1219_v0  ;;  %1787 = vmatprep.subr.mxu0 %v1088_v1  ;;  %v1080_v9 = vld [vmem:[%s2970_s11 + $0x1808] sm:$0xff]  ;;  %v1079_v11 = vld [vmem:[%s2970_s11 + $0x1800] sm:$0xff] }
 0x11e   : > { %1858 = vmatprep.subr.mxu1 %v1216_v2  ;;  %1788 = vmatpush1.msra.mxu0 %v1087_v3  ;;  %v1208_v10 = vld [vmem:[%s2970_s11 + $0x1c08] sm:$0xff]  ;;  %v1207_v12 = vld [vmem:[%s2970_s11 + $0x1c00] sm:$0xff] }
 0x11f   : > { %1859 = vmatpush1.msra.mxu1 %v1215_v4  ;;  %1789 = vmatprep.subr.mxu0 %v1084_v5  ;;  %v1204_v13 = vld [vmem:[%s2970_s11 + $0x1be8] sm:$0xff]  ;;  %v1203_v15 = vld [vmem:[%s2970_s11 + $0x1be0] sm:$0xff] }
 0x120   : > { %1860 = vmatprep.subr.mxu1 %v1212_v6  ;;  %1790 = vmatpush1.msra.mxu0 %v1083_v7  ;;  %v1332_v14 = vld [vmem:[%s2970_s11 + $0x1fe8] sm:$0xff]  ;;  %v1331_v16 = vld [vmem:[%s2970_s11 + $0x1fe0] sm:$0xff] }
 0x121   : > { %1861 = vmatpush1.msra.mxu1 %v1211_v8  ;;  %1791 = vmatprep.subr.mxu0 %v1080_v9  ;;  %v1200_v17 = vld [vmem:[%s2970_s11 + $0x1bc8] sm:$0xff]  ;;  %v1199_v19 = vld [vmem:[%s2970_s11 + $0x1bc0] sm:$0xff] }
 0x122   : > { %1862 = vmatprep.subr.mxu1 %v1208_v10  ;;  %1792 = vmatpush1.msra.mxu0 %v1079_v11  ;;  %v1328_v18 = vld [vmem:[%s2970_s11 + $0x1fc8] sm:$0xff]  ;;  %v1327_v20 = vld [vmem:[%s2970_s11 + $0x1fc0] sm:$0xff] }
 0x123   : > { %1863 = vmatpush1.msra.mxu1 %v1207_v12  ;;  %1793 = vmatprep.subr.mxu0 %v1204_v13  ;;  %v1196_v21 = vld [vmem:[%s2970_s11 + $0x1ba8] sm:$0xff]  ;;  %v1195_v23 = vld [vmem:[%s2970_s11 + $0x1ba0] sm:$0xff] }
 0x124   : > { %1864 = vmatprep.subr.mxu1 %v1332_v14  ;;  %1794 = vmatpush2.msra.mxu0 %v1203_v15  ;;  %v1324_v22 = vld [vmem:[%s2970_s11 + $0x1fa8] sm:$0xff]  ;;  %v1323_v24 = vld [vmem:[%s2970_s11 + $0x1fa0] sm:$0xff]  ;;  %v310_v15 = vld [vmem:[%s2983_s23 + $0x78] sm:$0xff] }
 0x125   : > { %1865 = vmatpush2.msra.mxu1 %v1331_v16  ;;  %1795 = vmatprep.subr.mxu0 %v1200_v17  ;;  %v1192_v25 = vld [vmem:[%s2970_s11 + $0x1b88] sm:$0xff]  ;;  %v1191_v27 = vld [vmem:[%s2970_s11 + $0x1b80] sm:$0xff]  ;;  %v374_v16 = vld [vmem:[%s2970_s11 + $0x1f8] sm:$0xff] }
 0x126   : > { %1866 = vmatprep.subr.mxu1 %v1328_v18  ;;  %1796 = vmatpush2.msra.mxu0 %v1199_v19  ;;  %v1320_v26 = vld [vmem:[%s2970_s11 + $0x1f88] sm:$0xff]  ;;  %v1319_v28 = vld [vmem:[%s2970_s11 + $0x1f80] sm:$0xff]  ;;  %v502_v17 = vld [vmem:[%s2970_s11 + $0x5f8] sm:$0xff] }
 0x127   : > { %1867 = vmatpush2.msra.mxu1 %v1327_v20  ;;  %1797 = vmatprep.subr.mxu0 %v1196_v21  ;;  %v1188_v29 = vld [vmem:[%s2970_s11 + $0x1b68] sm:$0xff]  ;;  %v1187_v31 = vld [vmem:[%s2970_s11 + $0x1b60] sm:$0xff]  ;;  %v309_v18 = vld [vmem:[%s2983_s23 + $0x70] sm:$0xff] }
 0x128   : > { %1868 = vmatprep.subr.mxu1 %v1324_v22  ;;  %1798 = vmatpush2.msra.mxu0 %v1195_v23  ;;  %v1316_v30 = vld [vmem:[%s2970_s11 + $0x1f68] sm:$0xff]  ;;  %v1315_v32 = vld [vmem:[%s2970_s11 + $0x1f60] sm:$0xff]  ;;  %v373_v19 = vld [vmem:[%s2970_s11 + $0x1f0] sm:$0xff] }
 0x129   : > { %1869 = vmatpush2.msra.mxu1 %v1323_v24  ;;  %1799 = vmatprep.subr.mxu0 %v1192_v25  ;;  %v1184_v33 = vld [vmem:[%s2970_s11 + $0x1b48] sm:$0xff]  ;;  %v1183_v35 = vld [vmem:[%s2970_s11 + $0x1b40] sm:$0xff]  ;;  %v501_v20 = vld [vmem:[%s2970_s11 + $0x5f0] sm:$0xff] }
 0x12a   : > { %1870 = vmatprep.subr.mxu1 %v1320_v26  ;;  %1800 = vmatpush2.msra.mxu0 %v1191_v27  ;;  %v1312_v34 = vld [vmem:[%s2970_s11 + $0x1f48] sm:$0xff]  ;;  %v1311_v36 = vld [vmem:[%s2970_s11 + $0x1f40] sm:$0xff]  ;;  %v370_v21 = vld [vmem:[%s2970_s11 + $0x1d8] sm:$0xff] }
 0x12b   : > { %1871 = vmatpush2.msra.mxu1 %v1319_v28  ;;  %1801 = vmatprep.subr.mxu0 %v1188_v29  ;;  %v1180_v37 = vld [vmem:[%s2970_s11 + $0x1b28] sm:$0xff]  ;;  %v1179_v39 = vld [vmem:[%s2970_s11 + $0x1b20] sm:$0xff]  ;;  %v498_v22 = vld [vmem:[%s2970_s11 + $0x5d8] sm:$0xff] }
 0x12c   : > { %1872 = vmatprep.subr.mxu1 %v1316_v30  ;;  %1802 = vmatpush2.msra.mxu0 %v1187_v31  ;;  %v1308_v38 = vld [vmem:[%s2970_s11 + $0x1f28] sm:$0xff]  ;;  %v1307_v40 = vld [vmem:[%s2970_s11 + $0x1f20] sm:$0xff]  ;;  %v369_v23 = vld [vmem:[%s2970_s11 + $0x1d0] sm:$0xff] }
 0x12d   : > { %1873 = vmatpush2.msra.mxu1 %v1315_v32  ;;  %1803 = vmatprep.subr.mxu0 %v1184_v33  ;;  %v1176_v41 = vld [vmem:[%s2970_s11 + $0x1b08] sm:$0xff]  ;;  %v1175_v43 = vld [vmem:[%s2970_s11 + $0x1b00] sm:$0xff]  ;;  %v497_v24 = vld [vmem:[%s2970_s11 + $0x5d0] sm:$0xff] }
 0x12e   : > { %1874 = vmatprep.subr.mxu1 %v1312_v34  ;;  %1804 = vmatpush2.msra.mxu0 %v1183_v35  ;;  %v1304_v42 = vld [vmem:[%s2970_s11 + $0x1f08] sm:$0xff]  ;;  %v1303_v44 = vld [vmem:[%s2970_s11 + $0x1f00] sm:$0xff]  ;;  %v366_v25 = vld [vmem:[%s2970_s11 + $0x1b8] sm:$0xff] }
 0x12f   : > { %1875 = vmatpush2.msra.mxu1 %v1311_v36  ;;  %1805 = vmatprep.subr.mxu0 %v1180_v37  ;;  %v1172_v45 = vld [vmem:[%s2970_s11 + $0x1ae8] sm:$0xff]  ;;  %v1171_v47 = vld [vmem:[%s2970_s11 + $0x1ae0] sm:$0xff]  ;;  %v494_v26 = vld [vmem:[%s2970_s11 + $0x5b8] sm:$0xff] }
 0x130   : > { %1876 = vmatprep.subr.mxu1 %v1308_v38  ;;  %1806 = vmatpush2.msra.mxu0 %v1179_v39  ;;  %v1300_v46 = vld [vmem:[%s2970_s11 + $0x1ee8] sm:$0xff]  ;;  %v1299_v48 = vld [vmem:[%s2970_s11 + $0x1ee0] sm:$0xff]  ;;  %v365_v27 = vld [vmem:[%s2970_s11 + $0x1b0] sm:$0xff] }
 0x131   : > { %1877 = vmatpush2.msra.mxu1 %v1307_v40  ;;  %1807 = vmatprep.subr.mxu0 %v1176_v41  ;;  %v1168_v49 = vld [vmem:[%s2970_s11 + $0x1ac8] sm:$0xff]  ;;  %v1167_v51 = vld [vmem:[%s2970_s11 + $0x1ac0] sm:$0xff]  ;;  %v493_v28 = vld [vmem:[%s2970_s11 + $0x5b0] sm:$0xff] }
 0x132   : > { %1878 = vmatprep.subr.mxu1 %v1304_v42  ;;  %1808 = vmatpush2.msra.mxu0 %v1175_v43  ;;  %v1296_v50 = vld [vmem:[%s2970_s11 + $0x1ec8] sm:$0xff]  ;;  %v1295_v52 = vld [vmem:[%s2970_s11 + $0x1ec0] sm:$0xff]  ;;  %v362_v29 = vld [vmem:[%s2970_s11 + $0x198] sm:$0xff] }
 0x133   : > { %1879 = vmatpush2.msra.mxu1 %v1303_v44  ;;  %1809 = vmatprep.subr.mxu0 %v1172_v45  ;;  %v1164_v53 = vld [vmem:[%s2970_s11 + $0x1aa8] sm:$0xff]  ;;  %v1163_v55 = vld [vmem:[%s2970_s11 + $0x1aa0] sm:$0xff]  ;;  %v490_v30 = vld [vmem:[%s2970_s11 + $0x598] sm:$0xff] }
 0x134   : > { %1880 = vmatprep.subr.mxu1 %v1300_v46  ;;  %1810 = vmatpush2.msra.mxu0 %v1171_v47  ;;  %v1292_v54 = vld [vmem:[%s2970_s11 + $0x1ea8] sm:$0xff]  ;;  %v1291_v56 = vld [vmem:[%s2970_s11 + $0x1ea0] sm:$0xff]  ;;  %v361_v31 = vld [vmem:[%s2970_s11 + $0x190] sm:$0xff] }
 0x135   : > { %1881 = vmatpush2.msra.mxu1 %v1299_v48  ;;  %1811 = vmatprep.subr.mxu0 %v1168_v49  ;;  %v1160_v57 = vld [vmem:[%s2970_s11 + $0x1a88] sm:$0xff]  ;;  %v1159_v59 = vld [vmem:[%s2970_s11 + $0x1a80] sm:$0xff]  ;;  %v489_v32 = vld [vmem:[%s2970_s11 + $0x590] sm:$0xff] }
 0x136   : > { %1882 = vmatprep.subr.mxu1 %v1296_v50  ;;  %1812 = vmatpush2.msra.mxu0 %v1167_v51  ;;  %v1288_v58 = vld [vmem:[%s2970_s11 + $0x1e88] sm:$0xff]  ;;  %v1287_v60 = vld [vmem:[%s2970_s11 + $0x1e80] sm:$0xff]  ;;  %v358_v33 = vld [vmem:[%s2970_s11 + $0x178] sm:$0xff] }
 0x137   : > { %1883 = vmatpush2.msra.mxu1 %v1295_v52  ;;  %1813 = vmatprep.subr.mxu0 %v1164_v53  ;;  %v1156_v61 = vld [vmem:[%s2970_s11 + $0x1a68] sm:$0xff]  ;;  %v1155_v63 = vld [vmem:[%s2970_s11 + $0x1a60] sm:$0xff]  ;;  %v486_v34 = vld [vmem:[%s2970_s11 + $0x578] sm:$0xff] }
 0x138   : > { %1884 = vmatprep.subr.mxu1 %v1292_v54  ;;  %1814 = vmatpush2.msra.mxu0 %v1163_v55  ;;  %v1284_v62 = vld [vmem:[%s2970_s11 + $0x1e68] sm:$0xff]  ;;  %v1283_v0 = vld [vmem:[%s2970_s11 + $0x1e60] sm:$0xff]  ;;  %v357_v35 = vld [vmem:[%s2970_s11 + $0x170] sm:$0xff] }
 0x139   : > { %1885 = vmatpush2.msra.mxu1 %v1291_v56  ;;  %1815 = vmatprep.subr.mxu0 %v1160_v57  ;;  %v1152_v1 = vld [vmem:[%s2970_s11 + $0x1a48] sm:$0xff]  ;;  %v1151_v3 = vld [vmem:[%s2970_s11 + $0x1a40] sm:$0xff]  ;;  %v485_v36 = vld [vmem:[%s2970_s11 + $0x570] sm:$0xff] }
 0x13a   : > { %1886 = vmatprep.subr.mxu1 %v1288_v58  ;;  %1816 = vmatpush2.msra.mxu0 %v1159_v59  ;;  %v1280_v2 = vld [vmem:[%s2970_s11 + $0x1e48] sm:$0xff]  ;;  %v1279_v4 = vld [vmem:[%s2970_s11 + $0x1e40] sm:$0xff]  ;;  %v354_v37 = vld [vmem:[%s2970_s11 + $0x158] sm:$0xff] }
 0x13b   : > { %1887 = vmatpush2.msra.mxu1 %v1287_v60  ;;  %1817 = vmatprep.subr.mxu0 %v1156_v61  ;;  %v1148_v5 = vld [vmem:[%s2970_s11 + $0x1a28] sm:$0xff]  ;;  %v1147_v7 = vld [vmem:[%s2970_s11 + $0x1a20] sm:$0xff]  ;;  %v482_v38 = vld [vmem:[%s2970_s11 + $0x558] sm:$0xff] }
 0x13c   : > { %1888 = vmatprep.subr.mxu1 %v1284_v62  ;;  %1818 = vmatpush2.msra.mxu0 %v1155_v63  ;;  %v1276_v6 = vld [vmem:[%s2970_s11 + $0x1e28] sm:$0xff]  ;;  %v1275_v8 = vld [vmem:[%s2970_s11 + $0x1e20] sm:$0xff]  ;;  %v353_v39 = vld [vmem:[%s2970_s11 + $0x150] sm:$0xff] }
 0x13d   : > { %1889 = vmatpush2.msra.mxu1 %v1283_v0  ;;  %1819 = vmatprep.subr.mxu0 %v1152_v1  ;;  %v1144_v9 = vld [vmem:[%s2970_s11 + $0x1a08] sm:$0xff]  ;;  %v1143_v11 = vld [vmem:[%s2970_s11 + $0x1a00] sm:$0xff]  ;;  %v481_v40 = vld [vmem:[%s2970_s11 + $0x550] sm:$0xff] }
 0x13e   : > { %1890 = vmatprep.subr.mxu1 %v1280_v2  ;;  %1820 = vmatpush2.msra.mxu0 %v1151_v3  ;;  %v1272_v10 = vld [vmem:[%s2970_s11 + $0x1e08] sm:$0xff]  ;;  %v1271_v13 = vld [vmem:[%s2970_s11 + $0x1e00] sm:$0xff]  ;;  %v350_v41 = vld [vmem:[%s2970_s11 + $0x138] sm:$0xff] }
 0x13f   : > { %1891 = vmatpush2.msra.mxu1 %v1279_v4  ;;  %1821 = vmatprep.subr.mxu0 %v1148_v5  ;;  %v308_v12 = vld [vmem:[%s2983_s23 + $0x68] sm:$0xff]  ;;  %v307_v14 = vld [vmem:[%s2983_s23 + $0x60] sm:$0xff]  ;;  %v478_v42 = vld [vmem:[%s2970_s11 + $0x538] sm:$0xff] }
 0x140   : > { %1892 = vmatprep.subr.mxu1 %v1276_v6  ;;  %1822 = vmatpush2.msra.mxu0 %v1147_v7  ;;  %v349_v43 = vld [vmem:[%s2970_s11 + $0x130] sm:$0xff]  ;;  %v346_v45 = vld [vmem:[%s2970_s11 + $0x118] sm:$0xff] }
 0x141   : > { %1893 = vmatpush2.msra.mxu1 %v1275_v8  ;;  %1823 = vmatprep.subr.mxu0 %v1144_v9  ;;  %v477_v44 = vld [vmem:[%s2970_s11 + $0x530] sm:$0xff]  ;;  %v474_v46 = vld [vmem:[%s2970_s11 + $0x518] sm:$0xff] }
 0x142   : > { %1894 = vmatprep.subr.mxu1 %v1272_v10  ;;  %1824 = vmatpush2.msra.mxu0 %v1143_v11  ;;  %v345_v47 = vld [vmem:[%s2970_s11 + $0x110] sm:$0xff]  ;;  %v342_v49 = vld [vmem:[%s2970_s11 + $0xf8] sm:$0xff] }
 0x143   : > { %1825 = vmatprep.mubr.f32.mxu0 %v308_v12  ;;  %1895 = vmatpush2.msra.mxu1 %v1271_v13  ;;  %v473_v48 = vld [vmem:[%s2970_s11 + $0x510] sm:$0xff]  ;;  %v470_v50 = vld [vmem:[%s2970_s11 + $0x4f8] sm:$0xff] }
 0x144   : > { %1826 = vmatmul.mubr.f32.vlgmr.msra.gmra.mxu0 %v307_v14  ;;  %1896 = vmatprep.mubr.f32.mxu1 %v310_v15  ;;  %v341_v51 = vld [vmem:[%s2970_s11 + $0xf0] sm:$0xff]  ;;  %v338_v53 = vld [vmem:[%s2970_s11 + $0xd8] sm:$0xff] }
 0x145   : > { %1903 = vmatprep.subr.mxu0 %v374_v16  ;;  %1974 = vmatprep.subr.mxu1 %v502_v17  ;;  %v469_v52 = vld [vmem:[%s2970_s11 + $0x4f0] sm:$0xff]  ;;  %v466_v54 = vld [vmem:[%s2970_s11 + $0x4d8] sm:$0xff] }
 0x146   : > { %1897 = vmatmul.mubr.f32.vlgmr.msra.gmra.mxu1 %v309_v18  ;;  %1904 = vmatpush1.msra.mxu0 %v373_v19  ;;  %v337_v55 = vld [vmem:[%s2970_s11 + $0xd0] sm:$0xff]  ;;  %v334_v57 = vld [vmem:[%s2970_s11 + $0xb8] sm:$0xff] }
 0x147   : > { %1975 = vmatpush1.msra.mxu1 %v501_v20  ;;  %1905 = vmatprep.subr.mxu0 %v370_v21  ;;  %v465_v56 = vld [vmem:[%s2970_s11 + $0x4d0] sm:$0xff]  ;;  %v462_v58 = vld [vmem:[%s2970_s11 + $0x4b8] sm:$0xff] }
 0x148   : > { %1976 = vmatprep.subr.mxu1 %v498_v22  ;;  %1906 = vmatpush1.msra.mxu0 %v369_v23  ;;  %v333_v59 = vld [vmem:[%s2970_s11 + $0xb0] sm:$0xff]  ;;  %v330_v61 = vld [vmem:[%s2970_s11 + $0x98] sm:$0xff] }
 0x149   : > { %1977 = vmatpush1.msra.mxu1 %v497_v24  ;;  %1907 = vmatprep.subr.mxu0 %v366_v25  ;;  %v461_v60 = vld [vmem:[%s2970_s11 + $0x4b0] sm:$0xff]  ;;  %v458_v62 = vld [vmem:[%s2970_s11 + $0x498] sm:$0xff] }
 0x14a   : > { %1978 = vmatprep.subr.mxu1 %v494_v26  ;;  %1908 = vmatpush1.msra.mxu0 %v365_v27  ;;  %v329_v63 = vld [vmem:[%s2970_s11 + $0x90] sm:$0xff]  ;;  %v326_v1 = vld [vmem:[%s2970_s11 + $0x78] sm:$0xff] }
 0x14b   : > { %1979 = vmatpush1.msra.mxu1 %v493_v28  ;;  %1909 = vmatprep.subr.mxu0 %v362_v29  ;;  %v457_v0 = vld [vmem:[%s2970_s11 + $0x490] sm:$0xff]  ;;  %v454_v2 = vld [vmem:[%s2970_s11 + $0x478] sm:$0xff] }
 0x14c   : > { %1980 = vmatprep.subr.mxu1 %v490_v30  ;;  %1910 = vmatpush1.msra.mxu0 %v361_v31  ;;  %v325_v3 = vld [vmem:[%s2970_s11 + $0x70] sm:$0xff]  ;;  %v322_v5 = vld [vmem:[%s2970_s11 + $0x58] sm:$0xff] }
 0x14d   : > { %1981 = vmatpush1.msra.mxu1 %v489_v32  ;;  %1911 = vmatprep.subr.mxu0 %v358_v33  ;;  %v453_v4 = vld [vmem:[%s2970_s11 + $0x470] sm:$0xff]  ;;  %v450_v6 = vld [vmem:[%s2970_s11 + $0x458] sm:$0xff] }
 0x14e   : > { %1982 = vmatprep.subr.mxu1 %v486_v34  ;;  %1912 = vmatpush1.msra.mxu0 %v357_v35  ;;  %v321_v7 = vld [vmem:[%s2970_s11 + $0x50] sm:$0xff]  ;;  %v318_v9 = vld [vmem:[%s2970_s11 + $0x38] sm:$0xff] }
 0x14f   : > { %1983 = vmatpush1.msra.mxu1 %v485_v36  ;;  %1913 = vmatprep.subr.mxu0 %v354_v37  ;;  %v449_v8 = vld [vmem:[%s2970_s11 + $0x450] sm:$0xff]  ;;  %v446_v10 = vld [vmem:[%s2970_s11 + $0x438] sm:$0xff] }
 0x150   : > { %1984 = vmatprep.subr.mxu1 %v482_v38  ;;  %1914 = vmatpush1.msra.mxu0 %v353_v39  ;;  %v317_v11 = vld [vmem:[%s2970_s11 + $0x30] sm:$0xff]  ;;  %v314_v13 = vld [vmem:[%s2970_s11 + $0x18] sm:$0xff] }
 0x151   : > { %1985 = vmatpush1.msra.mxu1 %v481_v40  ;;  %1915 = vmatprep.subr.mxu0 %v350_v41  ;;  %v445_v12 = vld [vmem:[%s2970_s11 + $0x430] sm:$0xff]  ;;  %v442_v14 = vld [vmem:[%s2970_s11 + $0x418] sm:$0xff] }
 0x152   : > { %1986 = vmatprep.subr.mxu1 %v478_v42  ;;  %1916 = vmatpush1.msra.mxu0 %v349_v43  ;;  %v313_v15 = vld [vmem:[%s2970_s11 + $0x10] sm:$0xff]  ;;  %v438_v17 = vld [vmem:[%s2970_s11 + $0x3f8] sm:$0xff] }
 0x153   : > { %1987 = vmatpush1.msra.mxu1 %v477_v44  ;;  %1917 = vmatprep.subr.mxu0 %v346_v45  ;;  %v441_v16 = vld [vmem:[%s2970_s11 + $0x410] sm:$0xff]  ;;  %v566_v18 = vld [vmem:[%s2970_s11 + $0x7f8] sm:$0xff] }
 0x154   : > { %1988 = vmatprep.subr.mxu1 %v474_v46  ;;  %1918 = vmatpush1.msra.mxu0 %v345_v47  ;;  %v437_v19 = vld [vmem:[%s2970_s11 + $0x3f0] sm:$0xff]  ;;  %v434_v21 = vld [vmem:[%s2970_s11 + $0x3d8] sm:$0xff] }
 0x155   : > { %1989 = vmatpush1.msra.mxu1 %v473_v48  ;;  %1919 = vmatprep.subr.mxu0 %v342_v49  ;;  %v565_v20 = vld [vmem:[%s2970_s11 + $0x7f0] sm:$0xff]  ;;  %v562_v22 = vld [vmem:[%s2970_s11 + $0x7d8] sm:$0xff] }
 0x156   : > { %1990 = vmatprep.subr.mxu1 %v470_v50  ;;  %1920 = vmatpush1.msra.mxu0 %v341_v51  ;;  %v433_v23 = vld [vmem:[%s2970_s11 + $0x3d0] sm:$0xff]  ;;  %v430_v25 = vld [vmem:[%s2970_s11 + $0x3b8] sm:$0xff] }
 0x157   : > { %1991 = vmatpush1.msra.mxu1 %v469_v52  ;;  %1921 = vmatprep.subr.mxu0 %v338_v53  ;;  %v561_v24 = vld [vmem:[%s2970_s11 + $0x7d0] sm:$0xff]  ;;  %v558_v26 = vld [vmem:[%s2970_s11 + $0x7b8] sm:$0xff] }
 0x158   : > { %1992 = vmatprep.subr.mxu1 %v466_v54  ;;  %1922 = vmatpush1.msra.mxu0 %v337_v55  ;;  %v429_v27 = vld [vmem:[%s2970_s11 + $0x3b0] sm:$0xff]  ;;  %v426_v29 = vld [vmem:[%s2970_s11 + $0x398] sm:$0xff] }
 0x159   : > { %1993 = vmatpush1.msra.mxu1 %v465_v56  ;;  %1923 = vmatprep.subr.mxu0 %v334_v57  ;;  %v557_v28 = vld [vmem:[%s2970_s11 + $0x7b0] sm:$0xff]  ;;  %v554_v30 = vld [vmem:[%s2970_s11 + $0x798] sm:$0xff] }
 0x15a   : > { %1994 = vmatprep.subr.mxu1 %v462_v58  ;;  %1924 = vmatpush1.msra.mxu0 %v333_v59  ;;  %v425_v31 = vld [vmem:[%s2970_s11 + $0x390] sm:$0xff]  ;;  %v422_v33 = vld [vmem:[%s2970_s11 + $0x378] sm:$0xff] }
 0x15b   : > { %1995 = vmatpush1.msra.mxu1 %v461_v60  ;;  %1925 = vmatprep.subr.mxu0 %v330_v61  ;;  %v553_v32 = vld [vmem:[%s2970_s11 + $0x790] sm:$0xff]  ;;  %v550_v34 = vld [vmem:[%s2970_s11 + $0x778] sm:$0xff] }
 0x15c   : > { %1996 = vmatprep.subr.mxu1 %v458_v62  ;;  %1926 = vmatpush1.msra.mxu0 %v329_v63  ;;  %v421_v35 = vld [vmem:[%s2970_s11 + $0x370] sm:$0xff]  ;;  %v418_v37 = vld [vmem:[%s2970_s11 + $0x358] sm:$0xff] }
 0x15d   : > { %1997 = vmatpush1.msra.mxu1 %v457_v0  ;;  %1927 = vmatprep.subr.mxu0 %v326_v1  ;;  %v549_v36 = vld [vmem:[%s2970_s11 + $0x770] sm:$0xff]  ;;  %v546_v38 = vld [vmem:[%s2970_s11 + $0x758] sm:$0xff] }
 0x15e   : > { %1998 = vmatprep.subr.mxu1 %v454_v2  ;;  %1928 = vmatpush1.msra.mxu0 %v325_v3  ;;  %v417_v39 = vld [vmem:[%s2970_s11 + $0x350] sm:$0xff]  ;;  %v414_v41 = vld [vmem:[%s2970_s11 + $0x338] sm:$0xff] }
 0x15f   : > { %1999 = vmatpush1.msra.mxu1 %v453_v4  ;;  %1929 = vmatprep.subr.mxu0 %v322_v5  ;;  %v545_v40 = vld [vmem:[%s2970_s11 + $0x750] sm:$0xff]  ;;  %v542_v42 = vld [vmem:[%s2970_s11 + $0x738] sm:$0xff] }
 0x160   : > { %2000 = vmatprep.subr.mxu1 %v450_v6  ;;  %1930 = vmatpush1.msra.mxu0 %v321_v7  ;;  %v413_v43 = vld [vmem:[%s2970_s11 + $0x330] sm:$0xff]  ;;  %v410_v45 = vld [vmem:[%s2970_s11 + $0x318] sm:$0xff] }
 0x161   : > { %2001 = vmatpush1.msra.mxu1 %v449_v8  ;;  %1931 = vmatprep.subr.mxu0 %v318_v9  ;;  %v541_v44 = vld [vmem:[%s2970_s11 + $0x730] sm:$0xff]  ;;  %v538_v46 = vld [vmem:[%s2970_s11 + $0x718] sm:$0xff] }
 0x162   : > { %2002 = vmatprep.subr.mxu1 %v446_v10  ;;  %1932 = vmatpush1.msra.mxu0 %v317_v11  ;;  %v409_v47 = vld [vmem:[%s2970_s11 + $0x310] sm:$0xff]  ;;  %v406_v49 = vld [vmem:[%s2970_s11 + $0x2f8] sm:$0xff] }
 0x163   : > { %2003 = vmatpush1.msra.mxu1 %v445_v12  ;;  %1933 = vmatprep.subr.mxu0 %v314_v13  ;;  %v537_v48 = vld [vmem:[%s2970_s11 + $0x710] sm:$0xff]  ;;  %v534_v50 = vld [vmem:[%s2970_s11 + $0x6f8] sm:$0xff] }
 0x164   : > { %2004 = vmatprep.subr.mxu1 %v442_v14  ;;  %1934 = vmatpush1.msra.mxu0 %v313_v15  ;;  %v405_v51 = vld [vmem:[%s2970_s11 + $0x2f0] sm:$0xff]  ;;  %v402_v53 = vld [vmem:[%s2970_s11 + $0x2d8] sm:$0xff] }
 0x165   : > { %2005 = vmatpush1.msra.mxu1 %v441_v16  ;;  %1935 = vmatprep.subr.mxu0 %v438_v17  ;;  %v533_v52 = vld [vmem:[%s2970_s11 + $0x6f0] sm:$0xff]  ;;  %v530_v54 = vld [vmem:[%s2970_s11 + $0x6d8] sm:$0xff]  ;;  %v2745_v17 = vld [vmem:[%s2983_s23 + $0x8] sm:$0xff] }
 0x166   : > { %2006 = vmatprep.subr.mxu1 %v566_v18  ;;  %1936 = vmatpush2.msra.mxu0 %v437_v19  ;;  %v401_v55 = vld [vmem:[%s2970_s11 + $0x2d0] sm:$0xff]  ;;  %v398_v57 = vld [vmem:[%s2970_s11 + $0x2b8] sm:$0xff] }
 0x167   : > { %2007 = vmatpush2.msra.mxu1 %v565_v20  ;;  %1937 = vmatprep.subr.mxu0 %v434_v21  ;;  %v529_v56 = vld [vmem:[%s2970_s11 + $0x6d0] sm:$0xff]  ;;  %v526_v58 = vld [vmem:[%s2970_s11 + $0x6b8] sm:$0xff] }
 0x168   : > { %2008 = vmatprep.subr.mxu1 %v562_v22  ;;  %1938 = vmatpush2.msra.mxu0 %v433_v23  ;;  %v397_v59 = vld [vmem:[%s2970_s11 + $0x2b0] sm:$0xff]  ;;  %v394_v61 = vld [vmem:[%s2970_s11 + $0x298] sm:$0xff]  ;;  %v2747_v23 = vld [vmem:[%s2983_s23] sm:$0xff] }
 0x169   : > { %2009 = vmatpush2.msra.mxu1 %v561_v24  ;;  %1939 = vmatprep.subr.mxu0 %v430_v25  ;;  %v525_v60 = vld [vmem:[%s2970_s11 + $0x6b0] sm:$0xff]  ;;  %v522_v62 = vld [vmem:[%s2970_s11 + $0x698] sm:$0xff] }
 0x16a   : > { %2010 = vmatprep.subr.mxu1 %v558_v26  ;;  %1940 = vmatpush2.msra.mxu0 %v429_v27  ;;  %v393_v63 = vld [vmem:[%s2970_s11 + $0x290] sm:$0xff]  ;;  %v390_v1 = vld [vmem:[%s2970_s11 + $0x278] sm:$0xff] }
 0x16b   : > { %2011 = vmatpush2.msra.mxu1 %v557_v28  ;;  %1941 = vmatprep.subr.mxu0 %v426_v29  ;;  %v521_v0 = vld [vmem:[%s2970_s11 + $0x690] sm:$0xff]  ;;  %v518_v2 = vld [vmem:[%s2970_s11 + $0x678] sm:$0xff] }
 0x16c   : > { %2012 = vmatprep.subr.mxu1 %v554_v30  ;;  %1942 = vmatpush2.msra.mxu0 %v425_v31  ;;  %v389_v3 = vld [vmem:[%s2970_s11 + $0x270] sm:$0xff]  ;;  %v386_v5 = vld [vmem:[%s2970_s11 + $0x258] sm:$0xff] }
 0x16d   : > { %2013 = vmatpush2.msra.mxu1 %v553_v32  ;;  %1943 = vmatprep.subr.mxu0 %v422_v33  ;;  %v517_v4 = vld [vmem:[%s2970_s11 + $0x670] sm:$0xff]  ;;  %v514_v6 = vld [vmem:[%s2970_s11 + $0x658] sm:$0xff] }
 0x16e   : > { %2014 = vmatprep.subr.mxu1 %v550_v34  ;;  %1944 = vmatpush2.msra.mxu0 %v421_v35  ;;  %v385_v7 = vld [vmem:[%s2970_s11 + $0x250] sm:$0xff]  ;;  %v382_v9 = vld [vmem:[%s2970_s11 + $0x238] sm:$0xff] }
 0x16f   : > { %2015 = vmatpush2.msra.mxu1 %v549_v36  ;;  %1945 = vmatprep.subr.mxu0 %v418_v37  ;;  %v513_v8 = vld [vmem:[%s2970_s11 + $0x650] sm:$0xff]  ;;  %v510_v10 = vld [vmem:[%s2970_s11 + $0x638] sm:$0xff] }
 0x170   : > { %2016 = vmatprep.subr.mxu1 %v546_v38  ;;  %1946 = vmatpush2.msra.mxu0 %v417_v39  ;;  %v381_v11 = vld [vmem:[%s2970_s11 + $0x230] sm:$0xff]  ;;  %v378_v13 = vld [vmem:[%s2970_s11 + $0x218] sm:$0xff] }
 0x171   : > { %2017 = vmatpush2.msra.mxu1 %v545_v40  ;;  %1947 = vmatprep.subr.mxu0 %v414_v41  ;;  %v509_v12 = vld [vmem:[%s2970_s11 + $0x630] sm:$0xff]  ;;  %v506_v14 = vld [vmem:[%s2970_s11 + $0x618] sm:$0xff] }
 0x172   : > { %2018 = vmatprep.subr.mxu1 %v542_v42  ;;  %1948 = vmatpush2.msra.mxu0 %v413_v43  ;;  %v377_v15 = vld [vmem:[%s2970_s11 + $0x210] sm:$0xff]  ;;  %v630_v18 = vld [vmem:[%s2970_s11 + $0x9f8] sm:$0xff] }
 0x173   : > { %2019 = vmatpush2.msra.mxu1 %v541_v44  ;;  %1949 = vmatprep.subr.mxu0 %v410_v45  ;;  %v505_v16 = vld [vmem:[%s2970_s11 + $0x610] sm:$0xff]  ;;  %v758_v19 = vld [vmem:[%s2970_s11 + $0xdf8] sm:$0xff] }
 0x174   : > { %2020 = vmatprep.subr.mxu1 %v538_v46  ;;  %1950 = vmatpush2.msra.mxu0 %v409_v47  ;;  %v2746_v20 = vld [vmem:[%s2983_s23 + $0x18] sm:$0xff]  ;;  %v629_v21 = vld [vmem:[%s2970_s11 + $0x9f0] sm:$0xff] }
 0x175   : > { %2021 = vmatpush2.msra.mxu1 %v537_v48  ;;  %1951 = vmatprep.subr.mxu0 %v406_v49  ;;  %v757_v22 = vld [vmem:[%s2970_s11 + $0xdf0] sm:$0xff]  ;;  %v626_v25 = vld [vmem:[%s2970_s11 + $0x9d8] sm:$0xff] }
 0x176   : > { %2022 = vmatprep.subr.mxu1 %v534_v50  ;;  %1952 = vmatpush2.msra.mxu0 %v405_v51  ;;  %v2748_v24 = vld [vmem:[%s2983_s23 + $0x10] sm:$0xff]  ;;  %v754_v26 = vld [vmem:[%s2970_s11 + $0xdd8] sm:$0xff] }
 0x177   : > { %2023 = vmatpush2.msra.mxu1 %v533_v52  ;;  %1953 = vmatprep.subr.mxu0 %v402_v53  ;;  %v625_v27 = vld [vmem:[%s2970_s11 + $0x9d0] sm:$0xff]  ;;  %v622_v29 = vld [vmem:[%s2970_s11 + $0x9b8] sm:$0xff] }
 0x178   : > { %2024 = vmatprep.subr.mxu1 %v530_v54  ;;  %1954 = vmatpush2.msra.mxu0 %v401_v55  ;;  %v753_v28 = vld [vmem:[%s2970_s11 + $0xdd0] sm:$0xff]  ;;  %v750_v30 = vld [vmem:[%s2970_s11 + $0xdb8] sm:$0xff] }
 0x179   : > { %2025 = vmatpush2.msra.mxu1 %v529_v56  ;;  %1955 = vmatprep.subr.mxu0 %v398_v57  ;;  %v621_v31 = vld [vmem:[%s2970_s11 + $0x9b0] sm:$0xff]  ;;  %v618_v33 = vld [vmem:[%s2970_s11 + $0x998] sm:$0xff] }
 0x17a   : > { %2026 = vmatprep.subr.mxu1 %v526_v58  ;;  %1956 = vmatpush2.msra.mxu0 %v397_v59  ;;  %v749_v32 = vld [vmem:[%s2970_s11 + $0xdb0] sm:$0xff]  ;;  %v746_v34 = vld [vmem:[%s2970_s11 + $0xd98] sm:$0xff] }
 0x17b   : > { %2027 = vmatpush2.msra.mxu1 %v525_v60  ;;  %1957 = vmatprep.subr.mxu0 %v394_v61  ;;  %v617_v35 = vld [vmem:[%s2970_s11 + $0x990] sm:$0xff]  ;;  %v614_v37 = vld [vmem:[%s2970_s11 + $0x978] sm:$0xff] }
 0x17c   : > { %2028 = vmatprep.subr.mxu1 %v522_v62  ;;  %1958 = vmatpush2.msra.mxu0 %v393_v63  ;;  %v745_v36 = vld [vmem:[%s2970_s11 + $0xd90] sm:$0xff]  ;;  %v742_v38 = vld [vmem:[%s2970_s11 + $0xd78] sm:$0xff] }
 0x17d   : > { %2029 = vmatpush2.msra.mxu1 %v521_v0  ;;  %1959 = vmatprep.subr.mxu0 %v390_v1  ;;  %v613_v39 = vld [vmem:[%s2970_s11 + $0x970] sm:$0xff]  ;;  %v610_v41 = vld [vmem:[%s2970_s11 + $0x958] sm:$0xff] }
 0x17e   : > { %2030 = vmatprep.subr.mxu1 %v518_v2  ;;  %1960 = vmatpush2.msra.mxu0 %v389_v3  ;;  %v741_v40 = vld [vmem:[%s2970_s11 + $0xd70] sm:$0xff]  ;;  %v738_v42 = vld [vmem:[%s2970_s11 + $0xd58] sm:$0xff] }
 0x17f   : > { %2031 = vmatpush2.msra.mxu1 %v517_v4  ;;  %1961 = vmatprep.subr.mxu0 %v386_v5  ;;  %v609_v43 = vld [vmem:[%s2970_s11 + $0x950] sm:$0xff]  ;;  %v606_v45 = vld [vmem:[%s2970_s11 + $0x938] sm:$0xff] }
 0x180   : > { %2032 = vmatprep.subr.mxu1 %v514_v6  ;;  %1962 = vmatpush2.msra.mxu0 %v385_v7  ;;  %v737_v44 = vld [vmem:[%s2970_s11 + $0xd50] sm:$0xff]  ;;  %v734_v46 = vld [vmem:[%s2970_s11 + $0xd38] sm:$0xff] }
 0x181   : > { %2033 = vmatpush2.msra.mxu1 %v513_v8  ;;  %1963 = vmatprep.subr.mxu0 %v382_v9  ;;  %v605_v47 = vld [vmem:[%s2970_s11 + $0x930] sm:$0xff]  ;;  %v602_v49 = vld [vmem:[%s2970_s11 + $0x918] sm:$0xff] }
 0x182   : > { %2034 = vmatprep.subr.mxu1 %v510_v10  ;;  %1964 = vmatpush2.msra.mxu0 %v381_v11  ;;  %v733_v48 = vld [vmem:[%s2970_s11 + $0xd30] sm:$0xff]  ;;  %v730_v50 = vld [vmem:[%s2970_s11 + $0xd18] sm:$0xff] }
 0x183   : > { %2035 = vmatpush2.msra.mxu1 %v509_v12  ;;  %1965 = vmatprep.subr.mxu0 %v378_v13  ;;  %v601_v51 = vld [vmem:[%s2970_s11 + $0x910] sm:$0xff]  ;;  %v598_v53 = vld [vmem:[%s2970_s11 + $0x8f8] sm:$0xff] }
 0x184   : > { %2036 = vmatprep.subr.mxu1 %v506_v14  ;;  %1966 = vmatpush2.msra.mxu0 %v377_v15  ;;  %v729_v52 = vld [vmem:[%s2970_s11 + $0xd10] sm:$0xff]  ;;  %v726_v54 = vld [vmem:[%s2970_s11 + $0xcf8] sm:$0xff] }
 0x185   : > { %1967 = vmatprep.mubr.f32.mxu0 %v2745_v17  ;;  %2037 = vmatpush2.msra.mxu1 %v505_v16  ;;  %v597_v55 = vld [vmem:[%s2970_s11 + $0x8f0] sm:$0xff]  ;;  %v594_v57 = vld [vmem:[%s2970_s11 + $0x8d8] sm:$0xff] }
 0x186   : > { %2038 = vmatprep.mubr.f32.mxu1 %v2746_v20  ;;  %1968 = vmatmul.mubr.f32.vlgmr.msra.gmra.mxu0 %v2747_v23  ;;  %v725_v56 = vld [vmem:[%s2970_s11 + $0xcf0] sm:$0xff]  ;;  %v722_v58 = vld [vmem:[%s2970_s11 + $0xcd8] sm:$0xff] }
 0x187   : > { %2039 = vmatmul.mubr.f32.vlgmr.msra.gmra.mxu1 %v2748_v24  ;;  %2045 = vmatprep.subr.mxu0 %v630_v18  ;;  %v593_v59 = vld [vmem:[%s2970_s11 + $0x8d0] sm:$0xff]  ;;  %v590_v61 = vld [vmem:[%s2970_s11 + $0x8b8] sm:$0xff] }
 0x188   : > { %2116 = vmatprep.subr.mxu1 %v758_v19  ;;  %2046 = vmatpush1.msra.mxu0 %v629_v21  ;;  %v721_v60 = vld [vmem:[%s2970_s11 + $0xcd0] sm:$0xff]  ;;  %v718_v62 = vld [vmem:[%s2970_s11 + $0xcb8] sm:$0xff] }
 0x189   : > { %2117 = vmatpush1.msra.mxu1 %v757_v22  ;;  %2047 = vmatprep.subr.mxu0 %v626_v25  ;;  %v589_v63 = vld [vmem:[%s2970_s11 + $0x8b0] sm:$0xff]  ;;  %v586_v1 = vld [vmem:[%s2970_s11 + $0x898] sm:$0xff] }
 0x18a   : > { %2118 = vmatprep.subr.mxu1 %v754_v26  ;;  %2048 = vmatpush1.msra.mxu0 %v625_v27  ;;  %v717_v0 = vld [vmem:[%s2970_s11 + $0xcb0] sm:$0xff]  ;;  %v714_v2 = vld [vmem:[%s2970_s11 + $0xc98] sm:$0xff] }
 0x18b   : > { %2119 = vmatpush1.msra.mxu1 %v753_v28  ;;  %2049 = vmatprep.subr.mxu0 %v622_v29  ;;  %v585_v3 = vld [vmem:[%s2970_s11 + $0x890] sm:$0xff]  ;;  %v582_v5 = vld [vmem:[%s2970_s11 + $0x878] sm:$0xff] }
 0x18c   : > { %2120 = vmatprep.subr.mxu1 %v750_v30  ;;  %2050 = vmatpush1.msra.mxu0 %v621_v31  ;;  %v713_v4 = vld [vmem:[%s2970_s11 + $0xc90] sm:$0xff]  ;;  %v710_v6 = vld [vmem:[%s2970_s11 + $0xc78] sm:$0xff] }
 0x18d   : > { %2121 = vmatpush1.msra.mxu1 %v749_v32  ;;  %2051 = vmatprep.subr.mxu0 %v618_v33  ;;  %v581_v7 = vld [vmem:[%s2970_s11 + $0x870] sm:$0xff]  ;;  %v578_v9 = vld [vmem:[%s2970_s11 + $0x858] sm:$0xff] }
 0x18e   : > { %2122 = vmatprep.subr.mxu1 %v746_v34  ;;  %2052 = vmatpush1.msra.mxu0 %v617_v35  ;;  %v709_v8 = vld [vmem:[%s2970_s11 + $0xc70] sm:$0xff]  ;;  %v706_v10 = vld [vmem:[%s2970_s11 + $0xc58] sm:$0xff] }
 0x18f   : > { %2123 = vmatpush1.msra.mxu1 %v745_v36  ;;  %2053 = vmatprep.subr.mxu0 %v614_v37  ;;  %v577_v11 = vld [vmem:[%s2970_s11 + $0x850] sm:$0xff]  ;;  %v574_v13 = vld [vmem:[%s2970_s11 + $0x838] sm:$0xff] }
 0x190   : > { %2124 = vmatprep.subr.mxu1 %v742_v38  ;;  %2054 = vmatpush1.msra.mxu0 %v613_v39  ;;  %v705_v12 = vld [vmem:[%s2970_s11 + $0xc50] sm:$0xff]  ;;  %v702_v14 = vld [vmem:[%s2970_s11 + $0xc38] sm:$0xff] }
 0x191   : > { %2125 = vmatpush1.msra.mxu1 %v741_v40  ;;  %2055 = vmatprep.subr.mxu0 %v610_v41  ;;  %v573_v15 = vld [vmem:[%s2970_s11 + $0x830] sm:$0xff]  ;;  %v570_v17 = vld [vmem:[%s2970_s11 + $0x818] sm:$0xff] }
 0x192   : > { %2126 = vmatprep.subr.mxu1 %v738_v42  ;;  %2056 = vmatpush1.msra.mxu0 %v609_v43  ;;  %v701_v16 = vld [vmem:[%s2970_s11 + $0xc30] sm:$0xff]  ;;  %v698_v18 = vld [vmem:[%s2970_s11 + $0xc18] sm:$0xff] }
 0x193   : > { %2127 = vmatpush1.msra.mxu1 %v737_v44  ;;  %2057 = vmatprep.subr.mxu0 %v606_v45  ;;  %v569_v19 = vld [vmem:[%s2970_s11 + $0x810] sm:$0xff]  ;;  %v694_v21 = vld [vmem:[%s2970_s11 + $0xbf8] sm:$0xff] }
 0x194   : > { %2128 = vmatprep.subr.mxu1 %v734_v46  ;;  %2058 = vmatpush1.msra.mxu0 %v605_v47  ;;  %v697_v20 = vld [vmem:[%s2970_s11 + $0xc10] sm:$0xff]  ;;  %v822_v22 = vld [vmem:[%s2970_s11 + $0xff8] sm:$0xff] }
 0x195   : > { %2129 = vmatpush1.msra.mxu1 %v733_v48  ;;  %2059 = vmatprep.subr.mxu0 %v602_v49  ;;  %v693_v23 = vld [vmem:[%s2970_s11 + $0xbf0] sm:$0xff]  ;;  %v690_v25 = vld [vmem:[%s2970_s11 + $0xbd8] sm:$0xff] }
 0x196   : > { %2130 = vmatprep.subr.mxu1 %v730_v50  ;;  %2060 = vmatpush1.msra.mxu0 %v601_v51  ;;  %v821_v24 = vld [vmem:[%s2970_s11 + $0xff0] sm:$0xff]  ;;  %v818_v26 = vld [vmem:[%s2970_s11 + $0xfd8] sm:$0xff] }
 0x197   : > { %2131 = vmatpush1.msra.mxu1 %v729_v52  ;;  %2061 = vmatprep.subr.mxu0 %v598_v53  ;;  %v689_v27 = vld [vmem:[%s2970_s11 + $0xbd0] sm:$0xff]  ;;  %v686_v29 = vld [vmem:[%s2970_s11 + $0xbb8] sm:$0xff] }
 0x198   : > { %2132 = vmatprep.subr.mxu1 %v726_v54  ;;  %2062 = vmatpush1.msra.mxu0 %v597_v55  ;;  %v817_v28 = vld [vmem:[%s2970_s11 + $0xfd0] sm:$0xff]  ;;  %v814_v30 = vld [vmem:[%s2970_s11 + $0xfb8] sm:$0xff] }
 0x199   : > { %2133 = vmatpush1.msra.mxu1 %v725_v56  ;;  %2063 = vmatprep.subr.mxu0 %v594_v57  ;;  %v685_v31 = vld [vmem:[%s2970_s11 + $0xbb0] sm:$0xff]  ;;  %v682_v33 = vld [vmem:[%s2970_s11 + $0xb98] sm:$0xff] }
 0x19a   : > { %2134 = vmatprep.subr.mxu1 %v722_v58  ;;  %2064 = vmatpush1.msra.mxu0 %v593_v59  ;;  %v813_v32 = vld [vmem:[%s2970_s11 + $0xfb0] sm:$0xff]  ;;  %v810_v34 = vld [vmem:[%s2970_s11 + $0xf98] sm:$0xff] }
 0x19b   : > { %2135 = vmatpush1.msra.mxu1 %v721_v60  ;;  %2065 = vmatprep.subr.mxu0 %v590_v61  ;;  %v681_v35 = vld [vmem:[%s2970_s11 + $0xb90] sm:$0xff]  ;;  %v678_v37 = vld [vmem:[%s2970_s11 + $0xb78] sm:$0xff] }
 0x19c   : > { %2136 = vmatprep.subr.mxu1 %v718_v62  ;;  %2066 = vmatpush1.msra.mxu0 %v589_v63  ;;  %v809_v36 = vld [vmem:[%s2970_s11 + $0xf90] sm:$0xff]  ;;  %v806_v38 = vld [vmem:[%s2970_s11 + $0xf78] sm:$0xff] }
 0x19d   : > { %2137 = vmatpush1.msra.mxu1 %v717_v0  ;;  %2067 = vmatprep.subr.mxu0 %v586_v1  ;;  %v677_v39 = vld [vmem:[%s2970_s11 + $0xb70] sm:$0xff]  ;;  %v674_v41 = vld [vmem:[%s2970_s11 + $0xb58] sm:$0xff] }
 0x19e   : > { %2138 = vmatprep.subr.mxu1 %v714_v2  ;;  %2068 = vmatpush1.msra.mxu0 %v585_v3  ;;  %v805_v40 = vld [vmem:[%s2970_s11 + $0xf70] sm:$0xff]  ;;  %v802_v42 = vld [vmem:[%s2970_s11 + $0xf58] sm:$0xff] }
 0x19f   : > { %2139 = vmatpush1.msra.mxu1 %v713_v4  ;;  %2069 = vmatprep.subr.mxu0 %v582_v5  ;;  %v673_v43 = vld [vmem:[%s2970_s11 + $0xb50] sm:$0xff]  ;;  %v670_v45 = vld [vmem:[%s2970_s11 + $0xb38] sm:$0xff] }
 0x1a0   : > { %2140 = vmatprep.subr.mxu1 %v710_v6  ;;  %2070 = vmatpush1.msra.mxu0 %v581_v7  ;;  %v801_v44 = vld [vmem:[%s2970_s11 + $0xf50] sm:$0xff]  ;;  %v798_v46 = vld [vmem:[%s2970_s11 + $0xf38] sm:$0xff] }
 0x1a1   : > { %2141 = vmatpush1.msra.mxu1 %v709_v8  ;;  %2071 = vmatprep.subr.mxu0 %v578_v9  ;;  %v669_v47 = vld [vmem:[%s2970_s11 + $0xb30] sm:$0xff]  ;;  %v666_v49 = vld [vmem:[%s2970_s11 + $0xb18] sm:$0xff] }
 0x1a2   : > { %2142 = vmatprep.subr.mxu1 %v706_v10  ;;  %2072 = vmatpush1.msra.mxu0 %v577_v11  ;;  %v797_v48 = vld [vmem:[%s2970_s11 + $0xf30] sm:$0xff]  ;;  %v794_v50 = vld [vmem:[%s2970_s11 + $0xf18] sm:$0xff] }
 0x1a3   : > { %2143 = vmatpush1.msra.mxu1 %v705_v12  ;;  %2073 = vmatprep.subr.mxu0 %v574_v13  ;;  %v665_v51 = vld [vmem:[%s2970_s11 + $0xb10] sm:$0xff]  ;;  %v662_v53 = vld [vmem:[%s2970_s11 + $0xaf8] sm:$0xff] }
 0x1a4   : > { %2144 = vmatprep.subr.mxu1 %v702_v14  ;;  %2074 = vmatpush1.msra.mxu0 %v573_v15  ;;  %v793_v52 = vld [vmem:[%s2970_s11 + $0xf10] sm:$0xff]  ;;  %v790_v54 = vld [vmem:[%s2970_s11 + $0xef8] sm:$0xff] }
 0x1a5   : > { %2145 = vmatpush1.msra.mxu1 %v701_v16  ;;  %2075 = vmatprep.subr.mxu0 %v570_v17  ;;  %v661_v55 = vld [vmem:[%s2970_s11 + $0xaf0] sm:$0xff]  ;;  %v658_v57 = vld [vmem:[%s2970_s11 + $0xad8] sm:$0xff] }
 0x1a6   : > { %2146 = vmatprep.subr.mxu1 %v698_v18  ;;  %2076 = vmatpush1.msra.mxu0 %v569_v19  ;;  %v789_v56 = vld [vmem:[%s2970_s11 + $0xef0] sm:$0xff]  ;;  %v786_v58 = vld [vmem:[%s2970_s11 + $0xed8] sm:$0xff] }
 0x1a7   : > { %2147 = vmatpush1.msra.mxu1 %v697_v20  ;;  %2077 = vmatprep.subr.mxu0 %v694_v21  ;;  %v657_v59 = vld [vmem:[%s2970_s11 + $0xad0] sm:$0xff]  ;;  %v654_v61 = vld [vmem:[%s2970_s11 + $0xab8] sm:$0xff] }
 0x1a8   : > { %2148 = vmatprep.subr.mxu1 %v822_v22  ;;  %2078 = vmatpush2.msra.mxu0 %v693_v23  ;;  %v785_v60 = vld [vmem:[%s2970_s11 + $0xed0] sm:$0xff]  ;;  %v782_v62 = vld [vmem:[%s2970_s11 + $0xeb8] sm:$0xff]  ;;  %v2749_v22 = vld [vmem:[%s2983_s23 + $0x28] sm:$0xff] }
 0x1a9   : > { %2149 = vmatpush2.msra.mxu1 %v821_v24  ;;  %2079 = vmatprep.subr.mxu0 %v690_v25  ;;  %v653_v63 = vld [vmem:[%s2970_s11 + $0xab0] sm:$0xff]  ;;  %v650_v1 = vld [vmem:[%s2970_s11 + $0xa98] sm:$0xff]  ;;  %v2750_v24 = vld [vmem:[%s2983_s23 + $0x20] sm:$0xff] }
 0x1aa   : > { %2150 = vmatprep.subr.mxu1 %v818_v26  ;;  %2080 = vmatpush2.msra.mxu0 %v689_v27  ;;  %v781_v0 = vld [vmem:[%s2970_s11 + $0xeb0] sm:$0xff]  ;;  %v778_v2 = vld [vmem:[%s2970_s11 + $0xe98] sm:$0xff] }
 0x1ab   : > { %2151 = vmatpush2.msra.mxu1 %v817_v28  ;;  %2081 = vmatprep.subr.mxu0 %v686_v29  ;;  %v649_v3 = vld [vmem:[%s2970_s11 + $0xa90] sm:$0xff]  ;;  %v646_v5 = vld [vmem:[%s2970_s11 + $0xa78] sm:$0xff] }
 0x1ac   : > { %2152 = vmatprep.subr.mxu1 %v814_v30  ;;  %2082 = vmatpush2.msra.mxu0 %v685_v31  ;;  %v777_v4 = vld [vmem:[%s2970_s11 + $0xe90] sm:$0xff]  ;;  %v774_v6 = vld [vmem:[%s2970_s11 + $0xe78] sm:$0xff] }
 0x1ad   : > { %2153 = vmatpush2.msra.mxu1 %v813_v32  ;;  %2083 = vmatprep.subr.mxu0 %v682_v33  ;;  %v645_v7 = vld [vmem:[%s2970_s11 + $0xa70] sm:$0xff]  ;;  %v642_v9 = vld [vmem:[%s2970_s11 + $0xa58] sm:$0xff] }
 0x1ae   : > { %2154 = vmatprep.subr.mxu1 %v810_v34  ;;  %2084 = vmatpush2.msra.mxu0 %v681_v35  ;;  %v773_v8 = vld [vmem:[%s2970_s11 + $0xe70] sm:$0xff]  ;;  %v770_v10 = vld [vmem:[%s2970_s11 + $0xe58] sm:$0xff] }
 0x1af   : > { %2155 = vmatpush2.msra.mxu1 %v809_v36  ;;  %2085 = vmatprep.subr.mxu0 %v678_v37  ;;  %v641_v11 = vld [vmem:[%s2970_s11 + $0xa50] sm:$0xff]  ;;  %v638_v13 = vld [vmem:[%s2970_s11 + $0xa38] sm:$0xff] }
 0x1b0   : > { %2156 = vmatprep.subr.mxu1 %v806_v38  ;;  %2086 = vmatpush2.msra.mxu0 %v677_v39  ;;  %v769_v12 = vld [vmem:[%s2970_s11 + $0xe50] sm:$0xff]  ;;  %v766_v14 = vld [vmem:[%s2970_s11 + $0xe38] sm:$0xff] }
 0x1b1   : > { %2157 = vmatpush2.msra.mxu1 %v805_v40  ;;  %2087 = vmatprep.subr.mxu0 %v674_v41  ;;  %v637_v15 = vld [vmem:[%s2970_s11 + $0xa30] sm:$0xff]  ;;  %v634_v17 = vld [vmem:[%s2970_s11 + $0xa18] sm:$0xff] }
 0x1b2   : > { %2158 = vmatprep.subr.mxu1 %v802_v42  ;;  %2088 = vmatpush2.msra.mxu0 %v673_v43  ;;  %v765_v16 = vld [vmem:[%s2970_s11 + $0xe30] sm:$0xff]  ;;  %v762_v18 = vld [vmem:[%s2970_s11 + $0xe18] sm:$0xff] }
 0x1b3   : > { %2159 = vmatpush2.msra.mxu1 %v801_v44  ;;  %2089 = vmatprep.subr.mxu0 %v670_v45  ;;  %v633_v19 = vld [vmem:[%s2970_s11 + $0xa10] sm:$0xff]  ;;  %v886_v21 = vld [vmem:[%s2970_s11 + $0x11f8] sm:$0xff] }
 0x1b4   : > { %2160 = vmatprep.subr.mxu1 %v798_v46  ;;  %2090 = vmatpush2.msra.mxu0 %v669_v47  ;;  %v761_v20 = vld [vmem:[%s2970_s11 + $0xe10] sm:$0xff]  ;;  %v1014_v23 = vld [vmem:[%s2970_s11 + $0x15f8] sm:$0xff] }
 0x1b5   : > { %2161 = vmatpush2.msra.mxu1 %v797_v48  ;;  %2091 = vmatprep.subr.mxu0 %v666_v49  ;;  %v885_v25 = vld [vmem:[%s2970_s11 + $0x11f0] sm:$0xff]  ;;  %v2751_v27 = vld [vmem:[%s2983_s23 + $0x38] sm:$0xff] }
 0x1b6   : > { %2162 = vmatprep.subr.mxu1 %v794_v50  ;;  %2092 = vmatpush2.msra.mxu0 %v665_v51  ;;  %v1013_v26 = vld [vmem:[%s2970_s11 + $0x15f0] sm:$0xff]  ;;  %v882_v28 = vld [vmem:[%s2970_s11 + $0x11d8] sm:$0xff] }
 0x1b7   : > { %2163 = vmatpush2.msra.mxu1 %v793_v52  ;;  %2093 = vmatprep.subr.mxu0 %v662_v53  ;;  %v1010_v29 = vld [vmem:[%s2970_s11 + $0x15d8] sm:$0xff]  ;;  %v2752_v30 = vld [vmem:[%s2983_s23 + $0x30] sm:$0xff] }
 0x1b8   : > { %2164 = vmatprep.subr.mxu1 %v790_v54  ;;  %2094 = vmatpush2.msra.mxu0 %v661_v55  ;;  %v881_v31 = vld [vmem:[%s2970_s11 + $0x11d0] sm:$0xff]  ;;  %v878_v33 = vld [vmem:[%s2970_s11 + $0x11b8] sm:$0xff] }
 0x1b9   : > { %2165 = vmatpush2.msra.mxu1 %v789_v56  ;;  %2095 = vmatprep.subr.mxu0 %v658_v57  ;;  %v1009_v32 = vld [vmem:[%s2970_s11 + $0x15d0] sm:$0xff]  ;;  %v1006_v34 = vld [vmem:[%s2970_s11 + $0x15b8] sm:$0xff] }
 0x1ba   : > { %2166 = vmatprep.subr.mxu1 %v786_v58  ;;  %2096 = vmatpush2.msra.mxu0 %v657_v59  ;;  %v877_v35 = vld [vmem:[%s2970_s11 + $0x11b0] sm:$0xff]  ;;  %v874_v37 = vld [vmem:[%s2970_s11 + $0x1198] sm:$0xff] }
 0x1bb   : > { %2167 = vmatpush2.msra.mxu1 %v785_v60  ;;  %2097 = vmatprep.subr.mxu0 %v654_v61  ;;  %v1005_v36 = vld [vmem:[%s2970_s11 + $0x15b0] sm:$0xff]  ;;  %v1002_v38 = vld [vmem:[%s2970_s11 + $0x1598] sm:$0xff] }
 0x1bc   : > { %2168 = vmatprep.subr.mxu1 %v782_v62  ;;  %2098 = vmatpush2.msra.mxu0 %v653_v63  ;;  %v873_v39 = vld [vmem:[%s2970_s11 + $0x1190] sm:$0xff]  ;;  %v870_v41 = vld [vmem:[%s2970_s11 + $0x1178] sm:$0xff] }
 0x1bd   : > { %2169 = vmatpush2.msra.mxu1 %v781_v0  ;;  %2099 = vmatprep.subr.mxu0 %v650_v1  ;;  %v1001_v40 = vld [vmem:[%s2970_s11 + $0x1590] sm:$0xff]  ;;  %v998_v42 = vld [vmem:[%s2970_s11 + $0x1578] sm:$0xff] }
 0x1be   : > { %2170 = vmatprep.subr.mxu1 %v778_v2  ;;  %2100 = vmatpush2.msra.mxu0 %v649_v3  ;;  %v869_v43 = vld [vmem:[%s2970_s11 + $0x1170] sm:$0xff]  ;;  %v866_v45 = vld [vmem:[%s2970_s11 + $0x1158] sm:$0xff] }
 0x1bf   : > { %2171 = vmatpush2.msra.mxu1 %v777_v4  ;;  %2101 = vmatprep.subr.mxu0 %v646_v5  ;;  %v997_v44 = vld [vmem:[%s2970_s11 + $0x1570] sm:$0xff]  ;;  %v994_v46 = vld [vmem:[%s2970_s11 + $0x1558] sm:$0xff] }
 0x1c0   : > { %2172 = vmatprep.subr.mxu1 %v774_v6  ;;  %2102 = vmatpush2.msra.mxu0 %v645_v7  ;;  %v865_v47 = vld [vmem:[%s2970_s11 + $0x1150] sm:$0xff]  ;;  %v862_v49 = vld [vmem:[%s2970_s11 + $0x1138] sm:$0xff] }
 0x1c1   : > { %2173 = vmatpush2.msra.mxu1 %v773_v8  ;;  %2103 = vmatprep.subr.mxu0 %v642_v9  ;;  %v993_v48 = vld [vmem:[%s2970_s11 + $0x1550] sm:$0xff]  ;;  %v990_v50 = vld [vmem:[%s2970_s11 + $0x1538] sm:$0xff] }
 0x1c2   : > { %2174 = vmatprep.subr.mxu1 %v770_v10  ;;  %2104 = vmatpush2.msra.mxu0 %v641_v11  ;;  %v861_v51 = vld [vmem:[%s2970_s11 + $0x1130] sm:$0xff]  ;;  %v858_v53 = vld [vmem:[%s2970_s11 + $0x1118] sm:$0xff] }
 0x1c3   : > { %2175 = vmatpush2.msra.mxu1 %v769_v12  ;;  %2105 = vmatprep.subr.mxu0 %v638_v13  ;;  %v989_v52 = vld [vmem:[%s2970_s11 + $0x1530] sm:$0xff]  ;;  %v986_v54 = vld [vmem:[%s2970_s11 + $0x1518] sm:$0xff] }
 0x1c4   : > { %2176 = vmatprep.subr.mxu1 %v766_v14  ;;  %2106 = vmatpush2.msra.mxu0 %v637_v15  ;;  %v857_v55 = vld [vmem:[%s2970_s11 + $0x1110] sm:$0xff]  ;;  %v854_v57 = vld [vmem:[%s2970_s11 + $0x10f8] sm:$0xff] }
 0x1c5   : > { %2177 = vmatpush2.msra.mxu1 %v765_v16  ;;  %2107 = vmatprep.subr.mxu0 %v634_v17  ;;  %v985_v56 = vld [vmem:[%s2970_s11 + $0x1510] sm:$0xff]  ;;  %v982_v58 = vld [vmem:[%s2970_s11 + $0x14f8] sm:$0xff] }
 0x1c6   : > { %2178 = vmatprep.subr.mxu1 %v762_v18  ;;  %2108 = vmatpush2.msra.mxu0 %v633_v19  ;;  %v853_v59 = vld [vmem:[%s2970_s11 + $0x10f0] sm:$0xff]  ;;  %v850_v61 = vld [vmem:[%s2970_s11 + $0x10d8] sm:$0xff] }
 0x1c7   : > { %2109 = vmatprep.mubr.f32.mxu0 %v2749_v22  ;;  %2179 = vmatpush2.msra.mxu1 %v761_v20  ;;  %v981_v60 = vld [vmem:[%s2970_s11 + $0x14f0] sm:$0xff]  ;;  %v978_v62 = vld [vmem:[%s2970_s11 + $0x14d8] sm:$0xff] }
 0x1c8   : > { %2110 = vmatmul.mubr.f32.vlgmr.msra.gmra.mxu0 %v2750_v24  ;;  %2180 = vmatprep.mubr.f32.mxu1 %v2751_v27  ;;  %v849_v63 = vld [vmem:[%s2970_s11 + $0x10d0] sm:$0xff]  ;;  %v846_v1 = vld [vmem:[%s2970_s11 + $0x10b8] sm:$0xff] }
 0x1c9   : > { %2187 = vmatprep.subr.mxu0 %v886_v21  ;;  %2258 = vmatprep.subr.mxu1 %v1014_v23  ;;  %v977_v0 = vld [vmem:[%s2970_s11 + $0x14d0] sm:$0xff]  ;;  %v974_v2 = vld [vmem:[%s2970_s11 + $0x14b8] sm:$0xff] }
 0x1ca   : > { %2181 = vmatmul.mubr.f32.vlgmr.msra.gmra.mxu1 %v2752_v30  ;;  %2188 = vmatpush1.msra.mxu0 %v885_v25  ;;  %v845_v3 = vld [vmem:[%s2970_s11 + $0x10b0] sm:$0xff]  ;;  %v842_v5 = vld [vmem:[%s2970_s11 + $0x1098] sm:$0xff] }
 0x1cb   : > { %2259 = vmatpush1.msra.mxu1 %v1013_v26  ;;  %2189 = vmatprep.subr.mxu0 %v882_v28  ;;  %v973_v4 = vld [vmem:[%s2970_s11 + $0x14b0] sm:$0xff]  ;;  %v970_v6 = vld [vmem:[%s2970_s11 + $0x1498] sm:$0xff] }
 0x1cc   : > { %2260 = vmatprep.subr.mxu1 %v1010_v29  ;;  %2190 = vmatpush1.msra.mxu0 %v881_v31  ;;  %v841_v7 = vld [vmem:[%s2970_s11 + $0x1090] sm:$0xff]  ;;  %v838_v9 = vld [vmem:[%s2970_s11 + $0x1078] sm:$0xff] }
 0x1cd   : > { %2261 = vmatpush1.msra.mxu1 %v1009_v32  ;;  %2191 = vmatprep.subr.mxu0 %v878_v33  ;;  %v969_v8 = vld [vmem:[%s2970_s11 + $0x1490] sm:$0xff]  ;;  %v966_v10 = vld [vmem:[%s2970_s11 + $0x1478] sm:$0xff] }
 0x1ce   : > { %2262 = vmatprep.subr.mxu1 %v1006_v34  ;;  %2192 = vmatpush1.msra.mxu0 %v877_v35  ;;  %v837_v11 = vld [vmem:[%s2970_s11 + $0x1070] sm:$0xff]  ;;  %v834_v13 = vld [vmem:[%s2970_s11 + $0x1058] sm:$0xff] }
 0x1cf   : > { %2263 = vmatpush1.msra.mxu1 %v1005_v36  ;;  %2193 = vmatprep.subr.mxu0 %v874_v37  ;;  %v965_v12 = vld [vmem:[%s2970_s11 + $0x1470] sm:$0xff]  ;;  %v962_v14 = vld [vmem:[%s2970_s11 + $0x1458] sm:$0xff] }
 0x1d0   : > { %2264 = vmatprep.subr.mxu1 %v1002_v38  ;;  %2194 = vmatpush1.msra.mxu0 %v873_v39  ;;  %v833_v15 = vld [vmem:[%s2970_s11 + $0x1050] sm:$0xff]  ;;  %v830_v17 = vld [vmem:[%s2970_s11 + $0x1038] sm:$0xff]  ;;  %v1401_v39 = vpop.f32.mrf.mxu0 }
 0x1d1   : > { %2265 = vmatpush1.msra.mxu1 %v1001_v40  ;;  %2195 = vmatprep.subr.mxu0 %v870_v41  ;;  %v961_v16 = vld [vmem:[%s2970_s11 + $0x1450] sm:$0xff]  ;;  %v958_v18 = vld [vmem:[%s2970_s11 + $0x1438] sm:$0xff] }
 0x1d2   : > { %2266 = vmatprep.subr.mxu1 %v998_v42  ;;  %2196 = vmatpush1.msra.mxu0 %v869_v43  ;;  %v829_v19 = vld [vmem:[%s2970_s11 + $0x1030] sm:$0xff]  ;;  %v826_v21 = vld [vmem:[%s2970_s11 + $0x1018] sm:$0xff] }
 0x1d3   : > { %2267 = vmatpush1.msra.mxu1 %v997_v44  ;;  %2197 = vmatprep.subr.mxu0 %v866_v45  ;;  %v957_v20 = vld [vmem:[%s2970_s11 + $0x1430] sm:$0xff]  ;;  %v954_v22 = vld [vmem:[%s2970_s11 + $0x1418] sm:$0xff] }
 0x1d4   : > { %2268 = vmatprep.subr.mxu1 %v994_v46  ;;  %2198 = vmatpush1.msra.mxu0 %v865_v47  ;;  %v825_v23 = vld [vmem:[%s2970_s11 + $0x1010] sm:$0xff]  ;;  %v950_v25 = vld [vmem:[%s2970_s11 + $0x13f8] sm:$0xff] }
 0x1d5   : > { %2269 = vmatpush1.msra.mxu1 %v993_v48  ;;  %2199 = vmatprep.subr.mxu0 %v862_v49  ;;  %v953_v24 = vld [vmem:[%s2970_s11 + $0x1410] sm:$0xff]  ;;  %v1078_v26 = vld [vmem:[%s2970_s11 + $0x17f8] sm:$0xff]  ;;  %v1472_v48 = vpop.f32.mrf.mxu1  ;;  %v1403_v49 = vpop.f32.mrf.mxu0 }
 0x1d6   : > { %2270 = vmatprep.subr.mxu1 %v990_v50  ;;  %2200 = vmatpush1.msra.mxu0 %v861_v51  ;;  %v949_v27 = vld [vmem:[%s2970_s11 + $0x13f0] sm:$0xff]  ;;  %v946_v29 = vld [vmem:[%s2970_s11 + $0x13d8] sm:$0xff] }
 0x1d7   : > { %2271 = vmatpush1.msra.mxu1 %v989_v52  ;;  %2201 = vmatprep.subr.mxu0 %v858_v53  ;;  %v1077_v28 = vld [vmem:[%s2970_s11 + $0x17f0] sm:$0xff]  ;;  %v1074_v30 = vld [vmem:[%s2970_s11 + $0x17d8] sm:$0xff] }
 0x1d8   : > { %2272 = vmatprep.subr.mxu1 %v986_v54  ;;  %2202 = vmatpush1.msra.mxu0 %v857_v55  ;;  %v945_v31 = vld [vmem:[%s2970_s11 + $0x13d0] sm:$0xff]  ;;  %v942_v33 = vld [vmem:[%s2970_s11 + $0x13b8] sm:$0xff]  ;;  %v1543_v54 = vpop.f32.mrf.mxu0 }
 0x1d9   : > { %2273 = vmatpush1.msra.mxu1 %v985_v56  ;;  %2203 = vmatprep.subr.mxu0 %v854_v57  ;;  %v1073_v32 = vld [vmem:[%s2970_s11 + $0x17d0] sm:$0xff]  ;;  %v1070_v34 = vld [vmem:[%s2970_s11 + $0x17b8] sm:$0xff] }
 0x1da   : > { %2274 = vmatprep.subr.mxu1 %v982_v58  ;;  %2204 = vmatpush1.msra.mxu0 %v853_v59  ;;  %v941_v35 = vld [vmem:[%s2970_s11 + $0x13b0] sm:$0xff]  ;;  %v938_v37 = vld [vmem:[%s2970_s11 + $0x1398] sm:$0xff]  ;;  %v1474_v59 = vpop.f32.mrf.mxu1 }
 0x1db   : > { %2275 = vmatpush1.msra.mxu1 %v981_v60  ;;  %2205 = vmatprep.subr.mxu0 %v850_v61  ;;  %v1069_v36 = vld [vmem:[%s2970_s11 + $0x17b0] sm:$0xff]  ;;  %v1066_v38 = vld [vmem:[%s2970_s11 + $0x1798] sm:$0xff] }
 0x1dc   : > { %2276 = vmatprep.subr.mxu1 %v978_v62  ;;  %2206 = vmatpush1.msra.mxu0 %v849_v63  ;;  %v937_v40 = vld [vmem:[%s2970_s11 + $0x1390] sm:$0xff]  ;;  %v934_v42 = vld [vmem:[%s2970_s11 + $0x1378] sm:$0xff]  ;;  %v1473_v62 = vadd.f32 %v1472_v48, %v1401_v39 }
 0x1dd   : > { %2277 = vmatpush1.msra.mxu1 %v977_v0  ;;  %2207 = vmatprep.subr.mxu0 %v846_v1  ;;  %v1065_v41 = vld [vmem:[%s2970_s11 + $0x1790] sm:$0xff]  ;;  %v1062_v43 = vld [vmem:[%s2970_s11 + $0x1778] sm:$0xff]  ;;  %v1614_v1 = vpop.f32.mrf.mxu1 }
 0x1de   : > { %2278 = vmatprep.subr.mxu1 %v974_v2  ;;  %2208 = vmatpush1.msra.mxu0 %v845_v3  ;;  %v933_v44 = vld [vmem:[%s2970_s11 + $0x1370] sm:$0xff]  ;;  %v930_v46 = vld [vmem:[%s2970_s11 + $0x1358] sm:$0xff]  ;;  %v1545_v2 = vpop.f32.mrf.mxu0 }
 0x1df   : > { %2279 = vmatpush1.msra.mxu1 %v973_v4  ;;  %2209 = vmatprep.subr.mxu0 %v842_v5  ;;  %v1061_v45 = vld [vmem:[%s2970_s11 + $0x1770] sm:$0xff]  ;;  %v1058_v47 = vld [vmem:[%s2970_s11 + $0x1758] sm:$0xff]  ;;  %v1475_v5 = vadd.f32 %v1474_v59, %v1403_v49 }
 0x1e0   : > { %2280 = vmatprep.subr.mxu1 %v970_v6  ;;  %2210 = vmatpush1.msra.mxu0 %v841_v7  ;;  %v929_v50 = vld [vmem:[%s2970_s11 + $0x1350] sm:$0xff]  ;;  %v926_v52 = vld [vmem:[%s2970_s11 + $0x1338] sm:$0xff]  ;;  %v1544_v6 = vadd.f32 %v1543_v54, %v1473_v62 }
 0x1e1   : > { %2281 = vmatpush1.msra.mxu1 %v969_v8  ;;  %2211 = vmatprep.subr.mxu0 %v838_v9  ;;  %v1057_v51 = vld [vmem:[%s2970_s11 + $0x1750] sm:$0xff]  ;;  %v1054_v53 = vld [vmem:[%s2970_s11 + $0x1738] sm:$0xff]  ;;  %v1685_v9 = vpop.f32.mrf.mxu0 }
 0x1e2   : > { %2282 = vmatprep.subr.mxu1 %v966_v10  ;;  %2212 = vmatpush1.msra.mxu0 %v837_v11  ;;  %v925_v55 = vld [vmem:[%s2970_s11 + $0x1330] sm:$0xff]  ;;  %v922_v57 = vld [vmem:[%s2970_s11 + $0x1318] sm:$0xff] }
 0x1e3   : > { %2283 = vmatpush1.msra.mxu1 %v965_v12  ;;  %2213 = vmatprep.subr.mxu0 %v834_v13  ;;  %v1053_v56 = vld [vmem:[%s2970_s11 + $0x1730] sm:$0xff]  ;;  %v1050_v58 = vld [vmem:[%s2970_s11 + $0x1718] sm:$0xff]  ;;  %v1546_v12 = vadd.f32 %v1545_v2, %v1475_v5 }
 0x1e4   : > { %2284 = vmatprep.subr.mxu1 %v962_v14  ;;  %2214 = vmatpush1.msra.mxu0 %v833_v15  ;;  %v921_v60 = vld [vmem:[%s2970_s11 + $0x1310] sm:$0xff]  ;;  %v918_v63 = vld [vmem:[%s2970_s11 + $0x12f8] sm:$0xff]  ;;  %v1616_v15 = vpop.f32.mrf.mxu1 }
 0x1e5   : > { %2285 = vmatpush1.msra.mxu1 %v961_v16  ;;  %2215 = vmatprep.subr.mxu0 %v830_v17  ;;  %v1049_v61 = vld [vmem:[%s2970_s11 + $0x1710] sm:$0xff]  ;;  %v1046_v0 = vld [vmem:[%s2970_s11 + $0x16f8] sm:$0xff] }
 0x1e6   : > { %2286 = vmatprep.subr.mxu1 %v958_v18  ;;  %2216 = vmatpush1.msra.mxu0 %v829_v19  ;;  %v917_v3 = vld [vmem:[%s2970_s11 + $0x12f0] sm:$0xff]  ;;  %v914_v7 = vld [vmem:[%s2970_s11 + $0x12d8] sm:$0xff]  ;;  %v1615_v18 = vadd.f32 %v1614_v1, %v1544_v6 }
 0x1e7   : > { %2287 = vmatpush1.msra.mxu1 %v957_v20  ;;  %2217 = vmatprep.subr.mxu0 %v826_v21  ;;  %v1045_v4 = vld [vmem:[%s2970_s11 + $0x16f0] sm:$0xff]  ;;  %v1042_v8 = vld [vmem:[%s2970_s11 + $0x16d8] sm:$0xff]  ;;  %v1756_v21 = vpop.f32.mrf.mxu1 }
 0x1e8   : > { %2288 = vmatprep.subr.mxu1 %v954_v22  ;;  %2218 = vmatpush1.msra.mxu0 %v825_v23  ;;  %v913_v10 = vld [vmem:[%s2970_s11 + $0x12d0] sm:$0xff]  ;;  %v910_v13 = vld [vmem:[%s2970_s11 + $0x12b8] sm:$0xff]  ;;  %v1687_v22 = vpop.f32.mrf.mxu0 }
 0x1e9   : > { %2289 = vmatpush1.msra.mxu1 %v953_v24  ;;  %2219 = vmatprep.subr.mxu0 %v950_v25  ;;  %v1041_v11 = vld [vmem:[%s2970_s11 + $0x16d0] sm:$0xff]  ;;  %v1038_v14 = vld [vmem:[%s2970_s11 + $0x16b8] sm:$0xff]  ;;  %v1617_v25 = vadd.f32 %v1616_v15, %v1546_v12 }
 0x1ea   : > { %2290 = vmatprep.subr.mxu1 %v1078_v26  ;;  %2220 = vmatpush2.msra.mxu0 %v949_v27  ;;  %v909_v16 = vld [vmem:[%s2970_s11 + $0x12b0] sm:$0xff]  ;;  %v906_v19 = vld [vmem:[%s2970_s11 + $0x1298] sm:$0xff]  ;;  %v1686_v26 = vadd.f32 %v1685_v9, %v1615_v18 }
 0x1eb   : > { %2291 = vmatpush2.msra.mxu1 %v1077_v28  ;;  %2221 = vmatprep.subr.mxu0 %v946_v29  ;;  %v1037_v17 = vld [vmem:[%s2970_s11 + $0x16b0] sm:$0xff]  ;;  %v1034_v20 = vld [vmem:[%s2970_s11 + $0x1698] sm:$0xff] }
 0x1ec   : > { %2292 = vmatprep.subr.mxu1 %v1074_v30  ;;  %2222 = vmatpush2.msra.mxu0 %v945_v31  ;;  %v905_v23 = vld [vmem:[%s2970_s11 + $0x1290] sm:$0xff]  ;;  %v902_v27 = vld [vmem:[%s2970_s11 + $0x1278] sm:$0xff]  ;;  %v1688_v31 = vadd.f32 %v1687_v22, %v1617_v25 }
 0x1ed   : > { %2293 = vmatpush2.msra.mxu1 %v1073_v32  ;;  %2223 = vmatprep.subr.mxu0 %v942_v33  ;;  %v1033_v24 = vld [vmem:[%s2970_s11 + $0x1690] sm:$0xff]  ;;  %v1030_v28 = vld [vmem:[%s2970_s11 + $0x1678] sm:$0xff] }
 0x1ee   : > { %2294 = vmatprep.subr.mxu1 %v1070_v34  ;;  %2224 = vmatpush2.msra.mxu0 %v941_v35  ;;  %v901_v29 = vld [vmem:[%s2970_s11 + $0x1270] sm:$0xff]  ;;  %v898_v32 = vld [vmem:[%s2970_s11 + $0x1258] sm:$0xff]  ;;  %v1758_v34 = vpop.f32.mrf.mxu1 }
 0x1ef   : > { %2295 = vmatpush2.msra.mxu1 %v1069_v36  ;;  %2225 = vmatprep.subr.mxu0 %v938_v37  ;;  %v1029_v30 = vld [vmem:[%s2970_s11 + $0x1670] sm:$0xff]  ;;  %v1026_v33 = vld [vmem:[%s2970_s11 + $0x1658] sm:$0xff]  ;;  %v1757_v37 = vadd.f32 %v1756_v21, %v1686_v26 }
 0x1f0   : > { %2296 = vmatprep.subr.mxu1 %v1066_v38  ;;  %2226 = vmatpush2.msra.mxu0 %v937_v40  ;;  %v897_v35 = vld [vmem:[%s2970_s11 + $0x1250] sm:$0xff]  ;;  %v894_v38 = vld [vmem:[%s2970_s11 + $0x1238] sm:$0xff] }
 0x1f1   : > { %2297 = vmatpush2.msra.mxu1 %v1065_v41  ;;  %2227 = vmatprep.subr.mxu0 %v934_v42  ;;  %v1025_v36 = vld [vmem:[%s2970_s11 + $0x1650] sm:$0xff]  ;;  %v1022_v39 = vld [vmem:[%s2970_s11 + $0x1638] sm:$0xff] }
 0x1f2   : > { %2298 = vmatprep.subr.mxu1 %v1062_v43  ;;  %2228 = vmatpush2.msra.mxu0 %v933_v44  ;;  %v893_v40 = vld [vmem:[%s2970_s11 + $0x1230] sm:$0xff]  ;;  %v1759_v43 = vadd.f32 %v1758_v34, %v1688_v31  ;;  %v890_v44 = vld [vmem:[%s2970_s11 + $0x1218] sm:$0xff] }
 0x1f3   : > { %2299 = vmatpush2.msra.mxu1 %v1061_v45  ;;  %2229 = vmatprep.subr.mxu0 %v930_v46  ;;  %v1021_v41 = vld [vmem:[%s2970_s11 + $0x1630] sm:$0xff]  ;;  %v1018_v45 = vld [vmem:[%s2970_s11 + $0x1618] sm:$0xff] }
 0x1f4   : > { %2300 = vmatprep.subr.mxu1 %v1058_v47  ;;  %2230 = vmatpush2.msra.mxu0 %v929_v50  ;;  %v889_v47 = vld [vmem:[%s2970_s11 + $0x1210] sm:$0xff]  ;;  %v1142_v54 = vld [vmem:[%s2970_s11 + $0x19f8] sm:$0xff] }
 0x1f5   : > { %2301 = vmatpush2.msra.mxu1 %v1057_v51  ;;  %2231 = vmatprep.subr.mxu0 %v926_v52  ;;  %v291_v48 = vld [vmem:[#allocation2 + $0x10] sm:$0xff]  ;;  %v1138_v1 = vld [vmem:[%s2970_s11 + $0x19d8] sm:$0xff] }
 0x1f6   : > { %2302 = vmatprep.subr.mxu1 %v1054_v53  ;;  %2232 = vmatpush2.msra.mxu0 %v925_v55  ;;  %v1017_v51 = vld [vmem:[%s2970_s11 + $0x1610] sm:$0xff]  ;;  %v292_v55 = vld [vmem:[#allocation2] sm:$0xff]  ;;  %v1266_v2 = vld [vmem:[%s2970_s11 + $0x1dd8] sm:$0xff] }
 0x1f7   : > { %2303 = vmatpush2.msra.mxu1 %v1053_v56  ;;  %2233 = vmatprep.subr.mxu0 %v922_v57  ;;  %v2753_v57 = vld [vmem:[%s2983_s23 + $0x48] sm:$0xff]  ;;  %v1141_v62 = vld [vmem:[%s2970_s11 + $0x19f0] sm:$0xff]  ;;  %v1258_v12 = vld [vmem:[%s2970_s11 + $0x1d98] sm:$0xff] }
 0x1f8   : > { %2304 = vmatprep.subr.mxu1 %v1050_v58  ;;  %2234 = vmatpush2.msra.mxu0 %v921_v60  ;;  %v1270_v58 = vld [vmem:[%s2970_s11 + $0x1df8] sm:$0xff]  ;;  %v1137_v5 = vld [vmem:[%s2970_s11 + $0x19d0] sm:$0xff] }
 0x1f9   : > { %2305 = vmatpush2.msra.mxu1 %v1049_v61  ;;  %2235 = vmatprep.subr.mxu0 %v918_v63  ;;  %v2754_v61 = vld [vmem:[%s2983_s23 + $0x40] sm:$0xff]  ;;  %v1269_v63 = vld [vmem:[%s2970_s11 + $0x1df0] sm:$0xff]  ;;  %v1126_v15 = vld [vmem:[%s2970_s11 + $0x1978] sm:$0xff] }
 0x1fa   : > { %2306 = vmatprep.subr.mxu1 %v1046_v0  ;;  %2236 = vmatpush2.msra.mxu0 %v917_v3  ;;  %v2755_v0 = vld [vmem:[%s2983_s23 + $0x58] sm:$0xff]  ;;  %v1265_v6 = vld [vmem:[%s2970_s11 + $0x1dd0] sm:$0xff] }
 0x1fb   : > { %2307 = vmatpush2.msra.mxu1 %v1045_v4  ;;  %2237 = vmatprep.subr.mxu0 %v914_v7  ;;  %v2756_v4 = vld [vmem:[%s2983_s23 + $0x50] sm:$0xff]  ;;  %v1134_v7 = vld [vmem:[%s2970_s11 + $0x19b8] sm:$0xff] }
 0x1fc   : > { %2308 = vmatprep.subr.mxu1 %v1042_v8  ;;  %2238 = vmatpush2.msra.mxu0 %v913_v10  ;;  %v1262_v8 = vld [vmem:[%s2970_s11 + $0x1db8] sm:$0xff]  ;;  %v1133_v9 = vld [vmem:[%s2970_s11 + $0x19b0] sm:$0xff] }
 0x1fd   : > { %2309 = vmatpush2.msra.mxu1 %v1041_v11  ;;  %2239 = vmatprep.subr.mxu0 %v910_v13  ;;  %v1261_v10 = vld [vmem:[%s2970_s11 + $0x1db0] sm:$0xff]  ;;  %v1130_v11 = vld [vmem:[%s2970_s11 + $0x1998] sm:$0xff] }
 0x1fe   : > { %2310 = vmatprep.subr.mxu1 %v1038_v14  ;;  %2240 = vmatpush2.msra.mxu0 %v909_v16  ;;  %v1129_v13 = vld [vmem:[%s2970_s11 + $0x1990] sm:$0xff]  ;;  %v1254_v16 = vld [vmem:[%s2970_s11 + $0x1d78] sm:$0xff] }
 0x1ff   : > { %2311 = vmatpush2.msra.mxu1 %v1037_v17  ;;  %2241 = vmatprep.subr.mxu0 %v906_v19  ;;  %v1257_v14 = vld [vmem:[%s2970_s11 + $0x1d90] sm:$0xff]  ;;  %v1122_v19 = vld [vmem:[%s2970_s11 + $0x1958] sm:$0xff] }
 0x200   : > { %2312 = vmatprep.subr.mxu1 %v1034_v20  ;;  %2242 = vmatpush2.msra.mxu0 %v905_v23  ;;  %v1125_v17 = vld [vmem:[%s2970_s11 + $0x1970] sm:$0xff]  ;;  %v1250_v20 = vld [vmem:[%s2970_s11 + $0x1d58] sm:$0xff] }
 0x201   : > { %2313 = vmatpush2.msra.mxu1 %v1033_v24  ;;  %2243 = vmatprep.subr.mxu0 %v902_v27  ;;  %v1253_v18 = vld [vmem:[%s2970_s11 + $0x1d70] sm:$0xff]  ;;  %v1118_v23 = vld [vmem:[%s2970_s11 + $0x1938] sm:$0xff] }
 0x202   : > { %2314 = vmatprep.subr.mxu1 %v1030_v28  ;;  %2244 = vmatpush2.msra.mxu0 %v901_v29  ;;  %v1121_v21 = vld [vmem:[%s2970_s11 + $0x1950] sm:$0xff]  ;;  %v1246_v24 = vld [vmem:[%s2970_s11 + $0x1d38] sm:$0xff] }
 0x203   : > { %2315 = vmatpush2.msra.mxu1 %v1029_v30  ;;  %2245 = vmatprep.subr.mxu0 %v898_v32  ;;  %v1249_v22 = vld [vmem:[%s2970_s11 + $0x1d50] sm:$0xff]  ;;  %v1114_v27 = vld [vmem:[%s2970_s11 + $0x1918] sm:$0xff] }
 0x204   : > { %2316 = vmatprep.subr.mxu1 %v1026_v33  ;;  %v1827_v42 = vpop.f32.mrf.mxu0  ;;  %2246 = vmatpush2.msra.mxu0 %v897_v35  ;;  %v1117_v25 = vld [vmem:[%s2970_s11 + $0x1930] sm:$0xff]  ;;  %v1242_v28 = vld [vmem:[%s2970_s11 + $0x1d18] sm:$0xff] }
 0x205   : > { %2317 = vmatpush2.msra.mxu1 %v1025_v36  ;;  %v1828_v46 = vadd.f32 %v1827_v42, %v1757_v37  ;;  %2247 = vmatprep.subr.mxu0 %v894_v38  ;;  %v1245_v26 = vld [vmem:[%s2970_s11 + $0x1d30] sm:$0xff]  ;;  %v1110_v31 = vld [vmem:[%s2970_s11 + $0x18f8] sm:$0xff] }
 0x206   : > { %2318 = vmatprep.subr.mxu1 %v1022_v39  ;;  %v1898_v49 = vpop.f32.mrf.mxu1  ;;  %v1829_v50 = vpop.f32.mrf.mxu0  ;;  %2248 = vmatpush2.msra.mxu0 %v893_v40  ;;  %v1113_v29 = vld [vmem:[%s2970_s11 + $0x1910] sm:$0xff]  ;;  %v1238_v32 = vld [vmem:[%s2970_s11 + $0x1cf8] sm:$0xff] }
 0x207   : > { %2319 = vmatpush2.msra.mxu1 %v1021_v41  ;;  %v1899_v52 = vadd.f32 %v1898_v49, %v1828_v46  ;;  %v1830_v53 = vadd.f32 %v1829_v50, %v1759_v43  ;;  %2249 = vmatprep.subr.mxu0 %v890_v44  ;;  %v1241_v30 = vld [vmem:[%s2970_s11 + $0x1d10] sm:$0xff]  ;;  %v1106_v35 = vld [vmem:[%s2970_s11 + $0x18d8] sm:$0xff] }
 0x208   : > { %2320 = vmatprep.subr.mxu1 %v1018_v45  ;;  %v1900_v56 = vpop.f32.mrf.mxu1  ;;  %2250 = vmatpush2.msra.mxu0 %v889_v47  ;;  %v1109_v33 = vld [vmem:[%s2970_s11 + $0x18f0] sm:$0xff]  ;;  %v1234_v36 = vld [vmem:[%s2970_s11 + $0x1cd8] sm:$0xff] }
 0x209   : > { %2251 = vmatprep.mubr.f32.mxu0 %v2753_v57  ;;  %v2471_v59 = vadd.f32 %v1899_v52, %v291_v48  ;;  %v1901_v60 = vadd.f32 %v1900_v56, %v1830_v53  ;;  %2321 = vmatpush2.msra.mxu1 %v1017_v51  ;;  %v1237_v34 = vld [vmem:[%s2970_s11 + $0x1cf0] sm:$0xff]  ;;  %v1102_v39 = vld [vmem:[%s2970_s11 + $0x18b8] sm:$0xff] }
 0x20a   : > { %2252 = vmatmul.mubr.f32.vlgmr.msra.gmra.mxu0 %v2754_v61  ;;  %2322 = vmatprep.mubr.f32.mxu1 %v2755_v0  ;;  %v1105_v37 = vld [vmem:[%s2970_s11 + $0x18d0] sm:$0xff]  ;;  %v1230_v40 = vld [vmem:[%s2970_s11 + $0x1cb8] sm:$0xff] }
 0x20b   : > { %2329 = vmatprep.subr.mxu0 %v1142_v54  ;;  %2475 = vst [vmem:[#allocation2 + $0x10] sm:$0xff] %v2471_v59  ;;  %v2472_v3 = vadd.f32 %v1901_v60, %v292_v55  ;;  %2400 = vmatprep.subr.mxu1 %v1270_v58  ;;  %v1233_v38 = vld [vmem:[%s2970_s11 + $0x1cd0] sm:$0xff]  ;;  %v1098_v43 = vld [vmem:[%s2970_s11 + $0x1898] sm:$0xff] }
 0x20c   : > { %2323 = vmatmul.mubr.f32.vlgmr.msra.gmra.mxu1 %v2756_v4  ;;  %2330 = vmatpush1.msra.mxu0 %v1141_v62  ;;  %v1101_v41 = vld [vmem:[%s2970_s11 + $0x18b0] sm:$0xff]  ;;  %v1226_v44 = vld [vmem:[%s2970_s11 + $0x1c98] sm:$0xff] }
 0x20d   : > { %2401 = vmatpush1.msra.mxu1 %v1269_v63  ;;  %2476 = vst [vmem:[#allocation2] sm:$0xff] %v2472_v3  ;;  %2331 = vmatprep.subr.mxu0 %v1138_v1  ;;  %v1229_v42 = vld [vmem:[%s2970_s11 + $0x1cb0] sm:$0xff]  ;;  %v1094_v47 = vld [vmem:[%s2970_s11 + $0x1878] sm:$0xff] }
 0x20e   : > { %2402 = vmatprep.subr.mxu1 %v1266_v2  ;;  %2332 = vmatpush1.msra.mxu0 %v1137_v5  ;;  %v1097_v45 = vld [vmem:[%s2970_s11 + $0x1890] sm:$0xff]  ;;  %v1222_v48 = vld [vmem:[%s2970_s11 + $0x1c78] sm:$0xff] }
 0x20f   : > { %2403 = vmatpush1.msra.mxu1 %v1265_v6  ;;  %2333 = vmatprep.subr.mxu0 %v1134_v7  ;;  %v1225_v46 = vld [vmem:[%s2970_s11 + $0x1c90] sm:$0xff]  ;;  %v1090_v51 = vld [vmem:[%s2970_s11 + $0x1858] sm:$0xff] }
 0x210   : > { %2404 = vmatprep.subr.mxu1 %v1262_v8  ;;  %2334 = vmatpush1.msra.mxu0 %v1133_v9  ;;  %v1093_v49 = vld [vmem:[%s2970_s11 + $0x1870] sm:$0xff]  ;;  %v1218_v52 = vld [vmem:[%s2970_s11 + $0x1c58] sm:$0xff] }
 0x211   : > { %2405 = vmatpush1.msra.mxu1 %v1261_v10  ;;  %2335 = vmatprep.subr.mxu0 %v1130_v11  ;;  %v1221_v50 = vld [vmem:[%s2970_s11 + $0x1c70] sm:$0xff]  ;;  %v1086_v55 = vld [vmem:[%s2970_s11 + $0x1838] sm:$0xff] }
 0x212   : > { %2406 = vmatprep.subr.mxu1 %v1258_v12  ;;  %2336 = vmatpush1.msra.mxu0 %v1129_v13  ;;  %v1089_v53 = vld [vmem:[%s2970_s11 + $0x1850] sm:$0xff]  ;;  %v1214_v56 = vld [vmem:[%s2970_s11 + $0x1c38] sm:$0xff] }
 0x213   : > { %2407 = vmatpush1.msra.mxu1 %v1257_v14  ;;  %2337 = vmatprep.subr.mxu0 %v1126_v15  ;;  %v1217_v54 = vld [vmem:[%s2970_s11 + $0x1c50] sm:$0xff]  ;;  %v1082_v59 = vld [vmem:[%s2970_s11 + $0x1818] sm:$0xff] }
 0x214   : > { %2408 = vmatprep.subr.mxu1 %v1254_v16  ;;  %2338 = vmatpush1.msra.mxu0 %v1125_v17  ;;  %v1085_v57 = vld [vmem:[%s2970_s11 + $0x1830] sm:$0xff]  ;;  %v1210_v60 = vld [vmem:[%s2970_s11 + $0x1c18] sm:$0xff] }
 0x215   : > { %2409 = vmatpush1.msra.mxu1 %v1253_v18  ;;  %2339 = vmatprep.subr.mxu0 %v1122_v19  ;;  %v1213_v58 = vld [vmem:[%s2970_s11 + $0x1c30] sm:$0xff]  ;;  %v1206_v63 = vld [vmem:[%s2970_s11 + $0x1bf8] sm:$0xff] }
 0x216   : > { %2410 = vmatprep.subr.mxu1 %v1250_v20  ;;  %2340 = vmatpush1.msra.mxu0 %v1121_v21  ;;  %v1081_v61 = vld [vmem:[%s2970_s11 + $0x1810] sm:$0xff]  ;;  %v1334_v0 = vld [vmem:[%s2970_s11 + $0x1ff8] sm:$0xff] }
 0x217   : > { %2411 = vmatpush1.msra.mxu1 %v1249_v22  ;;  %2341 = vmatprep.subr.mxu0 %v1118_v23  ;;  %v1209_v62 = vld [vmem:[%s2970_s11 + $0x1c10] sm:$0xff]  ;;  %v1202_v3 = vld [vmem:[%s2970_s11 + $0x1bd8] sm:$0xff] }
 0x218   : > { %2412 = vmatprep.subr.mxu1 %v1246_v24  ;;  %2342 = vmatpush1.msra.mxu0 %v1117_v25  ;;  %v1205_v1 = vld [vmem:[%s2970_s11 + $0x1bf0] sm:$0xff]  ;;  %v1330_v4 = vld [vmem:[%s2970_s11 + $0x1fd8] sm:$0xff] }
 0x219   : > { %2413 = vmatpush1.msra.mxu1 %v1245_v26  ;;  %2343 = vmatprep.subr.mxu0 %v1114_v27  ;;  %v1333_v2 = vld [vmem:[%s2970_s11 + $0x1ff0] sm:$0xff]  ;;  %v1198_v7 = vld [vmem:[%s2970_s11 + $0x1bb8] sm:$0xff] }
 0x21a   : > { %2414 = vmatprep.subr.mxu1 %v1242_v28  ;;  %2344 = vmatpush1.msra.mxu0 %v1113_v29  ;;  %v1201_v5 = vld [vmem:[%s2970_s11 + $0x1bd0] sm:$0xff]  ;;  %v1326_v8 = vld [vmem:[%s2970_s11 + $0x1fb8] sm:$0xff] }
 0x21b   : > { %2415 = vmatpush1.msra.mxu1 %v1241_v30  ;;  %2345 = vmatprep.subr.mxu0 %v1110_v31  ;;  %v1329_v6 = vld [vmem:[%s2970_s11 + $0x1fd0] sm:$0xff]  ;;  %v1194_v11 = vld [vmem:[%s2970_s11 + $0x1b98] sm:$0xff] }
 0x21c   : > { %2416 = vmatprep.subr.mxu1 %v1238_v32  ;;  %2346 = vmatpush1.msra.mxu0 %v1109_v33  ;;  %v1197_v9 = vld [vmem:[%s2970_s11 + $0x1bb0] sm:$0xff]  ;;  %v1322_v12 = vld [vmem:[%s2970_s11 + $0x1f98] sm:$0xff] }
 0x21d   : > { %2417 = vmatpush1.msra.mxu1 %v1237_v34  ;;  %2347 = vmatprep.subr.mxu0 %v1106_v35  ;;  %v1325_v10 = vld [vmem:[%s2970_s11 + $0x1fb0] sm:$0xff]  ;;  %v1190_v15 = vld [vmem:[%s2970_s11 + $0x1b78] sm:$0xff] }
 0x21e   : > { %2418 = vmatprep.subr.mxu1 %v1234_v36  ;;  %2348 = vmatpush1.msra.mxu0 %v1105_v37  ;;  %v1193_v13 = vld [vmem:[%s2970_s11 + $0x1b90] sm:$0xff]  ;;  %v1318_v16 = vld [vmem:[%s2970_s11 + $0x1f78] sm:$0xff] }
 0x21f   : > { %2419 = vmatpush1.msra.mxu1 %v1233_v38  ;;  %2349 = vmatprep.subr.mxu0 %v1102_v39  ;;  %v1321_v14 = vld [vmem:[%s2970_s11 + $0x1f90] sm:$0xff]  ;;  %v1186_v19 = vld [vmem:[%s2970_s11 + $0x1b58] sm:$0xff] }
 0x220   : > { %2420 = vmatprep.subr.mxu1 %v1230_v40  ;;  %2350 = vmatpush1.msra.mxu0 %v1101_v41  ;;  %v1189_v17 = vld [vmem:[%s2970_s11 + $0x1b70] sm:$0xff]  ;;  %v1314_v20 = vld [vmem:[%s2970_s11 + $0x1f58] sm:$0xff] }
 0x221   : > { %2421 = vmatpush1.msra.mxu1 %v1229_v42  ;;  %2351 = vmatprep.subr.mxu0 %v1098_v43  ;;  %v1317_v18 = vld [vmem:[%s2970_s11 + $0x1f70] sm:$0xff]  ;;  %v1182_v23 = vld [vmem:[%s2970_s11 + $0x1b38] sm:$0xff] }
 0x222   : > { %2422 = vmatprep.subr.mxu1 %v1226_v44  ;;  %2352 = vmatpush1.msra.mxu0 %v1097_v45  ;;  %v1185_v21 = vld [vmem:[%s2970_s11 + $0x1b50] sm:$0xff]  ;;  %v1310_v24 = vld [vmem:[%s2970_s11 + $0x1f38] sm:$0xff] }
 0x223   : > { %2423 = vmatpush1.msra.mxu1 %v1225_v46  ;;  %2353 = vmatprep.subr.mxu0 %v1094_v47  ;;  %v1313_v22 = vld [vmem:[%s2970_s11 + $0x1f50] sm:$0xff]  ;;  %v1178_v27 = vld [vmem:[%s2970_s11 + $0x1b18] sm:$0xff] }
 0x224   : > { %2424 = vmatprep.subr.mxu1 %v1222_v48  ;;  %2354 = vmatpush1.msra.mxu0 %v1093_v49  ;;  %v1181_v25 = vld [vmem:[%s2970_s11 + $0x1b30] sm:$0xff]  ;;  %v1306_v28 = vld [vmem:[%s2970_s11 + $0x1f18] sm:$0xff] }
 0x225   : > { %2425 = vmatpush1.msra.mxu1 %v1221_v50  ;;  %2355 = vmatprep.subr.mxu0 %v1090_v51  ;;  %v1309_v26 = vld [vmem:[%s2970_s11 + $0x1f30] sm:$0xff]  ;;  %v1174_v31 = vld [vmem:[%s2970_s11 + $0x1af8] sm:$0xff] }
 0x226   : > { %2426 = vmatprep.subr.mxu1 %v1218_v52  ;;  %2356 = vmatpush1.msra.mxu0 %v1089_v53  ;;  %v1177_v29 = vld [vmem:[%s2970_s11 + $0x1b10] sm:$0xff]  ;;  %v1302_v32 = vld [vmem:[%s2970_s11 + $0x1ef8] sm:$0xff] }
 0x227   : > { %2427 = vmatpush1.msra.mxu1 %v1217_v54  ;;  %2357 = vmatprep.subr.mxu0 %v1086_v55  ;;  %v1305_v30 = vld [vmem:[%s2970_s11 + $0x1f10] sm:$0xff]  ;;  %v1170_v35 = vld [vmem:[%s2970_s11 + $0x1ad8] sm:$0xff] }
 0x228   : > { %2428 = vmatprep.subr.mxu1 %v1214_v56  ;;  %2358 = vmatpush1.msra.mxu0 %v1085_v57  ;;  %v1173_v33 = vld [vmem:[%s2970_s11 + $0x1af0] sm:$0xff]  ;;  %v1298_v36 = vld [vmem:[%s2970_s11 + $0x1ed8] sm:$0xff] }
 0x229   : > { %2429 = vmatpush1.msra.mxu1 %v1213_v58  ;;  %2359 = vmatprep.subr.mxu0 %v1082_v59  ;;  %v1301_v34 = vld [vmem:[%s2970_s11 + $0x1ef0] sm:$0xff]  ;;  %v1166_v39 = vld [vmem:[%s2970_s11 + $0x1ab8] sm:$0xff] }
 0x22a   : > { %2430 = vmatprep.subr.mxu1 %v1210_v60  ;;  %2360 = vmatpush1.msra.mxu0 %v1081_v61  ;;  %v1169_v37 = vld [vmem:[%s2970_s11 + $0x1ad0] sm:$0xff]  ;;  %v1294_v40 = vld [vmem:[%s2970_s11 + $0x1eb8] sm:$0xff] }
 0x22b   : > { %2431 = vmatpush1.msra.mxu1 %v1209_v62  ;;  %2361 = vmatprep.subr.mxu0 %v1206_v63  ;;  %v1297_v38 = vld [vmem:[%s2970_s11 + $0x1ed0] sm:$0xff]  ;;  %v1162_v43 = vld [vmem:[%s2970_s11 + $0x1a98] sm:$0xff]  ;;  %v2757_v63 = vld [vmem:[%s2983_s23 + $0x68] sm:$0xff] }
 0x22c   : > { %2432 = vmatprep.subr.mxu1 %v1334_v0  ;;  %2362 = vmatpush2.msra.mxu0 %v1205_v1  ;;  %v1165_v41 = vld [vmem:[%s2970_s11 + $0x1ab0] sm:$0xff]  ;;  %v1290_v44 = vld [vmem:[%s2970_s11 + $0x1e98] sm:$0xff]  ;;  %v2759_v1 = vld [vmem:[%s2983_s23 + $0x60] sm:$0xff] }
 0x22d   : > { %2433 = vmatpush2.msra.mxu1 %v1333_v2  ;;  %2363 = vmatprep.subr.mxu0 %v1202_v3  ;;  %v1293_v42 = vld [vmem:[%s2970_s11 + $0x1eb0] sm:$0xff]  ;;  %v1158_v47 = vld [vmem:[%s2970_s11 + $0x1a78] sm:$0xff] }
 0x22e   : > { %2434 = vmatprep.subr.mxu1 %v1330_v4  ;;  %2364 = vmatpush2.msra.mxu0 %v1201_v5  ;;  %v1161_v45 = vld [vmem:[%s2970_s11 + $0x1a90] sm:$0xff]  ;;  %v1286_v48 = vld [vmem:[%s2970_s11 + $0x1e78] sm:$0xff] }
 0x22f   : > { %2435 = vmatpush2.msra.mxu1 %v1329_v6  ;;  %2365 = vmatprep.subr.mxu0 %v1198_v7  ;;  %v1289_v46 = vld [vmem:[%s2970_s11 + $0x1e90] sm:$0xff]  ;;  %v1154_v51 = vld [vmem:[%s2970_s11 + $0x1a58] sm:$0xff] }
 0x230   : > { %2436 = vmatprep.subr.mxu1 %v1326_v8  ;;  %2366 = vmatpush2.msra.mxu0 %v1197_v9  ;;  %v1157_v49 = vld [vmem:[%s2970_s11 + $0x1a70] sm:$0xff]  ;;  %v1282_v52 = vld [vmem:[%s2970_s11 + $0x1e58] sm:$0xff] }
 0x231   : > { %2437 = vmatpush2.msra.mxu1 %v1325_v10  ;;  %2367 = vmatprep.subr.mxu0 %v1194_v11  ;;  %v1285_v50 = vld [vmem:[%s2970_s11 + $0x1e70] sm:$0xff]  ;;  %v1150_v55 = vld [vmem:[%s2970_s11 + $0x1a38] sm:$0xff] }
 0x232   : > { %2438 = vmatprep.subr.mxu1 %v1322_v12  ;;  %2368 = vmatpush2.msra.mxu0 %v1193_v13  ;;  %v1153_v53 = vld [vmem:[%s2970_s11 + $0x1a50] sm:$0xff]  ;;  %v1278_v56 = vld [vmem:[%s2970_s11 + $0x1e38] sm:$0xff] }
 0x233   : > { %2439 = vmatpush2.msra.mxu1 %v1321_v14  ;;  %2369 = vmatprep.subr.mxu0 %v1190_v15  ;;  %v1281_v54 = vld [vmem:[%s2970_s11 + $0x1e50] sm:$0xff]  ;;  %v1146_v59 = vld [vmem:[%s2970_s11 + $0x1a18] sm:$0xff] }
 0x234   : > { %2440 = vmatprep.subr.mxu1 %v1318_v16  ;;  %2370 = vmatpush2.msra.mxu0 %v1189_v17  ;;  %v1149_v57 = vld [vmem:[%s2970_s11 + $0x1a30] sm:$0xff]  ;;  %v1274_v60 = vld [vmem:[%s2970_s11 + $0x1e18] sm:$0xff] }
 0x235   : > { %2441 = vmatpush2.msra.mxu1 %v1317_v18  ;;  %2371 = vmatprep.subr.mxu0 %v1186_v19  ;;  %v1277_v58 = vld [vmem:[%s2970_s11 + $0x1e30] sm:$0xff]  ;;  %v2758_v0 = vld [vmem:[%s2983_s23 + $0x78] sm:$0xff] }
 0x236   : > { %2442 = vmatprep.subr.mxu1 %v1314_v20  ;;  %2372 = vmatpush2.msra.mxu0 %v1185_v21  ;;  %v1145_v61 = vld [vmem:[%s2970_s11 + $0x1a10] sm:$0xff] }
 0x237   : > { %2443 = vmatpush2.msra.mxu1 %v1313_v22  ;;  %2373 = vmatprep.subr.mxu0 %v1182_v23  ;;  %v1273_v62 = vld [vmem:[%s2970_s11 + $0x1e10] sm:$0xff] }
 0x238   : > { %2444 = vmatprep.subr.mxu1 %v1310_v24  ;;  %2374 = vmatpush2.msra.mxu0 %v1181_v25  ;;  %v2760_v2 = vld [vmem:[%s2983_s23 + $0x70] sm:$0xff] }
 0x239   : > { %2445 = vmatpush2.msra.mxu1 %v1309_v26  ;;  %2375 = vmatprep.subr.mxu0 %v1178_v27 }
 0x23a   : > { %2446 = vmatprep.subr.mxu1 %v1306_v28  ;;  %2376 = vmatpush2.msra.mxu0 %v1177_v29  ;;  %v293_v28 = vld [vmem:[#allocation2 + $0x18] sm:$0xff] }
 0x23b   : > { %2447 = vmatpush2.msra.mxu1 %v1305_v30  ;;  %2377 = vmatprep.subr.mxu0 %v1174_v31 }
 0x23c   : > { %2448 = vmatprep.subr.mxu1 %v1302_v32  ;;  %2378 = vmatpush2.msra.mxu0 %v1173_v33  ;;  %v294_v32 = vld [vmem:[#allocation2 + $0x8] sm:$0xff] }
 0x23d   : > { %2449 = vmatpush2.msra.mxu1 %v1301_v34  ;;  %2379 = vmatprep.subr.mxu0 %v1170_v35 }
 0x23e   : > { %2450 = vmatprep.subr.mxu1 %v1298_v36  ;;  %2380 = vmatpush2.msra.mxu0 %v1169_v37 }
 0x23f   : > { %2451 = vmatpush2.msra.mxu1 %v1297_v38  ;;  %2381 = vmatprep.subr.mxu0 %v1166_v39 }
 0x240   : > { %2452 = vmatprep.subr.mxu1 %v1294_v40  ;;  %2382 = vmatpush2.msra.mxu0 %v1165_v41 }
 0x241   : > { %2453 = vmatpush2.msra.mxu1 %v1293_v42  ;;  %2383 = vmatprep.subr.mxu0 %v1162_v43 }
 0x242   : > { %2454 = vmatprep.subr.mxu1 %v1290_v44  ;;  %2384 = vmatpush2.msra.mxu0 %v1161_v45 }
 0x243   : > { %2455 = vmatpush2.msra.mxu1 %v1289_v46  ;;  %2385 = vmatprep.subr.mxu0 %v1158_v47 }
 0x244   : > { %2456 = vmatprep.subr.mxu1 %v1286_v48  ;;  %2386 = vmatpush2.msra.mxu0 %v1157_v49 }
 0x245   : > { %2457 = vmatpush2.msra.mxu1 %v1285_v50  ;;  %2387 = vmatprep.subr.mxu0 %v1154_v51 }
 0x246   : > { %2458 = vmatprep.subr.mxu1 %v1282_v52  ;;  %2388 = vmatpush2.msra.mxu0 %v1153_v53  ;;  %v1969_v3 = vpop.f32.mrf.mxu0 }
 0x247   : > { %2459 = vmatpush2.msra.mxu1 %v1281_v54  ;;  %2389 = vmatprep.subr.mxu0 %v1150_v55  ;;  %v2040_v4 = vpop.f32.mrf.mxu1 }
 0x248   : > { %2460 = vmatprep.subr.mxu1 %v1278_v56  ;;  %2390 = vmatpush2.msra.mxu0 %v1149_v57  ;;  %v1971_v5 = vpop.f32.mrf.mxu0  ;;  %v2041_v8 = vadd.f32 %v2040_v4, %v1969_v3 }
 0x249   : > { %2461 = vmatpush2.msra.mxu1 %v1277_v58  ;;  %2391 = vmatprep.subr.mxu0 %v1146_v59  ;;  %v2042_v7 = vpop.f32.mrf.mxu1 }
 0x24a   : > { %2462 = vmatprep.subr.mxu1 %v1274_v60  ;;  %2392 = vmatpush2.msra.mxu0 %v1145_v61  ;;  %v2043_v11 = vadd.f32 %v2042_v7, %v1971_v5 }
 0x24b   : > { %2393 = vmatprep.mubr.f32.mxu0 %v2757_v63  ;;  %2463 = vmatpush2.msra.mxu1 %v1273_v62 }
 0x24c   : > { %2464 = vmatprep.mubr.f32.mxu1 %v2758_v0  ;;  %2394 = vmatmul.mubr.f32.vlgmr.msra.gmra.mxu0 %v2759_v1 }
 0x24d   : > { %2465 = vmatmul.mubr.f32.vlgmr.msra.gmra.mxu1 %v2760_v2 }
 0x288   : > { %v2111_v6 = vpop.f32.mrf.mxu0 }
 0x289   : > { %v2112_v12 = vadd.f32 %v2111_v6, %v2041_v8 }
 0x28a   : > { %v2182_v9 = vpop.f32.mrf.mxu1  ;;  %v2113_v10 = vpop.f32.mrf.mxu0 }
 0x28b   : > { %v2114_v14 = vadd.f32 %v2113_v10, %v2043_v11  ;;  %v2183_v16 = vadd.f32 %v2182_v9, %v2112_v12 }
 0x28c   : > { %v2184_v15 = vpop.f32.mrf.mxu1 }
 0x28d   : > { %v2185_v19 = vadd.f32 %v2184_v15, %v2114_v14 }
 0x2ca   : > { %v2253_v13 = vpop.f32.mrf.mxu0 }
 0x2cb   : > { %v2254_v20 = vadd.f32 %v2253_v13, %v2183_v16 }
 0x2cc   : > { %v2324_v17 = vpop.f32.mrf.mxu1  ;;  %v2255_v18 = vpop.f32.mrf.mxu0 }
 0x2cd   : > { %v2256_v21 = vadd.f32 %v2255_v18, %v2185_v19  ;;  %v2325_v23 = vadd.f32 %v2324_v17, %v2254_v20 }
 0x2ce   : > { %v2326_v22 = vpop.f32.mrf.mxu1 }
 0x2cf   : > { %v2327_v26 = vadd.f32 %v2326_v22, %v2256_v21 }
 0x30c   : > { %v2395_v24 = vpop.f32.mrf.mxu0 }
 0x30d   : > { %v2466_v25 = vpop.f32.mrf.mxu1  ;;  %v2396_v27 = vadd.f32 %v2395_v24, %v2325_v23 }
 0x30e   : > { %v2397_v29 = vpop.f32.mrf.mxu0 }
 0x30f   : > { %v2467_v30 = vadd.f32 %v2466_v25, %v2396_v27  ;;  %v2398_v31 = vadd.f32 %v2397_v29, %v2327_v26  ;;  %v2468_v33 = vpop.f32.mrf.mxu1 }
 0x311   : > { %v2473_v34 = vadd.f32 %v2467_v30, %v293_v28  ;;  %v2469_v35 = vadd.f32 %v2468_v33, %v2398_v31  ;;  %2482 = sbr.rel (%p2666_p11) target bundleno = 804 (0x324), region = 44 }
 0x313   : > { %2477 = vst [vmem:[#allocation2 + $0x18] sm:$0xff] %v2473_v34  ;;  %v2474_v36 = vadd.f32 %v2469_v35, %v294_v32 }
 0x315   : > { %2478 = vst [vmem:[#allocation2 + $0x8] sm:$0xff] %v2474_v36 }
 0x316   : > { %v2489_v37 = vlaneseq  ;;  %v2487_v39 = vld [vmem:[%s271_s30] sm:$0xf]  ;;  %v2483_v40 = vld [vmem:[#allocation2 + $0x10] sm:$0xff] }
 0x317   : > { %v2484_v45 = vld [vmem:[#allocation2] sm:$0xff] }
 0x318   : > { %v2490_v38 = vshrl.u32 %v2489_v37, 7 }
 0x31a   : > { %v2491_v41 = vsub.s32 0, %v2490_v38  ;;  %v2495_v42 = vsub.s32 1, %v2490_v38  ;;  %v2499_v43 = vsub.s32 2, %v2490_v38  ;;  %v2503_v44 = vsub.s32 3, %v2490_v38  ;;  %v2485_v46 = vld [vmem:[#allocation2 + $0x18] sm:$0xff] }
 0x31c   : > { %v2486_v47 = vld [vmem:[#allocation2 + $0x8] sm:$0xff]  ;;  %v2492_v48 = vrot.slane %v2487_v39, %v2491_v41  ;;  %v2496_v49 = vrot.slane %v2487_v39, %v2495_v42  ;;  %v2500_v50 = vrot.slane %v2487_v39, %v2499_v43  ;;  %v2504_v51 = vrot.slane %v2487_v39, %v2503_v44 }
 0x31e   : > { %v2509_v52 = vadd.f32 %v2492_v48, %v2483_v40  ;;  %v2510_v53 = vadd.f32 %v2496_v49, %v2484_v45  ;;  %v2511_v54 = vadd.f32 %v2500_v50, %v2485_v46  ;;  %v2512_v55 = vadd.f32 %v2504_v51, %v2486_v47 }
 0x320   : > { %v2513_v56 = vmax.f32 %v2509_v52, 0.0  ;;  %v2514_v57 = vmax.f32 %v2510_v53, 0.0  ;;  %v2515_v58 = vmax.f32 %v2511_v54, 0.0  ;;  %v2516_v59 = vmax.f32 %v2512_v55, 0.0 }
 0x322   : > { %2517 = vst [vmem:[%s2993_s29] sm:$0xff] %v2513_v56  ;;  %2518 = vst [vmem:[%s2993_s29 + $0x8] sm:$0xff] %v2514_v57 }
 0x323   : > { %2519 = vst [vmem:[%s2993_s29 + $0x10] sm:$0xff] %v2515_v58  ;;  %2520 = vst [vmem:[%s2993_s29 + $0x18] sm:$0xff] %v2516_v59 }
 0x324 PF: > { %s16_s19 = sadd.s32 1, %s2855_s19   ;;  %s4093_s12 = smov %s2831_s13 }
 0x325   : > { %p13_p12 = scmp.ge.s32.totalorder %s16_s19, 30   ;;  %s4094_s13 = smov %s2835_s14 }
 0x326   : > { %s4095_s14 = smov %s2949_s5  ;;  %s4096_s15 = smov %s2847_s17 }
 0x327   : > { %s4097_s16 = smov %s2851_s18  ;;  %s4098_s17 = smov %s4101_s21 }
 0x328   : > { %s4099_s18 = smov %s4105_s22  ;;  %15 = sbr.rel (!%p13_p12) target bundleno = 5 (0x5), region = 86 }
 0x32d   :  { %2551 = vsyncpa [#allocation4], 1 }
 0x32e   :  { %2553 = vsyncpa [#allocation4 + $0x1], 1 }

</bundles_post_ra>
